<compile_context>
chip_gen: v7x
topology: tpu7x:2x2x1
jax: 0.10.0
libtpu: 0.0.40
codegen_flags: <defaults>
</compile_context>

<pallas_src>
import functools

import jax
import jax.numpy as jnp
from jax.experimental import pallas as pl
from jax.experimental.pallas import tpu as pltpu


# --------------------------------------------------------------------------- #
# helpers
# --------------------------------------------------------------------------- #
def _round_up(x, m):
    return (x + m - 1) // m * m


_VMEM_LIMIT = 48 * 1024 * 1024   # <= physical VMEM on v5e/v6e (128 MiB) and v7x (64 MiB)


# --------------------------------------------------------------------------- #
# Pallas kernels
# --------------------------------------------------------------------------- #
def _tap_gemm_kernel(a_ref, w_ref, bias_ref, o_ref, acc_ref, *, relu):
    """Tap-streamed GEMM step: accumulate tap t, fused epilogue on the last tap.

    a_ref   : (tm, Kt)     bf16  streamed activation tap tile
    w_ref   : (T, Kt, Np)  bf16  folded weight, resident in VMEM for the call
    bias_ref: (1, Np)      f32   folded BN shift / bias
    o_ref   : (tm, Np)           output tile (bf16 or f32)
    acc_ref : (tm, Np)     f32   VMEM accumulator scratch
    """
    t = pl.program_id(1)

    @pl.when(t == 0)
    def _():
        acc_ref[...] = jnp.zeros_like(acc_ref)

    acc_ref[...] += jnp.dot(a_ref[...], w_ref[t],
                            preferred_element_type=jnp.float32)

    @pl.when(t == pl.num_programs(1) - 1)
    def _():
        r = acc_ref[...] + bias_ref[...]
        if relu:
            r = jnp.maximum(r, 0.0)
        o_ref[...] = r.astype(o_ref.dtype)


def _tap_gemm_res_kernel(a_ref, w_ref, bias_ref, res_ref, o_ref, acc_ref):
    """Same as above, plus residual add + ReLU in the epilogue (block conv2)."""
    t = pl.program_id(1)

    @pl.when(t == 0)
    def _():
        acc_ref[...] = jnp.zeros_like(acc_ref)

    acc_ref[...] += jnp.dot(a_ref[...], w_ref[t],
                            preferred_element_type=jnp.float32)

    @pl.when(t == pl.num_programs(1) - 1)
    def _():
        r = acc_ref[...] + bias_ref[...] + res_ref[...].astype(jnp.float32)
        o_ref[...] = jnp.maximum(r, 0.0).astype(o_ref.dtype)


def _max_taps_kernel(x_ref, o_ref):
    """Elementwise max over the leading tap axis of a lane-dense slab."""
    m = x_ref[0]
    for j in range(1, x_ref.shape[0]):
        m = jnp.maximum(m, x_ref[j])
    o_ref[...] = m


def _mean_axis1_kernel(x_ref, o_ref):
    """Global average pool over the H*W axis of an (8, H*W, C) slab (f32 out)."""
    o_ref[...] = jnp.mean(x_ref[...].astype(jnp.float32), axis=1)


# --------------------------------------------------------------------------- #
# Wrappers
# --------------------------------------------------------------------------- #
def tap_gemm(a, w_taps, bias_row, *, relu, residual=None,
             out_dtype=jnp.bfloat16, tm_cap=256):
    """out = act(sum_t a[t] @ w_taps[t] + bias [+ residual]).

    a        : (T, M, Kt) activations (cast to bf16 here)
    w_taps   : (T, Kt, Np) bf16 pre-folded weight (kept resident in VMEM)
    bias_row : (1, Np) f32
    residual : optional (M, Np), added (in f32) before the final ReLU
    Returns (M, Np) in out_dtype.
    """
    T, M, Kt = a.shape
    Tw, Kw, Np = w_taps.shape
    assert (Tw, Kw) == (T, Kt)

    # tm cap: 256 fits v5e's small scoped VMEM and still feeds v6e/v7x MXUs.
    tm = min(tm_cap, _round_up(M, 8))
    Mp = _round_up(M, tm)
    a_p = jnp.pad(a, ((0, 0), (0, Mp - M), (0, 0))).astype(jnp.bfloat16)

    in_specs = [
        # streamed activation tap tile (tap axis is the reduction grid axis)
        pl.BlockSpec((None, tm, Kt), lambda i, t: (t, i, 0)),
        # full folded weight: constant block index -> fetched once, VMEM-resident
        pl.BlockSpec((T, Kt, Np), lambda i, t: (0, 0, 0)),
        pl.BlockSpec((1, Np), lambda i, t: (0, 0)),
    ]
    args = [a_p, w_taps, bias_row]

    if residual is not None:
        res_p = jnp.pad(residual.astype(jnp.bfloat16),
                        ((0, Mp - residual.shape[0]), (0, 0)))
        in_specs.append(pl.BlockSpec((tm, Np), lambda i, t: (i, 0)))
        args.append(res_p)
        kernel = _tap_gemm_res_kernel
    else:
        kernel = functools.partial(_tap_gemm_kernel, relu=relu)

    out_itemsize = 4 if out_dtype == jnp.float32 else 2
    flops = 2 * Mp * Np * Kt * T
    bytes_acc = (a_p.size * 2 + w_taps.size * 2 + bias_row.size * 4
                 + Mp * Np * out_itemsize
                 + (Mp * Np * 2 if residual is not None else 0))

    out = pl.pallas_call(
        kernel,
        out_shape=jax.ShapeDtypeStruct((Mp, Np), out_dtype),
        grid_spec=pltpu.PrefetchScalarGridSpec(
            num_scalar_prefetch=0,
            grid=(Mp // tm, T),                      # tap (reduction) axis innermost
            in_specs=in_specs,
            out_specs=pl.BlockSpec((tm, Np), lambda i, t: (i, 0)),
            scratch_shapes=[pltpu.VMEM((tm, Np), jnp.float32)],
        ),
        compiler_params=pltpu.CompilerParams(
            dimension_semantics=("parallel", "arbitrary"),
            vmem_limit_bytes=_VMEM_LIMIT,
        ),
        cost_estimate=pl.CostEstimate(
            flops=flops, transcendentals=0, bytes_accessed=bytes_acc),
    )(*args)
    return out[:M]


def conv2d_fused(x, w_taps, bias_row, kh, kw, stride, padding, *,
                 relu, residual=None):
    """Conv (+folded BN) (+residual) (+ReLU) as a tap-streamed Pallas GEMM.

    x: (N, H, W, C) bf16 NHWC.  w_taps: (T, Kt, Cout) bf16 prepared weight,
    either T == kh*kw with Kt == C (per-tap streaming) or T == 1 with
    Kt == kh*kw*C (grouped, used for the 7x7 stem conv where C == 3).
    """
    N, H, W, C = x.shape
    T, Kt, Cout = w_taps.shape
    x_p = jnp.pad(x, ((0, 0), (padding, padding), (padding, padding), (0, 0)))
    Ho = (H + 2 * padding - kh) // stride + 1
    Wo = (W + 2 * padding - kw) // stride + 1
    M = N * Ho * Wo

    # TODO(synk): the tap slab below is still one XLA-materialized bf16 copy of
    # the activations (kh*kw x for 3x3); fully eliminating it needs manual halo
    # DMA from a pl.ANY input (element-offset indexing), left out for robustness.
    taps = []
    for di in range(kh):
        for dj in range(kw):
            taps.append(
                x_p[:, di:di + stride * (Ho - 1) + 1:stride,
                       dj:dj + stride * (Wo - 1) + 1:stride, :].reshape(M, C))
    if T == kh * kw:                       # per-tap reduction axis, Kt == C
        a = jnp.stack(taps, axis=0)
    else:                                  # grouped full-K (stem conv, T == 1)
        a = jnp.concatenate(taps, axis=1)[None]

    res2d = None
    if residual is not None:
        res2d = residual.reshape(M, Cout)

    out = tap_gemm(a, w_taps, bias_row, relu=relu, residual=res2d)
    return out.reshape(N, Ho, Wo, Cout)


def maxpool2d(x, k=3, stride=2, padding=1):
    """3x3/s2 max pool: lane-dense (taps, rows, 128) slab -> Pallas tap-max."""
    N, H, W, C = x.shape
    x_p = jnp.pad(
        x, ((0, 0), (padding, padding), (padding, padding), (0, 0)),
        constant_values=-jnp.inf,
    )
    Ho = (H + 2 * padding - k) // stride + 1
    Wo = (W + 2 * padding - k) // stride + 1
    M = N * Ho * Wo
    L = M * C

    taps = []
    for di in range(k):
        for dj in range(k):
            s = x_p[:, di:di + stride * (Ho - 1) + 1:stride,
                       dj:dj + stride * (Wo - 1) + 1:stride, :]
            taps.append(s.reshape(L))

    rows = _round_up(L, 128) // 128
    tr = min(256, _round_up(rows, 8))
    rows_p = _round_up(rows, tr)
    Lp = rows_p * 128

    a = jnp.stack(taps, axis=0)                                  # (k*k, L) bf16
    a = jnp.pad(a, ((0, 0), (0, Lp - L)), constant_values=-jnp.inf)
    a = a.reshape(k * k, rows_p, 128)

    out = pl.pallas_call(
        _max_taps_kernel,
        out_shape=jax.ShapeDtypeStruct((rows_p, 128), x.dtype),
        grid_spec=pltpu.PrefetchScalarGridSpec(
            num_scalar_prefetch=0,
            grid=(rows_p // tr,),
            in_specs=[pl.BlockSpec((k * k, tr, 128), lambda i: (0, i, 0))],
            out_specs=pl.BlockSpec((tr, 128), lambda i: (i, 0)),
        ),
        compiler_params=pltpu.CompilerParams(dimension_semantics=("parallel",)),
    )(a)
    return out.reshape(-1)[:L].reshape(N, Ho, Wo, C)


def global_avg_pool(x):
    """Gridded global average pool: (N, H, W, C) bf16 -> (N, C) f32."""
    N, H, W, C = x.shape
    HW = H * W
    Np8 = _round_up(N, 8)
    xr = jnp.pad(x.reshape(N, HW, C), ((0, Np8 - N), (0, 0), (0, 0)))

    out = pl.pallas_call(
        _mean_axis1_kernel,
        out_shape=jax.ShapeDtypeStruct((Np8, C), jnp.float32),
        grid_spec=pltpu.PrefetchScalarGridSpec(
            num_scalar_prefetch=0,
            grid=(Np8 // 8,),
            in_specs=[pl.BlockSpec((8, HW, C), lambda i: (i, 0, 0))],
            out_specs=pl.BlockSpec((8, C), lambda i: (i, 0)),
        ),
        compiler_params=pltpu.CompilerParams(dimension_semantics=("parallel",)),
    )(xr)
    return out[:N]


# --------------------------------------------------------------------------- #
# ResNet18 structure, deterministic init, and inference-time weight folding
# --------------------------------------------------------------------------- #
# (cin, cout, stride) per BasicBlock, in order (layer1..layer4, 2 blocks each)
BLOCK_CFG = [
    (64, 64, 1), (64, 64, 1),
    (64, 128, 2), (128, 128, 1),
    (128, 256, 2), (256, 256, 1),
    (256, 512, 2), (512, 512, 1),
]


def _init_conv(key, o, c, kh, kw):
    std = (2.0 / (c * kh * kw)) ** 0.5
    return std * jax.random.normal(key, (o, c, kh, kw), jnp.float32)


def _init_bn(key, c):
    k1, k2, k3, k4 = jax.random.split(key, 4)
    return {
        "gamma": 1.0 + 0.1 * jax.random.normal(k1, (c,), jnp.float32),
        "beta": 0.1 * jax.random.normal(k2, (c,), jnp.float32),
        "mean": 0.1 * jax.random.normal(k3, (c,), jnp.float32),
        "var": 1.0 + 0.1 * jax.random.uniform(k4, (c,), jnp.float32),
    }


def _init_block(key, cin, cout, stride):
    ks = jax.random.split(key, 6)
    p = {
        "conv1": _init_conv(ks[0], cout, cin, 3, 3),
        "bn1": _init_bn(ks[1], cout),
        "conv2": _init_conv(ks[2], cout, cout, 3, 3),
        "bn2": _init_bn(ks[3], cout),
    }
    if stride != 1 or cin != cout:
        p["ds_conv"] = _init_conv(ks[4], cout, cin, 1, 1)
        p["ds_bn"] = _init_bn(ks[5], cout)
    return p


def init_resnet18_params(key, num_classes=10):
    counter = iter(range(10_000))

    def nk():
        return jax.random.fold_in(key, next(counter))

    params = {
        "conv1": _init_conv(nk(), 64, 3, 7, 7),
        "bn1": _init_bn(nk(), 64),
        "blocks": [_init_block(nk(), cin, cout, s) for (cin, cout, s) in BLOCK_CFG],
    }
    bound = 1.0 / (512.0 ** 0.5)
    params["fc_w"] = jax.random.uniform(
        nk(), (num_classes, 512), jnp.float32, -bound, bound)
    params["fc_b"] = jax.random.uniform(
        nk(), (num_classes,), jnp.float32, -bound, bound)
    return params


def _fold_conv_bn(w, bn=None, eps=1e-5, group_taps=False):
    """(O,C,kh,kw) conv (+BN) -> ((T, Kt, O) bf16 weight, (1, O) f32 bias).

    T = kh*kw, Kt = C (per-tap streaming) unless group_taps, then T = 1 and
    Kt = kh*kw*C.  BN folding is done in f32 before the bf16 cast.
    """
    O, C, kh, kw = w.shape
    w_t = jnp.transpose(w, (2, 3, 1, 0)).reshape(kh * kw, C, O)   # tap-major
    if bn is None:
        bias = jnp.zeros((O,), jnp.float32)
    else:
        scale = bn["gamma"] / jnp.sqrt(bn["var"] + eps)
        bias = bn["beta"] - bn["mean"] * scale
        w_t = w_t * scale[None, None, :]
    if group_taps:
        w_t = w_t.reshape(1, kh * kw * C, O)
    return w_t.astype(jnp.bfloat16), bias.reshape(1, O).astype(jnp.float32)


def prepare_inference_params(params, num_classes=10):
    """Fold BN into conv weights; build per-tap (T, Kt, O) bf16 GEMM weights once."""
    prep = {"num_classes": num_classes}
    # 7x7 stem: C=3 per tap is too small for the MXU -> single grouped K=147 tap.
    prep["conv1_w"], prep["conv1_b"] = _fold_conv_bn(
        params["conv1"], params["bn1"], group_taps=True)

    prep["blocks"] = []
    for p in params["blocks"]:
        bp = {}
        bp["w1"], bp["b1"] = _fold_conv_bn(p["conv1"], p["bn1"])
        bp["w2"], bp["b2"] = _fold_conv_bn(p["conv2"], p["bn2"])
        if "ds_conv" in p:
            bp["w_ds"], bp["b_ds"] = _fold_conv_bn(p["ds_conv"], p["ds_bn"])
        prep["blocks"].append(bp)

    # FC: pad the class dim to 128 lanes (sliced off after the GEMM).
    ncp = _round_up(num_classes, 128)
    fc_w = jnp.zeros((512, ncp), jnp.float32).at[:, :num_classes].set(
        params["fc_w"].T)
    fc_b = jnp.zeros((ncp,), jnp.float32).at[:num_classes].set(params["fc_b"])
    prep["fc_w"] = fc_w[None].astype(jnp.bfloat16)     # (1, 512, ncp)
    prep["fc_b"] = fc_b.reshape(1, ncp)
    return prep


def basic_block(x, bp, stride):
    # conv1 + BN + ReLU fused into one tap-streamed GEMM
    out = conv2d_fused(x, bp["w1"], bp["b1"], 3, 3, stride, 1, relu=True)
    # downsample path (1x1 conv + BN), no activation
    if "w_ds" in bp:
        identity = conv2d_fused(x, bp["w_ds"], bp["b_ds"], 1, 1, stride, 0,
                                relu=False)
    else:
        identity = x
    # conv2 + BN + residual add + ReLU fused into the GEMM epilogue
    return conv2d_fused(out, bp["w2"], bp["b2"], 3, 3, 1, 1,
                        relu=False, residual=identity)


def resnet18_forward(prep, x_nchw):
    # NCHW -> NHWC; activations are bf16 end-to-end, accumulation stays f32.
    x = jnp.transpose(x_nchw, (0, 2, 3, 1)).astype(jnp.bfloat16)
    x = conv2d_fused(x, prep["conv1_w"], prep["conv1_b"], 7, 7, 2, 3, relu=True)
    x = maxpool2d(x, k=3, stride=2, padding=1)
    for bp, (_, _, stride) in zip(prep["blocks"], BLOCK_CFG):
        x = basic_block(x, bp, stride)
    feat = global_avg_pool(x)                                  # (N, 512) f32
    logits = tap_gemm(feat.astype(jnp.bfloat16)[None], prep["fc_w"],
                      prep["fc_b"], relu=False, out_dtype=jnp.float32)
    return logits[:, :prep["num_classes"]]


# --------------------------------------------------------------------------- #
if __name__ == "__main__":
    key = jax.random.PRNGKey(0)
    params = init_resnet18_params(key, num_classes=10)
    prep = prepare_inference_params(params, num_classes=10)

    x = jax.random.normal(jax.random.fold_in(key, 12345), (2, 3, 32, 32),
                          jnp.float32)

    fwd = jax.jit(functools.partial(resnet18_forward, prep))
    logits = fwd(x)
    jax.block_until_ready(logits)

    assert logits.shape == (2, 10), logits.shape
    assert logits.dtype == jnp.float32
    assert bool(jnp.all(jnp.isfinite(logits)))
    print("KERNEL_OK")
</pallas_src>

<mosaic_0001>
module attributes {stable_mosaic.version = 11 : i64} {
  func.func @_tap_gemm_kernel(%arg0: i32, %arg1: i32, %arg2: memref<1x256x147xbf16, #tpu.memory_space<vmem>>, %arg3: memref<1x147x64xbf16, #tpu.memory_space<vmem>>, %arg4: memref<1x64xf32, #tpu.memory_space<vmem>>, %arg5: memref<256x64xbf16, #tpu.memory_space<vmem>>, %arg6: memref<256x64xf32, #tpu.memory_space<vmem>>) attributes {dimension_semantics = [#tpu.dimension_semantics<parallel>, #tpu.dimension_semantics<arbitrary>], iteration_bounds = array<i64: 2, 1>, scalar_prefetch = 0 : i64, scratch_operands = 1 : i64, tpu.core_type = #tpu.core_type<tc>, window_params = [{transform_indices = @transform_0, window_bounds = array<i64: 1, 256, 147>}, {pipeline_mode = #tpu.pipeline_mode<synchronous>, transform_indices = @transform_1, window_bounds = array<i64: 1, 147, 64>}, {pipeline_mode = #tpu.pipeline_mode<synchronous>, transform_indices = @transform_2, window_bounds = array<i64: 1, 64>}, {transform_indices = @transform_3, window_bounds = array<i64: 256, 64>}]} {
    %c0_i32 = arith.constant 0 : i32
    %0 = arith.cmpi eq, %arg1, %c0_i32 : i32
    %1 = arith.extui %0 : i1 to i32
    %c0_i32_0 = arith.constant 0 : i32
    %2 = arith.cmpi ne, %1, %c0_i32_0 : i32
    scf.if %2 {
      %cst_11 = arith.constant 0.000000e+00 : f32
      %15 = vector.broadcast %cst_11 : f32 to vector<256x64xf32>
      %c0_12 = arith.constant 0 : index
      %c0_13 = arith.constant 0 : index
      %16 = vector.load %arg6[%c0_12, %c0_13] : memref<256x64xf32, #tpu.memory_space<vmem>>, vector<256x64xf32>
      tpu.vector_store %arg6[%c0_12, %c0_13], %15 {strides = array<i32>} : memref<256x64xf32, #tpu.memory_space<vmem>>, vector<256x64xf32>,
    } else {
    }
    %c0 = arith.constant 0 : index
    %c0_1 = arith.constant 0 : index
    %3 = vector.load %arg6[%c0, %c0_1] : memref<256x64xf32, #tpu.memory_space<vmem>>, vector<256x64xf32>
    %c0_2 = arith.constant 0 : index
    %c0_3 = arith.constant 0 : index
    %c0_4 = arith.constant 0 : index
    %4 = vector.load %arg2[%c0_2, %c0_3, %c0_4] : memref<1x256x147xbf16, #tpu.memory_space<vmem>>, vector<1x256x147xbf16>
    %5 = vector.shape_cast %4 : vector<1x256x147xbf16> to vector<256x147xbf16>
    %6 = arith.index_cast %arg1 : i32 to index
    %c0_5 = arith.constant 0 : index
    %c0_6 = arith.constant 0 : index
    %7 = vector.load %arg3[%6, %c0_5, %c0_6] : memref<1x147x64xbf16, #tpu.memory_space<vmem>>, vector<1x147x64xbf16>
    %8 = vector.shape_cast %7 : vector<1x147x64xbf16> to vector<147x64xbf16>
    %cst = arith.constant dense<0.000000e+00> : vector<256x64xf32>
    %9 = tpu.matmul %5, %8, %cst {dimension_numbers = #tpu.dot_dimension_numbers<[1], [0], [0], [1], [0, 0, 1, 1], [], []>} : vector<256x147xbf16>, vector<147x64xbf16>, vector<256x64xf32> -> vector<256x64xf32>
    %10 = arith.addf %3, %9 : vector<256x64xf32>
    %c0_7 = arith.constant 0 : index
    %c0_8 = arith.constant 0 : index
    %11 = vector.load %arg6[%c0_7, %c0_8] : memref<256x64xf32, #tpu.memory_space<vmem>>, vector<256x64xf32>
    tpu.vector_store %arg6[%c0_7, %c0_8], %10 {strides = array<i32>} : memref<256x64xf32, #tpu.memory_space<vmem>>, vector<256x64xf32>,
    %c0_i32_9 = arith.constant 0 : i32
    %12 = arith.cmpi eq, %arg1, %c0_i32_9 : i32
    %13 = arith.extui %12 : i1 to i32
    %c0_i32_10 = arith.constant 0 : i32
    %14 = arith.cmpi ne, %13, %c0_i32_10 : i32
    scf.if %14 {
      %c0_11 = arith.constant 0 : index
      %c0_12 = arith.constant 0 : index
      %15 = vector.load %arg6[%c0_11, %c0_12] : memref<256x64xf32, #tpu.memory_space<vmem>>, vector<256x64xf32>
      %c0_13 = arith.constant 0 : index
      %c0_14 = arith.constant 0 : index
      %16 = vector.load %arg4[%c0_13, %c0_14] : memref<1x64xf32, #tpu.memory_space<vmem>>, vector<1x64xf32>
      %17 = vector.broadcast %16 : vector<1x64xf32> to vector<256x64xf32>
      %18 = arith.addf %15, %17 : vector<256x64xf32>
      %cst_15 = arith.constant 0.000000e+00 : f32
      %19 = vector.broadcast %cst_15 : f32 to vector<256x64xf32>
      %20 = arith.maximumf %18, %19 : vector<256x64xf32>
      %21 = arith.truncf %20 : vector<256x64xf32> to vector<256x64xbf16>
      %c0_16 = arith.constant 0 : index
      %c0_17 = arith.constant 0 : index
      %22 = vector.load %arg5[%c0_16, %c0_17] : memref<256x64xbf16, #tpu.memory_space<vmem>>, vector<256x64xbf16>
      tpu.vector_store %arg5[%c0_16, %c0_17], %21 {strides = array<i32>} : memref<256x64xbf16, #tpu.memory_space<vmem>>, vector<256x64xbf16>,
    } else {
    }
    return
  }
  func.func @transform_0(%arg0: i32, %arg1: i32) -> (i32, i32, i32) {
    %c0_i32 = arith.constant 0 : i32
    %c0_i32_0 = arith.constant 0 : i32
    return %arg1, %arg0, %c0_i32 : i32, i32, i32
  }
  func.func @transform_1(%arg0: i32, %arg1: i32) -> (i32, i32, i32) {
    %c0_i32 = arith.constant 0 : i32
    %c0_i32_0 = arith.constant 0 : i32
    %c0_i32_1 = arith.constant 0 : i32
    %c0_i32_2 = arith.constant 0 : i32
    return %c0_i32, %c0_i32_0, %c0_i32_1 : i32, i32, i32
  }
  func.func @transform_2(%arg0: i32, %arg1: i32) -> (i32, i32) {
    %c0_i32 = arith.constant 0 : i32
    %c0_i32_0 = arith.constant 0 : i32
    %c0_i32_1 = arith.constant 0 : i32
    return %c0_i32, %c0_i32_0 : i32, i32
  }
  func.func @transform_3(%arg0: i32, %arg1: i32) -> (i32, i32) {
    %c0_i32 = arith.constant 0 : i32
    %c0_i32_0 = arith.constant 0 : i32
    return %arg0, %c0_i32 : i32, i32
  }
}

module attributes {stable_mosaic.version = 11 : i64} {
  func.func @_max_taps_kernel(%arg0: i32, %arg1: memref<9x64x128xbf16, #tpu.memory_space<vmem>>, %arg2: memref<64x128xbf16, #tpu.memory_space<vmem>>) attributes {dimension_semantics = [#tpu.dimension_semantics<parallel>], iteration_bounds = array<i64: 1>, scalar_prefetch = 0 : i64, scratch_operands = 0 : i64, tpu.core_type = #tpu.core_type<tc>, window_params = [{transform_indices = @transform_0, window_bounds = array<i64: 9, 64, 128>}, {transform_indices = @transform_1, window_bounds = array<i64: 64, 128>}]} {
    %c0 = arith.constant 0 : index
    %c0_0 = arith.constant 0 : index
    %c0_1 = arith.constant 0 : index
    %0 = vector.load %arg1[%c0, %c0_0, %c0_1] : memref<9x64x128xbf16, #tpu.memory_space<vmem>>, vector<1x64x128xbf16>
    %1 = vector.shape_cast %0 : vector<1x64x128xbf16> to vector<64x128xbf16>
    %c1 = arith.constant 1 : index
    %c0_2 = arith.constant 0 : index
    %c0_3 = arith.constant 0 : index
    %2 = vector.load %arg1[%c1, %c0_2, %c0_3] : memref<9x64x128xbf16, #tpu.memory_space<vmem>>, vector<1x64x128xbf16>
    %3 = vector.shape_cast %2 : vector<1x64x128xbf16> to vector<64x128xbf16>
    %4 = arith.maximumf %1, %3 : vector<64x128xbf16>
    %c2 = arith.constant 2 : index
    %c0_4 = arith.constant 0 : index
    %c0_5 = arith.constant 0 : index
    %5 = vector.load %arg1[%c2, %c0_4, %c0_5] : memref<9x64x128xbf16, #tpu.memory_space<vmem>>, vector<1x64x128xbf16>
    %6 = vector.shape_cast %5 : vector<1x64x128xbf16> to vector<64x128xbf16>
    %7 = arith.maximumf %4, %6 : vector<64x128xbf16>
    %c3 = arith.constant 3 : index
    %c0_6 = arith.constant 0 : index
    %c0_7 = arith.constant 0 : index
    %8 = vector.load %arg1[%c3, %c0_6, %c0_7] : memref<9x64x128xbf16, #tpu.memory_space<vmem>>, vector<1x64x128xbf16>
    %9 = vector.shape_cast %8 : vector<1x64x128xbf16> to vector<64x128xbf16>
    %10 = arith.maximumf %7, %9 : vector<64x128xbf16>
    %c4 = arith.constant 4 : index
    %c0_8 = arith.constant 0 : index
    %c0_9 = arith.constant 0 : index
    %11 = vector.load %arg1[%c4, %c0_8, %c0_9] : memref<9x64x128xbf16, #tpu.memory_space<vmem>>, vector<1x64x128xbf16>
    %12 = vector.shape_cast %11 : vector<1x64x128xbf16> to vector<64x128xbf16>
    %13 = arith.maximumf %10, %12 : vector<64x128xbf16>
    %c5 = arith.constant 5 : index
    %c0_10 = arith.constant 0 : index
    %c0_11 = arith.constant 0 : index
    %14 = vector.load %arg1[%c5, %c0_10, %c0_11] : memref<9x64x128xbf16, #tpu.memory_space<vmem>>, vector<1x64x128xbf16>
    %15 = vector.shape_cast %14 : vector<1x64x128xbf16> to vector<64x128xbf16>
    %16 = arith.maximumf %13, %15 : vector<64x128xbf16>
    %c6 = arith.constant 6 : index
    %c0_12 = arith.constant 0 : index
    %c0_13 = arith.constant 0 : index
    %17 = vector.load %arg1[%c6, %c0_12, %c0_13] : memref<9x64x128xbf16, #tpu.memory_space<vmem>>, vector<1x64x128xbf16>
    %18 = vector.shape_cast %17 : vector<1x64x128xbf16> to vector<64x128xbf16>
    %19 = arith.maximumf %16, %18 : vector<64x128xbf16>
    %c7 = arith.constant 7 : index
    %c0_14 = arith.constant 0 : index
    %c0_15 = arith.constant 0 : index
    %20 = vector.load %arg1[%c7, %c0_14, %c0_15] : memref<9x64x128xbf16, #tpu.memory_space<vmem>>, vector<1x64x128xbf16>
    %21 = vector.shape_cast %20 : vector<1x64x128xbf16> to vector<64x128xbf16>
    %22 = arith.maximumf %19, %21 : vector<64x128xbf16>
    %c8 = arith.constant 8 : index
    %c0_16 = arith.constant 0 : index
    %c0_17 = arith.constant 0 : index
    %23 = vector.load %arg1[%c8, %c0_16, %c0_17] : memref<9x64x128xbf16, #tpu.memory_space<vmem>>, vector<1x64x128xbf16>
    %24 = vector.shape_cast %23 : vector<1x64x128xbf16> to vector<64x128xbf16>
    %25 = arith.maximumf %22, %24 : vector<64x128xbf16>
    %c0_18 = arith.constant 0 : index
    %c0_19 = arith.constant 0 : index
    %26 = vector.load %arg2[%c0_18, %c0_19] : memref<64x128xbf16, #tpu.memory_space<vmem>>, vector<64x128xbf16>
    tpu.vector_store %arg2[%c0_18, %c0_19], %25 {strides = array<i32>} : memref<64x128xbf16, #tpu.memory_space<vmem>>, vector<64x128xbf16>,
    return
  }
  func.func @transform_0(%arg0: i32) -> (i32, i32, i32) {
    %c0_i32 = arith.constant 0 : i32
    %c0_i32_0 = arith.constant 0 : i32
    %c0_i32_1 = arith.constant 0 : i32
    return %c0_i32, %arg0, %c0_i32_0 : i32, i32, i32
  }
  func.func @transform_1(%arg0: i32) -> (i32, i32) {
    %c0_i32 = arith.constant 0 : i32
    %c0_i32_0 = arith.constant 0 : i32
    return %arg0, %c0_i32 : i32, i32
  }
}

module attributes {stable_mosaic.version = 11 : i64} {
  func.func @_tap_gemm_kernel(%arg0: i32, %arg1: i32, %arg2: memref<1x128x64xbf16, #tpu.memory_space<vmem>>, %arg3: memref<9x64x64xbf16, #tpu.memory_space<vmem>>, %arg4: memref<1x64xf32, #tpu.memory_space<vmem>>, %arg5: memref<128x64xbf16, #tpu.memory_space<vmem>>, %arg6: memref<128x64xf32, #tpu.memory_space<vmem>>) attributes {dimension_semantics = [#tpu.dimension_semantics<parallel>, #tpu.dimension_semantics<arbitrary>], iteration_bounds = array<i64: 1, 9>, scalar_prefetch = 0 : i64, scratch_operands = 1 : i64, tpu.core_type = #tpu.core_type<tc>, window_params = [{transform_indices = @transform_0, window_bounds = array<i64: 1, 128, 64>}, {pipeline_mode = #tpu.pipeline_mode<synchronous>, transform_indices = @transform_1, window_bounds = array<i64: 9, 64, 64>}, {pipeline_mode = #tpu.pipeline_mode<synchronous>, transform_indices = @transform_2, window_bounds = array<i64: 1, 64>}, {transform_indices = @transform_3, window_bounds = array<i64: 128, 64>}]} {
    %c0_i32 = arith.constant 0 : i32
    %0 = arith.cmpi eq, %arg1, %c0_i32 : i32
    %1 = arith.extui %0 : i1 to i32
    %c0_i32_0 = arith.constant 0 : i32
    %2 = arith.cmpi ne, %1, %c0_i32_0 : i32
    scf.if %2 {
      %cst_10 = arith.constant 0.000000e+00 : f32
      %15 = vector.broadcast %cst_10 : f32 to vector<128x64xf32>
      %c0_11 = arith.constant 0 : index
      %c0_12 = arith.constant 0 : index
      %16 = vector.load %arg6[%c0_11, %c0_12] : memref<128x64xf32, #tpu.memory_space<vmem>>, vector<128x64xf32>
      tpu.vector_store %arg6[%c0_11, %c0_12], %15 {strides = array<i32>} : memref<128x64xf32, #tpu.memory_space<vmem>>, vector<128x64xf32>,
    } else {
    }
    %c0 = arith.constant 0 : index
    %c0_1 = arith.constant 0 : index
    %3 = vector.load %arg6[%c0, %c0_1] : memref<128x64xf32, #tpu.memory_space<vmem>>, vector<128x64xf32>
    %c0_2 = arith.constant 0 : index
    %c0_3 = arith.constant 0 : index
    %c0_4 = arith.constant 0 : index
    %4 = vector.load %arg2[%c0_2, %c0_3, %c0_4] : memref<1x128x64xbf16, #tpu.memory_space<vmem>>, vector<1x128x64xbf16>
    %5 = vector.shape_cast %4 : vector<1x128x64xbf16> to vector<128x64xbf16>
    %6 = arith.index_cast %arg1 : i32 to index
    %c0_5 = arith.constant 0 : index
    %c0_6 = arith.constant 0 : index
    %7 = vector.load %arg3[%6, %c0_5, %c0_6] : memref<9x64x64xbf16, #tpu.memory_space<vmem>>, vector<1x64x64xbf16>
    %8 = vector.shape_cast %7 : vector<1x64x64xbf16> to vector<64x64xbf16>
    %cst = arith.constant dense<0.000000e+00> : vector<128x64xf32>
    %9 = tpu.matmul %5, %8, %cst {dimension_numbers = #tpu.dot_dimension_numbers<[1], [0], [0], [1], [0, 0, 1, 1], [], []>} : vector<128x64xbf16>, vector<64x64xbf16>, vector<128x64xf32> -> vector<128x64xf32>
    %10 = arith.addf %3, %9 : vector<128x64xf32>
    %c0_7 = arith.constant 0 : index
    %c0_8 = arith.constant 0 : index
    %11 = vector.load %arg6[%c0_7, %c0_8] : memref<128x64xf32, #tpu.memory_space<vmem>>, vector<128x64xf32>
    tpu.vector_store %arg6[%c0_7, %c0_8], %10 {strides = array<i32>} : memref<128x64xf32, #tpu.memory_space<vmem>>, vector<128x64xf32>,
    %c8_i32 = arith.constant 8 : i32
    %12 = arith.cmpi eq, %arg1, %c8_i32 : i32
    %13 = arith.extui %12 : i1 to i32
    %c0_i32_9 = arith.constant 0 : i32
    %14 = arith.cmpi ne, %13, %c0_i32_9 : i32
    scf.if %14 {
      %c0_10 = arith.constant 0 : index
      %c0_11 = arith.constant 0 : index
      %15 = vector.load %arg6[%c0_10, %c0_11] : memref<128x64xf32, #tpu.memory_space<vmem>>, vector<128x64xf32>
      %c0_12 = arith.constant 0 : index
      %c0_13 = arith.constant 0 : index
      %16 = vector.load %arg4[%c0_12, %c0_13] : memref<1x64xf32, #tpu.memory_space<vmem>>, vector<1x64xf32>
      %17 = vector.broadcast %16 : vector<1x64xf32> to vector<128x64xf32>
      %18 = arith.addf %15, %17 : vector<128x64xf32>
      %cst_14 = arith.constant 0.000000e+00 : f32
      %19 = vector.broadcast %cst_14 : f32 to vector<128x64xf32>
      %20 = arith.maximumf %18, %19 : vector<128x64xf32>
      %21 = arith.truncf %20 : vector<128x64xf32> to vector<128x64xbf16>
      %c0_15 = arith.constant 0 : index
      %c0_16 = arith.constant 0 : index
      %22 = vector.load %arg5[%c0_15, %c0_16] : memref<128x64xbf16, #tpu.memory_space<vmem>>, vector<128x64xbf16>
      tpu.vector_store %arg5[%c0_15, %c0_16], %21 {strides = array<i32>} : memref<128x64xbf16, #tpu.memory_space<vmem>>, vector<128x64xbf16>,
    } else {
    }
    return
  }
  func.func @transform_0(%arg0: i32, %arg1: i32) -> (i32, i32, i32) {
    %c0_i32 = arith.constant 0 : i32
    %c0_i32_0 = arith.constant 0 : i32
    return %arg1, %arg0, %c0_i32 : i32, i32, i32
  }
  func.func @transform_1(%arg0: i32, %arg1: i32) -> (i32, i32, i32) {
    %c0_i32 = arith.constant 0 : i32
    %c0_i32_0 = arith.constant 0 : i32
    %c0_i32_1 = arith.constant 0 : i32
    %c0_i32_2 = arith.constant 0 : i32
    return %c0_i32, %c0_i32_0, %c0_i32_1 : i32, i32, i32
  }
  func.func @transform_2(%arg0: i32, %arg1: i32) -> (i32, i32) {
    %c0_i32 = arith.constant 0 : i32
    %c0_i32_0 = arith.constant 0 : i32
    %c0_i32_1 = arith.constant 0 : i32
    return %c0_i32, %c0_i32_0 : i32, i32
  }
  func.func @transform_3(%arg0: i32, %arg1: i32) -> (i32, i32) {
    %c0_i32 = arith.constant 0 : i32
    %c0_i32_0 = arith.constant 0 : i32
    return %arg0, %c0_i32 : i32, i32
  }
}

module attributes {stable_mosaic.version = 11 : i64} {
  func.func @_tap_gemm_res_kernel(%arg0: i32, %arg1: i32, %arg2: memref<1x128x64xbf16, #tpu.memory_space<vmem>>, %arg3: memref<9x64x64xbf16, #tpu.memory_space<vmem>>, %arg4: memref<1x64xf32, #tpu.memory_space<vmem>>, %arg5: memref<128x64xbf16, #tpu.memory_space<vmem>>, %arg6: memref<128x64xbf16, #tpu.memory_space<vmem>>, %arg7: memref<128x64xf32, #tpu.memory_space<vmem>>) attributes {dimension_semantics = [#tpu.dimension_semantics<parallel>, #tpu.dimension_semantics<arbitrary>], iteration_bounds = array<i64: 1, 9>, scalar_prefetch = 0 : i64, scratch_operands = 1 : i64, tpu.core_type = #tpu.core_type<tc>, window_params = [{transform_indices = @transform_0, window_bounds = array<i64: 1, 128, 64>}, {pipeline_mode = #tpu.pipeline_mode<synchronous>, transform_indices = @transform_1, window_bounds = array<i64: 9, 64, 64>}, {pipeline_mode = #tpu.pipeline_mode<synchronous>, transform_indices = @transform_2, window_bounds = array<i64: 1, 64>}, {transform_indices = @transform_3, window_bounds = array<i64: 128, 64>}, {transform_indices = @transform_4, window_bounds = array<i64: 128, 64>}]} {
    %c0_i32 = arith.constant 0 : i32
    %0 = arith.cmpi eq, %arg1, %c0_i32 : i32
    %1 = arith.extui %0 : i1 to i32
    %c0_i32_0 = arith.constant 0 : i32
    %2 = arith.cmpi ne, %1, %c0_i32_0 : i32
    scf.if %2 {
      %cst_10 = arith.constant 0.000000e+00 : f32
      %15 = vector.broadcast %cst_10 : f32 to vector<128x64xf32>
      %c0_11 = arith.constant 0 : index
      %c0_12 = arith.constant 0 : index
      %16 = vector.load %arg7[%c0_11, %c0_12] : memref<128x64xf32, #tpu.memory_space<vmem>>, vector<128x64xf32>
      tpu.vector_store %arg7[%c0_11, %c0_12], %15 {strides = array<i32>} : memref<128x64xf32, #tpu.memory_space<vmem>>, vector<128x64xf32>,
    } else {
    }
    %c0 = arith.constant 0 : index
    %c0_1 = arith.constant 0 : index
    %3 = vector.load %arg7[%c0, %c0_1] : memref<128x64xf32, #tpu.memory_space<vmem>>, vector<128x64xf32>
    %c0_2 = arith.constant 0 : index
    %c0_3 = arith.constant 0 : index
    %c0_4 = arith.constant 0 : index
    %4 = vector.load %arg2[%c0_2, %c0_3, %c0_4] : memref<1x128x64xbf16, #tpu.memory_space<vmem>>, vector<1x128x64xbf16>
    %5 = vector.shape_cast %4 : vector<1x128x64xbf16> to vector<128x64xbf16>
    %6 = arith.index_cast %arg1 : i32 to index
    %c0_5 = arith.constant 0 : index
    %c0_6 = arith.constant 0 : index
    %7 = vector.load %arg3[%6, %c0_5, %c0_6] : memref<9x64x64xbf16, #tpu.memory_space<vmem>>, vector<1x64x64xbf16>
    %8 = vector.shape_cast %7 : vector<1x64x64xbf16> to vector<64x64xbf16>
    %cst = arith.constant dense<0.000000e+00> : vector<128x64xf32>
    %9 = tpu.matmul %5, %8, %cst {dimension_numbers = #tpu.dot_dimension_numbers<[1], [0], [0], [1], [0, 0, 1, 1], [], []>} : vector<128x64xbf16>, vector<64x64xbf16>, vector<128x64xf32> -> vector<128x64xf32>
    %10 = arith.addf %3, %9 : vector<128x64xf32>
    %c0_7 = arith.constant 0 : index
    %c0_8 = arith.constant 0 : index
    %11 = vector.load %arg7[%c0_7, %c0_8] : memref<128x64xf32, #tpu.memory_space<vmem>>, vector<128x64xf32>
    tpu.vector_store %arg7[%c0_7, %c0_8], %10 {strides = array<i32>} : memref<128x64xf32, #tpu.memory_space<vmem>>, vector<128x64xf32>,
    %c8_i32 = arith.constant 8 : i32
    %12 = arith.cmpi eq, %arg1, %c8_i32 : i32
    %13 = arith.extui %12 : i1 to i32
    %c0_i32_9 = arith.constant 0 : i32
    %14 = arith.cmpi ne, %13, %c0_i32_9 : i32
    scf.if %14 {
      %c0_10 = arith.constant 0 : index
      %c0_11 = arith.constant 0 : index
      %15 = vector.load %arg7[%c0_10, %c0_11] : memref<128x64xf32, #tpu.memory_space<vmem>>, vector<128x64xf32>
      %c0_12 = arith.constant 0 : index
      %c0_13 = arith.constant 0 : index
      %16 = vector.load %arg4[%c0_12, %c0_13] : memref<1x64xf32, #tpu.memory_space<vmem>>, vector<1x64xf32>
      %17 = vector.broadcast %16 : vector<1x64xf32> to vector<128x64xf32>
      %18 = arith.addf %15, %17 : vector<128x64xf32>
      %c0_14 = arith.constant 0 : index
      %c0_15 = arith.constant 0 : index
      %19 = vector.load %arg5[%c0_14, %c0_15] : memref<128x64xbf16, #tpu.memory_space<vmem>>, vector<128x64xbf16>
      %20 = arith.extf %19 : vector<128x64xbf16> to vector<128x64xf32>
      %21 = arith.addf %18, %20 : vector<128x64xf32>
      %cst_16 = arith.constant 0.000000e+00 : f32
      %22 = vector.broadcast %cst_16 : f32 to vector<128x64xf32>
      %23 = arith.maximumf %21, %22 : vector<128x64xf32>
      %24 = arith.truncf %23 : vector<128x64xf32> to vector<128x64xbf16>
      %c0_17 = arith.constant 0 : index
      %c0_18 = arith.constant 0 : index
      %25 = vector.load %arg6[%c0_17, %c0_18] : memref<128x64xbf16, #tpu.memory_space<vmem>>, vector<128x64xbf16>
      tpu.vector_store %arg6[%c0_17, %c0_18], %24 {strides = array<i32>} : memref<128x64xbf16, #tpu.memory_space<vmem>>, vector<128x64xbf16>,
    } else {
    }
    return
  }
  func.func @transform_0(%arg0: i32, %arg1: i32) -> (i32, i32, i32) {
    %c0_i32 = arith.constant 0 : i32
    %c0_i32_0 = arith.constant 0 : i32
    return %arg1, %arg0, %c0_i32 : i32, i32, i32
  }
  func.func @transform_1(%arg0: i32, %arg1: i32) -> (i32, i32, i32) {
    %c0_i32 = arith.constant 0 : i32
    %c0_i32_0 = arith.constant 0 : i32
    %c0_i32_1 = arith.constant 0 : i32
    %c0_i32_2 = arith.constant 0 : i32
    return %c0_i32, %c0_i32_0, %c0_i32_1 : i32, i32, i32
  }
  func.func @transform_2(%arg0: i32, %arg1: i32) -> (i32, i32) {
    %c0_i32 = arith.constant 0 : i32
    %c0_i32_0 = arith.constant 0 : i32
    %c0_i32_1 = arith.constant 0 : i32
    return %c0_i32, %c0_i32_0 : i32, i32
  }
  func.func @transform_3(%arg0: i32, %arg1: i32) -> (i32, i32) {
    %c0_i32 = arith.constant 0 : i32
    %c0_i32_0 = arith.constant 0 : i32
    return %arg0, %c0_i32 : i32, i32
  }
  func.func @transform_4(%arg0: i32, %arg1: i32) -> (i32, i32) {
    %c0_i32 = arith.constant 0 : i32
    %c0_i32_0 = arith.constant 0 : i32
    return %arg0, %c0_i32 : i32, i32
  }
}

module attributes {stable_mosaic.version = 11 : i64} {
  func.func @_tap_gemm_kernel(%arg0: i32, %arg1: i32, %arg2: memref<1x32x64xbf16, #tpu.memory_space<vmem>>, %arg3: memref<9x64x128xbf16, #tpu.memory_space<vmem>>, %arg4: memref<1x128xf32, #tpu.memory_space<vmem>>, %arg5: memref<32x128xbf16, #tpu.memory_space<vmem>>, %arg6: memref<32x128xf32, #tpu.memory_space<vmem>>) attributes {dimension_semantics = [#tpu.dimension_semantics<parallel>, #tpu.dimension_semantics<arbitrary>], iteration_bounds = array<i64: 1, 9>, scalar_prefetch = 0 : i64, scratch_operands = 1 : i64, tpu.core_type = #tpu.core_type<tc>, window_params = [{transform_indices = @transform_0, window_bounds = array<i64: 1, 32, 64>}, {pipeline_mode = #tpu.pipeline_mode<synchronous>, transform_indices = @transform_1, window_bounds = array<i64: 9, 64, 128>}, {pipeline_mode = #tpu.pipeline_mode<synchronous>, transform_indices = @transform_2, window_bounds = array<i64: 1, 128>}, {transform_indices = @transform_3, window_bounds = array<i64: 32, 128>}]} {
    %c0_i32 = arith.constant 0 : i32
    %0 = arith.cmpi eq, %arg1, %c0_i32 : i32
    %1 = arith.extui %0 : i1 to i32
    %c0_i32_0 = arith.constant 0 : i32
    %2 = arith.cmpi ne, %1, %c0_i32_0 : i32
    scf.if %2 {
      %cst_10 = arith.constant 0.000000e+00 : f32
      %15 = vector.broadcast %cst_10 : f32 to vector<32x128xf32>
      %c0_11 = arith.constant 0 : index
      %c0_12 = arith.constant 0 : index
      %16 = vector.load %arg6[%c0_11, %c0_12] : memref<32x128xf32, #tpu.memory_space<vmem>>, vector<32x128xf32>
      tpu.vector_store %arg6[%c0_11, %c0_12], %15 {strides = array<i32>} : memref<32x128xf32, #tpu.memory_space<vmem>>, vector<32x128xf32>,
    } else {
    }
    %c0 = arith.constant 0 : index
    %c0_1 = arith.constant 0 : index
    %3 = vector.load %arg6[%c0, %c0_1] : memref<32x128xf32, #tpu.memory_space<vmem>>, vector<32x128xf32>
    %c0_2 = arith.constant 0 : index
    %c0_3 = arith.constant 0 : index
    %c0_4 = arith.constant 0 : index
    %4 = vector.load %arg2[%c0_2, %c0_3, %c0_4] : memref<1x32x64xbf16, #tpu.memory_space<vmem>>, vector<1x32x64xbf16>
    %5 = vector.shape_cast %4 : vector<1x32x64xbf16> to vector<32x64xbf16>
    %6 = arith.index_cast %arg1 : i32 to index
    %c0_5 = arith.constant 0 : index
    %c0_6 = arith.constant 0 : index
    %7 = vector.load %arg3[%6, %c0_5, %c0_6] : memref<9x64x128xbf16, #tpu.memory_space<vmem>>, vector<1x64x128xbf16>
    %8 = vector.shape_cast %7 : vector<1x64x128xbf16> to vector<64x128xbf16>
    %cst = arith.constant dense<0.000000e+00> : vector<32x128xf32>
    %9 = tpu.matmul %5, %8, %cst {dimension_numbers = #tpu.dot_dimension_numbers<[1], [0], [0], [1], [0, 0, 1, 1], [], []>} : vector<32x64xbf16>, vector<64x128xbf16>, vector<32x128xf32> -> vector<32x128xf32>
    %10 = arith.addf %3, %9 : vector<32x128xf32>
    %c0_7 = arith.constant 0 : index
    %c0_8 = arith.constant 0 : index
    %11 = vector.load %arg6[%c0_7, %c0_8] : memref<32x128xf32, #tpu.memory_space<vmem>>, vector<32x128xf32>
    tpu.vector_store %arg6[%c0_7, %c0_8], %10 {strides = array<i32>} : memref<32x128xf32, #tpu.memory_space<vmem>>, vector<32x128xf32>,
    %c8_i32 = arith.constant 8 : i32
    %12 = arith.cmpi eq, %arg1, %c8_i32 : i32
    %13 = arith.extui %12 : i1 to i32
    %c0_i32_9 = arith.constant 0 : i32
    %14 = arith.cmpi ne, %13, %c0_i32_9 : i32
    scf.if %14 {
      %c0_10 = arith.constant 0 : index
      %c0_11 = arith.constant 0 : index
      %15 = vector.load %arg6[%c0_10, %c0_11] : memref<32x128xf32, #tpu.memory_space<vmem>>, vector<32x128xf32>
      %c0_12 = arith.constant 0 : index
      %c0_13 = arith.constant 0 : index
      %16 = vector.load %arg4[%c0_12, %c0_13] : memref<1x128xf32, #tpu.memory_space<vmem>>, vector<1x128xf32>
      %17 = vector.broadcast %16 : vector<1x128xf32> to vector<32x128xf32>
      %18 = arith.addf %15, %17 : vector<32x128xf32>
      %cst_14 = arith.constant 0.000000e+00 : f32
      %19 = vector.broadcast %cst_14 : f32 to vector<32x128xf32>
      %20 = arith.maximumf %18, %19 : vector<32x128xf32>
      %21 = arith.truncf %20 : vector<32x128xf32> to vector<32x128xbf16>
      %c0_15 = arith.constant 0 : index
      %c0_16 = arith.constant 0 : index
      %22 = vector.load %arg5[%c0_15, %c0_16] : memref<32x128xbf16, #tpu.memory_space<vmem>>, vector<32x128xbf16>
      tpu.vector_store %arg5[%c0_15, %c0_16], %21 {strides = array<i32>} : memref<32x128xbf16, #tpu.memory_space<vmem>>, vector<32x128xbf16>,
    } else {
    }
    return
  }
  func.func @transform_0(%arg0: i32, %arg1: i32) -> (i32, i32, i32) {
    %c0_i32 = arith.constant 0 : i32
    %c0_i32_0 = arith.constant 0 : i32
    return %arg1, %arg0, %c0_i32 : i32, i32, i32
  }
  func.func @transform_1(%arg0: i32, %arg1: i32) -> (i32, i32, i32) {
    %c0_i32 = arith.constant 0 : i32
    %c0_i32_0 = arith.constant 0 : i32
    %c0_i32_1 = arith.constant 0 : i32
    %c0_i32_2 = arith.constant 0 : i32
    return %c0_i32, %c0_i32_0, %c0_i32_1 : i32, i32, i32
  }
  func.func @transform_2(%arg0: i32, %arg1: i32) -> (i32, i32) {
    %c0_i32 = arith.constant 0 : i32
    %c0_i32_0 = arith.constant 0 : i32
    %c0_i32_1 = arith.constant 0 : i32
    return %c0_i32, %c0_i32_0 : i32, i32
  }
  func.func @transform_3(%arg0: i32, %arg1: i32) -> (i32, i32) {
    %c0_i32 = arith.constant 0 : i32
    %c0_i32_0 = arith.constant 0 : i32
    return %arg0, %c0_i32 : i32, i32
  }
}

module attributes {stable_mosaic.version = 11 : i64} {
  func.func @_tap_gemm_kernel(%arg0: i32, %arg1: i32, %arg2: memref<1x32x64xbf16, #tpu.memory_space<vmem>>, %arg3: memref<1x64x128xbf16, #tpu.memory_space<vmem>>, %arg4: memref<1x128xf32, #tpu.memory_space<vmem>>, %arg5: memref<32x128xbf16, #tpu.memory_space<vmem>>, %arg6: memref<32x128xf32, #tpu.memory_space<vmem>>) attributes {dimension_semantics = [#tpu.dimension_semantics<parallel>, #tpu.dimension_semantics<arbitrary>], iteration_bounds = array<i64: 1, 1>, scalar_prefetch = 0 : i64, scratch_operands = 1 : i64, tpu.core_type = #tpu.core_type<tc>, window_params = [{transform_indices = @transform_0, window_bounds = array<i64: 1, 32, 64>}, {pipeline_mode = #tpu.pipeline_mode<synchronous>, transform_indices = @transform_1, window_bounds = array<i64: 1, 64, 128>}, {pipeline_mode = #tpu.pipeline_mode<synchronous>, transform_indices = @transform_2, window_bounds = array<i64: 1, 128>}, {transform_indices = @transform_3, window_bounds = array<i64: 32, 128>}]} {
    %c0_i32 = arith.constant 0 : i32
    %0 = arith.cmpi eq, %arg1, %c0_i32 : i32
    %1 = arith.extui %0 : i1 to i32
    %c0_i32_0 = arith.constant 0 : i32
    %2 = arith.cmpi ne, %1, %c0_i32_0 : i32
    scf.if %2 {
      %cst_11 = arith.constant 0.000000e+00 : f32
      %15 = vector.broadcast %cst_11 : f32 to vector<32x128xf32>
      %c0_12 = arith.constant 0 : index
      %c0_13 = arith.constant 0 : index
      %16 = vector.load %arg6[%c0_12, %c0_13] : memref<32x128xf32, #tpu.memory_space<vmem>>, vector<32x128xf32>
      tpu.vector_store %arg6[%c0_12, %c0_13], %15 {strides = array<i32>} : memref<32x128xf32, #tpu.memory_space<vmem>>, vector<32x128xf32>,
    } else {
    }
    %c0 = arith.constant 0 : index
    %c0_1 = arith.constant 0 : index
    %3 = vector.load %arg6[%c0, %c0_1] : memref<32x128xf32, #tpu.memory_space<vmem>>, vector<32x128xf32>
    %c0_2 = arith.constant 0 : index
    %c0_3 = arith.constant 0 : index
    %c0_4 = arith.constant 0 : index
    %4 = vector.load %arg2[%c0_2, %c0_3, %c0_4] : memref<1x32x64xbf16, #tpu.memory_space<vmem>>, vector<1x32x64xbf16>
    %5 = vector.shape_cast %4 : vector<1x32x64xbf16> to vector<32x64xbf16>
    %6 = arith.index_cast %arg1 : i32 to index
    %c0_5 = arith.constant 0 : index
    %c0_6 = arith.constant 0 : index
    %7 = vector.load %arg3[%6, %c0_5, %c0_6] : memref<1x64x128xbf16, #tpu.memory_space<vmem>>, vector<1x64x128xbf16>
    %8 = vector.shape_cast %7 : vector<1x64x128xbf16> to vector<64x128xbf16>
    %cst = arith.constant dense<0.000000e+00> : vector<32x128xf32>
    %9 = tpu.matmul %5, %8, %cst {dimension_numbers = #tpu.dot_dimension_numbers<[1], [0], [0], [1], [0, 0, 1, 1], [], []>} : vector<32x64xbf16>, vector<64x128xbf16>, vector<32x128xf32> -> vector<32x128xf32>
    %10 = arith.addf %3, %9 : vector<32x128xf32>
    %c0_7 = arith.constant 0 : index
    %c0_8 = arith.constant 0 : index
    %11 = vector.load %arg6[%c0_7, %c0_8] : memref<32x128xf32, #tpu.memory_space<vmem>>, vector<32x128xf32>
    tpu.vector_store %arg6[%c0_7, %c0_8], %10 {strides = array<i32>} : memref<32x128xf32, #tpu.memory_space<vmem>>, vector<32x128xf32>,
    %c0_i32_9 = arith.constant 0 : i32
    %12 = arith.cmpi eq, %arg1, %c0_i32_9 : i32
    %13 = arith.extui %12 : i1 to i32
    %c0_i32_10 = arith.constant 0 : i32
    %14 = arith.cmpi ne, %13, %c0_i32_10 : i32
    scf.if %14 {
      %c0_11 = arith.constant 0 : index
      %c0_12 = arith.constant 0 : index
      %15 = vector.load %arg6[%c0_11, %c0_12] : memref<32x128xf32, #tpu.memory_space<vmem>>, vector<32x128xf32>
      %c0_13 = arith.constant 0 : index
      %c0_14 = arith.constant 0 : index
      %16 = vector.load %arg4[%c0_13, %c0_14] : memref<1x128xf32, #tpu.memory_space<vmem>>, vector<1x128xf32>
      %17 = vector.broadcast %16 : vector<1x128xf32> to vector<32x128xf32>
      %18 = arith.addf %15, %17 : vector<32x128xf32>
      %19 = arith.truncf %18 : vector<32x128xf32> to vector<32x128xbf16>
      %c0_15 = arith.constant 0 : index
      %c0_16 = arith.constant 0 : index
      %20 = vector.load %arg5[%c0_15, %c0_16] : memref<32x128xbf16, #tpu.memory_space<vmem>>, vector<32x128xbf16>
      tpu.vector_store %arg5[%c0_15, %c0_16], %19 {strides = array<i32>} : memref<32x128xbf16, #tpu.memory_space<vmem>>, vector<32x128xbf16>,
    } else {
    }
    return
  }
  func.func @transform_0(%arg0: i32, %arg1: i32) -> (i32, i32, i32) {
    %c0_i32 = arith.constant 0 : i32
    %c0_i32_0 = arith.constant 0 : i32
    return %arg1, %arg0, %c0_i32 : i32, i32, i32
  }
  func.func @transform_1(%arg0: i32, %arg1: i32) -> (i32, i32, i32) {
    %c0_i32 = arith.constant 0 : i32
    %c0_i32_0 = arith.constant 0 : i32
    %c0_i32_1 = arith.constant 0 : i32
    %c0_i32_2 = arith.constant 0 : i32
    return %c0_i32, %c0_i32_0, %c0_i32_1 : i32, i32, i32
  }
  func.func @transform_2(%arg0: i32, %arg1: i32) -> (i32, i32) {
    %c0_i32 = arith.constant 0 : i32
    %c0_i32_0 = arith.constant 0 : i32
    %c0_i32_1 = arith.constant 0 : i32
    return %c0_i32, %c0_i32_0 : i32, i32
  }
  func.func @transform_3(%arg0: i32, %arg1: i32) -> (i32, i32) {
    %c0_i32 = arith.constant 0 : i32
    %c0_i32_0 = arith.constant 0 : i32
    return %arg0, %c0_i32 : i32, i32
  }
}

module attributes {stable_mosaic.version = 11 : i64} {
  func.func @_tap_gemm_res_kernel(%arg0: i32, %arg1: i32, %arg2: memref<1x32x128xbf16, #tpu.memory_space<vmem>>, %arg3: memref<9x128x128xbf16, #tpu.memory_space<vmem>>, %arg4: memref<1x128xf32, #tpu.memory_space<vmem>>, %arg5: memref<32x128xbf16, #tpu.memory_space<vmem>>, %arg6: memref<32x128xbf16, #tpu.memory_space<vmem>>, %arg7: memref<32x128xf32, #tpu.memory_space<vmem>>) attributes {dimension_semantics = [#tpu.dimension_semantics<parallel>, #tpu.dimension_semantics<arbitrary>], iteration_bounds = array<i64: 1, 9>, scalar_prefetch = 0 : i64, scratch_operands = 1 : i64, tpu.core_type = #tpu.core_type<tc>, window_params = [{transform_indices = @transform_0, window_bounds = array<i64: 1, 32, 128>}, {pipeline_mode = #tpu.pipeline_mode<synchronous>, transform_indices = @transform_1, window_bounds = array<i64: 9, 128, 128>}, {pipeline_mode = #tpu.pipeline_mode<synchronous>, transform_indices = @transform_2, window_bounds = array<i64: 1, 128>}, {transform_indices = @transform_3, window_bounds = array<i64: 32, 128>}, {transform_indices = @transform_4, window_bounds = array<i64: 32, 128>}]} {
    %c0_i32 = arith.constant 0 : i32
    %0 = arith.cmpi eq, %arg1, %c0_i32 : i32
    %1 = arith.extui %0 : i1 to i32
    %c0_i32_0 = arith.constant 0 : i32
    %2 = arith.cmpi ne, %1, %c0_i32_0 : i32
    scf.if %2 {
      %cst_10 = arith.constant 0.000000e+00 : f32
      %15 = vector.broadcast %cst_10 : f32 to vector<32x128xf32>
      %c0_11 = arith.constant 0 : index
      %c0_12 = arith.constant 0 : index
      %16 = vector.load %arg7[%c0_11, %c0_12] : memref<32x128xf32, #tpu.memory_space<vmem>>, vector<32x128xf32>
      tpu.vector_store %arg7[%c0_11, %c0_12], %15 {strides = array<i32>} : memref<32x128xf32, #tpu.memory_space<vmem>>, vector<32x128xf32>,
    } else {
    }
    %c0 = arith.constant 0 : index
    %c0_1 = arith.constant 0 : index
    %3 = vector.load %arg7[%c0, %c0_1] : memref<32x128xf32, #tpu.memory_space<vmem>>, vector<32x128xf32>
    %c0_2 = arith.constant 0 : index
    %c0_3 = arith.constant 0 : index
    %c0_4 = arith.constant 0 : index
    %4 = vector.load %arg2[%c0_2, %c0_3, %c0_4] : memref<1x32x128xbf16, #tpu.memory_space<vmem>>, vector<1x32x128xbf16>
    %5 = vector.shape_cast %4 : vector<1x32x128xbf16> to vector<32x128xbf16>
    %6 = arith.index_cast %arg1 : i32 to index
    %c0_5 = arith.constant 0 : index
    %c0_6 = arith.constant 0 : index
    %7 = vector.load %arg3[%6, %c0_5, %c0_6] : memref<9x128x128xbf16, #tpu.memory_space<vmem>>, vector<1x128x128xbf16>
    %8 = vector.shape_cast %7 : vector<1x128x128xbf16> to vector<128x128xbf16>
    %cst = arith.constant dense<0.000000e+00> : vector<32x128xf32>
    %9 = tpu.matmul %5, %8, %cst {dimension_numbers = #tpu.dot_dimension_numbers<[1], [0], [0], [1], [0, 0, 1, 1], [], []>} : vector<32x128xbf16>, vector<128x128xbf16>, vector<32x128xf32> -> vector<32x128xf32>
    %10 = arith.addf %3, %9 : vector<32x128xf32>
    %c0_7 = arith.constant 0 : index
    %c0_8 = arith.constant 0 : index
    %11 = vector.load %arg7[%c0_7, %c0_8] : memref<32x128xf32, #tpu.memory_space<vmem>>, vector<32x128xf32>
    tpu.vector_store %arg7[%c0_7, %c0_8], %10 {strides = array<i32>} : memref<32x128xf32, #tpu.memory_space<vmem>>, vector<32x128xf32>,
    %c8_i32 = arith.constant 8 : i32
    %12 = arith.cmpi eq, %arg1, %c8_i32 : i32
    %13 = arith.extui %12 : i1 to i32
    %c0_i32_9 = arith.constant 0 : i32
    %14 = arith.cmpi ne, %13, %c0_i32_9 : i32
    scf.if %14 {
      %c0_10 = arith.constant 0 : index
      %c0_11 = arith.constant 0 : index
      %15 = vector.load %arg7[%c0_10, %c0_11] : memref<32x128xf32, #tpu.memory_space<vmem>>, vector<32x128xf32>
      %c0_12 = arith.constant 0 : index
      %c0_13 = arith.constant 0 : index
      %16 = vector.load %arg4[%c0_12, %c0_13] : memref<1x128xf32, #tpu.memory_space<vmem>>, vector<1x128xf32>
      %17 = vector.broadcast %16 : vector<1x128xf32> to vector<32x128xf32>
      %18 = arith.addf %15, %17 : vector<32x128xf32>
      %c0_14 = arith.constant 0 : index
      %c0_15 = arith.constant 0 : index
      %19 = vector.load %arg5[%c0_14, %c0_15] : memref<32x128xbf16, #tpu.memory_space<vmem>>, vector<32x128xbf16>
      %20 = arith.extf %19 : vector<32x128xbf16> to vector<32x128xf32>
      %21 = arith.addf %18, %20 : vector<32x128xf32>
      %cst_16 = arith.constant 0.000000e+00 : f32
      %22 = vector.broadcast %cst_16 : f32 to vector<32x128xf32>
      %23 = arith.maximumf %21, %22 : vector<32x128xf32>
      %24 = arith.truncf %23 : vector<32x128xf32> to vector<32x128xbf16>
      %c0_17 = arith.constant 0 : index
      %c0_18 = arith.constant 0 : index
      %25 = vector.load %arg6[%c0_17, %c0_18] : memref<32x128xbf16, #tpu.memory_space<vmem>>, vector<32x128xbf16>
      tpu.vector_store %arg6[%c0_17, %c0_18], %24 {strides = array<i32>} : memref<32x128xbf16, #tpu.memory_space<vmem>>, vector<32x128xbf16>,
    } else {
    }
    return
  }
  func.func @transform_0(%arg0: i32, %arg1: i32) -> (i32, i32, i32) {
    %c0_i32 = arith.constant 0 : i32
    %c0_i32_0 = arith.constant 0 : i32
    return %arg1, %arg0, %c0_i32 : i32, i32, i32
  }
  func.func @transform_1(%arg0: i32, %arg1: i32) -> (i32, i32, i32) {
    %c0_i32 = arith.constant 0 : i32
    %c0_i32_0 = arith.constant 0 : i32
    %c0_i32_1 = arith.constant 0 : i32
    %c0_i32_2 = arith.constant 0 : i32
    return %c0_i32, %c0_i32_0, %c0_i32_1 : i32, i32, i32
  }
  func.func @transform_2(%arg0: i32, %arg1: i32) -> (i32, i32) {
    %c0_i32 = arith.constant 0 : i32
    %c0_i32_0 = arith.constant 0 : i32
    %c0_i32_1 = arith.constant 0 : i32
    return %c0_i32, %c0_i32_0 : i32, i32
  }
  func.func @transform_3(%arg0: i32, %arg1: i32) -> (i32, i32) {
    %c0_i32 = arith.constant 0 : i32
    %c0_i32_0 = arith.constant 0 : i32
    return %arg0, %c0_i32 : i32, i32
  }
  func.func @transform_4(%arg0: i32, %arg1: i32) -> (i32, i32) {
    %c0_i32 = arith.constant 0 : i32
    %c0_i32_0 = arith.constant 0 : i32
    return %arg0, %c0_i32 : i32, i32
  }
}

module attributes {stable_mosaic.version = 11 : i64} {
  func.func @_tap_gemm_kernel(%arg0: i32, %arg1: i32, %arg2: memref<1x32x128xbf16, #tpu.memory_space<vmem>>, %arg3: memref<9x128x128xbf16, #tpu.memory_space<vmem>>, %arg4: memref<1x128xf32, #tpu.memory_space<vmem>>, %arg5: memref<32x128xbf16, #tpu.memory_space<vmem>>, %arg6: memref<32x128xf32, #tpu.memory_space<vmem>>) attributes {dimension_semantics = [#tpu.dimension_semantics<parallel>, #tpu.dimension_semantics<arbitrary>], iteration_bounds = array<i64: 1, 9>, scalar_prefetch = 0 : i64, scratch_operands = 1 : i64, tpu.core_type = #tpu.core_type<tc>, window_params = [{transform_indices = @transform_0, window_bounds = array<i64: 1, 32, 128>}, {pipeline_mode = #tpu.pipeline_mode<synchronous>, transform_indices = @transform_1, window_bounds = array<i64: 9, 128, 128>}, {pipeline_mode = #tpu.pipeline_mode<synchronous>, transform_indices = @transform_2, window_bounds = array<i64: 1, 128>}, {transform_indices = @transform_3, window_bounds = array<i64: 32, 128>}]} {
    %c0_i32 = arith.constant 0 : i32
    %0 = arith.cmpi eq, %arg1, %c0_i32 : i32
    %1 = arith.extui %0 : i1 to i32
    %c0_i32_0 = arith.constant 0 : i32
    %2 = arith.cmpi ne, %1, %c0_i32_0 : i32
    scf.if %2 {
      %cst_10 = arith.constant 0.000000e+00 : f32
      %15 = vector.broadcast %cst_10 : f32 to vector<32x128xf32>
      %c0_11 = arith.constant 0 : index
      %c0_12 = arith.constant 0 : index
      %16 = vector.load %arg6[%c0_11, %c0_12] : memref<32x128xf32, #tpu.memory_space<vmem>>, vector<32x128xf32>
      tpu.vector_store %arg6[%c0_11, %c0_12], %15 {strides = array<i32>} : memref<32x128xf32, #tpu.memory_space<vmem>>, vector<32x128xf32>,
    } else {
    }
    %c0 = arith.constant 0 : index
    %c0_1 = arith.constant 0 : index
    %3 = vector.load %arg6[%c0, %c0_1] : memref<32x128xf32, #tpu.memory_space<vmem>>, vector<32x128xf32>
    %c0_2 = arith.constant 0 : index
    %c0_3 = arith.constant 0 : index
    %c0_4 = arith.constant 0 : index
    %4 = vector.load %arg2[%c0_2, %c0_3, %c0_4] : memref<1x32x128xbf16, #tpu.memory_space<vmem>>, vector<1x32x128xbf16>
    %5 = vector.shape_cast %4 : vector<1x32x128xbf16> to vector<32x128xbf16>
    %6 = arith.index_cast %arg1 : i32 to index
    %c0_5 = arith.constant 0 : index
    %c0_6 = arith.constant 0 : index
    %7 = vector.load %arg3[%6, %c0_5, %c0_6] : memref<9x128x128xbf16, #tpu.memory_space<vmem>>, vector<1x128x128xbf16>
    %8 = vector.shape_cast %7 : vector<1x128x128xbf16> to vector<128x128xbf16>
    %cst = arith.constant dense<0.000000e+00> : vector<32x128xf32>
    %9 = tpu.matmul %5, %8, %cst {dimension_numbers = #tpu.dot_dimension_numbers<[1], [0], [0], [1], [0, 0, 1, 1], [], []>} : vector<32x128xbf16>, vector<128x128xbf16>, vector<32x128xf32> -> vector<32x128xf32>
    %10 = arith.addf %3, %9 : vector<32x128xf32>
    %c0_7 = arith.constant 0 : index
    %c0_8 = arith.constant 0 : index
    %11 = vector.load %arg6[%c0_7, %c0_8] : memref<32x128xf32, #tpu.memory_space<vmem>>, vector<32x128xf32>
    tpu.vector_store %arg6[%c0_7, %c0_8], %10 {strides = array<i32>} : memref<32x128xf32, #tpu.memory_space<vmem>>, vector<32x128xf32>,
    %c8_i32 = arith.constant 8 : i32
    %12 = arith.cmpi eq, %arg1, %c8_i32 : i32
    %13 = arith.extui %12 : i1 to i32
    %c0_i32_9 = arith.constant 0 : i32
    %14 = arith.cmpi ne, %13, %c0_i32_9 : i32
    scf.if %14 {
      %c0_10 = arith.constant 0 : index
      %c0_11 = arith.constant 0 : index
      %15 = vector.load %arg6[%c0_10, %c0_11] : memref<32x128xf32, #tpu.memory_space<vmem>>, vector<32x128xf32>
      %c0_12 = arith.constant 0 : index
      %c0_13 = arith.constant 0 : index
      %16 = vector.load %arg4[%c0_12, %c0_13] : memref<1x128xf32, #tpu.memory_space<vmem>>, vector<1x128xf32>
      %17 = vector.broadcast %16 : vector<1x128xf32> to vector<32x128xf32>
      %18 = arith.addf %15, %17 : vector<32x128xf32>
      %cst_14 = arith.constant 0.000000e+00 : f32
      %19 = vector.broadcast %cst_14 : f32 to vector<32x128xf32>
      %20 = arith.maximumf %18, %19 : vector<32x128xf32>
      %21 = arith.truncf %20 : vector<32x128xf32> to vector<32x128xbf16>
      %c0_15 = arith.constant 0 : index
      %c0_16 = arith.constant 0 : index
      %22 = vector.load %arg5[%c0_15, %c0_16] : memref<32x128xbf16, #tpu.memory_space<vmem>>, vector<32x128xbf16>
      tpu.vector_store %arg5[%c0_15, %c0_16], %21 {strides = array<i32>} : memref<32x128xbf16, #tpu.memory_space<vmem>>, vector<32x128xbf16>,
    } else {
    }
    return
  }
  func.func @transform_0(%arg0: i32, %arg1: i32) -> (i32, i32, i32) {
    %c0_i32 = arith.constant 0 : i32
    %c0_i32_0 = arith.constant 0 : i32
    return %arg1, %arg0, %c0_i32 : i32, i32, i32
  }
  func.func @transform_1(%arg0: i32, %arg1: i32) -> (i32, i32, i32) {
    %c0_i32 = arith.constant 0 : i32
    %c0_i32_0 = arith.constant 0 : i32
    %c0_i32_1 = arith.constant 0 : i32
    %c0_i32_2 = arith.constant 0 : i32
    return %c0_i32, %c0_i32_0, %c0_i32_1 : i32, i32, i32
  }
  func.func @transform_2(%arg0: i32, %arg1: i32) -> (i32, i32) {
    %c0_i32 = arith.constant 0 : i32
    %c0_i32_0 = arith.constant 0 : i32
    %c0_i32_1 = arith.constant 0 : i32
    return %c0_i32, %c0_i32_0 : i32, i32
  }
  func.func @transform_3(%arg0: i32, %arg1: i32) -> (i32, i32) {
    %c0_i32 = arith.constant 0 : i32
    %c0_i32_0 = arith.constant 0 : i32
    return %arg0, %c0_i32 : i32, i32
  }
}

module attributes {stable_mosaic.version = 11 : i64} {
  func.func @_tap_gemm_kernel(%arg0: i32, %arg1: i32, %arg2: memref<1x8x128xbf16, #tpu.memory_space<vmem>>, %arg3: memref<9x128x256xbf16, #tpu.memory_space<vmem>>, %arg4: memref<1x256xf32, #tpu.memory_space<vmem>>, %arg5: memref<8x256xbf16, #tpu.memory_space<vmem>>, %arg6: memref<8x256xf32, #tpu.memory_space<vmem>>) attributes {dimension_semantics = [#tpu.dimension_semantics<parallel>, #tpu.dimension_semantics<arbitrary>], iteration_bounds = array<i64: 1, 9>, scalar_prefetch = 0 : i64, scratch_operands = 1 : i64, tpu.core_type = #tpu.core_type<tc>, window_params = [{transform_indices = @transform_0, window_bounds = array<i64: 1, 8, 128>}, {pipeline_mode = #tpu.pipeline_mode<synchronous>, transform_indices = @transform_1, window_bounds = array<i64: 9, 128, 256>}, {pipeline_mode = #tpu.pipeline_mode<synchronous>, transform_indices = @transform_2, window_bounds = array<i64: 1, 256>}, {transform_indices = @transform_3, window_bounds = array<i64: 8, 256>}]} {
    %c0_i32 = arith.constant 0 : i32
    %0 = arith.cmpi eq, %arg1, %c0_i32 : i32
    %1 = arith.extui %0 : i1 to i32
    %c0_i32_0 = arith.constant 0 : i32
    %2 = arith.cmpi ne, %1, %c0_i32_0 : i32
    scf.if %2 {
      %cst_10 = arith.constant 0.000000e+00 : f32
      %15 = vector.broadcast %cst_10 : f32 to vector<8x256xf32>
      %c0_11 = arith.constant 0 : index
      %c0_12 = arith.constant 0 : index
      %16 = vector.load %arg6[%c0_11, %c0_12] : memref<8x256xf32, #tpu.memory_space<vmem>>, vector<8x256xf32>
      tpu.vector_store %arg6[%c0_11, %c0_12], %15 {strides = array<i32>} : memref<8x256xf32, #tpu.memory_space<vmem>>, vector<8x256xf32>,
    } else {
    }
    %c0 = arith.constant 0 : index
    %c0_1 = arith.constant 0 : index
    %3 = vector.load %arg6[%c0, %c0_1] : memref<8x256xf32, #tpu.memory_space<vmem>>, vector<8x256xf32>
    %c0_2 = arith.constant 0 : index
    %c0_3 = arith.constant 0 : index
    %c0_4 = arith.constant 0 : index
    %4 = vector.load %arg2[%c0_2, %c0_3, %c0_4] : memref<1x8x128xbf16, #tpu.memory_space<vmem>>, vector<1x8x128xbf16>
    %5 = vector.shape_cast %4 : vector<1x8x128xbf16> to vector<8x128xbf16>
    %6 = arith.index_cast %arg1 : i32 to index
    %c0_5 = arith.constant 0 : index
    %c0_6 = arith.constant 0 : index
    %7 = vector.load %arg3[%6, %c0_5, %c0_6] : memref<9x128x256xbf16, #tpu.memory_space<vmem>>, vector<1x128x256xbf16>
    %8 = vector.shape_cast %7 : vector<1x128x256xbf16> to vector<128x256xbf16>
    %cst = arith.constant dense<0.000000e+00> : vector<8x256xf32>
    %9 = tpu.matmul %5, %8, %cst {dimension_numbers = #tpu.dot_dimension_numbers<[1], [0], [0], [1], [0, 0, 1, 1], [], []>} : vector<8x128xbf16>, vector<128x256xbf16>, vector<8x256xf32> -> vector<8x256xf32>
    %10 = arith.addf %3, %9 : vector<8x256xf32>
    %c0_7 = arith.constant 0 : index
    %c0_8 = arith.constant 0 : index
    %11 = vector.load %arg6[%c0_7, %c0_8] : memref<8x256xf32, #tpu.memory_space<vmem>>, vector<8x256xf32>
    tpu.vector_store %arg6[%c0_7, %c0_8], %10 {strides = array<i32>} : memref<8x256xf32, #tpu.memory_space<vmem>>, vector<8x256xf32>,
    %c8_i32 = arith.constant 8 : i32
    %12 = arith.cmpi eq, %arg1, %c8_i32 : i32
    %13 = arith.extui %12 : i1 to i32
    %c0_i32_9 = arith.constant 0 : i32
    %14 = arith.cmpi ne, %13, %c0_i32_9 : i32
    scf.if %14 {
      %c0_10 = arith.constant 0 : index
      %c0_11 = arith.constant 0 : index
      %15 = vector.load %arg6[%c0_10, %c0_11] : memref<8x256xf32, #tpu.memory_space<vmem>>, vector<8x256xf32>
      %c0_12 = arith.constant 0 : index
      %c0_13 = arith.constant 0 : index
      %16 = vector.load %arg4[%c0_12, %c0_13] : memref<1x256xf32, #tpu.memory_space<vmem>>, vector<1x256xf32>
      %17 = vector.broadcast %16 : vector<1x256xf32> to vector<8x256xf32>
      %18 = arith.addf %15, %17 : vector<8x256xf32>
      %cst_14 = arith.constant 0.000000e+00 : f32
      %19 = vector.broadcast %cst_14 : f32 to vector<8x256xf32>
      %20 = arith.maximumf %18, %19 : vector<8x256xf32>
      %21 = arith.truncf %20 : vector<8x256xf32> to vector<8x256xbf16>
      %c0_15 = arith.constant 0 : index
      %c0_16 = arith.constant 0 : index
      %22 = vector.load %arg5[%c0_15, %c0_16] : memref<8x256xbf16, #tpu.memory_space<vmem>>, vector<8x256xbf16>
      tpu.vector_store %arg5[%c0_15, %c0_16], %21 {strides = array<i32>} : memref<8x256xbf16, #tpu.memory_space<vmem>>, vector<8x256xbf16>,
    } else {
    }
    return
  }
  func.func @transform_0(%arg0: i32, %arg1: i32) -> (i32, i32, i32) {
    %c0_i32 = arith.constant 0 : i32
    %c0_i32_0 = arith.constant 0 : i32
    return %arg1, %arg0, %c0_i32 : i32, i32, i32
  }
  func.func @transform_1(%arg0: i32, %arg1: i32) -> (i32, i32, i32) {
    %c0_i32 = arith.constant 0 : i32
    %c0_i32_0 = arith.constant 0 : i32
    %c0_i32_1 = arith.constant 0 : i32
    %c0_i32_2 = arith.constant 0 : i32
    return %c0_i32, %c0_i32_0, %c0_i32_1 : i32, i32, i32
  }
  func.func @transform_2(%arg0: i32, %arg1: i32) -> (i32, i32) {
    %c0_i32 = arith.constant 0 : i32
    %c0_i32_0 = arith.constant 0 : i32
    %c0_i32_1 = arith.constant 0 : i32
    return %c0_i32, %c0_i32_0 : i32, i32
  }
  func.func @transform_3(%arg0: i32, %arg1: i32) -> (i32, i32) {
    %c0_i32 = arith.constant 0 : i32
    %c0_i32_0 = arith.constant 0 : i32
    return %arg0, %c0_i32 : i32, i32
  }
}

module attributes {stable_mosaic.version = 11 : i64} {
  func.func @_tap_gemm_kernel(%arg0: i32, %arg1: i32, %arg2: memref<1x8x128xbf16, #tpu.memory_space<vmem>>, %arg3: memref<1x128x256xbf16, #tpu.memory_space<vmem>>, %arg4: memref<1x256xf32, #tpu.memory_space<vmem>>, %arg5: memref<8x256xbf16, #tpu.memory_space<vmem>>, %arg6: memref<8x256xf32, #tpu.memory_space<vmem>>) attributes {dimension_semantics = [#tpu.dimension_semantics<parallel>, #tpu.dimension_semantics<arbitrary>], iteration_bounds = array<i64: 1, 1>, scalar_prefetch = 0 : i64, scratch_operands = 1 : i64, tpu.core_type = #tpu.core_type<tc>, window_params = [{transform_indices = @transform_0, window_bounds = array<i64: 1, 8, 128>}, {pipeline_mode = #tpu.pipeline_mode<synchronous>, transform_indices = @transform_1, window_bounds = array<i64: 1, 128, 256>}, {pipeline_mode = #tpu.pipeline_mode<synchronous>, transform_indices = @transform_2, window_bounds = array<i64: 1, 256>}, {transform_indices = @transform_3, window_bounds = array<i64: 8, 256>}]} {
    %c0_i32 = arith.constant 0 : i32
    %0 = arith.cmpi eq, %arg1, %c0_i32 : i32
    %1 = arith.extui %0 : i1 to i32
    %c0_i32_0 = arith.constant 0 : i32
    %2 = arith.cmpi ne, %1, %c0_i32_0 : i32
    scf.if %2 {
      %cst_11 = arith.constant 0.000000e+00 : f32
      %15 = vector.broadcast %cst_11 : f32 to vector<8x256xf32>
      %c0_12 = arith.constant 0 : index
      %c0_13 = arith.constant 0 : index
      %16 = vector.load %arg6[%c0_12, %c0_13] : memref<8x256xf32, #tpu.memory_space<vmem>>, vector<8x256xf32>
      tpu.vector_store %arg6[%c0_12, %c0_13], %15 {strides = array<i32>} : memref<8x256xf32, #tpu.memory_space<vmem>>, vector<8x256xf32>,
    } else {
    }
    %c0 = arith.constant 0 : index
    %c0_1 = arith.constant 0 : index
    %3 = vector.load %arg6[%c0, %c0_1] : memref<8x256xf32, #tpu.memory_space<vmem>>, vector<8x256xf32>
    %c0_2 = arith.constant 0 : index
    %c0_3 = arith.constant 0 : index
    %c0_4 = arith.constant 0 : index
    %4 = vector.load %arg2[%c0_2, %c0_3, %c0_4] : memref<1x8x128xbf16, #tpu.memory_space<vmem>>, vector<1x8x128xbf16>
    %5 = vector.shape_cast %4 : vector<1x8x128xbf16> to vector<8x128xbf16>
    %6 = arith.index_cast %arg1 : i32 to index
    %c0_5 = arith.constant 0 : index
    %c0_6 = arith.constant 0 : index
    %7 = vector.load %arg3[%6, %c0_5, %c0_6] : memref<1x128x256xbf16, #tpu.memory_space<vmem>>, vector<1x128x256xbf16>
    %8 = vector.shape_cast %7 : vector<1x128x256xbf16> to vector<128x256xbf16>
    %cst = arith.constant dense<0.000000e+00> : vector<8x256xf32>
    %9 = tpu.matmul %5, %8, %cst {dimension_numbers = #tpu.dot_dimension_numbers<[1], [0], [0], [1], [0, 0, 1, 1], [], []>} : vector<8x128xbf16>, vector<128x256xbf16>, vector<8x256xf32> -> vector<8x256xf32>
    %10 = arith.addf %3, %9 : vector<8x256xf32>
    %c0_7 = arith.constant 0 : index
    %c0_8 = arith.constant 0 : index
    %11 = vector.load %arg6[%c0_7, %c0_8] : memref<8x256xf32, #tpu.memory_space<vmem>>, vector<8x256xf32>
    tpu.vector_store %arg6[%c0_7, %c0_8], %10 {strides = array<i32>} : memref<8x256xf32, #tpu.memory_space<vmem>>, vector<8x256xf32>,
    %c0_i32_9 = arith.constant 0 : i32
    %12 = arith.cmpi eq, %arg1, %c0_i32_9 : i32
    %13 = arith.extui %12 : i1 to i32
    %c0_i32_10 = arith.constant 0 : i32
    %14 = arith.cmpi ne, %13, %c0_i32_10 : i32
    scf.if %14 {
      %c0_11 = arith.constant 0 : index
      %c0_12 = arith.constant 0 : index
      %15 = vector.load %arg6[%c0_11, %c0_12] : memref<8x256xf32, #tpu.memory_space<vmem>>, vector<8x256xf32>
      %c0_13 = arith.constant 0 : index
      %c0_14 = arith.constant 0 : index
      %16 = vector.load %arg4[%c0_13, %c0_14] : memref<1x256xf32, #tpu.memory_space<vmem>>, vector<1x256xf32>
      %17 = vector.broadcast %16 : vector<1x256xf32> to vector<8x256xf32>
      %18 = arith.addf %15, %17 : vector<8x256xf32>
      %19 = arith.truncf %18 : vector<8x256xf32> to vector<8x256xbf16>
      %c0_15 = arith.constant 0 : index
      %c0_16 = arith.constant 0 : index
      %20 = vector.load %arg5[%c0_15, %c0_16] : memref<8x256xbf16, #tpu.memory_space<vmem>>, vector<8x256xbf16>
      tpu.vector_store %arg5[%c0_15, %c0_16], %19 {strides = array<i32>} : memref<8x256xbf16, #tpu.memory_space<vmem>>, vector<8x256xbf16>,
    } else {
    }
    return
  }
  func.func @transform_0(%arg0: i32, %arg1: i32) -> (i32, i32, i32) {
    %c0_i32 = arith.constant 0 : i32
    %c0_i32_0 = arith.constant 0 : i32
    return %arg1, %arg0, %c0_i32 : i32, i32, i32
  }
  func.func @transform_1(%arg0: i32, %arg1: i32) -> (i32, i32, i32) {
    %c0_i32 = arith.constant 0 : i32
    %c0_i32_0 = arith.constant 0 : i32
    %c0_i32_1 = arith.constant 0 : i32
    %c0_i32_2 = arith.constant 0 : i32
    return %c0_i32, %c0_i32_0, %c0_i32_1 : i32, i32, i32
  }
  func.func @transform_2(%arg0: i32, %arg1: i32) -> (i32, i32) {
    %c0_i32 = arith.constant 0 : i32
    %c0_i32_0 = arith.constant 0 : i32
    %c0_i32_1 = arith.constant 0 : i32
    return %c0_i32, %c0_i32_0 : i32, i32
  }
  func.func @transform_3(%arg0: i32, %arg1: i32) -> (i32, i32) {
    %c0_i32 = arith.constant 0 : i32
    %c0_i32_0 = arith.constant 0 : i32
    return %arg0, %c0_i32 : i32, i32
  }
}

module attributes {stable_mosaic.version = 11 : i64} {
  func.func @_tap_gemm_res_kernel(%arg0: i32, %arg1: i32, %arg2: memref<1x8x256xbf16, #tpu.memory_space<vmem>>, %arg3: memref<9x256x256xbf16, #tpu.memory_space<vmem>>, %arg4: memref<1x256xf32, #tpu.memory_space<vmem>>, %arg5: memref<8x256xbf16, #tpu.memory_space<vmem>>, %arg6: memref<8x256xbf16, #tpu.memory_space<vmem>>, %arg7: memref<8x256xf32, #tpu.memory_space<vmem>>) attributes {dimension_semantics = [#tpu.dimension_semantics<parallel>, #tpu.dimension_semantics<arbitrary>], iteration_bounds = array<i64: 1, 9>, scalar_prefetch = 0 : i64, scratch_operands = 1 : i64, tpu.core_type = #tpu.core_type<tc>, window_params = [{transform_indices = @transform_0, window_bounds = array<i64: 1, 8, 256>}, {pipeline_mode = #tpu.pipeline_mode<synchronous>, transform_indices = @transform_1, window_bounds = array<i64: 9, 256, 256>}, {pipeline_mode = #tpu.pipeline_mode<synchronous>, transform_indices = @transform_2, window_bounds = array<i64: 1, 256>}, {transform_indices = @transform_3, window_bounds = array<i64: 8, 256>}, {transform_indices = @transform_4, window_bounds = array<i64: 8, 256>}]} {
    %c0_i32 = arith.constant 0 : i32
    %0 = arith.cmpi eq, %arg1, %c0_i32 : i32
    %1 = arith.extui %0 : i1 to i32
    %c0_i32_0 = arith.constant 0 : i32
    %2 = arith.cmpi ne, %1, %c0_i32_0 : i32
    scf.if %2 {
      %cst_10 = arith.constant 0.000000e+00 : f32
      %15 = vector.broadcast %cst_10 : f32 to vector<8x256xf32>
      %c0_11 = arith.constant 0 : index
      %c0_12 = arith.constant 0 : index
      %16 = vector.load %arg7[%c0_11, %c0_12] : memref<8x256xf32, #tpu.memory_space<vmem>>, vector<8x256xf32>
      tpu.vector_store %arg7[%c0_11, %c0_12], %15 {strides = array<i32>} : memref<8x256xf32, #tpu.memory_space<vmem>>, vector<8x256xf32>,
    } else {
    }
    %c0 = arith.constant 0 : index
    %c0_1 = arith.constant 0 : index
    %3 = vector.load %arg7[%c0, %c0_1] : memref<8x256xf32, #tpu.memory_space<vmem>>, vector<8x256xf32>
    %c0_2 = arith.constant 0 : index
    %c0_3 = arith.constant 0 : index
    %c0_4 = arith.constant 0 : index
    %4 = vector.load %arg2[%c0_2, %c0_3, %c0_4] : memref<1x8x256xbf16, #tpu.memory_space<vmem>>, vector<1x8x256xbf16>
    %5 = vector.shape_cast %4 : vector<1x8x256xbf16> to vector<8x256xbf16>
    %6 = arith.index_cast %arg1 : i32 to index
    %c0_5 = arith.constant 0 : index
    %c0_6 = arith.constant 0 : index
    %7 = vector.load %arg3[%6, %c0_5, %c0_6] : memref<9x256x256xbf16, #tpu.memory_space<vmem>>, vector<1x256x256xbf16>
    %8 = vector.shape_cast %7 : vector<1x256x256xbf16> to vector<256x256xbf16>
    %cst = arith.constant dense<0.000000e+00> : vector<8x256xf32>
    %9 = tpu.matmul %5, %8, %cst {dimension_numbers = #tpu.dot_dimension_numbers<[1], [0], [0], [1], [0, 0, 1, 1], [], []>} : vector<8x256xbf16>, vector<256x256xbf16>, vector<8x256xf32> -> vector<8x256xf32>
    %10 = arith.addf %3, %9 : vector<8x256xf32>
    %c0_7 = arith.constant 0 : index
    %c0_8 = arith.constant 0 : index
    %11 = vector.load %arg7[%c0_7, %c0_8] : memref<8x256xf32, #tpu.memory_space<vmem>>, vector<8x256xf32>
    tpu.vector_store %arg7[%c0_7, %c0_8], %10 {strides = array<i32>} : memref<8x256xf32, #tpu.memory_space<vmem>>, vector<8x256xf32>,
    %c8_i32 = arith.constant 8 : i32
    %12 = arith.cmpi eq, %arg1, %c8_i32 : i32
    %13 = arith.extui %12 : i1 to i32
    %c0_i32_9 = arith.constant 0 : i32
    %14 = arith.cmpi ne, %13, %c0_i32_9 : i32
    scf.if %14 {
      %c0_10 = arith.constant 0 : index
      %c0_11 = arith.constant 0 : index
      %15 = vector.load %arg7[%c0_10, %c0_11] : memref<8x256xf32, #tpu.memory_space<vmem>>, vector<8x256xf32>
      %c0_12 = arith.constant 0 : index
      %c0_13 = arith.constant 0 : index
      %16 = vector.load %arg4[%c0_12, %c0_13] : memref<1x256xf32, #tpu.memory_space<vmem>>, vector<1x256xf32>
      %17 = vector.broadcast %16 : vector<1x256xf32> to vector<8x256xf32>
      %18 = arith.addf %15, %17 : vector<8x256xf32>
      %c0_14 = arith.constant 0 : index
      %c0_15 = arith.constant 0 : index
      %19 = vector.load %arg5[%c0_14, %c0_15] : memref<8x256xbf16, #tpu.memory_space<vmem>>, vector<8x256xbf16>
      %20 = arith.extf %19 : vector<8x256xbf16> to vector<8x256xf32>
      %21 = arith.addf %18, %20 : vector<8x256xf32>
      %cst_16 = arith.constant 0.000000e+00 : f32
      %22 = vector.broadcast %cst_16 : f32 to vector<8x256xf32>
      %23 = arith.maximumf %21, %22 : vector<8x256xf32>
      %24 = arith.truncf %23 : vector<8x256xf32> to vector<8x256xbf16>
      %c0_17 = arith.constant 0 : index
      %c0_18 = arith.constant 0 : index
      %25 = vector.load %arg6[%c0_17, %c0_18] : memref<8x256xbf16, #tpu.memory_space<vmem>>, vector<8x256xbf16>
      tpu.vector_store %arg6[%c0_17, %c0_18], %24 {strides = array<i32>} : memref<8x256xbf16, #tpu.memory_space<vmem>>, vector<8x256xbf16>,
    } else {
    }
    return
  }
  func.func @transform_0(%arg0: i32, %arg1: i32) -> (i32, i32, i32) {
    %c0_i32 = arith.constant 0 : i32
    %c0_i32_0 = arith.constant 0 : i32
    return %arg1, %arg0, %c0_i32 : i32, i32, i32
  }
  func.func @transform_1(%arg0: i32, %arg1: i32) -> (i32, i32, i32) {
    %c0_i32 = arith.constant 0 : i32
    %c0_i32_0 = arith.constant 0 : i32
    %c0_i32_1 = arith.constant 0 : i32
    %c0_i32_2 = arith.constant 0 : i32
    return %c0_i32, %c0_i32_0, %c0_i32_1 : i32, i32, i32
  }
  func.func @transform_2(%arg0: i32, %arg1: i32) -> (i32, i32) {
    %c0_i32 = arith.constant 0 : i32
    %c0_i32_0 = arith.constant 0 : i32
    %c0_i32_1 = arith.constant 0 : i32
    return %c0_i32, %c0_i32_0 : i32, i32
  }
  func.func @transform_3(%arg0: i32, %arg1: i32) -> (i32, i32) {
    %c0_i32 = arith.constant 0 : i32
    %c0_i32_0 = arith.constant 0 : i32
    return %arg0, %c0_i32 : i32, i32
  }
  func.func @transform_4(%arg0: i32, %arg1: i32) -> (i32, i32) {
    %c0_i32 = arith.constant 0 : i32
    %c0_i32_0 = arith.constant 0 : i32
    return %arg0, %c0_i32 : i32, i32
  }
}

module attributes {stable_mosaic.version = 11 : i64} {
  func.func @_tap_gemm_kernel(%arg0: i32, %arg1: i32, %arg2: memref<1x8x256xbf16, #tpu.memory_space<vmem>>, %arg3: memref<9x256x256xbf16, #tpu.memory_space<vmem>>, %arg4: memref<1x256xf32, #tpu.memory_space<vmem>>, %arg5: memref<8x256xbf16, #tpu.memory_space<vmem>>, %arg6: memref<8x256xf32, #tpu.memory_space<vmem>>) attributes {dimension_semantics = [#tpu.dimension_semantics<parallel>, #tpu.dimension_semantics<arbitrary>], iteration_bounds = array<i64: 1, 9>, scalar_prefetch = 0 : i64, scratch_operands = 1 : i64, tpu.core_type = #tpu.core_type<tc>, window_params = [{transform_indices = @transform_0, window_bounds = array<i64: 1, 8, 256>}, {pipeline_mode = #tpu.pipeline_mode<synchronous>, transform_indices = @transform_1, window_bounds = array<i64: 9, 256, 256>}, {pipeline_mode = #tpu.pipeline_mode<synchronous>, transform_indices = @transform_2, window_bounds = array<i64: 1, 256>}, {transform_indices = @transform_3, window_bounds = array<i64: 8, 256>}]} {
    %c0_i32 = arith.constant 0 : i32
    %0 = arith.cmpi eq, %arg1, %c0_i32 : i32
    %1 = arith.extui %0 : i1 to i32
    %c0_i32_0 = arith.constant 0 : i32
    %2 = arith.cmpi ne, %1, %c0_i32_0 : i32
    scf.if %2 {
      %cst_10 = arith.constant 0.000000e+00 : f32
      %15 = vector.broadcast %cst_10 : f32 to vector<8x256xf32>
      %c0_11 = arith.constant 0 : index
      %c0_12 = arith.constant 0 : index
      %16 = vector.load %arg6[%c0_11, %c0_12] : memref<8x256xf32, #tpu.memory_space<vmem>>, vector<8x256xf32>
      tpu.vector_store %arg6[%c0_11, %c0_12], %15 {strides = array<i32>} : memref<8x256xf32, #tpu.memory_space<vmem>>, vector<8x256xf32>,
    } else {
    }
    %c0 = arith.constant 0 : index
    %c0_1 = arith.constant 0 : index
    %3 = vector.load %arg6[%c0, %c0_1] : memref<8x256xf32, #tpu.memory_space<vmem>>, vector<8x256xf32>
    %c0_2 = arith.constant 0 : index
    %c0_3 = arith.constant 0 : index
    %c0_4 = arith.constant 0 : index
    %4 = vector.load %arg2[%c0_2, %c0_3, %c0_4] : memref<1x8x256xbf16, #tpu.memory_space<vmem>>, vector<1x8x256xbf16>
    %5 = vector.shape_cast %4 : vector<1x8x256xbf16> to vector<8x256xbf16>
    %6 = arith.index_cast %arg1 : i32 to index
    %c0_5 = arith.constant 0 : index
    %c0_6 = arith.constant 0 : index
    %7 = vector.load %arg3[%6, %c0_5, %c0_6] : memref<9x256x256xbf16, #tpu.memory_space<vmem>>, vector<1x256x256xbf16>
    %8 = vector.shape_cast %7 : vector<1x256x256xbf16> to vector<256x256xbf16>
    %cst = arith.constant dense<0.000000e+00> : vector<8x256xf32>
    %9 = tpu.matmul %5, %8, %cst {dimension_numbers = #tpu.dot_dimension_numbers<[1], [0], [0], [1], [0, 0, 1, 1], [], []>} : vector<8x256xbf16>, vector<256x256xbf16>, vector<8x256xf32> -> vector<8x256xf32>
    %10 = arith.addf %3, %9 : vector<8x256xf32>
    %c0_7 = arith.constant 0 : index
    %c0_8 = arith.constant 0 : index
    %11 = vector.load %arg6[%c0_7, %c0_8] : memref<8x256xf32, #tpu.memory_space<vmem>>, vector<8x256xf32>
    tpu.vector_store %arg6[%c0_7, %c0_8], %10 {strides = array<i32>} : memref<8x256xf32, #tpu.memory_space<vmem>>, vector<8x256xf32>,
    %c8_i32 = arith.constant 8 : i32
    %12 = arith.cmpi eq, %arg1, %c8_i32 : i32
    %13 = arith.extui %12 : i1 to i32
    %c0_i32_9 = arith.constant 0 : i32
    %14 = arith.cmpi ne, %13, %c0_i32_9 : i32
    scf.if %14 {
      %c0_10 = arith.constant 0 : index
      %c0_11 = arith.constant 0 : index
      %15 = vector.load %arg6[%c0_10, %c0_11] : memref<8x256xf32, #tpu.memory_space<vmem>>, vector<8x256xf32>
      %c0_12 = arith.constant 0 : index
      %c0_13 = arith.constant 0 : index
      %16 = vector.load %arg4[%c0_12, %c0_13] : memref<1x256xf32, #tpu.memory_space<vmem>>, vector<1x256xf32>
      %17 = vector.broadcast %16 : vector<1x256xf32> to vector<8x256xf32>
      %18 = arith.addf %15, %17 : vector<8x256xf32>
      %cst_14 = arith.constant 0.000000e+00 : f32
      %19 = vector.broadcast %cst_14 : f32 to vector<8x256xf32>
      %20 = arith.maximumf %18, %19 : vector<8x256xf32>
      %21 = arith.truncf %20 : vector<8x256xf32> to vector<8x256xbf16>
      %c0_15 = arith.constant 0 : index
      %c0_16 = arith.constant 0 : index
      %22 = vector.load %arg5[%c0_15, %c0_16] : memref<8x256xbf16, #tpu.memory_space<vmem>>, vector<8x256xbf16>
      tpu.vector_store %arg5[%c0_15, %c0_16], %21 {strides = array<i32>} : memref<8x256xbf16, #tpu.memory_space<vmem>>, vector<8x256xbf16>,
    } else {
    }
    return
  }
  func.func @transform_0(%arg0: i32, %arg1: i32) -> (i32, i32, i32) {
    %c0_i32 = arith.constant 0 : i32
    %c0_i32_0 = arith.constant 0 : i32
    return %arg1, %arg0, %c0_i32 : i32, i32, i32
  }
  func.func @transform_1(%arg0: i32, %arg1: i32) -> (i32, i32, i32) {
    %c0_i32 = arith.constant 0 : i32
    %c0_i32_0 = arith.constant 0 : i32
    %c0_i32_1 = arith.constant 0 : i32
    %c0_i32_2 = arith.constant 0 : i32
    return %c0_i32, %c0_i32_0, %c0_i32_1 : i32, i32, i32
  }
  func.func @transform_2(%arg0: i32, %arg1: i32) -> (i32, i32) {
    %c0_i32 = arith.constant 0 : i32
    %c0_i32_0 = arith.constant 0 : i32
    %c0_i32_1 = arith.constant 0 : i32
    return %c0_i32, %c0_i32_0 : i32, i32
  }
  func.func @transform_3(%arg0: i32, %arg1: i32) -> (i32, i32) {
    %c0_i32 = arith.constant 0 : i32
    %c0_i32_0 = arith.constant 0 : i32
    return %arg0, %c0_i32 : i32, i32
  }
}

module attributes {stable_mosaic.version = 11 : i64} {
  func.func @_tap_gemm_kernel(%arg0: i32, %arg1: i32, %arg2: memref<1x8x256xbf16, #tpu.memory_space<vmem>>, %arg3: memref<9x256x512xbf16, #tpu.memory_space<vmem>>, %arg4: memref<1x512xf32, #tpu.memory_space<vmem>>, %arg5: memref<8x512xbf16, #tpu.memory_space<vmem>>, %arg6: memref<8x512xf32, #tpu.memory_space<vmem>>) attributes {dimension_semantics = [#tpu.dimension_semantics<parallel>, #tpu.dimension_semantics<arbitrary>], iteration_bounds = array<i64: 1, 9>, scalar_prefetch = 0 : i64, scratch_operands = 1 : i64, tpu.core_type = #tpu.core_type<tc>, window_params = [{transform_indices = @transform_0, window_bounds = array<i64: 1, 8, 256>}, {pipeline_mode = #tpu.pipeline_mode<synchronous>, transform_indices = @transform_1, window_bounds = array<i64: 9, 256, 512>}, {pipeline_mode = #tpu.pipeline_mode<synchronous>, transform_indices = @transform_2, window_bounds = array<i64: 1, 512>}, {transform_indices = @transform_3, window_bounds = array<i64: 8, 512>}]} {
    %c0_i32 = arith.constant 0 : i32
    %0 = arith.cmpi eq, %arg1, %c0_i32 : i32
    %1 = arith.extui %0 : i1 to i32
    %c0_i32_0 = arith.constant 0 : i32
    %2 = arith.cmpi ne, %1, %c0_i32_0 : i32
    scf.if %2 {
      %cst_10 = arith.constant 0.000000e+00 : f32
      %15 = vector.broadcast %cst_10 : f32 to vector<8x512xf32>
      %c0_11 = arith.constant 0 : index
      %c0_12 = arith.constant 0 : index
      %16 = vector.load %arg6[%c0_11, %c0_12] : memref<8x512xf32, #tpu.memory_space<vmem>>, vector<8x512xf32>
      tpu.vector_store %arg6[%c0_11, %c0_12], %15 {strides = array<i32>} : memref<8x512xf32, #tpu.memory_space<vmem>>, vector<8x512xf32>,
    } else {
    }
    %c0 = arith.constant 0 : index
    %c0_1 = arith.constant 0 : index
    %3 = vector.load %arg6[%c0, %c0_1] : memref<8x512xf32, #tpu.memory_space<vmem>>, vector<8x512xf32>
    %c0_2 = arith.constant 0 : index
    %c0_3 = arith.constant 0 : index
    %c0_4 = arith.constant 0 : index
    %4 = vector.load %arg2[%c0_2, %c0_3, %c0_4] : memref<1x8x256xbf16, #tpu.memory_space<vmem>>, vector<1x8x256xbf16>
    %5 = vector.shape_cast %4 : vector<1x8x256xbf16> to vector<8x256xbf16>
    %6 = arith.index_cast %arg1 : i32 to index
    %c0_5 = arith.constant 0 : index
    %c0_6 = arith.constant 0 : index
    %7 = vector.load %arg3[%6, %c0_5, %c0_6] : memref<9x256x512xbf16, #tpu.memory_space<vmem>>, vector<1x256x512xbf16>
    %8 = vector.shape_cast %7 : vector<1x256x512xbf16> to vector<256x512xbf16>
    %cst = arith.constant dense<0.000000e+00> : vector<8x512xf32>
    %9 = tpu.matmul %5, %8, %cst {dimension_numbers = #tpu.dot_dimension_numbers<[1], [0], [0], [1], [0, 0, 1, 1], [], []>} : vector<8x256xbf16>, vector<256x512xbf16>, vector<8x512xf32> -> vector<8x512xf32>
    %10 = arith.addf %3, %9 : vector<8x512xf32>
    %c0_7 = arith.constant 0 : index
    %c0_8 = arith.constant 0 : index
    %11 = vector.load %arg6[%c0_7, %c0_8] : memref<8x512xf32, #tpu.memory_space<vmem>>, vector<8x512xf32>
    tpu.vector_store %arg6[%c0_7, %c0_8], %10 {strides = array<i32>} : memref<8x512xf32, #tpu.memory_space<vmem>>, vector<8x512xf32>,
    %c8_i32 = arith.constant 8 : i32
    %12 = arith.cmpi eq, %arg1, %c8_i32 : i32
    %13 = arith.extui %12 : i1 to i32
    %c0_i32_9 = arith.constant 0 : i32
    %14 = arith.cmpi ne, %13, %c0_i32_9 : i32
    scf.if %14 {
      %c0_10 = arith.constant 0 : index
      %c0_11 = arith.constant 0 : index
      %15 = vector.load %arg6[%c0_10, %c0_11] : memref<8x512xf32, #tpu.memory_space<vmem>>, vector<8x512xf32>
      %c0_12 = arith.constant 0 : index
      %c0_13 = arith.constant 0 : index
      %16 = vector.load %arg4[%c0_12, %c0_13] : memref<1x512xf32, #tpu.memory_space<vmem>>, vector<1x512xf32>
      %17 = vector.broadcast %16 : vector<1x512xf32> to vector<8x512xf32>
      %18 = arith.addf %15, %17 : vector<8x512xf32>
      %cst_14 = arith.constant 0.000000e+00 : f32
      %19 = vector.broadcast %cst_14 : f32 to vector<8x512xf32>
      %20 = arith.maximumf %18, %19 : vector<8x512xf32>
      %21 = arith.truncf %20 : vector<8x512xf32> to vector<8x512xbf16>
      %c0_15 = arith.constant 0 : index
      %c0_16 = arith.constant 0 : index
      %22 = vector.load %arg5[%c0_15, %c0_16] : memref<8x512xbf16, #tpu.memory_space<vmem>>, vector<8x512xbf16>
      tpu.vector_store %arg5[%c0_15, %c0_16], %21 {strides = array<i32>} : memref<8x512xbf16, #tpu.memory_space<vmem>>, vector<8x512xbf16>,
    } else {
    }
    return
  }
  func.func @transform_0(%arg0: i32, %arg1: i32) -> (i32, i32, i32) {
    %c0_i32 = arith.constant 0 : i32
    %c0_i32_0 = arith.constant 0 : i32
    return %arg1, %arg0, %c0_i32 : i32, i32, i32
  }
  func.func @transform_1(%arg0: i32, %arg1: i32) -> (i32, i32, i32) {
    %c0_i32 = arith.constant 0 : i32
    %c0_i32_0 = arith.constant 0 : i32
    %c0_i32_1 = arith.constant 0 : i32
    %c0_i32_2 = arith.constant 0 : i32
    return %c0_i32, %c0_i32_0, %c0_i32_1 : i32, i32, i32
  }
  func.func @transform_2(%arg0: i32, %arg1: i32) -> (i32, i32) {
    %c0_i32 = arith.constant 0 : i32
    %c0_i32_0 = arith.constant 0 : i32
    %c0_i32_1 = arith.constant 0 : i32
    return %c0_i32, %c0_i32_0 : i32, i32
  }
  func.func @transform_3(%arg0: i32, %arg1: i32) -> (i32, i32) {
    %c0_i32 = arith.constant 0 : i32
    %c0_i32_0 = arith.constant 0 : i32
    return %arg0, %c0_i32 : i32, i32
  }
}

module attributes {stable_mosaic.version = 11 : i64} {
  func.func @_tap_gemm_kernel(%arg0: i32, %arg1: i32, %arg2: memref<1x8x256xbf16, #tpu.memory_space<vmem>>, %arg3: memref<1x256x512xbf16, #tpu.memory_space<vmem>>, %arg4: memref<1x512xf32, #tpu.memory_space<vmem>>, %arg5: memref<8x512xbf16, #tpu.memory_space<vmem>>, %arg6: memref<8x512xf32, #tpu.memory_space<vmem>>) attributes {dimension_semantics = [#tpu.dimension_semantics<parallel>, #tpu.dimension_semantics<arbitrary>], iteration_bounds = array<i64: 1, 1>, scalar_prefetch = 0 : i64, scratch_operands = 1 : i64, tpu.core_type = #tpu.core_type<tc>, window_params = [{transform_indices = @transform_0, window_bounds = array<i64: 1, 8, 256>}, {pipeline_mode = #tpu.pipeline_mode<synchronous>, transform_indices = @transform_1, window_bounds = array<i64: 1, 256, 512>}, {pipeline_mode = #tpu.pipeline_mode<synchronous>, transform_indices = @transform_2, window_bounds = array<i64: 1, 512>}, {transform_indices = @transform_3, window_bounds = array<i64: 8, 512>}]} {
    %c0_i32 = arith.constant 0 : i32
    %0 = arith.cmpi eq, %arg1, %c0_i32 : i32
    %1 = arith.extui %0 : i1 to i32
    %c0_i32_0 = arith.constant 0 : i32
    %2 = arith.cmpi ne, %1, %c0_i32_0 : i32
    scf.if %2 {
      %cst_11 = arith.constant 0.000000e+00 : f32
      %15 = vector.broadcast %cst_11 : f32 to vector<8x512xf32>
      %c0_12 = arith.constant 0 : index
      %c0_13 = arith.constant 0 : index
      %16 = vector.load %arg6[%c0_12, %c0_13] : memref<8x512xf32, #tpu.memory_space<vmem>>, vector<8x512xf32>
      tpu.vector_store %arg6[%c0_12, %c0_13], %15 {strides = array<i32>} : memref<8x512xf32, #tpu.memory_space<vmem>>, vector<8x512xf32>,
    } else {
    }
    %c0 = arith.constant 0 : index
    %c0_1 = arith.constant 0 : index
    %3 = vector.load %arg6[%c0, %c0_1] : memref<8x512xf32, #tpu.memory_space<vmem>>, vector<8x512xf32>
    %c0_2 = arith.constant 0 : index
    %c0_3 = arith.constant 0 : index
    %c0_4 = arith.constant 0 : index
    %4 = vector.load %arg2[%c0_2, %c0_3, %c0_4] : memref<1x8x256xbf16, #tpu.memory_space<vmem>>, vector<1x8x256xbf16>
    %5 = vector.shape_cast %4 : vector<1x8x256xbf16> to vector<8x256xbf16>
    %6 = arith.index_cast %arg1 : i32 to index
    %c0_5 = arith.constant 0 : index
    %c0_6 = arith.constant 0 : index
    %7 = vector.load %arg3[%6, %c0_5, %c0_6] : memref<1x256x512xbf16, #tpu.memory_space<vmem>>, vector<1x256x512xbf16>
    %8 = vector.shape_cast %7 : vector<1x256x512xbf16> to vector<256x512xbf16>
    %cst = arith.constant dense<0.000000e+00> : vector<8x512xf32>
    %9 = tpu.matmul %5, %8, %cst {dimension_numbers = #tpu.dot_dimension_numbers<[1], [0], [0], [1], [0, 0, 1, 1], [], []>} : vector<8x256xbf16>, vector<256x512xbf16>, vector<8x512xf32> -> vector<8x512xf32>
    %10 = arith.addf %3, %9 : vector<8x512xf32>
    %c0_7 = arith.constant 0 : index
    %c0_8 = arith.constant 0 : index
    %11 = vector.load %arg6[%c0_7, %c0_8] : memref<8x512xf32, #tpu.memory_space<vmem>>, vector<8x512xf32>
    tpu.vector_store %arg6[%c0_7, %c0_8], %10 {strides = array<i32>} : memref<8x512xf32, #tpu.memory_space<vmem>>, vector<8x512xf32>,
    %c0_i32_9 = arith.constant 0 : i32
    %12 = arith.cmpi eq, %arg1, %c0_i32_9 : i32
    %13 = arith.extui %12 : i1 to i32
    %c0_i32_10 = arith.constant 0 : i32
    %14 = arith.cmpi ne, %13, %c0_i32_10 : i32
    scf.if %14 {
      %c0_11 = arith.constant 0 : index
      %c0_12 = arith.constant 0 : index
      %15 = vector.load %arg6[%c0_11, %c0_12] : memref<8x512xf32, #tpu.memory_space<vmem>>, vector<8x512xf32>
      %c0_13 = arith.constant 0 : index
      %c0_14 = arith.constant 0 : index
      %16 = vector.load %arg4[%c0_13, %c0_14] : memref<1x512xf32, #tpu.memory_space<vmem>>, vector<1x512xf32>
      %17 = vector.broadcast %16 : vector<1x512xf32> to vector<8x512xf32>
      %18 = arith.addf %15, %17 : vector<8x512xf32>
      %19 = arith.truncf %18 : vector<8x512xf32> to vector<8x512xbf16>
      %c0_15 = arith.constant 0 : index
      %c0_16 = arith.constant 0 : index
      %20 = vector.load %arg5[%c0_15, %c0_16] : memref<8x512xbf16, #tpu.memory_space<vmem>>, vector<8x512xbf16>
      tpu.vector_store %arg5[%c0_15, %c0_16], %19 {strides = array<i32>} : memref<8x512xbf16, #tpu.memory_space<vmem>>, vector<8x512xbf16>,
    } else {
    }
    return
  }
  func.func @transform_0(%arg0: i32, %arg1: i32) -> (i32, i32, i32) {
    %c0_i32 = arith.constant 0 : i32
    %c0_i32_0 = arith.constant 0 : i32
    return %arg1, %arg0, %c0_i32 : i32, i32, i32
  }
  func.func @transform_1(%arg0: i32, %arg1: i32) -> (i32, i32, i32) {
    %c0_i32 = arith.constant 0 : i32
    %c0_i32_0 = arith.constant 0 : i32
    %c0_i32_1 = arith.constant 0 : i32
    %c0_i32_2 = arith.constant 0 : i32
    return %c0_i32, %c0_i32_0, %c0_i32_1 : i32, i32, i32
  }
  func.func @transform_2(%arg0: i32, %arg1: i32) -> (i32, i32) {
    %c0_i32 = arith.constant 0 : i32
    %c0_i32_0 = arith.constant 0 : i32
    %c0_i32_1 = arith.constant 0 : i32
    return %c0_i32, %c0_i32_0 : i32, i32
  }
  func.func @transform_3(%arg0: i32, %arg1: i32) -> (i32, i32) {
    %c0_i32 = arith.constant 0 : i32
    %c0_i32_0 = arith.constant 0 : i32
    return %arg0, %c0_i32 : i32, i32
  }
}

module attributes {stable_mosaic.version = 11 : i64} {
  func.func @_tap_gemm_res_kernel(%arg0: i32, %arg1: i32, %arg2: memref<1x8x512xbf16, #tpu.memory_space<vmem>>, %arg3: memref<9x512x512xbf16, #tpu.memory_space<vmem>>, %arg4: memref<1x512xf32, #tpu.memory_space<vmem>>, %arg5: memref<8x512xbf16, #tpu.memory_space<vmem>>, %arg6: memref<8x512xbf16, #tpu.memory_space<vmem>>, %arg7: memref<8x512xf32, #tpu.memory_space<vmem>>) attributes {dimension_semantics = [#tpu.dimension_semantics<parallel>, #tpu.dimension_semantics<arbitrary>], iteration_bounds = array<i64: 1, 9>, scalar_prefetch = 0 : i64, scratch_operands = 1 : i64, tpu.core_type = #tpu.core_type<tc>, window_params = [{transform_indices = @transform_0, window_bounds = array<i64: 1, 8, 512>}, {pipeline_mode = #tpu.pipeline_mode<synchronous>, transform_indices = @transform_1, window_bounds = array<i64: 9, 512, 512>}, {pipeline_mode = #tpu.pipeline_mode<synchronous>, transform_indices = @transform_2, window_bounds = array<i64: 1, 512>}, {transform_indices = @transform_3, window_bounds = array<i64: 8, 512>}, {transform_indices = @transform_4, window_bounds = array<i64: 8, 512>}]} {
    %c0_i32 = arith.constant 0 : i32
    %0 = arith.cmpi eq, %arg1, %c0_i32 : i32
    %1 = arith.extui %0 : i1 to i32
    %c0_i32_0 = arith.constant 0 : i32
    %2 = arith.cmpi ne, %1, %c0_i32_0 : i32
    scf.if %2 {
      %cst_10 = arith.constant 0.000000e+00 : f32
      %15 = vector.broadcast %cst_10 : f32 to vector<8x512xf32>
      %c0_11 = arith.constant 0 : index
      %c0_12 = arith.constant 0 : index
      %16 = vector.load %arg7[%c0_11, %c0_12] : memref<8x512xf32, #tpu.memory_space<vmem>>, vector<8x512xf32>
      tpu.vector_store %arg7[%c0_11, %c0_12], %15 {strides = array<i32>} : memref<8x512xf32, #tpu.memory_space<vmem>>, vector<8x512xf32>,
    } else {
    }
    %c0 = arith.constant 0 : index
    %c0_1 = arith.constant 0 : index
    %3 = vector.load %arg7[%c0, %c0_1] : memref<8x512xf32, #tpu.memory_space<vmem>>, vector<8x512xf32>
    %c0_2 = arith.constant 0 : index
    %c0_3 = arith.constant 0 : index
    %c0_4 = arith.constant 0 : index
    %4 = vector.load %arg2[%c0_2, %c0_3, %c0_4] : memref<1x8x512xbf16, #tpu.memory_space<vmem>>, vector<1x8x512xbf16>
    %5 = vector.shape_cast %4 : vector<1x8x512xbf16> to vector<8x512xbf16>
    %6 = arith.index_cast %arg1 : i32 to index
    %c0_5 = arith.constant 0 : index
    %c0_6 = arith.constant 0 : index
    %7 = vector.load %arg3[%6, %c0_5, %c0_6] : memref<9x512x512xbf16, #tpu.memory_space<vmem>>, vector<1x512x512xbf16>
    %8 = vector.shape_cast %7 : vector<1x512x512xbf16> to vector<512x512xbf16>
    %cst = arith.constant dense<0.000000e+00> : vector<8x512xf32>
    %9 = tpu.matmul %5, %8, %cst {dimension_numbers = #tpu.dot_dimension_numbers<[1], [0], [0], [1], [0, 0, 1, 1], [], []>} : vector<8x512xbf16>, vector<512x512xbf16>, vector<8x512xf32> -> vector<8x512xf32>
    %10 = arith.addf %3, %9 : vector<8x512xf32>
    %c0_7 = arith.constant 0 : index
    %c0_8 = arith.constant 0 : index
    %11 = vector.load %arg7[%c0_7, %c0_8] : memref<8x512xf32, #tpu.memory_space<vmem>>, vector<8x512xf32>
    tpu.vector_store %arg7[%c0_7, %c0_8], %10 {strides = array<i32>} : memref<8x512xf32, #tpu.memory_space<vmem>>, vector<8x512xf32>,
    %c8_i32 = arith.constant 8 : i32
    %12 = arith.cmpi eq, %arg1, %c8_i32 : i32
    %13 = arith.extui %12 : i1 to i32
    %c0_i32_9 = arith.constant 0 : i32
    %14 = arith.cmpi ne, %13, %c0_i32_9 : i32
    scf.if %14 {
      %c0_10 = arith.constant 0 : index
      %c0_11 = arith.constant 0 : index
      %15 = vector.load %arg7[%c0_10, %c0_11] : memref<8x512xf32, #tpu.memory_space<vmem>>, vector<8x512xf32>
      %c0_12 = arith.constant 0 : index
      %c0_13 = arith.constant 0 : index
      %16 = vector.load %arg4[%c0_12, %c0_13] : memref<1x512xf32, #tpu.memory_space<vmem>>, vector<1x512xf32>
      %17 = vector.broadcast %16 : vector<1x512xf32> to vector<8x512xf32>
      %18 = arith.addf %15, %17 : vector<8x512xf32>
      %c0_14 = arith.constant 0 : index
      %c0_15 = arith.constant 0 : index
      %19 = vector.load %arg5[%c0_14, %c0_15] : memref<8x512xbf16, #tpu.memory_space<vmem>>, vector<8x512xbf16>
      %20 = arith.extf %19 : vector<8x512xbf16> to vector<8x512xf32>
      %21 = arith.addf %18, %20 : vector<8x512xf32>
      %cst_16 = arith.constant 0.000000e+00 : f32
      %22 = vector.broadcast %cst_16 : f32 to vector<8x512xf32>
      %23 = arith.maximumf %21, %22 : vector<8x512xf32>
      %24 = arith.truncf %23 : vector<8x512xf32> to vector<8x512xbf16>
      %c0_17 = arith.constant 0 : index
      %c0_18 = arith.constant 0 : index
      %25 = vector.load %arg6[%c0_17, %c0_18] : memref<8x512xbf16, #tpu.memory_space<vmem>>, vector<8x512xbf16>
      tpu.vector_store %arg6[%c0_17, %c0_18], %24 {strides = array<i32>} : memref<8x512xbf16, #tpu.memory_space<vmem>>, vector<8x512xbf16>,
    } else {
    }
    return
  }
  func.func @transform_0(%arg0: i32, %arg1: i32) -> (i32, i32, i32) {
    %c0_i32 = arith.constant 0 : i32
    %c0_i32_0 = arith.constant 0 : i32
    return %arg1, %arg0, %c0_i32 : i32, i32, i32
  }
  func.func @transform_1(%arg0: i32, %arg1: i32) -> (i32, i32, i32) {
    %c0_i32 = arith.constant 0 : i32
    %c0_i32_0 = arith.constant 0 : i32
    %c0_i32_1 = arith.constant 0 : i32
    %c0_i32_2 = arith.constant 0 : i32
    return %c0_i32, %c0_i32_0, %c0_i32_1 : i32, i32, i32
  }
  func.func @transform_2(%arg0: i32, %arg1: i32) -> (i32, i32) {
    %c0_i32 = arith.constant 0 : i32
    %c0_i32_0 = arith.constant 0 : i32
    %c0_i32_1 = arith.constant 0 : i32
    return %c0_i32, %c0_i32_0 : i32, i32
  }
  func.func @transform_3(%arg0: i32, %arg1: i32) -> (i32, i32) {
    %c0_i32 = arith.constant 0 : i32
    %c0_i32_0 = arith.constant 0 : i32
    return %arg0, %c0_i32 : i32, i32
  }
  func.func @transform_4(%arg0: i32, %arg1: i32) -> (i32, i32) {
    %c0_i32 = arith.constant 0 : i32
    %c0_i32_0 = arith.constant 0 : i32
    return %arg0, %c0_i32 : i32, i32
  }
}

module attributes {stable_mosaic.version = 11 : i64} {
  func.func @_tap_gemm_kernel(%arg0: i32, %arg1: i32, %arg2: memref<1x8x512xbf16, #tpu.memory_space<vmem>>, %arg3: memref<9x512x512xbf16, #tpu.memory_space<vmem>>, %arg4: memref<1x512xf32, #tpu.memory_space<vmem>>, %arg5: memref<8x512xbf16, #tpu.memory_space<vmem>>, %arg6: memref<8x512xf32, #tpu.memory_space<vmem>>) attributes {dimension_semantics = [#tpu.dimension_semantics<parallel>, #tpu.dimension_semantics<arbitrary>], iteration_bounds = array<i64: 1, 9>, scalar_prefetch = 0 : i64, scratch_operands = 1 : i64, tpu.core_type = #tpu.core_type<tc>, window_params = [{transform_indices = @transform_0, window_bounds = array<i64: 1, 8, 512>}, {pipeline_mode = #tpu.pipeline_mode<synchronous>, transform_indices = @transform_1, window_bounds = array<i64: 9, 512, 512>}, {pipeline_mode = #tpu.pipeline_mode<synchronous>, transform_indices = @transform_2, window_bounds = array<i64: 1, 512>}, {transform_indices = @transform_3, window_bounds = array<i64: 8, 512>}]} {
    %c0_i32 = arith.constant 0 : i32
    %0 = arith.cmpi eq, %arg1, %c0_i32 : i32
    %1 = arith.extui %0 : i1 to i32
    %c0_i32_0 = arith.constant 0 : i32
    %2 = arith.cmpi ne, %1, %c0_i32_0 : i32
    scf.if %2 {
      %cst_10 = arith.constant 0.000000e+00 : f32
      %15 = vector.broadcast %cst_10 : f32 to vector<8x512xf32>
      %c0_11 = arith.constant 0 : index
      %c0_12 = arith.constant 0 : index
      %16 = vector.load %arg6[%c0_11, %c0_12] : memref<8x512xf32, #tpu.memory_space<vmem>>, vector<8x512xf32>
      tpu.vector_store %arg6[%c0_11, %c0_12], %15 {strides = array<i32>} : memref<8x512xf32, #tpu.memory_space<vmem>>, vector<8x512xf32>,
    } else {
    }
    %c0 = arith.constant 0 : index
    %c0_1 = arith.constant 0 : index
    %3 = vector.load %arg6[%c0, %c0_1] : memref<8x512xf32, #tpu.memory_space<vmem>>, vector<8x512xf32>
    %c0_2 = arith.constant 0 : index
    %c0_3 = arith.constant 0 : index
    %c0_4 = arith.constant 0 : index
    %4 = vector.load %arg2[%c0_2, %c0_3, %c0_4] : memref<1x8x512xbf16, #tpu.memory_space<vmem>>, vector<1x8x512xbf16>
    %5 = vector.shape_cast %4 : vector<1x8x512xbf16> to vector<8x512xbf16>
    %6 = arith.index_cast %arg1 : i32 to index
    %c0_5 = arith.constant 0 : index
    %c0_6 = arith.constant 0 : index
    %7 = vector.load %arg3[%6, %c0_5, %c0_6] : memref<9x512x512xbf16, #tpu.memory_space<vmem>>, vector<1x512x512xbf16>
    %8 = vector.shape_cast %7 : vector<1x512x512xbf16> to vector<512x512xbf16>
    %cst = arith.constant dense<0.000000e+00> : vector<8x512xf32>
    %9 = tpu.matmul %5, %8, %cst {dimension_numbers = #tpu.dot_dimension_numbers<[1], [0], [0], [1], [0, 0, 1, 1], [], []>} : vector<8x512xbf16>, vector<512x512xbf16>, vector<8x512xf32> -> vector<8x512xf32>
    %10 = arith.addf %3, %9 : vector<8x512xf32>
    %c0_7 = arith.constant 0 : index
    %c0_8 = arith.constant 0 : index
    %11 = vector.load %arg6[%c0_7, %c0_8] : memref<8x512xf32, #tpu.memory_space<vmem>>, vector<8x512xf32>
    tpu.vector_store %arg6[%c0_7, %c0_8], %10 {strides = array<i32>} : memref<8x512xf32, #tpu.memory_space<vmem>>, vector<8x512xf32>,
    %c8_i32 = arith.constant 8 : i32
    %12 = arith.cmpi eq, %arg1, %c8_i32 : i32
    %13 = arith.extui %12 : i1 to i32
    %c0_i32_9 = arith.constant 0 : i32
    %14 = arith.cmpi ne, %13, %c0_i32_9 : i32
    scf.if %14 {
      %c0_10 = arith.constant 0 : index
      %c0_11 = arith.constant 0 : index
      %15 = vector.load %arg6[%c0_10, %c0_11] : memref<8x512xf32, #tpu.memory_space<vmem>>, vector<8x512xf32>
      %c0_12 = arith.constant 0 : index
      %c0_13 = arith.constant 0 : index
      %16 = vector.load %arg4[%c0_12, %c0_13] : memref<1x512xf32, #tpu.memory_space<vmem>>, vector<1x512xf32>
      %17 = vector.broadcast %16 : vector<1x512xf32> to vector<8x512xf32>
      %18 = arith.addf %15, %17 : vector<8x512xf32>
      %cst_14 = arith.constant 0.000000e+00 : f32
      %19 = vector.broadcast %cst_14 : f32 to vector<8x512xf32>
      %20 = arith.maximumf %18, %19 : vector<8x512xf32>
      %21 = arith.truncf %20 : vector<8x512xf32> to vector<8x512xbf16>
      %c0_15 = arith.constant 0 : index
      %c0_16 = arith.constant 0 : index
      %22 = vector.load %arg5[%c0_15, %c0_16] : memref<8x512xbf16, #tpu.memory_space<vmem>>, vector<8x512xbf16>
      tpu.vector_store %arg5[%c0_15, %c0_16], %21 {strides = array<i32>} : memref<8x512xbf16, #tpu.memory_space<vmem>>, vector<8x512xbf16>,
    } else {
    }
    return
  }
  func.func @transform_0(%arg0: i32, %arg1: i32) -> (i32, i32, i32) {
    %c0_i32 = arith.constant 0 : i32
    %c0_i32_0 = arith.constant 0 : i32
    return %arg1, %arg0, %c0_i32 : i32, i32, i32
  }
  func.func @transform_1(%arg0: i32, %arg1: i32) -> (i32, i32, i32) {
    %c0_i32 = arith.constant 0 : i32
    %c0_i32_0 = arith.constant 0 : i32
    %c0_i32_1 = arith.constant 0 : i32
    %c0_i32_2 = arith.constant 0 : i32
    return %c0_i32, %c0_i32_0, %c0_i32_1 : i32, i32, i32
  }
  func.func @transform_2(%arg0: i32, %arg1: i32) -> (i32, i32) {
    %c0_i32 = arith.constant 0 : i32
    %c0_i32_0 = arith.constant 0 : i32
    %c0_i32_1 = arith.constant 0 : i32
    return %c0_i32, %c0_i32_0 : i32, i32
  }
  func.func @transform_3(%arg0: i32, %arg1: i32) -> (i32, i32) {
    %c0_i32 = arith.constant 0 : i32
    %c0_i32_0 = arith.constant 0 : i32
    return %arg0, %c0_i32 : i32, i32
  }
}

module attributes {stable_mosaic.version = 11 : i64} {
  func.func @_mean_axis1_kernel(%arg0: i32, %arg1: memref<8x1x512xbf16, #tpu.memory_space<vmem>>, %arg2: memref<8x512xf32, #tpu.memory_space<vmem>>) attributes {dimension_semantics = [#tpu.dimension_semantics<parallel>], iteration_bounds = array<i64: 1>, scalar_prefetch = 0 : i64, scratch_operands = 0 : i64, tpu.core_type = #tpu.core_type<tc>, window_params = [{transform_indices = @transform_0, window_bounds = array<i64: 8, 1, 512>}, {transform_indices = @transform_1, window_bounds = array<i64: 8, 512>}]} {
    %c0 = arith.constant 0 : index
    %c0_0 = arith.constant 0 : index
    %c0_1 = arith.constant 0 : index
    %0 = vector.load %arg1[%c0, %c0_0, %c0_1] : memref<8x1x512xbf16, #tpu.memory_space<vmem>>, vector<8x1x512xbf16>
    %1 = arith.extf %0 : vector<8x1x512xbf16> to vector<8x1x512xf32>
    %cst = arith.constant dense<0.000000e+00> : vector<8x512xf32>
    %2 = vector.multi_reduction <add>, %1, %cst [1] : vector<8x1x512xf32> to vector<8x512xf32>
    %cst_2 = arith.constant 1.000000e+00 : f32
    %3 = vector.broadcast %cst_2 : f32 to vector<8x512xf32>
    %4 = arith.divf %2, %3 : vector<8x512xf32>
    %c0_3 = arith.constant 0 : index
    %c0_4 = arith.constant 0 : index
    %5 = vector.load %arg2[%c0_3, %c0_4] : memref<8x512xf32, #tpu.memory_space<vmem>>, vector<8x512xf32>
    tpu.vector_store %arg2[%c0_3, %c0_4], %4 {strides = array<i32>} : memref<8x512xf32, #tpu.memory_space<vmem>>, vector<8x512xf32>,
    return
  }
  func.func @transform_0(%arg0: i32) -> (i32, i32, i32) {
    %c0_i32 = arith.constant 0 : i32
    %c0_i32_0 = arith.constant 0 : i32
    %c0_i32_1 = arith.constant 0 : i32
    return %arg0, %c0_i32, %c0_i32_0 : i32, i32, i32
  }
  func.func @transform_1(%arg0: i32) -> (i32, i32) {
    %c0_i32 = arith.constant 0 : i32
    %c0_i32_0 = arith.constant 0 : i32
    return %arg0, %c0_i32 : i32, i32
  }
}

module attributes {stable_mosaic.version = 11 : i64} {
  func.func @_tap_gemm_kernel(%arg0: i32, %arg1: i32, %arg2: memref<1x8x512xbf16, #tpu.memory_space<vmem>>, %arg3: memref<1x512x128xbf16, #tpu.memory_space<vmem>>, %arg4: memref<1x128xf32, #tpu.memory_space<vmem>>, %arg5: memref<8x128xf32, #tpu.memory_space<vmem>>, %arg6: memref<8x128xf32, #tpu.memory_space<vmem>>) attributes {dimension_semantics = [#tpu.dimension_semantics<parallel>, #tpu.dimension_semantics<arbitrary>], iteration_bounds = array<i64: 1, 1>, scalar_prefetch = 0 : i64, scratch_operands = 1 : i64, tpu.core_type = #tpu.core_type<tc>, window_params = [{transform_indices = @transform_0, window_bounds = array<i64: 1, 8, 512>}, {pipeline_mode = #tpu.pipeline_mode<synchronous>, transform_indices = @transform_1, window_bounds = array<i64: 1, 512, 128>}, {pipeline_mode = #tpu.pipeline_mode<synchronous>, transform_indices = @transform_2, window_bounds = array<i64: 1, 128>}, {transform_indices = @transform_3, window_bounds = array<i64: 8, 128>}]} {
    %c0_i32 = arith.constant 0 : i32
    %0 = arith.cmpi eq, %arg1, %c0_i32 : i32
    %1 = arith.extui %0 : i1 to i32
    %c0_i32_0 = arith.constant 0 : i32
    %2 = arith.cmpi ne, %1, %c0_i32_0 : i32
    scf.if %2 {
      %cst_11 = arith.constant 0.000000e+00 : f32
      %15 = vector.broadcast %cst_11 : f32 to vector<8x128xf32>
      %c0_12 = arith.constant 0 : index
      %c0_13 = arith.constant 0 : index
      %16 = vector.load %arg6[%c0_12, %c0_13] : memref<8x128xf32, #tpu.memory_space<vmem>>, vector<8x128xf32>
      tpu.vector_store %arg6[%c0_12, %c0_13], %15 {strides = array<i32>} : memref<8x128xf32, #tpu.memory_space<vmem>>, vector<8x128xf32>,
    } else {
    }
    %c0 = arith.constant 0 : index
    %c0_1 = arith.constant 0 : index
    %3 = vector.load %arg6[%c0, %c0_1] : memref<8x128xf32, #tpu.memory_space<vmem>>, vector<8x128xf32>
    %c0_2 = arith.constant 0 : index
    %c0_3 = arith.constant 0 : index
    %c0_4 = arith.constant 0 : index
    %4 = vector.load %arg2[%c0_2, %c0_3, %c0_4] : memref<1x8x512xbf16, #tpu.memory_space<vmem>>, vector<1x8x512xbf16>
    %5 = vector.shape_cast %4 : vector<1x8x512xbf16> to vector<8x512xbf16>
    %6 = arith.index_cast %arg1 : i32 to index
    %c0_5 = arith.constant 0 : index
    %c0_6 = arith.constant 0 : index
    %7 = vector.load %arg3[%6, %c0_5, %c0_6] : memref<1x512x128xbf16, #tpu.memory_space<vmem>>, vector<1x512x128xbf16>
    %8 = vector.shape_cast %7 : vector<1x512x128xbf16> to vector<512x128xbf16>
    %cst = arith.constant dense<0.000000e+00> : vector<8x128xf32>
    %9 = tpu.matmul %5, %8, %cst {dimension_numbers = #tpu.dot_dimension_numbers<[1], [0], [0], [1], [0, 0, 1, 1], [], []>} : vector<8x512xbf16>, vector<512x128xbf16>, vector<8x128xf32> -> vector<8x128xf32>
    %10 = arith.addf %3, %9 : vector<8x128xf32>
    %c0_7 = arith.constant 0 : index
    %c0_8 = arith.constant 0 : index
    %11 = vector.load %arg6[%c0_7, %c0_8] : memref<8x128xf32, #tpu.memory_space<vmem>>, vector<8x128xf32>
    tpu.vector_store %arg6[%c0_7, %c0_8], %10 {strides = array<i32>} : memref<8x128xf32, #tpu.memory_space<vmem>>, vector<8x128xf32>,
    %c0_i32_9 = arith.constant 0 : i32
    %12 = arith.cmpi eq, %arg1, %c0_i32_9 : i32
    %13 = arith.extui %12 : i1 to i32
    %c0_i32_10 = arith.constant 0 : i32
    %14 = arith.cmpi ne, %13, %c0_i32_10 : i32
    scf.if %14 {
      %c0_11 = arith.constant 0 : index
      %c0_12 = arith.constant 0 : index
      %15 = vector.load %arg6[%c0_11, %c0_12] : memref<8x128xf32, #tpu.memory_space<vmem>>, vector<8x128xf32>
      %c0_13 = arith.constant 0 : index
      %c0_14 = arith.constant 0 : index
      %16 = vector.load %arg4[%c0_13, %c0_14] : memref<1x128xf32, #tpu.memory_space<vmem>>, vector<1x128xf32>
      %17 = vector.broadcast %16 : vector<1x128xf32> to vector<8x128xf32>
      %18 = arith.addf %15, %17 : vector<8x128xf32>
      %c0_15 = arith.constant 0 : index
      %c0_16 = arith.constant 0 : index
      %19 = vector.load %arg5[%c0_15, %c0_16] : memref<8x128xf32, #tpu.memory_space<vmem>>, vector<8x128xf32>
      tpu.vector_store %arg5[%c0_15, %c0_16], %18 {strides = array<i32>} : memref<8x128xf32, #tpu.memory_space<vmem>>, vector<8x128xf32>,
    } else {
    }
    return
  }
  func.func @transform_0(%arg0: i32, %arg1: i32) -> (i32, i32, i32) {
    %c0_i32 = arith.constant 0 : i32
    %c0_i32_0 = arith.constant 0 : i32
    return %arg1, %arg0, %c0_i32 : i32, i32, i32
  }
  func.func @transform_1(%arg0: i32, %arg1: i32) -> (i32, i32, i32) {
    %c0_i32 = arith.constant 0 : i32
    %c0_i32_0 = arith.constant 0 : i32
    %c0_i32_1 = arith.constant 0 : i32
    %c0_i32_2 = arith.constant 0 : i32
    return %c0_i32, %c0_i32_0, %c0_i32_1 : i32, i32, i32
  }
  func.func @transform_2(%arg0: i32, %arg1: i32) -> (i32, i32) {
    %c0_i32 = arith.constant 0 : i32
    %c0_i32_0 = arith.constant 0 : i32
    %c0_i32_1 = arith.constant 0 : i32
    return %c0_i32, %c0_i32_0 : i32, i32
  }
  func.func @transform_3(%arg0: i32, %arg1: i32) -> (i32, i32) {
    %c0_i32 = arith.constant 0 : i32
    %c0_i32_0 = arith.constant 0 : i32
    return %arg0, %c0_i32 : i32, i32
  }
}

</mosaic_0001>

<bundles_post_ra>
// kernel: resnet18_forward.23
= control target key start
LH: loop header
LB: loop body
LE: loop exit
PB: predicated region body
PF: predicated region fallthrough
CT: control target
= control target key end

     0   :  { %s1441_s12 = smov 0   ;;  %s1443_s13 = smov 0   ;;  %s1747_s0 = inlined_call_operand.vmem [shape: bf16[1,512,147], index: 0, kind: input, shape index: {}]   ;;  %s1748_s1 = inlined_call_operand.vmem [shape: bf16[1,147,64], index: 1, kind: input, shape index: {}]   ;;  %s1749_s2 = inlined_call_operand.vmem [shape: f32[1,64], index: 2, kind: input, shape index: {}]   ;;  %s1750_s3 = inlined_call_operand.vmem [shape: bf16[512,64], index: 3, kind: output, shape index: {}]  }
   0x1   :  { %s1445_s14 = smov 0  }
   0x2 LB: > { %s25_s15 = sadd.s32 1, %s1412_s13  ;;  %p1157_p0 = scmp.ge.s32.totalorder %s1416_s14, 1  ;;  %s1416_s14 = sphi %s1445_s14, %s13_s14   ;;  %s1412_s13 = sphi %s1443_s13, %s1752_s13   ;;  %s1408_s12 = sphi %s1441_s12, %s1751_s12  }
   0x3   : > { %p27_p1 = scmp.ge.s32.totalorder %s25_s15, 2  ;;  %p157_p2 = scmp.lt.s32.totalorder %s1416_s14, 3 }
   0x5   : > { %s1754_s15 = smov (%p27_p1, %s25_s15), 0  ;;  %p158_p3 = pnand %p1157_p0, %p157_p2 }
   0x6   : > { %v1336_v0 = vld [vmem:[%s1748_s1] sm:$0xff] (!%p158_p3)   ;;  %v1418_v1 = vmov (!%p158_p3), 0   ;;  %v1337_v2 = vld [vmem:[%s1748_s1 + $0x8] sm:$0xff] (!%p158_p3)   ;;  %v1338_v3 = vld [vmem:[%s1748_s1 + $0x10] sm:$0xff] (!%p158_p3)   ;;  %s1158_s22 = sshll.u32 (!%p158_p3), %s1408_s12, 5  ;;  %vm208_vm0 = vcmask (!%p158_p3), 523264  }
   0x7   : > { %161 = sbr.rel (%p158_p3) target bundleno = 337 (0x151), region = 32  ;;  %584 = vmatprep.subr.bf16.mxu0 (!%p158_p3), %v1418_v1  ;;  %1289 = vmatprep.subr.bf16.mxu1 (!%p158_p3), %v1418_v1  ;;  %p189_p4 = scmp.lt.s32.totalorder (!%p158_p3), %s1158_s22, 63  ;;  %v1339_v4 = vld [vmem:[%s1748_s1 + $0x18] sm:$0xff] (!%p158_p3)   ;;  %v1419_v5 = vmov (!%p158_p3), 0.0   ;;  %v1340_v6 = vld [vmem:[%s1748_s1 + $0x20] sm:$0xff] (!%p158_p3)   ;;  %vm528_vm1 = vcmask (!%p158_p3), 154624  }
   0x8   : > { %585 = vmatpush1.bf16.msra.mxu0 (!%p158_p3), %v1336_v0  ;;  %1299 = vmatpush1.bf16.msra.mxu1 (!%p158_p3), %v1336_v0  ;;  %209 = vst.msk [vmem:[#allocation2] sm:$0xff] (!%p158_p3), %vm208_vm0, %v1419_v5  ;;  %210 = vst.msk [vmem:[#allocation2 + $0x8] sm:$0xff] (!%p158_p3), %vm208_vm0, %v1419_v5  ;;  %v1341_v9 = vld [vmem:[%s1748_s1 + $0x28] sm:$0xff] (!%p158_p3)   ;;  %v1342_v10 = vld [vmem:[%s1748_s1 + $0x30] sm:$0xff] (!%p158_p3)   ;;  %vm577_vm2 = vcmask (!%p158_p3), 1040384   ;;  %vm578_vm3 = vcmask (!%p158_p3), 1041408  }
   0x9   : > { %586 = vmatprep.subr.bf16.mxu0 (!%p158_p3), %v1418_v1  ;;  %1290 = vmatprep.subr.bf16.mxu1 (!%p158_p3), %v1418_v1  ;;  %211 = vst.msk [vmem:[#allocation2 + $0x10] sm:$0xff] (!%p158_p3), %vm208_vm0, %v1419_v5  ;;  %212 = vst.msk [vmem:[#allocation2 + $0x18] sm:$0xff] (!%p158_p3), %vm208_vm0, %v1419_v5  ;;  %v1343_v11 = vld [vmem:[%s1748_s1 + $0x38] sm:$0xff] (!%p158_p3)   ;;  %v1420_v12 = vmov (!%p158_p3), 65535   ;;  %v1344_v14 = vld [vmem:[%s1748_s1 + $0x40] sm:$0xff] (!%p158_p3)   ;;  %vm1044_vm4 = vcmask (!%p158_p3), 519168  }
   0xa   : > { %213 = vst.msk [vmem:[#allocation2 + $0x20] sm:$0xff] (!%p158_p3), %vm208_vm0, %v1419_v5  ;;  %214 = vst.msk [vmem:[#allocation2 + $0x28] sm:$0xff] (!%p158_p3), %vm208_vm0, %v1419_v5  ;;  %v579_v13 = vsel (!%p158_p3), %vm577_vm2, 4294967295, %v1420_v12  ;;  %v1345_v15 = vld [vmem:[%s1748_s1 + $0x48] ss:$0 sps:$4 sm:$0x33] (!%p158_p3)  }
   0xb   : > { %215 = vst.msk [vmem:[#allocation2 + $0x30] sm:$0xff] (!%p158_p3), %vm208_vm0, %v1419_v5  ;;  %216 = vst.msk [vmem:[#allocation2 + $0x38] sm:$0xff] (!%p158_p3), %vm208_vm0, %v1419_v5  ;;  %v580_v16 = vsel (!%p158_p3), %vm578_vm3, %v579_v13, 0 }
   0xc   : > { %587 = vmatpush1.bf16.msra.mxu0 (!%p158_p3), %v1337_v2  ;;  %1300 = vmatpush1.bf16.msra.mxu1 (!%p158_p3), %v1337_v2  ;;  %217 = vst.msk [vmem:[#allocation2 + $0x40] sm:$0xff] (!%p158_p3), %vm208_vm0, %v1419_v5  ;;  %218 = vst.msk [vmem:[#allocation2 + $0x48] sm:$0xff] (!%p158_p3), %vm208_vm0, %v1419_v5  ;;  %v582_v17 = vand.u32 (!%p158_p3), %v1345_v15, %v580_v16  ;;  %v1606_v2 = vld [vmem:[%s1749_s2] ss:$0 sm:$0xff] (!%p158_p3) }
   0xd   : > { %588 = vmatprep.subr.bf16.mxu0 (!%p158_p3), %v1418_v1  ;;  %1291 = vmatprep.subr.bf16.mxu1 (!%p158_p3), %v1418_v1  ;;  %219 = vst.msk [vmem:[#allocation2 + $0x50] sm:$0xff] (!%p158_p3), %vm208_vm0, %v1419_v5  ;;  %220 = vst.msk [vmem:[#allocation2 + $0x58] sm:$0xff] (!%p158_p3), %vm208_vm0, %v1419_v5 }
   0xe   : > { %s1756_s22 = smov (!%p189_p4, %s1158_s22), 63  ;;  %221 = vst.msk [vmem:[#allocation2 + $0x60] sm:$0xff] %vm208_vm0, %v1419_v5  ;;  %222 = vst.msk [vmem:[#allocation2 + $0x68] sm:$0xff] %vm208_vm0, %v1419_v5 }
   0xf   : > { %s1256_s25 = sshll.u32 %s1756_s22, 3  ;;  %223 = vst.msk [vmem:[#allocation2 + $0x70] sm:$0xff] %vm208_vm0, %v1419_v5  ;;  %224 = vst.msk [vmem:[#allocation2 + $0x78] sm:$0xff] %vm208_vm0, %v1419_v5  ;;  %v241_v48 = vld [vmem:[#allocation2] sm:$0xff]  ;;  %v242_v52 = vld [vmem:[#allocation2 + $0x8] sm:$0xff]  ;;  %s1162_s19 = sshll.u32 %s1756_s22, 2 }
  0x10   : > { %589 = vmatpush1.bf16.msra.mxu0 %v1338_v3  ;;  %1301 = vmatpush1.bf16.msra.mxu1 %v1338_v3  ;;  %225 = vst.msk [vmem:[#allocation2 + $0x80] sm:$0xff] %vm208_vm0, %v1419_v5  ;;  %226 = vst.msk [vmem:[#allocation2 + $0x88] sm:$0xff] %vm208_vm0, %v1419_v5  ;;  %s1519_s28 = scalar_lea.vmem %s1747_s0, %s1256_s25  ;;  %v243_v0 = vld [vmem:[#allocation2 + $0x10] sm:$0xff]  ;;  %s1620_s22 = scalar_lea.vmem %s1750_s3, %s1162_s19 }
  0x11   : > { %590 = vmatprep.subr.bf16.mxu0 %v1418_v1  ;;  %1292 = vmatprep.subr.bf16.mxu1 %v1418_v1  ;;  %227 = vst.msk [vmem:[#allocation2 + $0x90] sm:$0xff] %vm208_vm0, %v1419_v5  ;;  %228 = vst.msk [vmem:[#allocation2 + $0x98] sm:$0xff] %vm208_vm0, %v1419_v5  ;;  %v1348_v7 = vld [vmem:[%s1519_s28 + $0x4] ss:$8 sps:$4 sm:$0xff]   ;;  %v1346_v18 = vld [vmem:[%s1519_s28] ss:$8 sps:$4 sm:$0xff]  }
  0x12   : > { %229 = vst.msk [vmem:[#allocation2 + $0xa0] sm:$0xff] %vm208_vm0, %v1419_v5  ;;  %230 = vst.msk [vmem:[#allocation2 + $0xa8] sm:$0xff] %vm208_vm0, %v1419_v5  ;;  %v1351_v8 = vld [vmem:[%s1519_s28 + $0x84] ss:$8 sps:$4 sm:$0xff]   ;;  %1205 = vmatprep.mubr.msk.bf16.mxu0 %vm528_vm1, %v1348_v7  ;;  %v1349_v19 = vld [vmem:[%s1519_s28 + $0x80] ss:$8 sps:$4 sm:$0xff]  }
  0x13   : > { %231 = vst.msk [vmem:[#allocation2 + $0xb0] sm:$0xff] %vm208_vm0, %v1419_v5  ;;  %232 = vst.msk [vmem:[#allocation2 + $0xb8] sm:$0xff] %vm208_vm0, %v1419_v5  ;;  %1213 = vmatprep.mubr.msk.bf16.mxu1 %vm528_vm1, %v1351_v8  ;;  %v1352_v20 = vld [vmem:[%s1519_s28 + $0x14] ss:$8 sps:$4 sm:$0xff]   ;;  %v1356_v22 = vld [vmem:[%s1519_s28 + $0x10] ss:$8 sps:$4 sm:$0xff]  }
  0x14   : > { %233 = vst.msk [vmem:[#allocation2 + $0xc0] sm:$0xff] %vm208_vm0, %v1419_v5  ;;  %234 = vst.msk [vmem:[#allocation2 + $0xc8] sm:$0xff] %vm208_vm0, %v1419_v5  ;;  %591 = vmatpush1.bf16.msra.mxu0 %v1339_v4  ;;  %1302 = vmatpush1.bf16.msra.mxu1 %v1339_v4  ;;  %v1354_v21 = vld [vmem:[%s1519_s28 + $0x94] ss:$8 sps:$4 sm:$0xff]   ;;  %v1357_v23 = vld [vmem:[%s1519_s28 + $0x90] ss:$8 sps:$4 sm:$0xff]  }
  0x15   : > { %235 = vst.msk [vmem:[#allocation2 + $0xd0] sm:$0xff] %vm208_vm0, %v1419_v5  ;;  %236 = vst.msk [vmem:[#allocation2 + $0xd8] sm:$0xff] %vm208_vm0, %v1419_v5  ;;  %592 = vmatprep.subr.bf16.mxu0 %v1418_v1  ;;  %1293 = vmatprep.subr.bf16.mxu1 %v1418_v1  ;;  %v1358_v24 = vld [vmem:[%s1519_s28 + $0x24] ss:$8 sps:$4 sm:$0xff]   ;;  %v1362_v26 = vld [vmem:[%s1519_s28 + $0x20] ss:$8 sps:$4 sm:$0xff]  }
  0x16   : > { %237 = vst.msk [vmem:[#allocation2 + $0xe0] sm:$0xff] %vm208_vm0, %v1419_v5  ;;  %238 = vst.msk [vmem:[#allocation2 + $0xe8] sm:$0xff] %vm208_vm0, %v1419_v5  ;;  %v1360_v25 = vld [vmem:[%s1519_s28 + $0xa4] ss:$8 sps:$4 sm:$0xff]   ;;  %v1363_v27 = vld [vmem:[%s1519_s28 + $0xa0] ss:$8 sps:$4 sm:$0xff]  }
  0x17   : > { %239 = vst.msk [vmem:[#allocation2 + $0xf0] sm:$0xff] %vm208_vm0, %v1419_v5  ;;  %240 = vst.msk [vmem:[#allocation2 + $0xf8] sm:$0xff] %vm208_vm0, %v1419_v5  ;;  %v1364_v28 = vld [vmem:[%s1519_s28 + $0x34] ss:$8 sps:$4 sm:$0xff]   ;;  %v1368_v30 = vld [vmem:[%s1519_s28 + $0x30] ss:$8 sps:$4 sm:$0xff]  }
  0x18   : > { %593 = vmatpush1.bf16.msra.mxu0 %v1340_v6  ;;  %1303 = vmatpush1.bf16.msra.mxu1 %v1340_v6  ;;  %v1366_v29 = vld [vmem:[%s1519_s28 + $0xb4] ss:$8 sps:$4 sm:$0xff]   ;;  %v1369_v31 = vld [vmem:[%s1519_s28 + $0xb0] ss:$8 sps:$4 sm:$0xff]   ;;  %v1370_v32 = vld [vmem:[%s1519_s28 + $0x44] ss:$8 sps:$4 sm:$0xff]  }
  0x19   : > { %594 = vmatprep.subr.bf16.mxu0 %v1418_v1  ;;  %1294 = vmatprep.subr.bf16.mxu1 %v1418_v1  ;;  %v1372_v33 = vld [vmem:[%s1519_s28 + $0xc4] ss:$8 sps:$4 sm:$0xff]   ;;  %v1374_v34 = vld [vmem:[%s1519_s28 + $0x40] ss:$8 sps:$4 sm:$0xff]   ;;  %v1376_v36 = vld [vmem:[%s1519_s28 + $0x54] ss:$8 sps:$4 sm:$0xff]  }
  0x1a   : > { %v1375_v35 = vld [vmem:[%s1519_s28 + $0xc0] ss:$8 sps:$4 sm:$0xff]   ;;  %v1378_v37 = vld [vmem:[%s1519_s28 + $0xd4] ss:$8 sps:$4 sm:$0xff]   ;;  %v1380_v38 = vld [vmem:[%s1519_s28 + $0x50] ss:$8 sps:$4 sm:$0xff]  }
  0x1b   : > { %v1381_v39 = vld [vmem:[%s1519_s28 + $0xd0] ss:$8 sps:$4 sm:$0xff]   ;;  %v1382_v40 = vld [vmem:[%s1519_s28 + $0x64] ss:$8 sps:$4 sm:$0xff]   ;;  %v1386_v42 = vld [vmem:[%s1519_s28 + $0x60] ss:$8 sps:$4 sm:$0xff]  }
  0x1c   : > { %595 = vmatpush1.bf16.msra.mxu0 %v1341_v9  ;;  %1304 = vmatpush1.bf16.msra.mxu1 %v1341_v9  ;;  %v1384_v41 = vld [vmem:[%s1519_s28 + $0xe4] ss:$8 sps:$4 sm:$0xff]   ;;  %v1387_v43 = vld [vmem:[%s1519_s28 + $0xe0] ss:$8 sps:$4 sm:$0xff]   ;;  %v1388_v44 = vld [vmem:[%s1519_s28 + $0x74] ss:$8 sps:$4 sm:$0xff]  }
  0x1d   : > { %596 = vmatprep.subr.bf16.mxu0 %v1418_v1  ;;  %1295 = vmatprep.subr.bf16.mxu1 %v1418_v1  ;;  %v1390_v45 = vld [vmem:[%s1519_s28 + $0xf4] ss:$8 sps:$4 sm:$0xff]   ;;  %v1392_v46 = vld [vmem:[%s1519_s28 + $0x70] ss:$8 sps:$4 sm:$0xff]   ;;  %v257_v49 = vld [vmem:[#allocation2 + $0x80] sm:$0xff] }
  0x1e   : > { %v1393_v47 = vld [vmem:[%s1519_s28 + $0xf0] ss:$8 sps:$4 sm:$0xff]   ;;  %v258_v53 = vld [vmem:[#allocation2 + $0x88] sm:$0xff] }
  0x1f   : > { %v244_v5 = vld [vmem:[#allocation2 + $0x18] sm:$0xff] }
  0x20   : > { %597 = vmatpush1.bf16.msra.mxu0 %v1342_v10  ;;  %1305 = vmatpush1.bf16.msra.mxu1 %v1342_v10  ;;  %v260_v6 = vld [vmem:[#allocation2 + $0x98] sm:$0xff] }
  0x21   : > { %598 = vmatprep.subr.bf16.mxu0 %v1418_v1  ;;  %1296 = vmatprep.subr.bf16.mxu1 %v1418_v1 }
  0x24   : > { %599 = vmatpush1.bf16.msra.mxu0 %v1343_v11  ;;  %1306 = vmatpush1.bf16.msra.mxu1 %v1343_v11 }
  0x25   : > { %600 = vmatprep.subr.bf16.mxu0 %v1418_v1  ;;  %1297 = vmatprep.subr.bf16.mxu1 %v1418_v1 }
  0x28   : > { %601 = vmatpush1.bf16.msra.mxu0 %v1344_v14  ;;  %1307 = vmatpush1.bf16.msra.mxu1 %v1344_v14 }
  0x29   : > { %602 = vmatprep.subr.bf16.mxu0 %v1418_v1  ;;  %1298 = vmatprep.subr.bf16.mxu1 %v1418_v1  ;;  %v259_v1 = vld [vmem:[#allocation2 + $0x90] sm:$0xff] }
  0x2c   : > { %603 = vmatpush1.bf16.msra.mxu0 %v582_v17  ;;  %1308 = vmatpush1.bf16.msra.mxu1 %v582_v17 }
  0x2f   : > { %617 = vmatmul.mubr.bf16.vlgmr.msra.gmra.mrb[0].mxu0 %v1346_v18  ;;  %681 = vmatmul.mubr.bf16.vlgmr.msra.gmra.mrb[0].mxu1 %v1349_v19 }
  0x30   : > { %1206 = vmatprep.mubr.msk.bf16.mxu0 %vm528_vm1, %v1352_v20  ;;  %1214 = vmatprep.mubr.msk.bf16.mxu1 %vm528_vm1, %v1354_v21 }
  0x37   : > { %625 = vmatmul.mubr.bf16.gmra.mrb[4].mxu0 %v1356_v22  ;;  %689 = vmatmul.mubr.bf16.gmra.mrb[4].mxu1 %v1357_v23 }
  0x38   : > { %1207 = vmatprep.mubr.msk.bf16.mxu0 %vm528_vm1, %v1358_v24  ;;  %1215 = vmatprep.mubr.msk.bf16.mxu1 %vm528_vm1, %v1360_v25 }
  0x3f   : > { %633 = vmatmul.mubr.bf16.gmra.mrb[8].mxu0 %v1362_v26  ;;  %697 = vmatmul.mubr.bf16.gmra.mrb[8].mxu1 %v1363_v27  ;;  %v245_v27 = vld [vmem:[#allocation2 + $0x20] sm:$0xff] }
  0x40   : > { %1208 = vmatprep.mubr.msk.bf16.mxu0 %vm528_vm1, %v1364_v28  ;;  %1216 = vmatprep.mubr.msk.bf16.mxu1 %vm528_vm1, %v1366_v29  ;;  %v261_v28 = vld [vmem:[#allocation2 + $0xa0] sm:$0xff] }
  0x47   : > { %641 = vmatmul.mubr.bf16.gmra.mrb[12].mxu0 %v1368_v30  ;;  %705 = vmatmul.mubr.bf16.gmra.mrb[12].mxu1 %v1369_v31 }
  0x48   : > { %1209 = vmatprep.mubr.msk.bf16.mxu0 %vm528_vm1, %v1370_v32  ;;  %1217 = vmatprep.mubr.msk.bf16.mxu1 %vm528_vm1, %v1372_v33 }
  0x4f   : > { %649 = vmatmul.mubr.bf16.gmra.mrb[16].mxu0 %v1374_v34  ;;  %713 = vmatmul.mubr.bf16.gmra.mrb[16].mxu1 %v1375_v35  ;;  %v246_v35 = vld [vmem:[#allocation2 + $0x28] sm:$0xff] }
  0x50   : > { %1210 = vmatprep.mubr.msk.bf16.mxu0 %vm528_vm1, %v1376_v36  ;;  %1218 = vmatprep.mubr.msk.bf16.mxu1 %vm528_vm1, %v1378_v37  ;;  %v262_v36 = vld [vmem:[#allocation2 + $0xa8] sm:$0xff] }
  0x57   : > { %657 = vmatmul.mubr.bf16.gmra.mrb[20].mxu0 %v1380_v38  ;;  %721 = vmatmul.mubr.bf16.gmra.mrb[20].mxu1 %v1381_v39 }
  0x58   : > { %1211 = vmatprep.mubr.msk.bf16.mxu0 %vm528_vm1, %v1382_v40  ;;  %1219 = vmatprep.mubr.msk.bf16.mxu1 %vm528_vm1, %v1384_v41 }
  0x5f   : > { %665 = vmatmul.mubr.bf16.gmra.mrb[24].mxu0 %v1386_v42  ;;  %729 = vmatmul.mubr.bf16.gmra.mrb[24].mxu1 %v1387_v43 }
  0x60   : > { %1212 = vmatprep.mubr.msk.bf16.mxu0 %vm528_vm1, %v1388_v44  ;;  %1220 = vmatprep.mubr.msk.bf16.mxu1 %vm528_vm1, %v1390_v45 }
  0x67   : > { %673 = vmatmul.mubr.bf16.gmra.mrb[28].mxu0 %v1392_v46  ;;  %737 = vmatmul.mubr.bf16.gmra.mrb[28].mxu1 %v1393_v47 }
 0x102   : > { %v618_v50 = vpop.f32.mrb[0].mxu0  ;;  %v682_v51 = vpop.f32.mrb[0].mxu1 }
 0x103   : > { %v745_v54 = vadd.f32 %v618_v50, %v241_v48  ;;  %v761_v55 = vadd.f32 %v682_v51, %v257_v49  ;;  %v620_v56 = vpop.f32.mrb[1].mxu0  ;;  %v684_v57 = vpop.f32.mrb[1].mxu1 }
 0x104   : > { %v621_v58 = vpop.f32.mrb[2].mxu0  ;;  %v685_v59 = vpop.f32.mrb[2].mxu1 }
 0x105   : > { %778 = vst.msk [vmem:[#allocation2] sm:$0xff] %vm208_vm0, %v745_v54  ;;  %794 = vst.msk [vmem:[#allocation2 + $0x80] sm:$0xff] %vm208_vm0, %v761_v55  ;;  %v746_v60 = vadd.f32 %v621_v58, %v242_v52  ;;  %v762_v61 = vadd.f32 %v685_v59, %v258_v53  ;;  %v623_v62 = vpop.f32.mrb[3].mxu0  ;;  %v687_v63 = vpop.f32.mrb[3].mxu1  ;;  %v247_v59 = vld [vmem:[#allocation2 + $0x30] sm:$0xff] }
 0x107   : > { %779 = vst.msk [vmem:[#allocation2 + $0x8] sm:$0xff] %vm208_vm0, %v746_v60  ;;  %795 = vst.msk [vmem:[#allocation2 + $0x88] sm:$0xff] %vm208_vm0, %v762_v61  ;;  %v263_v60 = vld [vmem:[#allocation2 + $0xb0] sm:$0xff] }
 0x10a   : > { %v626_v3 = vpop.f32.mrb[4].mxu0  ;;  %v690_v4 = vpop.f32.mrb[4].mxu1 }
 0x10b   : > { %v747_v7 = vadd.f32 %v626_v3, %v243_v0  ;;  %v763_v8 = vadd.f32 %v690_v4, %v259_v1  ;;  %v628_v9 = vpop.f32.mrb[5].mxu0  ;;  %v692_v10 = vpop.f32.mrb[5].mxu1  ;;  %v248_v4 = vld [vmem:[#allocation2 + $0x38] sm:$0xff] }
 0x10c   : > { %v813_v11 = vld [vmem:[#allocation2] sm:$0xff]  ;;  %v629_v13 = vpop.f32.mrb[6].mxu0  ;;  %v693_v14 = vpop.f32.mrb[6].mxu1 }
 0x10d   : > { %v829_v12 = vld [vmem:[#allocation2 + $0x80] sm:$0xff]  ;;  %v852_v15 = vadd.f32 %v1606_v2, %v813_v11  ;;  %780 = vst.msk [vmem:[#allocation2 + $0x10] sm:$0xff] %vm208_vm0, %v747_v7  ;;  %796 = vst.msk [vmem:[#allocation2 + $0x90] sm:$0xff] %vm208_vm0, %v763_v8  ;;  %v748_v17 = vadd.f32 %v629_v13, %v244_v5  ;;  %v764_v18 = vadd.f32 %v693_v14, %v260_v6  ;;  %v631_v19 = vpop.f32.mrb[7].mxu0  ;;  %v695_v20 = vpop.f32.mrb[7].mxu1  ;;  %v264_v5 = vld [vmem:[#allocation2 + $0xb8] sm:$0xff] }
 0x10e   : > { %v868_v16 = vadd.f32 %v1606_v2, %v829_v12  ;;  %v814_v21 = vld [vmem:[#allocation2 + $0x8] sm:$0xff] }
 0x10f   : > { %v830_v22 = vld [vmem:[#allocation2 + $0x88] sm:$0xff]  ;;  %v884_v23 = vmax.f32 %v852_v15, 0.0  ;;  %v853_v25 = vadd.f32 %v1606_v2, %v814_v21  ;;  %781 = vst.msk [vmem:[#allocation2 + $0x18] sm:$0xff] %vm208_vm0, %v748_v17  ;;  %797 = vst.msk [vmem:[#allocation2 + $0x98] sm:$0xff] %vm208_vm0, %v764_v18 }
 0x110   : > { %v900_v24 = vmax.f32 %v868_v16, 0.0  ;;  %v869_v26 = vadd.f32 %v1606_v2, %v830_v22 }
 0x111   : > { %v1257_v29 = vpack.c.bf16 %v884_v23, %v884_v23  ;;  %v885_v31 = vmax.f32 %v853_v25, 0.0 }
 0x112   : > { %v1273_v30 = vpack.c.bf16 %v900_v24, %v900_v24  ;;  %v901_v32 = vmax.f32 %v869_v26, 0.0  ;;  %v634_v33 = vpop.f32.mrb[8].mxu0  ;;  %v698_v34 = vpop.f32.mrb[8].mxu1 }
 0x113   : > { %1045 = vst.msk [vmem:[%s1620_s22] sm:$0xf] %vm1044_vm4, %v1257_v29  ;;  %v1258_v37 = vpack.c.bf16 %v885_v31, %v885_v31  ;;  %v749_v39 = vadd.f32 %v634_v33, %v245_v27  ;;  %v765_v40 = vadd.f32 %v698_v34, %v261_v28  ;;  %v636_v41 = vpop.f32.mrb[9].mxu0  ;;  %v700_v42 = vpop.f32.mrb[9].mxu1  ;;  %v249_v28 = vld [vmem:[#allocation2 + $0x40] sm:$0xff] }
 0x114   : > { %1061 = vst.msk [vmem:[%s1620_s22 + $0x40] sm:$0xf] %vm1044_vm4, %v1273_v30  ;;  %v1274_v38 = vpack.c.bf16 %v901_v32, %v901_v32  ;;  %v815_v43 = vld [vmem:[#allocation2 + $0x10] sm:$0xff]  ;;  %v637_v45 = vpop.f32.mrb[10].mxu0  ;;  %v701_v46 = vpop.f32.mrb[10].mxu1  ;;  %v265_v29 = vld [vmem:[#allocation2 + $0xc0] sm:$0xff] }
 0x115   : > { %v831_v44 = vld [vmem:[#allocation2 + $0x90] sm:$0xff]  ;;  %1046 = vst.msk [vmem:[%s1620_s22 + $0x4] sm:$0xf] %vm1044_vm4, %v1258_v37  ;;  %v854_v47 = vadd.f32 %v1606_v2, %v815_v43  ;;  %v750_v49 = vadd.f32 %v637_v45, %v246_v35  ;;  %v766_v50 = vadd.f32 %v701_v46, %v262_v36  ;;  %v639_v51 = vpop.f32.mrb[11].mxu0  ;;  %v703_v52 = vpop.f32.mrb[11].mxu1  ;;  %v250_v36 = vld [vmem:[#allocation2 + $0x48] sm:$0xff] }
 0x116   : > { %1062 = vst.msk [vmem:[%s1620_s22 + $0x44] sm:$0xf] %vm1044_vm4, %v1274_v38  ;;  %v870_v48 = vadd.f32 %v1606_v2, %v831_v44  ;;  %v816_v53 = vld [vmem:[#allocation2 + $0x18] sm:$0xff]  ;;  %v266_v37 = vld [vmem:[#allocation2 + $0xc8] sm:$0xff] }
 0x117   : > { %782 = vst.msk [vmem:[#allocation2 + $0x20] sm:$0xff] %vm208_vm0, %v749_v39  ;;  %798 = vst.msk [vmem:[#allocation2 + $0xa0] sm:$0xff] %vm208_vm0, %v765_v40  ;;  %v832_v54 = vld [vmem:[#allocation2 + $0x98] sm:$0xff]  ;;  %v886_v55 = vmax.f32 %v854_v47, 0.0  ;;  %v855_v57 = vadd.f32 %v1606_v2, %v816_v53 }
 0x118   : > { %v902_v56 = vmax.f32 %v870_v48, 0.0  ;;  %v871_v58 = vadd.f32 %v1606_v2, %v832_v54  ;;  %783 = vst.msk [vmem:[#allocation2 + $0x28] sm:$0xff] %vm208_vm0, %v750_v49  ;;  %799 = vst.msk [vmem:[#allocation2 + $0xa8] sm:$0xff] %vm208_vm0, %v766_v50 }
 0x119   : > { %v1259_v61 = vpack.c.bf16 %v886_v55, %v886_v55  ;;  %v887_v63 = vmax.f32 %v855_v57, 0.0 }
 0x11a   : > { %v1275_v62 = vpack.c.bf16 %v902_v56, %v902_v56  ;;  %v903_v0 = vmax.f32 %v871_v58, 0.0  ;;  %v642_v1 = vpop.f32.mrb[12].mxu0  ;;  %v706_v3 = vpop.f32.mrb[12].mxu1 }
 0x11b   : > { %1047 = vst.msk [vmem:[%s1620_s22 + $0x8] sm:$0xf] %vm1044_vm4, %v1259_v61  ;;  %v1260_v6 = vpack.c.bf16 %v887_v63, %v887_v63  ;;  %v751_v8 = vadd.f32 %v642_v1, %v247_v59  ;;  %v767_v9 = vadd.f32 %v706_v3, %v263_v60  ;;  %v644_v10 = vpop.f32.mrb[13].mxu0  ;;  %v708_v11 = vpop.f32.mrb[13].mxu1  ;;  %v251_v60 = vld [vmem:[#allocation2 + $0x50] sm:$0xff] }
 0x11c   : > { %1063 = vst.msk [vmem:[%s1620_s22 + $0x48] sm:$0xf] %vm1044_vm4, %v1275_v62  ;;  %v1276_v7 = vpack.c.bf16 %v903_v0, %v903_v0  ;;  %v645_v14 = vpop.f32.mrb[14].mxu0  ;;  %v709_v15 = vpop.f32.mrb[14].mxu1  ;;  %v267_v61 = vld [vmem:[#allocation2 + $0xd0] sm:$0xff] }
 0x11d   : > { %1048 = vst.msk [vmem:[%s1620_s22 + $0xc] sm:$0xf] %vm1044_vm4, %v1260_v6  ;;  %v752_v18 = vadd.f32 %v645_v14, %v248_v4  ;;  %v768_v19 = vadd.f32 %v709_v15, %v264_v5  ;;  %v647_v20 = vpop.f32.mrb[15].mxu0  ;;  %v711_v21 = vpop.f32.mrb[15].mxu1  ;;  %v252_v5 = vld [vmem:[#allocation2 + $0x58] sm:$0xff] }
 0x11e   : > { %v817_v12 = vld [vmem:[#allocation2 + $0x20] sm:$0xff]  ;;  %1064 = vst.msk [vmem:[%s1620_s22 + $0x4c] sm:$0xf] %vm1044_vm4, %v1276_v7  ;;  %v268_v6 = vld [vmem:[#allocation2 + $0xd8] sm:$0xff] }
 0x11f   : > { %v833_v13 = vld [vmem:[#allocation2 + $0xa0] sm:$0xff]  ;;  %v856_v16 = vadd.f32 %v1606_v2, %v817_v12  ;;  %784 = vst.msk [vmem:[#allocation2 + $0x30] sm:$0xff] %vm208_vm0, %v751_v8  ;;  %800 = vst.msk [vmem:[#allocation2 + $0xb0] sm:$0xff] %vm208_vm0, %v767_v9  ;;  %v818_v22 = vld [vmem:[#allocation2 + $0x28] sm:$0xff] }
 0x120   : > { %v872_v17 = vadd.f32 %v1606_v2, %v833_v13  ;;  %v834_v23 = vld [vmem:[#allocation2 + $0xa8] sm:$0xff]  ;;  %v857_v26 = vadd.f32 %v1606_v2, %v818_v22  ;;  %785 = vst.msk [vmem:[#allocation2 + $0x38] sm:$0xff] %vm208_vm0, %v752_v18  ;;  %801 = vst.msk [vmem:[#allocation2 + $0xb8] sm:$0xff] %vm208_vm0, %v768_v19 }
 0x121   : > { %v888_v24 = vmax.f32 %v856_v16, 0.0  ;;  %v873_v27 = vadd.f32 %v1606_v2, %v834_v23 }
 0x122   : > { %v904_v25 = vmax.f32 %v872_v17, 0.0  ;;  %v889_v32 = vmax.f32 %v857_v26, 0.0  ;;  %v650_v34 = vpop.f32.mrb[16].mxu0  ;;  %v714_v35 = vpop.f32.mrb[16].mxu1 }
 0x123   : > { %v1261_v30 = vpack.c.bf16 %v888_v24, %v888_v24  ;;  %v905_v33 = vmax.f32 %v873_v27, 0.0  ;;  %v753_v40 = vadd.f32 %v650_v34, %v249_v28  ;;  %v769_v41 = vadd.f32 %v714_v35, %v265_v29  ;;  %v652_v42 = vpop.f32.mrb[17].mxu0  ;;  %v716_v43 = vpop.f32.mrb[17].mxu1  ;;  %v253_v29 = vld [vmem:[#allocation2 + $0x60] sm:$0xff] }
 0x124   : > { %v1277_v31 = vpack.c.bf16 %v904_v25, %v904_v25  ;;  %v1262_v38 = vpack.c.bf16 %v889_v32, %v889_v32  ;;  %v653_v46 = vpop.f32.mrb[18].mxu0  ;;  %v717_v47 = vpop.f32.mrb[18].mxu1 }
 0x125   : > { %1049 = vst.msk [vmem:[%s1620_s22 + $0x10] sm:$0xf] %vm1044_vm4, %v1261_v30  ;;  %v1278_v39 = vpack.c.bf16 %v905_v33, %v905_v33  ;;  %v754_v50 = vadd.f32 %v653_v46, %v250_v36  ;;  %v770_v51 = vadd.f32 %v717_v47, %v266_v37  ;;  %v655_v52 = vpop.f32.mrb[19].mxu0  ;;  %v719_v53 = vpop.f32.mrb[19].mxu1  ;;  %v269_v30 = vld [vmem:[#allocation2 + $0xe0] sm:$0xff]  ;;  %v254_v37 = vld [vmem:[#allocation2 + $0x68] sm:$0xff] }
 0x126   : > { %1065 = vst.msk [vmem:[%s1620_s22 + $0x50] sm:$0xf] %vm1044_vm4, %v1277_v31  ;;  %v819_v44 = vld [vmem:[#allocation2 + $0x30] sm:$0xff]  ;;  %1050 = vst.msk [vmem:[%s1620_s22 + $0x14] sm:$0xf] %vm1044_vm4, %v1262_v38  ;;  %v270_v38 = vld [vmem:[#allocation2 + $0xe8] sm:$0xff] }
 0x127   : > { %v835_v45 = vld [vmem:[#allocation2 + $0xb0] sm:$0xff]  ;;  %1066 = vst.msk [vmem:[%s1620_s22 + $0x54] sm:$0xf] %vm1044_vm4, %v1278_v39  ;;  %v858_v48 = vadd.f32 %v1606_v2, %v819_v44  ;;  %v820_v54 = vld [vmem:[#allocation2 + $0x38] sm:$0xff] }
 0x128   : > { %v874_v49 = vadd.f32 %v1606_v2, %v835_v45  ;;  %786 = vst.msk [vmem:[#allocation2 + $0x40] sm:$0xff] %vm208_vm0, %v753_v40  ;;  %802 = vst.msk [vmem:[#allocation2 + $0xc0] sm:$0xff] %vm208_vm0, %v769_v41  ;;  %v836_v55 = vld [vmem:[#allocation2 + $0xb8] sm:$0xff]  ;;  %v859_v58 = vadd.f32 %v1606_v2, %v820_v54 }
 0x129   : > { %v890_v56 = vmax.f32 %v858_v48, 0.0  ;;  %v875_v59 = vadd.f32 %v1606_v2, %v836_v55  ;;  %787 = vst.msk [vmem:[#allocation2 + $0x48] sm:$0xff] %vm208_vm0, %v754_v50  ;;  %803 = vst.msk [vmem:[#allocation2 + $0xc8] sm:$0xff] %vm208_vm0, %v770_v51 }
 0x12a   : > { %v906_v57 = vmax.f32 %v874_v49, 0.0  ;;  %v891_v0 = vmax.f32 %v859_v58, 0.0  ;;  %v658_v3 = vpop.f32.mrb[20].mxu0  ;;  %v722_v4 = vpop.f32.mrb[20].mxu1 }
 0x12b   : > { %v1263_v62 = vpack.c.bf16 %v890_v56, %v890_v56  ;;  %v907_v1 = vmax.f32 %v875_v59, 0.0  ;;  %v755_v9 = vadd.f32 %v658_v3, %v251_v60  ;;  %v771_v10 = vadd.f32 %v722_v4, %v267_v61  ;;  %v660_v11 = vpop.f32.mrb[21].mxu0  ;;  %v724_v12 = vpop.f32.mrb[21].mxu1  ;;  %v255_v61 = vld [vmem:[#allocation2 + $0x70] sm:$0xff] }
 0x12c   : > { %v1279_v63 = vpack.c.bf16 %v906_v57, %v906_v57  ;;  %v1264_v7 = vpack.c.bf16 %v891_v0, %v891_v0  ;;  %v661_v15 = vpop.f32.mrb[22].mxu0  ;;  %v725_v16 = vpop.f32.mrb[22].mxu1 }
 0x12d   : > { %1051 = vst.msk [vmem:[%s1620_s22 + $0x18] sm:$0xf] %vm1044_vm4, %v1263_v62  ;;  %v1280_v8 = vpack.c.bf16 %v907_v1, %v907_v1  ;;  %v756_v19 = vadd.f32 %v661_v15, %v252_v5  ;;  %v772_v20 = vadd.f32 %v725_v16, %v268_v6  ;;  %v663_v21 = vpop.f32.mrb[23].mxu0  ;;  %v727_v22 = vpop.f32.mrb[23].mxu1  ;;  %v271_v62 = vld [vmem:[#allocation2 + $0xf0] sm:$0xff]  ;;  %v256_v6 = vld [vmem:[#allocation2 + $0x78] sm:$0xff] }
 0x12e   : > { %1067 = vst.msk [vmem:[%s1620_s22 + $0x58] sm:$0xf] %vm1044_vm4, %v1279_v63  ;;  %1052 = vst.msk [vmem:[%s1620_s22 + $0x1c] sm:$0xf] %vm1044_vm4, %v1264_v7  ;;  %v272_v7 = vld [vmem:[#allocation2 + $0xf8] sm:$0xff] }
 0x12f   : > { %v821_v13 = vld [vmem:[#allocation2 + $0x40] sm:$0xff]  ;;  %1068 = vst.msk [vmem:[%s1620_s22 + $0x5c] sm:$0xf] %vm1044_vm4, %v1280_v8 }
 0x130   : > { %v837_v14 = vld [vmem:[#allocation2 + $0xc0] sm:$0xff]  ;;  %v860_v17 = vadd.f32 %v1606_v2, %v821_v13  ;;  %788 = vst.msk [vmem:[#allocation2 + $0x50] sm:$0xff] %vm208_vm0, %v755_v9  ;;  %804 = vst.msk [vmem:[#allocation2 + $0xd0] sm:$0xff] %vm208_vm0, %v771_v10  ;;  %v822_v23 = vld [vmem:[#allocation2 + $0x48] sm:$0xff] }
 0x131   : > { %v876_v18 = vadd.f32 %v1606_v2, %v837_v14  ;;  %v838_v24 = vld [vmem:[#allocation2 + $0xc8] sm:$0xff]  ;;  %v861_v27 = vadd.f32 %v1606_v2, %v822_v23  ;;  %789 = vst.msk [vmem:[#allocation2 + $0x58] sm:$0xff] %vm208_vm0, %v756_v19  ;;  %805 = vst.msk [vmem:[#allocation2 + $0xd8] sm:$0xff] %vm208_vm0, %v772_v20 }
 0x132   : > { %v892_v25 = vmax.f32 %v860_v17, 0.0  ;;  %v877_v28 = vadd.f32 %v1606_v2, %v838_v24  ;;  %v666_v35 = vpop.f32.mrb[24].mxu0  ;;  %v730_v36 = vpop.f32.mrb[24].mxu1 }
 0x133   : > { %v908_v26 = vmax.f32 %v876_v18, 0.0  ;;  %v893_v33 = vmax.f32 %v861_v27, 0.0  ;;  %v757_v41 = vadd.f32 %v666_v35, %v253_v29  ;;  %v773_v42 = vadd.f32 %v730_v36, %v269_v30  ;;  %v668_v43 = vpop.f32.mrb[25].mxu0  ;;  %v732_v44 = vpop.f32.mrb[25].mxu1 }
 0x134   : > { %v1265_v31 = vpack.c.bf16 %v892_v25, %v892_v25  ;;  %v909_v34 = vmax.f32 %v877_v28, 0.0  ;;  %v669_v47 = vpop.f32.mrb[26].mxu0  ;;  %v733_v48 = vpop.f32.mrb[26].mxu1 }
 0x135   : > { %v1281_v32 = vpack.c.bf16 %v908_v26, %v908_v26  ;;  %v1266_v39 = vpack.c.bf16 %v893_v33, %v893_v33  ;;  %790 = vst.msk [vmem:[#allocation2 + $0x60] sm:$0xff] %vm208_vm0, %v757_v41  ;;  %806 = vst.msk [vmem:[#allocation2 + $0xe0] sm:$0xff] %vm208_vm0, %v773_v42  ;;  %v758_v51 = vadd.f32 %v669_v47, %v254_v37  ;;  %v671_v53 = vpop.f32.mrb[27].mxu0  ;;  %v735_v54 = vpop.f32.mrb[27].mxu1 }
 0x136   : > { %1053 = vst.msk [vmem:[%s1620_s22 + $0x20] sm:$0xf] %vm1044_vm4, %v1265_v31  ;;  %v1282_v40 = vpack.c.bf16 %v909_v34, %v909_v34  ;;  %v774_v52 = vadd.f32 %v733_v48, %v270_v38 }
 0x137   : > { %1069 = vst.msk [vmem:[%s1620_s22 + $0x60] sm:$0xf] %vm1044_vm4, %v1281_v32  ;;  %v823_v45 = vld [vmem:[#allocation2 + $0x50] sm:$0xff]  ;;  %1054 = vst.msk [vmem:[%s1620_s22 + $0x24] sm:$0xf] %vm1044_vm4, %v1266_v39 }
 0x138   : > { %v839_v46 = vld [vmem:[#allocation2 + $0xd0] sm:$0xff]  ;;  %1070 = vst.msk [vmem:[%s1620_s22 + $0x64] sm:$0xf] %vm1044_vm4, %v1282_v40  ;;  %v862_v49 = vadd.f32 %v1606_v2, %v823_v45  ;;  %v824_v55 = vld [vmem:[#allocation2 + $0x58] sm:$0xff] }
 0x139   : > { %v878_v50 = vadd.f32 %v1606_v2, %v839_v46  ;;  %v840_v56 = vld [vmem:[#allocation2 + $0xd8] sm:$0xff]  ;;  %v863_v59 = vadd.f32 %v1606_v2, %v824_v55  ;;  %791 = vst.msk [vmem:[#allocation2 + $0x68] sm:$0xff] %vm208_vm0, %v758_v51  ;;  %807 = vst.msk [vmem:[#allocation2 + $0xe8] sm:$0xff] %vm208_vm0, %v774_v52 }
 0x13a   : > { %v894_v57 = vmax.f32 %v862_v49, 0.0  ;;  %v879_v60 = vadd.f32 %v1606_v2, %v840_v56  ;;  %v674_v4 = vpop.f32.mrb[28].mxu0  ;;  %v738_v5 = vpop.f32.mrb[28].mxu1 }
 0x13b   : > { %v910_v58 = vmax.f32 %v878_v50, 0.0  ;;  %v895_v1 = vmax.f32 %v863_v59, 0.0  ;;  %v759_v10 = vadd.f32 %v674_v4, %v255_v61  ;;  %v775_v11 = vadd.f32 %v738_v5, %v271_v62  ;;  %v676_v12 = vpop.f32.mrb[29].mxu0  ;;  %v740_v13 = vpop.f32.mrb[29].mxu1 }
 0x13c   : > { %v1267_v63 = vpack.c.bf16 %v894_v57, %v894_v57  ;;  %v911_v3 = vmax.f32 %v879_v60, 0.0  ;;  %v825_v14 = vld [vmem:[#allocation2 + $0x60] sm:$0xff]  ;;  %v677_v16 = vpop.f32.mrb[30].mxu0  ;;  %v741_v17 = vpop.f32.mrb[30].mxu1 }
 0x13d   : > { %v1283_v0 = vpack.c.bf16 %v910_v58, %v910_v58  ;;  %v1268_v8 = vpack.c.bf16 %v895_v1, %v895_v1  ;;  %v841_v15 = vld [vmem:[#allocation2 + $0xe0] sm:$0xff]  ;;  %v864_v18 = vadd.f32 %v1606_v2, %v825_v14  ;;  %792 = vst.msk [vmem:[#allocation2 + $0x70] sm:$0xff] %vm208_vm0, %v759_v10  ;;  %808 = vst.msk [vmem:[#allocation2 + $0xf0] sm:$0xff] %vm208_vm0, %v775_v11  ;;  %v679_v22 = vpop.f32.mrb[31].mxu0  ;;  %v743_v23 = vpop.f32.mrb[31].mxu1 }
 0x13e   : > { %1055 = vst.msk [vmem:[%s1620_s22 + $0x28] sm:$0xf] %vm1044_vm4, %v1267_v63  ;;  %v1284_v9 = vpack.c.bf16 %v911_v3, %v911_v3  ;;  %v880_v19 = vadd.f32 %v1606_v2, %v841_v15  ;;  %v760_v20 = vadd.f32 %v677_v16, %v256_v6  ;;  %v776_v21 = vadd.f32 %v741_v17, %v272_v7 }
 0x13f   : > { %1071 = vst.msk [vmem:[%s1620_s22 + $0x68] sm:$0xf] %vm1044_vm4, %v1283_v0  ;;  %1056 = vst.msk [vmem:[%s1620_s22 + $0x2c] sm:$0xf] %vm1044_vm4, %v1268_v8  ;;  %v896_v26 = vmax.f32 %v864_v18, 0.0 }
 0x140   : > { %1072 = vst.msk [vmem:[%s1620_s22 + $0x6c] sm:$0xf] %vm1044_vm4, %v1284_v9  ;;  %v826_v24 = vld [vmem:[#allocation2 + $0x68] sm:$0xff]  ;;  %v912_v27 = vmax.f32 %v880_v19, 0.0 }
 0x141   : > { %v842_v25 = vld [vmem:[#allocation2 + $0xe8] sm:$0xff]  ;;  %v865_v28 = vadd.f32 %v1606_v2, %v826_v24  ;;  %793 = vst.msk [vmem:[#allocation2 + $0x78] sm:$0xff] %vm208_vm0, %v760_v20  ;;  %809 = vst.msk [vmem:[#allocation2 + $0xf8] sm:$0xff] %vm208_vm0, %v776_v21  ;;  %v1269_v30 = vpack.c.bf16 %v896_v26, %v896_v26 }
 0x142   : > { %v881_v29 = vadd.f32 %v1606_v2, %v842_v25  ;;  %v1285_v31 = vpack.c.bf16 %v912_v27, %v912_v27 }
 0x143   : > { %v897_v32 = vmax.f32 %v865_v28, 0.0  ;;  %1057 = vst.msk [vmem:[%s1620_s22 + $0x30] sm:$0xf] %vm1044_vm4, %v1269_v30 }
 0x144   : > { %v913_v33 = vmax.f32 %v881_v29, 0.0  ;;  %1073 = vst.msk [vmem:[%s1620_s22 + $0x70] sm:$0xf] %vm1044_vm4, %v1285_v31  ;;  %v827_v36 = vld [vmem:[#allocation2 + $0x70] sm:$0xff] }
 0x145   : > { %v1270_v34 = vpack.c.bf16 %v897_v32, %v897_v32  ;;  %v843_v37 = vld [vmem:[#allocation2 + $0xf0] sm:$0xff]  ;;  %v866_v38 = vadd.f32 %v1606_v2, %v827_v36 }
 0x146   : > { %v1286_v35 = vpack.c.bf16 %v913_v33, %v913_v33  ;;  %v882_v39 = vadd.f32 %v1606_v2, %v843_v37 }
 0x147   : > { %1058 = vst.msk [vmem:[%s1620_s22 + $0x34] sm:$0xf] %vm1044_vm4, %v1270_v34  ;;  %v898_v42 = vmax.f32 %v866_v38, 0.0 }
 0x148   : > { %1074 = vst.msk [vmem:[%s1620_s22 + $0x74] sm:$0xf] %vm1044_vm4, %v1286_v35  ;;  %v828_v40 = vld [vmem:[#allocation2 + $0x78] sm:$0xff]  ;;  %v914_v43 = vmax.f32 %v882_v39, 0.0 }
 0x149   : > { %v844_v41 = vld [vmem:[#allocation2 + $0xf8] sm:$0xff]  ;;  %v867_v44 = vadd.f32 %v1606_v2, %v828_v40  ;;  %v1271_v46 = vpack.c.bf16 %v898_v42, %v898_v42 }
 0x14a   : > { %v883_v45 = vadd.f32 %v1606_v2, %v844_v41  ;;  %v1287_v47 = vpack.c.bf16 %v914_v43, %v914_v43 }
 0x14b   : > { %v899_v48 = vmax.f32 %v867_v44, 0.0  ;;  %1059 = vst.msk [vmem:[%s1620_s22 + $0x38] sm:$0xf] %vm1044_vm4, %v1271_v46 }
 0x14c   : > { %v915_v49 = vmax.f32 %v883_v45, 0.0  ;;  %1075 = vst.msk [vmem:[%s1620_s22 + $0x78] sm:$0xf] %vm1044_vm4, %v1287_v47 }
 0x14d   : > { %v1272_v50 = vpack.c.bf16 %v899_v48, %v899_v48 }
 0x14e   : > { %v1288_v51 = vpack.c.bf16 %v915_v49, %v915_v49 }
 0x14f   : > { %1060 = vst.msk [vmem:[%s1620_s22 + $0x3c] sm:$0xf] %vm1044_vm4, %v1272_v50 }
 0x150   : > { %1076 = vst.msk [vmem:[%s1620_s22 + $0x7c] sm:$0xf] %vm1044_vm4, %v1288_v51 }
 0x151 PF: > { %s13_s14 = sadd.s32 1, %s1416_s14   ;;  %s1751_s12 = smov %s1412_s13 }
 0x152   : > { %p10_p5 = scmp.ge.s32.totalorder %s13_s14, 4   ;;  %s1752_s13 = smov %s1754_s15 }
 0x154   :  { %12 = sbr.rel (!%p10_p5) target bundleno = 2 (0x2), region = 71 }

// kernel: resnet18_forward.24
= control target key start
LH: loop header
LB: loop body
LE: loop exit
PB: predicated region body
PF: predicated region fallthrough
CT: control target
= control target key end

     0   :  { %s493_s0 = inlined_call_operand.vmem [shape: bf16[9,64,128], index: 0, kind: input, shape index: {}]   ;;  %s494_s1 = inlined_call_operand.vmem [shape: bf16[64,128], index: 1, kind: output, shape index: {}]  }
   0x1   :  { %v8_v0 = vld [vmem:[%s493_s0] sm:$0xf]  ;;  %v9_v1 = vld [vmem:[%s493_s0 + $0x4] sm:$0xf]  ;;  %v10_v18 = vld [vmem:[%s493_s0 + $0x8] sm:$0xf] }
   0x2   :  { %v164_v2 = vld [vmem:[%s493_s0 + $0x20] sm:$0xf]  ;;  %v165_v3 = vld [vmem:[%s493_s0 + $0x24] sm:$0xf]  ;;  %v11_v19 = vld [vmem:[%s493_s0 + $0xc] sm:$0xf] }
   0x3   :  { %v25_v4 = vmax.bf16 %v164_v2, %v8_v0  ;;  %v172_v5 = vld [vmem:[%s493_s0 + $0x40] sm:$0xf]  ;;  %v173_v6 = vld [vmem:[%s493_s0 + $0x44] sm:$0xf]  ;;  %v26_v7 = vmax.bf16 %v165_v3, %v9_v1  ;;  %v166_v20 = vld [vmem:[%s493_s0 + $0x28] sm:$0xf] }
   0x4   :  { %v180_v8 = vld [vmem:[%s493_s0 + $0x60] sm:$0xf]  ;;  %v181_v10 = vld [vmem:[%s493_s0 + $0x64] sm:$0xf]  ;;  %v167_v22 = vld [vmem:[%s493_s0 + $0x2c] sm:$0xf]  ;;  %v27_v23 = vmax.bf16 %v166_v20, %v10_v18 }
   0x5   :  { %v42_v9 = vmax.bf16 %v172_v5, %v25_v4  ;;  %v43_v11 = vmax.bf16 %v173_v6, %v26_v7  ;;  %v188_v12 = vld [vmem:[%s493_s0 + $0x80] sm:$0xf]  ;;  %v189_v14 = vld [vmem:[%s493_s0 + $0x84] sm:$0xf]  ;;  %v174_v24 = vld [vmem:[%s493_s0 + $0x48] sm:$0xf]  ;;  %v28_v28 = vmax.bf16 %v167_v22, %v11_v19 }
   0x6   :  { %v196_v15 = vld [vmem:[%s493_s0 + $0xa0] sm:$0xf]  ;;  %v197_v16 = vld [vmem:[%s493_s0 + $0xa4] sm:$0xf]  ;;  %v175_v25 = vld [vmem:[%s493_s0 + $0x4c] sm:$0xf]  ;;  %v44_v33 = vmax.bf16 %v174_v24, %v27_v23 }
   0x7   :  { %v59_v13 = vmax.bf16 %v180_v8, %v42_v9  ;;  %v60_v17 = vmax.bf16 %v181_v10, %v43_v11  ;;  %v204_v27 = vld [vmem:[%s493_s0 + $0xc0] sm:$0xf]  ;;  %v182_v29 = vld [vmem:[%s493_s0 + $0x68] sm:$0xf]  ;;  %v205_v31 = vld [vmem:[%s493_s0 + $0xc4] sm:$0xf]  ;;  %v45_v38 = vmax.bf16 %v175_v25, %v28_v28 }
   0x8   :  { %v212_v32 = vld [vmem:[%s493_s0 + $0xe0] sm:$0xf]  ;;  %v183_v34 = vld [vmem:[%s493_s0 + $0x6c] sm:$0xf]  ;;  %v213_v36 = vld [vmem:[%s493_s0 + $0xe4] sm:$0xf]  ;;  %v61_v42 = vmax.bf16 %v182_v29, %v44_v33 }
   0x9   :  { %v76_v21 = vmax.bf16 %v188_v12, %v59_v13  ;;  %v77_v26 = vmax.bf16 %v189_v14, %v60_v17  ;;  %v220_v37 = vld [vmem:[%s493_s0 + $0x100] sm:$0xf]  ;;  %v190_v39 = vld [vmem:[%s493_s0 + $0x88] sm:$0xf]  ;;  %v221_v41 = vld [vmem:[%s493_s0 + $0x104] sm:$0xf]  ;;  %v62_v47 = vmax.bf16 %v183_v34, %v45_v38 }
   0xa   :  { %v191_v43 = vld [vmem:[%s493_s0 + $0x8c] sm:$0xf]  ;;  %v198_v44 = vld [vmem:[%s493_s0 + $0xa8] sm:$0xf]  ;;  %v12_v48 = vld [vmem:[%s493_s0 + $0x10] sm:$0xf]  ;;  %v78_v52 = vmax.bf16 %v190_v39, %v61_v42 }
   0xb   :  { %v93_v30 = vmax.bf16 %v196_v15, %v76_v21  ;;  %v94_v35 = vmax.bf16 %v197_v16, %v77_v26  ;;  %v199_v45 = vld [vmem:[%s493_s0 + $0xac] sm:$0xf]  ;;  %v13_v49 = vld [vmem:[%s493_s0 + $0x14] sm:$0xf]  ;;  %v168_v50 = vld [vmem:[%s493_s0 + $0x30] sm:$0xf]  ;;  %v79_v58 = vmax.bf16 %v191_v43, %v62_v47 }
   0xc   :  { %v169_v53 = vld [vmem:[%s493_s0 + $0x34] sm:$0xf]  ;;  %v29_v54 = vmax.bf16 %v168_v50, %v12_v48  ;;  %v176_v55 = vld [vmem:[%s493_s0 + $0x50] sm:$0xf]  ;;  %v206_v59 = vld [vmem:[%s493_s0 + $0xc8] sm:$0xf]  ;;  %v95_v63 = vmax.bf16 %v198_v44, %v78_v52 }
   0xd   :  { %v110_v40 = vmax.bf16 %v204_v27, %v93_v30  ;;  %v111_v46 = vmax.bf16 %v205_v31, %v94_v35  ;;  %v177_v56 = vld [vmem:[%s493_s0 + $0x54] sm:$0xf]  ;;  %v30_v60 = vmax.bf16 %v169_v53, %v13_v49  ;;  %v184_v61 = vld [vmem:[%s493_s0 + $0x70] sm:$0xf]  ;;  %v207_v0 = vld [vmem:[%s493_s0 + $0xcc] sm:$0xf]  ;;  %v96_v5 = vmax.bf16 %v199_v45, %v79_v58 }
   0xe   :  { %v214_v1 = vld [vmem:[%s493_s0 + $0xe8] sm:$0xf]  ;;  %v46_v2 = vmax.bf16 %v176_v55, %v29_v54  ;;  %v185_v3 = vld [vmem:[%s493_s0 + $0x74] sm:$0xf]  ;;  %v215_v6 = vld [vmem:[%s493_s0 + $0xec] sm:$0xf]  ;;  %v112_v10 = vmax.bf16 %v206_v59, %v95_v63 }
   0xf   :  { %v127_v51 = vmax.bf16 %v212_v32, %v110_v40  ;;  %v128_v57 = vmax.bf16 %v213_v36, %v111_v46  ;;  %v222_v7 = vld [vmem:[%s493_s0 + $0x108] sm:$0xf]  ;;  %v47_v8 = vmax.bf16 %v177_v56, %v30_v60  ;;  %v192_v9 = vld [vmem:[%s493_s0 + $0x90] sm:$0xf]  ;;  %v223_v11 = vld [vmem:[%s493_s0 + $0x10c] sm:$0xf]  ;;  %v113_v17 = vmax.bf16 %v207_v0, %v96_v5 }
  0x10   :  { %v63_v12 = vmax.bf16 %v184_v61, %v46_v2  ;;  %v193_v13 = vld [vmem:[%s493_s0 + $0x94] sm:$0xf]  ;;  %v200_v14 = vld [vmem:[%s493_s0 + $0xb0] sm:$0xf]  ;;  %v14_v19 = vld [vmem:[%s493_s0 + $0x18] sm:$0xf]  ;;  %v129_v22 = vmax.bf16 %v214_v1, %v112_v10 }
  0x11   :  { %v144_v62 = vmax.bf16 %v220_v37, %v127_v51  ;;  %v145_v4 = vmax.bf16 %v221_v41, %v128_v57  ;;  %v201_v15 = vld [vmem:[%s493_s0 + $0xb4] sm:$0xf]  ;;  %v64_v18 = vmax.bf16 %v185_v3, %v47_v8  ;;  %v15_v20 = vld [vmem:[%s493_s0 + $0x1c] sm:$0xf]  ;;  %v170_v21 = vld [vmem:[%s493_s0 + $0x38] sm:$0xf]  ;;  %v130_v28 = vmax.bf16 %v215_v6, %v113_v17 }
  0x12   :  { %v80_v23 = vmax.bf16 %v192_v9, %v63_v12  ;;  %v171_v24 = vld [vmem:[%s493_s0 + $0x3c] sm:$0xf]  ;;  %v31_v25 = vmax.bf16 %v170_v21, %v14_v19  ;;  %v178_v26 = vld [vmem:[%s493_s0 + $0x58] sm:$0xf]  ;;  %v208_v30 = vld [vmem:[%s493_s0 + $0xd0] sm:$0xf]  ;;  %v146_v33 = vmax.bf16 %v222_v7, %v129_v22 }
  0x13   :  { %v248_v16 = vcombine.low %v144_v62, %v145_v4  ;;  %v179_v27 = vld [vmem:[%s493_s0 + $0x5c] sm:$0xf]  ;;  %v81_v29 = vmax.bf16 %v193_v13, %v64_v18  ;;  %v32_v31 = vmax.bf16 %v171_v24, %v15_v20  ;;  %v186_v32 = vld [vmem:[%s493_s0 + $0x78] sm:$0xf]  ;;  %v209_v35 = vld [vmem:[%s493_s0 + $0xd4] sm:$0xf]  ;;  %v147_v38 = vmax.bf16 %v223_v11, %v130_v28 }
  0x14   :  { %v97_v34 = vmax.bf16 %v200_v14, %v80_v23  ;;  %v48_v36 = vmax.bf16 %v178_v26, %v31_v25  ;;  %v187_v37 = vld [vmem:[%s493_s0 + $0x7c] sm:$0xf]  ;;  %v216_v40 = vld [vmem:[%s493_s0 + $0xf0] sm:$0xf]  ;;  %v194_v42 = vld [vmem:[%s493_s0 + $0x98] sm:$0xf] }
  0x15   :  { %232 = vst [vmem:[%s494_s1] sm:$0xff] %v248_v16   ;;  %v98_v39 = vmax.bf16 %v201_v15, %v81_v29  ;;  %v49_v41 = vmax.bf16 %v179_v27, %v32_v31  ;;  %v217_v44 = vld [vmem:[%s493_s0 + $0xf4] sm:$0xf]  ;;  %v195_v46 = vld [vmem:[%s493_s0 + $0x9c] sm:$0xf]  ;;  %v249_v47 = vcombine.low %v146_v33, %v147_v38  ;;  %v224_v49 = vld [vmem:[%s493_s0 + $0x110] sm:$0xf] }
  0x16   :  { %v114_v43 = vmax.bf16 %v208_v30, %v97_v34  ;;  %v65_v45 = vmax.bf16 %v186_v32, %v48_v36  ;;  %v202_v51 = vld [vmem:[%s493_s0 + $0xb8] sm:$0xf]  ;;  %v225_v53 = vld [vmem:[%s493_s0 + $0x114] sm:$0xf]  ;;  %v203_v55 = vld [vmem:[%s493_s0 + $0xbc] sm:$0xf] }
  0x17   :  { %v115_v48 = vmax.bf16 %v209_v35, %v98_v39  ;;  %v66_v50 = vmax.bf16 %v187_v37, %v49_v41  ;;  %250 = vst [vmem:[%s494_s1 + $0x8] sm:$0xff] %v249_v47   ;;  %v210_v58 = vld [vmem:[%s493_s0 + $0xd8] sm:$0xf]  ;;  %v211_v61 = vld [vmem:[%s493_s0 + $0xdc] sm:$0xf] }
  0x18   :  { %v131_v52 = vmax.bf16 %v216_v40, %v114_v43  ;;  %v82_v54 = vmax.bf16 %v194_v42, %v65_v45  ;;  %v218_v0 = vld [vmem:[%s493_s0 + $0xf8] sm:$0xf]  ;;  %v219_v2 = vld [vmem:[%s493_s0 + $0xfc] sm:$0xf] }
  0x19   :  { %v132_v56 = vmax.bf16 %v217_v44, %v115_v48  ;;  %v83_v57 = vmax.bf16 %v195_v46, %v66_v50  ;;  %v226_v5 = vld [vmem:[%s493_s0 + $0x118] sm:$0xf]  ;;  %v227_v7 = vld [vmem:[%s493_s0 + $0x11c] sm:$0xf] }
  0x1a   :  { %v148_v59 = vmax.bf16 %v224_v49, %v131_v52  ;;  %v99_v60 = vmax.bf16 %v202_v51, %v82_v54 }
  0x1b   :  { %v149_v62 = vmax.bf16 %v225_v53, %v132_v56  ;;  %v100_v63 = vmax.bf16 %v203_v55, %v83_v57 }
  0x1c   :  { %v116_v1 = vmax.bf16 %v210_v58, %v99_v60 }
  0x1d   :  { %v251_v3 = vcombine.low %v148_v59, %v149_v62  ;;  %v117_v4 = vmax.bf16 %v211_v61, %v100_v63 }
  0x1e   :  { %v133_v6 = vmax.bf16 %v218_v0, %v116_v1 }
  0x1f   :  { %252 = vst [vmem:[%s494_s1 + $0x10] sm:$0xff] %v251_v3   ;;  %v134_v8 = vmax.bf16 %v219_v2, %v117_v4 }
  0x20   :  { %v150_v9 = vmax.bf16 %v226_v5, %v133_v6 }
  0x21   :  { %v151_v10 = vmax.bf16 %v227_v7, %v134_v8 }
  0x23   :  { %v253_v11 = vcombine.low %v150_v9, %v151_v10 }
  0x25   :  { %254 = vst [vmem:[%s494_s1 + $0x18] sm:$0xff] %v253_v11  }

// kernel: resnet18_forward.25
= control target key start
LH: loop header
LB: loop body
LE: loop exit
PB: predicated region body
PF: predicated region fallthrough
CT: control target
= control target key end

     0   :  { %s888_s12 = smov 0   ;;  %s890_s13 = smov 0   ;;  %s1045_s0 = inlined_call_operand.vmem [shape: bf16[9,128,64], index: 0, kind: input, shape index: {}]   ;;  %s1046_s1 = inlined_call_operand.vmem [shape: bf16[9,64,64], index: 1, kind: input, shape index: {}]   ;;  %s1047_s2 = inlined_call_operand.vmem [shape: f32[1,64], index: 2, kind: input, shape index: {}]   ;;  %s1048_s3 = inlined_call_operand.vmem [shape: bf16[128,64], index: 3, kind: output, shape index: {}]  }
   0x1   :  { %s892_s14 = smov 0  }
   0x2 LB: > { %s22_s15 = sadd.s32 1, %s861_s13  ;;  %p696_p0 = scmp.ge.s32.totalorder %s865_s14, 1  ;;  %s865_s14 = sphi %s892_s14, %s13_s14   ;;  %s861_s13 = sphi %s890_s13, %s1050_s13   ;;  %s857_s12 = sphi %s888_s12, %s1049_s12  }
   0x3   : > { %p23_p1 = scmp.ge.s32.totalorder %s22_s15, 9  ;;  %p156_p2 = scmp.lt.s32.totalorder %s865_s14, 10 }
   0x5   : > { %s1052_s15 = smov (%p23_p1, %s22_s15), 0  ;;  %p157_p3 = pnand %p696_p0, %p156_p2 }
   0x6   : > { %p185_p4 = scmp.lt.s32.totalorder (!%p157_p3), %s857_s12, 8  ;;  %p699_p5 = scmp.ne.s32.totalorder (!%p157_p3), %s857_s12, 0 }
   0x7   : > { %160 = sbr.rel (%p157_p3) target bundleno = 284 (0x11c), region = 32 }
   0xe   : > { %s186_s16 = scalar_select %p185_p4, %s857_s12, 8 }
   0xf   : > { %204 = sbr.rel (%p699_p5) target bundleno = 24 (0x18), region = 36  ;;  %vm205_vm0 = vcmask (!%p699_p5), 523264   ;;  %v867_v0 = vmov (!%p699_p5), 0.0  }
  0x10   : > { %s744_s17 = sshll.u32 %s186_s16, 6  ;;  %206 = vst.msk [vmem:[#allocation2] sm:$0xff] (!%p699_p5), %vm205_vm0, %v867_v0  ;;  %207 = vst.msk [vmem:[#allocation2 + $0x8] sm:$0xff] (!%p699_p5), %vm205_vm0, %v867_v0 }
  0x11   : > { %s913_s20 = scalar_lea.vmem %s1045_s0, %s744_s17  ;;  %208 = vst.msk [vmem:[#allocation2 + $0x10] sm:$0xff] (!%p699_p5), %vm205_vm0, %v867_v0  ;;  %209 = vst.msk [vmem:[#allocation2 + $0x18] sm:$0xff] (!%p699_p5), %vm205_vm0, %v867_v0 }
  0x12   : > { %210 = vst.msk [vmem:[#allocation2 + $0x20] sm:$0xff] (!%p699_p5), %vm205_vm0, %v867_v0  ;;  %211 = vst.msk [vmem:[#allocation2 + $0x28] sm:$0xff] (!%p699_p5), %vm205_vm0, %v867_v0 }
  0x13   : > { %212 = vst.msk [vmem:[#allocation2 + $0x30] sm:$0xff] (!%p699_p5), %vm205_vm0, %v867_v0  ;;  %213 = vst.msk [vmem:[#allocation2 + $0x38] sm:$0xff] (!%p699_p5), %vm205_vm0, %v867_v0 }
  0x14   : > { %214 = vst.msk [vmem:[#allocation2 + $0x40] sm:$0xff] (!%p699_p5), %vm205_vm0, %v867_v0  ;;  %215 = vst.msk [vmem:[#allocation2 + $0x48] sm:$0xff] (!%p699_p5), %vm205_vm0, %v867_v0 }
  0x15   : > { %216 = vst.msk [vmem:[#allocation2 + $0x50] sm:$0xff] (!%p699_p5), %vm205_vm0, %v867_v0  ;;  %217 = vst.msk [vmem:[#allocation2 + $0x58] sm:$0xff] (!%p699_p5), %vm205_vm0, %v867_v0 }
  0x16   : > { %218 = vst.msk [vmem:[#allocation2 + $0x60] sm:$0xff] %vm205_vm0, %v867_v0  ;;  %219 = vst.msk [vmem:[#allocation2 + $0x68] sm:$0xff] %vm205_vm0, %v867_v0 }
  0x17   : > { %220 = vst.msk [vmem:[#allocation2 + $0x70] sm:$0xff] %vm205_vm0, %v867_v0  ;;  %221 = vst.msk [vmem:[#allocation2 + $0x78] sm:$0xff] %vm205_vm0, %v867_v0 }
  0x18 PF: > { %s745_s21 = sshll.u32 %s857_s12, 5  ;;  %v835_v1 = vld [vmem:[%s913_s20] sm:$0xff]   ;;  %vm329_vm1 = vcmask 523264   ;;  %v837_v7 = vld [vmem:[%s913_s20 + $0x8] sm:$0xff]   ;;  %v839_v9 = vld [vmem:[%s913_s20 + $0x10] sm:$0xff]   ;;  %p722_p6 = scmp.ne.s32.totalorder %s857_s12, 8 }
  0x19   : > { %s256_s24 = scalar_lea.vmem %s1046_s1, %s745_s21  ;;  %v836_v2 = vld [vmem:[%s913_s20 + $0x20] sm:$0xff]   ;;  %782 = vmatprep.mubr.msk.bf16.mxu0 %vm329_vm1, %v835_v1  ;;  %v838_v8 = vld [vmem:[%s913_s20 + $0x28] sm:$0xff]   ;;  %v840_v10 = vld [vmem:[%s913_s20 + $0x30] sm:$0xff]   ;;  %vm606_vm2 = vcmask (!%p722_p6), 519168  }
  0x1a   : > { %v831_v3 = vld [vmem:[%s256_s24] sm:$0xff]   ;;  %v832_v4 = vld [vmem:[%s256_s24 + $0x8] sm:$0xff]   ;;  %790 = vmatprep.mubr.msk.bf16.mxu1 %vm329_vm1, %v836_v2  ;;  %v833_v5 = vld [vmem:[%s256_s24 + $0x10] sm:$0xff]  }
  0x1b   : > { %774 = vmatprep.subr.bf16.mxu0 %v831_v3  ;;  %798 = vmatprep.subr.bf16.mxu1 %v831_v3  ;;  %v834_v6 = vld [vmem:[%s256_s24 + $0x18] sm:$0xff]   ;;  %v224_v13 = vld [vmem:[#allocation2 + $0x10] sm:$0xff]  ;;  %v222_v15 = vld [vmem:[#allocation2] sm:$0xff] }
  0x1c   : > { %775 = vmatpush3.bf16.msra.mxu0 %v831_v3  ;;  %802 = vmatpush3.bf16.msra.mxu1 %v831_v3  ;;  %v841_v11 = vld [vmem:[%s913_s20 + $0x18] sm:$0xff]   ;;  %v223_v25 = vld [vmem:[#allocation2 + $0x8] sm:$0xff]  ;;  %v228_v37 = vld [vmem:[#allocation2 + $0x30] sm:$0xff] }
  0x1d   : > { %776 = vmatprep.subr.bf16.mxu0 %v832_v4  ;;  %799 = vmatprep.subr.bf16.mxu1 %v832_v4  ;;  %v842_v12 = vld [vmem:[%s913_s20 + $0x38] sm:$0xff]   ;;  %v230_v16 = vld [vmem:[#allocation2 + $0x40] sm:$0xff]  ;;  %v231_v26 = vld [vmem:[#allocation2 + $0x48] sm:$0xff] }
  0x1e   : > { %v232_v14 = vld [vmem:[#allocation2 + $0x50] sm:$0xff]  ;;  %v225_v19 = vld [vmem:[#allocation2 + $0x18] sm:$0xff]  ;;  %v226_v39 = vld [vmem:[#allocation2 + $0x20] sm:$0xff] }
  0x1f   : > { %v233_v20 = vld [vmem:[#allocation2 + $0x58] sm:$0xff]  ;;  %v236_v38 = vld [vmem:[#allocation2 + $0x70] sm:$0xff]  ;;  %v234_v40 = vld [vmem:[#allocation2 + $0x60] sm:$0xff] }
  0x20   : > { %777 = vmatpush3.bf16.msra.mxu0 %v832_v4  ;;  %803 = vmatpush3.bf16.msra.mxu1 %v832_v4  ;;  %v229_v43 = vld [vmem:[#allocation2 + $0x38] sm:$0xff]  ;;  %v227_v49 = vld [vmem:[#allocation2 + $0x28] sm:$0xff]  ;;  %v723_v62 = vld [vmem:[%s1047_s2] ss:$0 sm:$0xff] (!%p722_p6) }
  0x21   : > { %778 = vmatprep.subr.bf16.mxu0 %v833_v5  ;;  %800 = vmatprep.subr.bf16.mxu1 %v833_v5  ;;  %v237_v44 = vld [vmem:[#allocation2 + $0x78] sm:$0xff]  ;;  %v235_v50 = vld [vmem:[#allocation2 + $0x68] sm:$0xff] }
  0x24   : > { %779 = vmatpush3.bf16.msra.mxu0 %v833_v5  ;;  %804 = vmatpush3.bf16.msra.mxu1 %v833_v5 }
  0x25   : > { %780 = vmatprep.subr.bf16.mxu0 %v834_v6  ;;  %801 = vmatprep.subr.bf16.mxu1 %v834_v6 }
  0x28   : > { %781 = vmatpush3.bf16.msra.mxu0 %v834_v6  ;;  %805 = vmatpush3.bf16.msra.mxu1 %v834_v6 }
  0x2b   : > { %783 = vmatmul.mubr.msk.bf16.vlgmr.msra.gmra.mrb[0].mxu0 %vm329_vm1, %v837_v7  ;;  %791 = vmatmul.mubr.msk.bf16.vlgmr.msra.gmra.mrb[0].mxu1 %vm329_vm1, %v838_v8 }
  0x2c   : > { %786 = vmatprep.mubr.msk.bf16.mxu0 %vm329_vm1, %v839_v9  ;;  %794 = vmatprep.mubr.msk.bf16.mxu1 %vm329_vm1, %v840_v10 }
  0x33   : > { %787 = vmatmul.mubr.msk.bf16.gmra.mrb[4].mxu0 %vm329_vm1, %v841_v11  ;;  %795 = vmatmul.mubr.msk.bf16.gmra.mrb[4].mxu1 %vm329_vm1, %v842_v12 }
  0xfe   : > { %v784_v17 = vpop.f32.mrb[0].mxu0  ;;  %v792_v18 = vpop.f32.mrb[0].mxu1 }
  0xff   : > { %v453_v21 = vadd.f32 %v784_v17, %v224_v13  ;;  %v461_v22 = vadd.f32 %v792_v18, %v232_v14  ;;  %v388_v23 = vpop.f32.mrb[1].mxu0  ;;  %v420_v24 = vpop.f32.mrb[1].mxu1 }
 0x100   : > { %v451_v27 = vadd.f32 %v388_v23, %v222_v15  ;;  %v459_v28 = vadd.f32 %v420_v24, %v230_v16  ;;  %v785_v29 = vpop.f32.mrb[2].mxu0  ;;  %v793_v30 = vpop.f32.mrb[2].mxu1 }
 0x101   : > { %469 = vst.msk [vmem:[#allocation2 + $0x10] sm:$0xff] %vm329_vm1, %v453_v21  ;;  %477 = vst.msk [vmem:[#allocation2 + $0x50] sm:$0xff] %vm329_vm1, %v461_v22  ;;  %v454_v31 = vadd.f32 %v785_v29, %v225_v19  ;;  %v462_v32 = vadd.f32 %v793_v30, %v233_v20  ;;  %v391_v33 = vpop.f32.mrb[3].mxu0  ;;  %v423_v34 = vpop.f32.mrb[3].mxu1 }
 0x102   : > { %467 = vst.msk [vmem:[#allocation2] sm:$0xff] %vm329_vm1, %v451_v27  ;;  %475 = vst.msk [vmem:[#allocation2 + $0x40] sm:$0xff] %vm329_vm1, %v459_v28  ;;  %v452_v35 = vadd.f32 %v391_v33, %v223_v25  ;;  %v460_v36 = vadd.f32 %v423_v34, %v231_v26 }
 0x103   : > { %470 = vst.msk [vmem:[#allocation2 + $0x18] sm:$0xff] %vm329_vm1, %v454_v31  ;;  %478 = vst.msk [vmem:[#allocation2 + $0x58] sm:$0xff] %vm329_vm1, %v462_v32 }
 0x104   : > { %468 = vst.msk [vmem:[#allocation2 + $0x8] sm:$0xff] %vm329_vm1, %v452_v35  ;;  %476 = vst.msk [vmem:[#allocation2 + $0x48] sm:$0xff] %vm329_vm1, %v460_v36 }
 0x106   : > { %v788_v41 = vpop.f32.mrb[4].mxu0  ;;  %v796_v42 = vpop.f32.mrb[4].mxu1  ;;  %486 = sbr.rel (%p722_p6) target bundleno = 284 (0x11c), region = 40 }
 0x107   : > { %v457_v45 = vadd.f32 %v788_v41, %v228_v37  ;;  %v465_v46 = vadd.f32 %v796_v42, %v236_v38  ;;  %v404_v47 = vpop.f32.mrb[5].mxu0  ;;  %v436_v48 = vpop.f32.mrb[5].mxu1 }
 0x108   : > { %v455_v51 = vadd.f32 %v404_v47, %v226_v39  ;;  %v463_v52 = vadd.f32 %v436_v48, %v234_v40  ;;  %v789_v53 = vpop.f32.mrb[6].mxu0  ;;  %v797_v54 = vpop.f32.mrb[6].mxu1  ;;  %v489_v2 = vld [vmem:[#allocation2 + $0x10] sm:$0xff] (!%p722_p6) }
 0x109   : > { %473 = vst.msk [vmem:[#allocation2 + $0x30] sm:$0xff] %vm329_vm1, %v457_v45  ;;  %481 = vst.msk [vmem:[#allocation2 + $0x70] sm:$0xff] %vm329_vm1, %v465_v46  ;;  %v458_v55 = vadd.f32 %v789_v53, %v229_v43  ;;  %v466_v56 = vadd.f32 %v797_v54, %v237_v44  ;;  %v407_v57 = vpop.f32.mrb[7].mxu0  ;;  %v439_v58 = vpop.f32.mrb[7].mxu1  ;;  %v487_v61 = vld [vmem:[#allocation2] sm:$0xff] (!%p722_p6)  ;;  %v512_v5 = vadd.f32 (!%p722_p6), %v723_v62, %v489_v2  ;;  %v497_v25 = vld [vmem:[#allocation2 + $0x50] sm:$0xff] (!%p722_p6) }
 0x10a   : > { %471 = vst.msk [vmem:[#allocation2 + $0x20] sm:$0xff] %vm329_vm1, %v455_v51  ;;  %479 = vst.msk [vmem:[#allocation2 + $0x60] sm:$0xff] %vm329_vm1, %v463_v52  ;;  %v456_v59 = vadd.f32 %v407_v57, %v227_v49  ;;  %v464_v60 = vadd.f32 %v439_v58, %v235_v50  ;;  %v510_v0 = vadd.f32 (!%p722_p6), %v723_v62, %v487_v61  ;;  %v490_v3 = vld [vmem:[#allocation2 + $0x18] sm:$0xff] (!%p722_p6)  ;;  %v495_v19 = vld [vmem:[#allocation2 + $0x40] sm:$0xff] (!%p722_p6) }
 0x10b   : > { %474 = vst.msk [vmem:[#allocation2 + $0x38] sm:$0xff] %vm329_vm1, %v458_v55  ;;  %482 = vst.msk [vmem:[#allocation2 + $0x78] sm:$0xff] %vm329_vm1, %v466_v56  ;;  %v488_v63 = vld [vmem:[#allocation2 + $0x8] sm:$0xff] (!%p722_p6)  ;;  %v513_v6 = vadd.f32 (!%p722_p6), %v723_v62, %v490_v3  ;;  %v528_v15 = vmax.f32 (!%p722_p6), %v512_v5, 0.0  ;;  %v498_v26 = vld [vmem:[#allocation2 + $0x58] sm:$0xff] (!%p722_p6)  ;;  %v518_v36 = vadd.f32 (!%p722_p6), %v723_v62, %v495_v19  ;;  %v520_v40 = vadd.f32 (!%p722_p6), %v723_v62, %v497_v25 }
 0x10c   : > { %472 = vst.msk [vmem:[#allocation2 + $0x28] sm:$0xff] %vm329_vm1, %v456_v59  ;;  %480 = vst.msk [vmem:[#allocation2 + $0x68] sm:$0xff] %vm329_vm1, %v464_v60  ;;  %v511_v1 = vadd.f32 (!%p722_p6), %v723_v62, %v488_v63  ;;  %v526_v11 = vmax.f32 (!%p722_p6), %v510_v0, 0.0  ;;  %v496_v20 = vld [vmem:[#allocation2 + $0x48] sm:$0xff] (!%p722_p6)  ;;  %v521_v41 = vadd.f32 (!%p722_p6), %v723_v62, %v498_v26 }
 0x10d   : > { %v529_v16 = vmax.f32 %v513_v6, 0.0  ;;  %v748_v28 = vpack.c.bf16 %v528_v15, %v528_v15  ;;  %v519_v37 = vadd.f32 %v723_v62, %v496_v20  ;;  %v534_v43 = vmax.f32 %v518_v36, 0.0 }
 0x10e   : > { %v527_v12 = vmax.f32 %v511_v1, 0.0  ;;  %v746_v21 = vpack.c.bf16 %v526_v11, %v526_v11  ;;  %v536_v47 = vmax.f32 %v520_v40, 0.0  ;;  %v537_v48 = vmax.f32 %v521_v41, 0.0 }
 0x10f   : > { %v749_v29 = vpack.c.bf16 %v529_v16, %v529_v16  ;;  %609 = vst.msk [vmem:[%s1048_s3 + $0x8] sm:$0xf] %vm606_vm2, %v748_v28  ;;  %v535_v44 = vmax.f32 %v519_v37, 0.0  ;;  %v754_v51 = vpack.c.bf16 %v534_v43, %v534_v43 }
 0x110   : > { %v493_v9 = vld [vmem:[#allocation2 + $0x30] sm:$0xff]  ;;  %v747_v22 = vpack.c.bf16 %v527_v12, %v527_v12  ;;  %607 = vst.msk [vmem:[%s1048_s3] sm:$0xf] %vm606_vm2, %v746_v21  ;;  %v756_v55 = vpack.c.bf16 %v536_v47, %v536_v47  ;;  %v757_v56 = vpack.c.bf16 %v537_v48, %v537_v48 }
 0x111   : > { %v491_v4 = vld [vmem:[#allocation2 + $0x20] sm:$0xff]  ;;  %v516_v14 = vadd.f32 %v723_v62, %v493_v9  ;;  %v501_v33 = vld [vmem:[#allocation2 + $0x70] sm:$0xff]  ;;  %610 = vst.msk [vmem:[%s1048_s3 + $0xc] sm:$0xf] %vm606_vm2, %v749_v29  ;;  %v755_v52 = vpack.c.bf16 %v535_v44, %v535_v44  ;;  %615 = vst.msk [vmem:[%s1048_s3 + $0x20] sm:$0xf] %vm606_vm2, %v754_v51 }
 0x112   : > { %v514_v7 = vadd.f32 %v723_v62, %v491_v4  ;;  %v494_v10 = vld [vmem:[#allocation2 + $0x38] sm:$0xff]  ;;  %v499_v27 = vld [vmem:[#allocation2 + $0x60] sm:$0xff]  ;;  %608 = vst.msk [vmem:[%s1048_s3 + $0x4] sm:$0xf] %vm606_vm2, %v747_v22  ;;  %v524_v46 = vadd.f32 %v723_v62, %v501_v33  ;;  %617 = vst.msk [vmem:[%s1048_s3 + $0x28] sm:$0xf] %vm606_vm2, %v756_v55 }
 0x113   : > { %v492_v8 = vld [vmem:[#allocation2 + $0x28] sm:$0xff]  ;;  %v517_v18 = vadd.f32 %v723_v62, %v494_v10  ;;  %v532_v24 = vmax.f32 %v516_v14, 0.0  ;;  %v502_v38 = vld [vmem:[#allocation2 + $0x78] sm:$0xff]  ;;  %v522_v42 = vadd.f32 %v723_v62, %v499_v27  ;;  %616 = vst.msk [vmem:[%s1048_s3 + $0x24] sm:$0xf] %vm606_vm2, %v755_v52 }
 0x114   : > { %v515_v13 = vadd.f32 %v723_v62, %v492_v8  ;;  %v530_v17 = vmax.f32 %v514_v7, 0.0  ;;  %v500_v32 = vld [vmem:[#allocation2 + $0x68] sm:$0xff]  ;;  %v525_v50 = vadd.f32 %v723_v62, %v502_v38  ;;  %v540_v54 = vmax.f32 %v524_v46, 0.0  ;;  %618 = vst.msk [vmem:[%s1048_s3 + $0x2c] sm:$0xf] %vm606_vm2, %v757_v56 }
 0x115   : > { %v533_v31 = vmax.f32 %v517_v18, 0.0  ;;  %v752_v35 = vpack.c.bf16 %v532_v24, %v532_v24  ;;  %v523_v45 = vadd.f32 %v723_v62, %v500_v32  ;;  %v538_v49 = vmax.f32 %v522_v42, 0.0 }
 0x116   : > { %v531_v23 = vmax.f32 %v515_v13, 0.0  ;;  %v750_v30 = vpack.c.bf16 %v530_v17, %v530_v17  ;;  %v541_v58 = vmax.f32 %v525_v50, 0.0  ;;  %v760_v60 = vpack.c.bf16 %v540_v54, %v540_v54 }
 0x117   : > { %v753_v39 = vpack.c.bf16 %v533_v31, %v533_v31  ;;  %613 = vst.msk [vmem:[%s1048_s3 + $0x18] sm:$0xf] %vm606_vm2, %v752_v35  ;;  %v539_v53 = vmax.f32 %v523_v45, 0.0  ;;  %v758_v57 = vpack.c.bf16 %v538_v49, %v538_v49 }
 0x118   : > { %v751_v34 = vpack.c.bf16 %v531_v23, %v531_v23  ;;  %611 = vst.msk [vmem:[%s1048_s3 + $0x10] sm:$0xf] %vm606_vm2, %v750_v30  ;;  %v761_v61 = vpack.c.bf16 %v541_v58, %v541_v58  ;;  %621 = vst.msk [vmem:[%s1048_s3 + $0x38] sm:$0xf] %vm606_vm2, %v760_v60 }
 0x119   : > { %614 = vst.msk [vmem:[%s1048_s3 + $0x1c] sm:$0xf] %vm606_vm2, %v753_v39  ;;  %v759_v59 = vpack.c.bf16 %v539_v53, %v539_v53  ;;  %619 = vst.msk [vmem:[%s1048_s3 + $0x30] sm:$0xf] %vm606_vm2, %v758_v57 }
 0x11a   : > { %612 = vst.msk [vmem:[%s1048_s3 + $0x14] sm:$0xf] %vm606_vm2, %v751_v34  ;;  %622 = vst.msk [vmem:[%s1048_s3 + $0x3c] sm:$0xf] %vm606_vm2, %v761_v61 }
 0x11b   : > { %620 = vst.msk [vmem:[%s1048_s3 + $0x34] sm:$0xf] %vm606_vm2, %v759_v59 }
 0x11c PF: > { %s13_s14 = sadd.s32 1, %s865_s14   ;;  %s1049_s12 = smov %s861_s13 }
 0x11d   : > { %p10_p7 = scmp.ge.s32.totalorder %s13_s14, 11   ;;  %s1050_s13 = smov %s1052_s15 }
 0x11f   :  { %12 = sbr.rel (!%p10_p7) target bundleno = 2 (0x2), region = 71 }

// kernel: resnet18_forward.26
= control target key start
LH: loop header
LB: loop body
LE: loop exit
PB: predicated region body
PF: predicated region fallthrough
CT: control target
= control target key end

     0   :  { %s1045_s15 = smov 0   ;;  %s1047_s16 = smov 0   ;;  %s1244_s0 = inlined_call_operand.vmem [shape: bf16[9,128,64], index: 0, kind: input, shape index: {}]   ;;  %s1245_s1 = inlined_call_operand.vmem [shape: bf16[9,64,64], index: 1, kind: input, shape index: {}]   ;;  %s1246_s2 = inlined_call_operand.vmem [shape: f32[1,64], index: 2, kind: input, shape index: {}]   ;;  %s1247_s3 = inlined_call_operand.vmem [shape: bf16[128,64], index: 3, kind: input, shape index: {}]   ;;  %s1248_s4 = inlined_call_operand.vmem [shape: bf16[128,64], index: 4, kind: output, shape index: {}]  }
   0x1   :  { %s1049_s17 = smov 0  }
   0x2 LB: > { %s23_s18 = sadd.s32 1, %s1013_s16  ;;  %p809_p0 = scmp.ge.s32.totalorder %s1017_s17, 1  ;;  %s1017_s17 = sphi %s1049_s17, %s14_s17   ;;  %s1013_s16 = sphi %s1047_s16, %s1250_s16   ;;  %s1009_s15 = sphi %s1045_s15, %s1249_s15  }
   0x3   : > { %p24_p1 = scmp.ge.s32.totalorder %s23_s18, 9  ;;  %p192_p2 = scmp.lt.s32.totalorder %s1017_s17, 10 }
   0x5   : > { %s1252_s18 = smov (%p24_p1, %s23_s18), 0  ;;  %p193_p3 = pnand %p809_p0, %p192_p2 }
   0x6   : > { %p228_p4 = scmp.lt.s32.totalorder (!%p193_p3), %s1009_s15, 8  ;;  %p812_p5 = scmp.ne.s32.totalorder (!%p193_p3), %s1009_s15, 0 }
   0x7   : > { %196 = sbr.rel (%p193_p3) target bundleno = 290 (0x122), region = 36 }
   0xe   : > { %s229_s19 = scalar_select %p228_p4, %s1009_s15, 8 }
   0xf   : > { %253 = sbr.rel (%p812_p5) target bundleno = 24 (0x18), region = 40  ;;  %vm254_vm0 = vcmask (!%p812_p5), 523264   ;;  %v1019_v0 = vmov (!%p812_p5), 0.0  }
  0x10   : > { %s857_s20 = sshll.u32 %s229_s19, 6  ;;  %255 = vst.msk [vmem:[#allocation2] sm:$0xff] (!%p812_p5), %vm254_vm0, %v1019_v0  ;;  %256 = vst.msk [vmem:[#allocation2 + $0x8] sm:$0xff] (!%p812_p5), %vm254_vm0, %v1019_v0 }
  0x11   : > { %s1070_s23 = scalar_lea.vmem %s1244_s0, %s857_s20  ;;  %257 = vst.msk [vmem:[#allocation2 + $0x10] sm:$0xff] (!%p812_p5), %vm254_vm0, %v1019_v0  ;;  %258 = vst.msk [vmem:[#allocation2 + $0x18] sm:$0xff] (!%p812_p5), %vm254_vm0, %v1019_v0 }
  0x12   : > { %259 = vst.msk [vmem:[#allocation2 + $0x20] sm:$0xff] (!%p812_p5), %vm254_vm0, %v1019_v0  ;;  %260 = vst.msk [vmem:[#allocation2 + $0x28] sm:$0xff] (!%p812_p5), %vm254_vm0, %v1019_v0 }
  0x13   : > { %261 = vst.msk [vmem:[#allocation2 + $0x30] sm:$0xff] (!%p812_p5), %vm254_vm0, %v1019_v0  ;;  %262 = vst.msk [vmem:[#allocation2 + $0x38] sm:$0xff] (!%p812_p5), %vm254_vm0, %v1019_v0 }
  0x14   : > { %263 = vst.msk [vmem:[#allocation2 + $0x40] sm:$0xff] (!%p812_p5), %vm254_vm0, %v1019_v0  ;;  %264 = vst.msk [vmem:[#allocation2 + $0x48] sm:$0xff] (!%p812_p5), %vm254_vm0, %v1019_v0 }
  0x15   : > { %265 = vst.msk [vmem:[#allocation2 + $0x50] sm:$0xff] (!%p812_p5), %vm254_vm0, %v1019_v0  ;;  %266 = vst.msk [vmem:[#allocation2 + $0x58] sm:$0xff] (!%p812_p5), %vm254_vm0, %v1019_v0 }
  0x16   : > { %267 = vst.msk [vmem:[#allocation2 + $0x60] sm:$0xff] %vm254_vm0, %v1019_v0  ;;  %268 = vst.msk [vmem:[#allocation2 + $0x68] sm:$0xff] %vm254_vm0, %v1019_v0 }
  0x17   : > { %269 = vst.msk [vmem:[#allocation2 + $0x70] sm:$0xff] %vm254_vm0, %v1019_v0  ;;  %270 = vst.msk [vmem:[#allocation2 + $0x78] sm:$0xff] %vm254_vm0, %v1019_v0 }
  0x18 PF: > { %s858_s24 = sshll.u32 %s1009_s15, 5  ;;  %v987_v1 = vld [vmem:[%s1070_s23] sm:$0xff]   ;;  %vm378_vm1 = vcmask 523264   ;;  %v989_v7 = vld [vmem:[%s1070_s23 + $0x8] sm:$0xff]   ;;  %v991_v9 = vld [vmem:[%s1070_s23 + $0x10] sm:$0xff]   ;;  %p835_p6 = scmp.ne.s32.totalorder %s1009_s15, 8 }
  0x19   : > { %s305_s27 = scalar_lea.vmem %s1245_s1, %s858_s24  ;;  %v988_v2 = vld [vmem:[%s1070_s23 + $0x20] sm:$0xff]   ;;  %934 = vmatprep.mubr.msk.bf16.mxu0 %vm378_vm1, %v987_v1  ;;  %v990_v8 = vld [vmem:[%s1070_s23 + $0x28] sm:$0xff]   ;;  %v992_v10 = vld [vmem:[%s1070_s23 + $0x30] sm:$0xff]   ;;  %vm703_vm2 = vcmask (!%p835_p6), 519168  }
  0x1a   : > { %v983_v3 = vld [vmem:[%s305_s27] sm:$0xff]   ;;  %v984_v4 = vld [vmem:[%s305_s27 + $0x8] sm:$0xff]   ;;  %942 = vmatprep.mubr.msk.bf16.mxu1 %vm378_vm1, %v988_v2  ;;  %v985_v5 = vld [vmem:[%s305_s27 + $0x10] sm:$0xff]  }
  0x1b   : > { %926 = vmatprep.subr.bf16.mxu0 %v983_v3  ;;  %950 = vmatprep.subr.bf16.mxu1 %v983_v3  ;;  %v986_v6 = vld [vmem:[%s305_s27 + $0x18] sm:$0xff]   ;;  %v273_v13 = vld [vmem:[#allocation2 + $0x10] sm:$0xff]  ;;  %v271_v15 = vld [vmem:[#allocation2] sm:$0xff] }
  0x1c   : > { %927 = vmatpush3.bf16.msra.mxu0 %v983_v3  ;;  %954 = vmatpush3.bf16.msra.mxu1 %v983_v3  ;;  %v993_v11 = vld [vmem:[%s1070_s23 + $0x18] sm:$0xff]   ;;  %v272_v25 = vld [vmem:[#allocation2 + $0x8] sm:$0xff]  ;;  %v277_v37 = vld [vmem:[#allocation2 + $0x30] sm:$0xff] }
  0x1d   : > { %928 = vmatprep.subr.bf16.mxu0 %v984_v4  ;;  %951 = vmatprep.subr.bf16.mxu1 %v984_v4  ;;  %v994_v12 = vld [vmem:[%s1070_s23 + $0x38] sm:$0xff]   ;;  %v279_v16 = vld [vmem:[#allocation2 + $0x40] sm:$0xff]  ;;  %v280_v26 = vld [vmem:[#allocation2 + $0x48] sm:$0xff] }
  0x1e   : > { %v281_v14 = vld [vmem:[#allocation2 + $0x50] sm:$0xff]  ;;  %v274_v19 = vld [vmem:[#allocation2 + $0x18] sm:$0xff]  ;;  %v275_v39 = vld [vmem:[#allocation2 + $0x20] sm:$0xff] }
  0x1f   : > { %v282_v20 = vld [vmem:[#allocation2 + $0x58] sm:$0xff]  ;;  %v285_v38 = vld [vmem:[#allocation2 + $0x70] sm:$0xff]  ;;  %v283_v40 = vld [vmem:[#allocation2 + $0x60] sm:$0xff] }
  0x20   : > { %929 = vmatpush3.bf16.msra.mxu0 %v984_v4  ;;  %955 = vmatpush3.bf16.msra.mxu1 %v984_v4  ;;  %v278_v43 = vld [vmem:[#allocation2 + $0x38] sm:$0xff]  ;;  %v276_v49 = vld [vmem:[#allocation2 + $0x28] sm:$0xff]  ;;  %v1129_v62 = vld [vmem:[%s1246_s2] ss:$0 sm:$0xff] (!%p835_p6) }
  0x21   : > { %930 = vmatprep.subr.bf16.mxu0 %v985_v5  ;;  %952 = vmatprep.subr.bf16.mxu1 %v985_v5  ;;  %v286_v44 = vld [vmem:[#allocation2 + $0x78] sm:$0xff]  ;;  %v284_v50 = vld [vmem:[#allocation2 + $0x68] sm:$0xff]  ;;  %v876_v63 = vld [vmem:[%s1247_s3] sm:$0xff] (!%p835_p6)  }
  0x22   : > { %v877_v1 = vunpack.c.l.bf16 (!%p835_p6), %v876_v63  ;;  %v878_v3 = vunpack.c.h.bf16 (!%p835_p6), %v876_v63 }
  0x24   : > { %931 = vmatpush3.bf16.msra.mxu0 %v985_v5  ;;  %956 = vmatpush3.bf16.msra.mxu1 %v985_v5  ;;  %v907_v5 = vld [vmem:[%s1247_s3 + $0x8] sm:$0xff] (!%p835_p6)  }
  0x25   : > { %932 = vmatprep.subr.bf16.mxu0 %v986_v6  ;;  %953 = vmatprep.subr.bf16.mxu1 %v986_v6 }
  0x28   : > { %933 = vmatpush3.bf16.msra.mxu0 %v986_v6  ;;  %957 = vmatpush3.bf16.msra.mxu1 %v986_v6 }
  0x2b   : > { %935 = vmatmul.mubr.msk.bf16.vlgmr.msra.gmra.mrb[0].mxu0 %vm378_vm1, %v989_v7  ;;  %943 = vmatmul.mubr.msk.bf16.vlgmr.msra.gmra.mrb[0].mxu1 %vm378_vm1, %v990_v8  ;;  %v881_v8 = vunpack.c.l.bf16 (!%p835_p6), %v907_v5 }
  0x2c   : > { %938 = vmatprep.mubr.msk.bf16.mxu0 %vm378_vm1, %v991_v9  ;;  %946 = vmatprep.mubr.msk.bf16.mxu1 %vm378_vm1, %v992_v10  ;;  %v882_v10 = vunpack.c.h.bf16 (!%p835_p6), %v907_v5 }
  0x33   : > { %939 = vmatmul.mubr.msk.bf16.gmra.mrb[4].mxu0 %vm378_vm1, %v993_v11  ;;  %947 = vmatmul.mubr.msk.bf16.gmra.mrb[4].mxu1 %vm378_vm1, %v994_v12  ;;  %v908_v12 = vld [vmem:[%s1247_s3 + $0x10] sm:$0xff] (!%p835_p6)  }
  0xfe   : > { %v936_v17 = vpop.f32.mrb[0].mxu0  ;;  %v944_v18 = vpop.f32.mrb[0].mxu1 }
  0xff   : > { %v502_v21 = vadd.f32 %v936_v17, %v273_v13  ;;  %v510_v22 = vadd.f32 %v944_v18, %v281_v14  ;;  %v437_v23 = vpop.f32.mrb[1].mxu0  ;;  %v469_v24 = vpop.f32.mrb[1].mxu1 }
 0x100   : > { %v500_v27 = vadd.f32 %v437_v23, %v271_v15  ;;  %v508_v28 = vadd.f32 %v469_v24, %v279_v16  ;;  %v937_v29 = vpop.f32.mrb[2].mxu0  ;;  %v945_v30 = vpop.f32.mrb[2].mxu1  ;;  %v885_v16 = vunpack.c.l.bf16 (!%p835_p6), %v908_v12  ;;  %v886_v23 = vunpack.c.h.bf16 (!%p835_p6), %v908_v12  ;;  %v913_v12 = vld [vmem:[%s1247_s3 + $0x38] sm:$0xff] (!%p835_p6)  }
 0x101   : > { %518 = vst.msk [vmem:[#allocation2 + $0x10] sm:$0xff] %vm378_vm1, %v502_v21  ;;  %526 = vst.msk [vmem:[#allocation2 + $0x50] sm:$0xff] %vm378_vm1, %v510_v22  ;;  %v503_v31 = vadd.f32 %v937_v29, %v274_v19  ;;  %v511_v32 = vadd.f32 %v945_v30, %v282_v20  ;;  %v440_v33 = vpop.f32.mrb[3].mxu0  ;;  %v472_v34 = vpop.f32.mrb[3].mxu1  ;;  %v909_v19 = vld [vmem:[%s1247_s3 + $0x18] sm:$0xff] (!%p835_p6)  }
 0x102   : > { %516 = vst.msk [vmem:[#allocation2] sm:$0xff] %vm378_vm1, %v500_v27  ;;  %524 = vst.msk [vmem:[#allocation2 + $0x40] sm:$0xff] %vm378_vm1, %v508_v28  ;;  %v501_v35 = vadd.f32 %v440_v33, %v272_v25  ;;  %v509_v36 = vadd.f32 %v472_v34, %v280_v26 }
 0x103   : > { %519 = vst.msk [vmem:[#allocation2 + $0x18] sm:$0xff] %vm378_vm1, %v503_v31  ;;  %527 = vst.msk [vmem:[#allocation2 + $0x58] sm:$0xff] %vm378_vm1, %v511_v32  ;;  %v889_v32 = vunpack.c.l.bf16 (!%p835_p6), %v909_v19 }
 0x104   : > { %517 = vst.msk [vmem:[#allocation2 + $0x8] sm:$0xff] %vm378_vm1, %v501_v35  ;;  %525 = vst.msk [vmem:[#allocation2 + $0x48] sm:$0xff] %vm378_vm1, %v509_v36 }
 0x106   : > { %v940_v41 = vpop.f32.mrb[4].mxu0  ;;  %v948_v42 = vpop.f32.mrb[4].mxu1  ;;  %535 = sbr.rel (%p835_p6) target bundleno = 290 (0x122), region = 44 }
 0x107   : > { %v506_v45 = vadd.f32 %v940_v41, %v277_v37  ;;  %v514_v46 = vadd.f32 %v948_v42, %v285_v38  ;;  %v453_v47 = vpop.f32.mrb[5].mxu0  ;;  %v485_v48 = vpop.f32.mrb[5].mxu1  ;;  %v910_v38 = vld [vmem:[%s1247_s3 + $0x20] sm:$0xff] (!%p835_p6)  }
 0x108   : > { %v504_v51 = vadd.f32 %v453_v47, %v275_v39  ;;  %v512_v52 = vadd.f32 %v485_v48, %v283_v40  ;;  %v941_v53 = vpop.f32.mrb[6].mxu0  ;;  %v949_v54 = vpop.f32.mrb[6].mxu1  ;;  %v538_v4 = vld [vmem:[#allocation2 + $0x10] sm:$0xff] (!%p835_p6)  ;;  %v890_v48 = vunpack.c.h.bf16 (!%p835_p6), %v909_v19 }
 0x109   : > { %522 = vst.msk [vmem:[#allocation2 + $0x30] sm:$0xff] %vm378_vm1, %v506_v45  ;;  %530 = vst.msk [vmem:[#allocation2 + $0x70] sm:$0xff] %vm378_vm1, %v514_v46  ;;  %v507_v55 = vadd.f32 %v941_v53, %v278_v43  ;;  %v515_v56 = vadd.f32 %v949_v54, %v286_v44  ;;  %v456_v57 = vpop.f32.mrb[7].mxu0  ;;  %v488_v58 = vpop.f32.mrb[7].mxu1  ;;  %v536_v61 = vld [vmem:[#allocation2] sm:$0xff] (!%p835_p6)  ;;  %v561_v7 = vadd.f32 (!%p835_p6), %v1129_v62, %v538_v4  ;;  %v546_v44 = vld [vmem:[#allocation2 + $0x50] sm:$0xff] (!%p835_p6)  ;;  %v893_v53 = vunpack.c.l.bf16 (!%p835_p6), %v910_v38 }
 0x10a   : > { %520 = vst.msk [vmem:[#allocation2 + $0x20] sm:$0xff] %vm378_vm1, %v504_v51  ;;  %528 = vst.msk [vmem:[#allocation2 + $0x60] sm:$0xff] %vm378_vm1, %v512_v52  ;;  %v505_v59 = vadd.f32 %v456_v57, %v276_v49  ;;  %v513_v60 = vadd.f32 %v488_v58, %v284_v50  ;;  %v559_v0 = vadd.f32 (!%p835_p6), %v1129_v62, %v536_v61  ;;  %v539_v9 = vld [vmem:[#allocation2 + $0x18] sm:$0xff] (!%p835_p6)  ;;  %v544_v33 = vld [vmem:[#allocation2 + $0x40] sm:$0xff] (!%p835_p6)  ;;  %v894_v57 = vunpack.c.h.bf16 (!%p835_p6), %v910_v38 }
 0x10b   : > { %523 = vst.msk [vmem:[#allocation2 + $0x38] sm:$0xff] %vm378_vm1, %v507_v55  ;;  %531 = vst.msk [vmem:[#allocation2 + $0x78] sm:$0xff] %vm378_vm1, %v515_v56  ;;  %v537_v2 = vld [vmem:[#allocation2 + $0x8] sm:$0xff] (!%p835_p6)  ;;  %v562_v14 = vadd.f32 (!%p835_p6), %v1129_v62, %v539_v9  ;;  %v609_v21 = vadd.f32 (!%p835_p6), %v881_v8, %v561_v7  ;;  %v567_v49 = vadd.f32 (!%p835_p6), %v1129_v62, %v544_v33  ;;  %v547_v50 = vld [vmem:[#allocation2 + $0x58] sm:$0xff] (!%p835_p6) }
 0x10c   : > { %521 = vst.msk [vmem:[#allocation2 + $0x28] sm:$0xff] %vm378_vm1, %v505_v59  ;;  %529 = vst.msk [vmem:[#allocation2 + $0x68] sm:$0xff] %vm378_vm1, %v513_v60  ;;  %v560_v6 = vadd.f32 (!%p835_p6), %v1129_v62, %v537_v2  ;;  %v607_v13 = vadd.f32 (!%p835_p6), %v877_v1, %v559_v0  ;;  %v545_v39 = vld [vmem:[#allocation2 + $0x48] sm:$0xff] (!%p835_p6)  ;;  %v569_v58 = vadd.f32 (!%p835_p6), %v1129_v62, %v546_v44  ;;  %v912_v60 = vld [vmem:[%s1247_s3 + $0x30] sm:$0xff] (!%p835_p6)  }
 0x10d   : > { %v610_v26 = vadd.f32 %v882_v10, %v562_v14  ;;  %v625_v30 = vmax.f32 %v609_v21, 0.0  ;;  %v911_v45 = vld [vmem:[%s1247_s3 + $0x28] sm:$0xff]   ;;  %v568_v54 = vadd.f32 %v1129_v62, %v545_v39  ;;  %v615_v0 = vadd.f32 %v893_v53, %v567_v49 }
 0x10e   : > { %v608_v20 = vadd.f32 %v878_v3, %v560_v6  ;;  %v623_v25 = vmax.f32 %v607_v13, 0.0  ;;  %v897_v59 = vunpack.c.l.bf16 %v911_v45  ;;  %v570_v1 = vadd.f32 %v1129_v62, %v547_v50 }
 0x10f   : > { %v626_v35 = vmax.f32 %v610_v26, 0.0  ;;  %v861_v41 = vpack.c.bf16 %v625_v30, %v625_v30  ;;  %v898_v2 = vunpack.c.h.bf16 %v911_v45  ;;  %v616_v4 = vadd.f32 %v894_v57, %v568_v54 }
 0x110   : > { %v542_v18 = vld [vmem:[#allocation2 + $0x30] sm:$0xff]  ;;  %v624_v29 = vmax.f32 %v608_v20, 0.0  ;;  %v859_v34 = vpack.c.bf16 %v623_v25, %v623_v25  ;;  %v617_v5 = vadd.f32 %v897_v59, %v569_v58  ;;  %v631_v8 = vmax.f32 %v615_v0, 0.0 }
 0x111   : > { %v540_v11 = vld [vmem:[#allocation2 + $0x20] sm:$0xff]  ;;  %v565_v28 = vadd.f32 %v1129_v62, %v542_v18  ;;  %v862_v46 = vpack.c.bf16 %v626_v35, %v626_v35  ;;  %706 = vst.msk [vmem:[%s1248_s4 + $0x8] sm:$0xf] %vm703_vm2, %v861_v41  ;;  %v550_v7 = vld [vmem:[#allocation2 + $0x70] sm:$0xff]  ;;  %v618_v9 = vadd.f32 %v898_v2, %v570_v1  ;;  %v901_v10 = vunpack.c.l.bf16 %v912_v60 }
 0x112   : > { %v563_v15 = vadd.f32 %v1129_v62, %v540_v11  ;;  %v543_v24 = vld [vmem:[#allocation2 + $0x38] sm:$0xff]  ;;  %v860_v40 = vpack.c.bf16 %v624_v29, %v624_v29  ;;  %704 = vst.msk [vmem:[%s1248_s4] sm:$0xf] %vm703_vm2, %v859_v34  ;;  %v548_v55 = vld [vmem:[#allocation2 + $0x60] sm:$0xff]  ;;  %v632_v14 = vmax.f32 %v616_v4, 0.0  ;;  %v867_v18 = vpack.c.bf16 %v631_v8, %v631_v8 }
 0x113   : > { %v541_v17 = vld [vmem:[#allocation2 + $0x28] sm:$0xff]  ;;  %v566_v37 = vadd.f32 %v1129_v62, %v543_v24  ;;  %v613_v43 = vadd.f32 %v889_v32, %v565_v28  ;;  %707 = vst.msk [vmem:[%s1248_s4 + $0xc] sm:$0xf] %vm703_vm2, %v862_v46  ;;  %v571_v6 = vadd.f32 %v1129_v62, %v548_v55  ;;  %v634_v19 = vmax.f32 %v618_v9, 0.0 }
 0x114   : > { %v564_v22 = vadd.f32 %v1129_v62, %v541_v17  ;;  %v611_v27 = vadd.f32 %v885_v16, %v563_v15  ;;  %705 = vst.msk [vmem:[%s1248_s4 + $0x4] sm:$0xf] %vm703_vm2, %v860_v40  ;;  %v549_v61 = vld [vmem:[#allocation2 + $0x68] sm:$0xff]  ;;  %v633_v15 = vmax.f32 %v617_v5, 0.0  ;;  %v902_v16 = vunpack.c.h.bf16 %v912_v60  ;;  %v551_v17 = vld [vmem:[#allocation2 + $0x78] sm:$0xff] }
 0x115   : > { %v629_v52 = vmax.f32 %v613_v43, 0.0  ;;  %v614_v56 = vadd.f32 %v890_v48, %v566_v37  ;;  %v572_v11 = vadd.f32 %v1129_v62, %v549_v61  ;;  %v619_v20 = vadd.f32 %v901_v10, %v571_v6  ;;  %712 = vst.msk [vmem:[%s1248_s4 + $0x20] sm:$0xf] %vm703_vm2, %v867_v18 }
 0x116   : > { %v612_v31 = vadd.f32 %v886_v23, %v564_v22  ;;  %v627_v36 = vmax.f32 %v611_v27, 0.0  ;;  %v573_v21 = vadd.f32 %v1129_v62, %v550_v7  ;;  %v868_v22 = vpack.c.bf16 %v632_v14, %v632_v14 }
 0x117   : > { %v865_v63 = vpack.c.bf16 %v629_v52, %v629_v52  ;;  %v630_v3 = vmax.f32 %v614_v56, 0.0  ;;  %v869_v23 = vpack.c.bf16 %v633_v15, %v633_v15  ;;  %v620_v24 = vadd.f32 %v902_v16, %v572_v11 }
 0x118   : > { %v628_v42 = vmax.f32 %v612_v31, 0.0  ;;  %v863_v47 = vpack.c.bf16 %v627_v36, %v627_v36  ;;  %v905_v25 = vunpack.c.l.bf16 %v913_v12  ;;  %v870_v26 = vpack.c.bf16 %v634_v19, %v634_v19  ;;  %713 = vst.msk [vmem:[%s1248_s4 + $0x24] sm:$0xf] %vm703_vm2, %v868_v22 }
 0x119   : > { %710 = vst.msk [vmem:[%s1248_s4 + $0x18] sm:$0xf] %vm703_vm2, %v865_v63  ;;  %v866_v13 = vpack.c.bf16 %v630_v3, %v630_v3  ;;  %v635_v27 = vmax.f32 %v619_v20, 0.0  ;;  %v574_v28 = vadd.f32 %v1129_v62, %v551_v17  ;;  %v906_v29 = vunpack.c.h.bf16 %v913_v12  ;;  %714 = vst.msk [vmem:[%s1248_s4 + $0x28] sm:$0xf] %vm703_vm2, %v869_v23 }
 0x11a   : > { %v864_v51 = vpack.c.bf16 %v628_v42, %v628_v42  ;;  %708 = vst.msk [vmem:[%s1248_s4 + $0x10] sm:$0xf] %vm703_vm2, %v863_v47  ;;  %v636_v30 = vmax.f32 %v620_v24, 0.0  ;;  %v621_v31 = vadd.f32 %v905_v25, %v573_v21  ;;  %715 = vst.msk [vmem:[%s1248_s4 + $0x2c] sm:$0xf] %vm703_vm2, %v870_v26 }
 0x11b   : > { %711 = vst.msk [vmem:[%s1248_s4 + $0x1c] sm:$0xf] %vm703_vm2, %v866_v13  ;;  %v871_v32 = vpack.c.bf16 %v635_v27, %v635_v27  ;;  %v622_v62 = vadd.f32 %v906_v29, %v574_v28 }
 0x11c   : > { %709 = vst.msk [vmem:[%s1248_s4 + $0x14] sm:$0xf] %vm703_vm2, %v864_v51  ;;  %v872_v33 = vpack.c.bf16 %v636_v30, %v636_v30  ;;  %v637_v34 = vmax.f32 %v621_v31, 0.0 }
 0x11d   : > { %716 = vst.msk [vmem:[%s1248_s4 + $0x30] sm:$0xf] %vm703_vm2, %v871_v32  ;;  %v638_v35 = vmax.f32 %v622_v62, 0.0 }
 0x11e   : > { %717 = vst.msk [vmem:[%s1248_s4 + $0x34] sm:$0xf] %vm703_vm2, %v872_v33  ;;  %v873_v36 = vpack.c.bf16 %v637_v34, %v637_v34 }
 0x11f   : > { %v874_v37 = vpack.c.bf16 %v638_v35, %v638_v35 }
 0x120   : > { %718 = vst.msk [vmem:[%s1248_s4 + $0x38] sm:$0xf] %vm703_vm2, %v873_v36 }
 0x121   : > { %719 = vst.msk [vmem:[%s1248_s4 + $0x3c] sm:$0xf] %vm703_vm2, %v874_v37 }
 0x122 PF: > { %s14_s17 = sadd.s32 1, %s1017_s17   ;;  %s1249_s15 = smov %s1013_s16 }
 0x123   : > { %p11_p7 = scmp.ge.s32.totalorder %s14_s17, 11   ;;  %s1250_s16 = smov %s1252_s18 }
 0x125   :  { %13 = sbr.rel (!%p11_p7) target bundleno = 2 (0x2), region = 78 }

// kernel: resnet18_forward.29
= control target key start
LH: loop header
LB: loop body
LE: loop exit
PB: predicated region body
PF: predicated region fallthrough
CT: control target
= control target key end

     0   :  { %s577_s12 = smov 0   ;;  %s579_s13 = smov 0   ;;  %s626_s0 = inlined_call_operand.vmem [shape: bf16[9,32,64], index: 0, kind: input, shape index: {}]   ;;  %s627_s1 = inlined_call_operand.vmem [shape: bf16[9,64,128], index: 1, kind: input, shape index: {}]   ;;  %s628_s2 = inlined_call_operand.vmem [shape: f32[1,128], index: 2, kind: input, shape index: {}]   ;;  %s629_s3 = inlined_call_operand.vmem [shape: bf16[32,128], index: 3, kind: output, shape index: {}]  }
   0x1   :  { %s581_s14 = smov 0  }
   0x2 LB: > { %s22_s15 = sadd.s32 1, %s550_s13  ;;  %p442_p0 = scmp.ge.s32.totalorder %s554_s14, 1  ;;  %s554_s14 = sphi %s581_s14, %s13_s14   ;;  %s550_s13 = sphi %s579_s13, %s631_s13   ;;  %s546_s12 = sphi %s577_s12, %s630_s12  }
   0x3   : > { %p23_p1 = scmp.ge.s32.totalorder %s22_s15, 9  ;;  %p156_p2 = scmp.lt.s32.totalorder %s554_s14, 10 }
   0x5   : > { %s633_s15 = smov (%p23_p1, %s22_s15), 0  ;;  %p157_p3 = pnand %p442_p0, %p156_p2 }
   0x6   : > { %p185_p4 = scmp.lt.s32.totalorder (!%p157_p3), %s546_s12, 8  ;;  %p445_p5 = scmp.ne.s32.totalorder (!%p157_p3), %s546_s12, 0 }
   0x7   : > { %160 = sbr.rel (%p157_p3) target bundleno = 273 (0x111), region = 32 }
   0xe   : > { %s186_s16 = scalar_select %p185_p4, %s546_s12, 8 }
   0xf   : > { %204 = sbr.rel (%p445_p5) target bundleno = 22 (0x16), region = 36  ;;  %v556_v0 = vmov (!%p445_p5), 0.0  }
  0x10   : > { %s466_s17 = sshll.u32 %s186_s16, 4  ;;  %205 = vst [vmem:[#allocation2] sm:$0xff] (!%p445_p5), %v556_v0  ;;  %206 = vst [vmem:[#allocation2 + $0x8] sm:$0xff] (!%p445_p5), %v556_v0 }
  0x11   : > { %s192_s20 = scalar_lea.vmem %s626_s0, %s466_s17  ;;  %207 = vst [vmem:[#allocation2 + $0x10] sm:$0xff] (!%p445_p5), %v556_v0  ;;  %208 = vst [vmem:[#allocation2 + $0x18] sm:$0xff] (!%p445_p5), %v556_v0 }
  0x16 PF: > { %s467_s21 = sshll.u32 %s546_s12, 5  ;;  %v530_v1 = vld [vmem:[%s192_s20] sm:$0xff]   ;;  %vm262_vm0 = vcmask 523264   ;;  %v531_v6 = vld [vmem:[%s192_s20 + $0x8] sm:$0xff]   ;;  %p456_p6 = scmp.ne.s32.totalorder %s546_s12, 8 }
  0x17   : > { %s219_s24 = scalar_lea.vmem %s627_s1, %s467_s21  ;;  %497 = vmatprep.mubr.msk.bf16.mxu0 %vm262_vm0, %v530_v1  ;;  %v209_v8 = vld [vmem:[#allocation2] sm:$0xff]  ;;  %v210_v13 = vld [vmem:[#allocation2 + $0x8] sm:$0xff] }
  0x18   : > { %v526_v2 = vld [vmem:[%s219_s24] sm:$0xff]   ;;  %v527_v3 = vld [vmem:[%s219_s24 + $0x8] sm:$0xff]   ;;  %v528_v4 = vld [vmem:[%s219_s24 + $0x10] sm:$0xff]  }
  0x19   : > { %489 = vmatprep.subr.bf16.mxu0 %v526_v2  ;;  %v529_v5 = vld [vmem:[%s219_s24 + $0x18] sm:$0xff]   ;;  %v211_v7 = vld [vmem:[#allocation2 + $0x10] sm:$0xff]  ;;  %v457_v21 = vld [vmem:[%s628_s2] ss:$0 sm:$0xff] (!%p456_p6) }
  0x1a   : > { %490 = vmatpush3.bf16.msra.mxu0 %v526_v2  ;;  %v212_v10 = vld [vmem:[#allocation2 + $0x18] sm:$0xff] }
  0x1b   : > { %491 = vmatprep.subr.bf16.mxu0 %v527_v3 }
  0x1e   : > { %492 = vmatpush3.bf16.msra.mxu0 %v527_v3 }
  0x1f   : > { %493 = vmatprep.subr.bf16.mxu0 %v528_v4 }
  0x22   : > { %494 = vmatpush3.bf16.msra.mxu0 %v528_v4 }
  0x23   : > { %495 = vmatprep.subr.bf16.mxu0 %v529_v5 }
  0x26   : > { %496 = vmatpush3.bf16.msra.mxu0 %v529_v5 }
  0x29   : > { %498 = vmatmul.mubr.msk.bf16.vlgmr.msra.gmra.mrb[0].mxu0 %vm262_vm0, %v531_v6 }
  0xfc   : > { %v499_v9 = vpop.f32.mrb[0].mxu0  ;;  %329 = sbr.rel (%p456_p6) target bundleno = 273 (0x111), region = 40 }
  0xfd   : > { %v320_v11 = vadd.f32 %v499_v9, %v211_v7  ;;  %v303_v12 = vpop.f32.mrb[1].mxu0 }
  0xfe   : > { %v318_v14 = vadd.f32 %v303_v12, %v209_v8  ;;  %v500_v15 = vpop.f32.mrb[2].mxu0 }
  0xff   : > { %324 = vst [vmem:[#allocation2 + $0x10] sm:$0xff] %v320_v11  ;;  %v321_v16 = vadd.f32 %v500_v15, %v212_v10  ;;  %v306_v17 = vpop.f32.mrb[3].mxu0 }
 0x100   : > { %322 = vst [vmem:[#allocation2] sm:$0xff] %v318_v14  ;;  %v319_v18 = vadd.f32 %v306_v17, %v210_v13 }
 0x101   : > { %325 = vst [vmem:[#allocation2 + $0x18] sm:$0xff] %v321_v16 }
 0x102   : > { %323 = vst [vmem:[#allocation2 + $0x8] sm:$0xff] %v319_v18 }
 0x106   : > { %v332_v24 = vld [vmem:[#allocation2 + $0x10] sm:$0xff] }
 0x107   : > { %v330_v19 = vld [vmem:[#allocation2] sm:$0xff]  ;;  %v343_v26 = vadd.f32 %v457_v21, %v332_v24 }
 0x108   : > { %v341_v22 = vadd.f32 %v457_v21, %v330_v19  ;;  %v333_v25 = vld [vmem:[#allocation2 + $0x18] sm:$0xff] }
 0x109   : > { %v331_v20 = vld [vmem:[#allocation2 + $0x8] sm:$0xff]  ;;  %v344_v27 = vadd.f32 %v457_v21, %v333_v25  ;;  %v347_v30 = vmax.f32 %v343_v26, 0.0 }
 0x10a   : > { %v342_v23 = vadd.f32 %v457_v21, %v331_v20  ;;  %v345_v28 = vmax.f32 %v341_v22, 0.0 }
 0x10b   : > { %v348_v31 = vmax.f32 %v344_v27, 0.0 }
 0x10c   : > { %v346_v29 = vmax.f32 %v342_v23, 0.0 }
 0x10d   : > { %v480_v33 = vpack.c.bf16 %v348_v31, %v347_v30 }
 0x10e   : > { %v475_v32 = vpack.c.bf16 %v346_v29, %v345_v28 }
 0x10f   : > { %482 = vst [vmem:[%s629_s3 + $0x8] sm:$0xff] %v480_v33  }
 0x110   : > { %476 = vst [vmem:[%s629_s3] sm:$0xff] %v475_v32  }
 0x111 PF: > { %s13_s14 = sadd.s32 1, %s554_s14   ;;  %s630_s12 = smov %s550_s13 }
 0x112   : > { %p10_p7 = scmp.ge.s32.totalorder %s13_s14, 11   ;;  %s631_s13 = smov %s633_s15 }
 0x114   :  { %12 = sbr.rel (!%p10_p7) target bundleno = 2 (0x2), region = 71 }

// kernel: resnet18_forward.30
= control target key start
LH: loop header
LB: loop body
LE: loop exit
PB: predicated region body
PF: predicated region fallthrough
CT: control target
= control target key end

     0   :  { %vm76_vm0 = vcmask 523264   ;;  %s281_s1 = inlined_call_operand.vmem [shape: bf16[1,64,128], index: 1, kind: input, shape index: {}]   ;;  %s282_s0 = inlined_call_operand.vmem [shape: bf16[1,32,64], index: 0, kind: input, shape index: {}]   ;;  %s283_s2 = inlined_call_operand.vmem [shape: f32[1,128], index: 2, kind: input, shape index: {}]   ;;  %s284_s3 = inlined_call_operand.vmem [shape: bf16[32,128], index: 3, kind: output, shape index: {}]  }
   0x1   :  { %v228_v0 = vld [vmem:[%s281_s1] sm:$0xff]   ;;  %v229_v1 = vld [vmem:[%s281_s1 + $0x8] sm:$0xff]   ;;  %v230_v2 = vld [vmem:[%s281_s1 + $0x10] sm:$0xff]  }
   0x2   :  { %216 = vmatprep.subr.bf16.mxu0 %v228_v0  ;;  %v232_v3 = vld [vmem:[%s282_s0] sm:$0xff]   ;;  %v231_v4 = vld [vmem:[%s281_s1 + $0x18] sm:$0xff]   ;;  %v233_v5 = vld [vmem:[%s282_s0 + $0x8] sm:$0xff]  }
   0x3   :  { %217 = vmatpush3.bf16.msra.mxu0 %v228_v0  ;;  %224 = vmatprep.mubr.msk.bf16.mxu0 %vm76_vm0, %v232_v3  ;;  %v190_v7 = vld [vmem:[%s283_s2] ss:$0 sm:$0xff] }
   0x4   :  { %218 = vmatprep.subr.bf16.mxu0 %v229_v1 }
   0x7   :  { %219 = vmatpush3.bf16.msra.mxu0 %v229_v1 }
   0x8   :  { %220 = vmatprep.subr.bf16.mxu0 %v230_v2 }
   0xb   :  { %221 = vmatpush3.bf16.msra.mxu0 %v230_v2 }
   0xc   :  { %222 = vmatprep.subr.bf16.mxu0 %v231_v4 }
   0xf   :  { %223 = vmatpush3.bf16.msra.mxu0 %v231_v4 }
  0x12   :  { %225 = vmatmul.mubr.msk.bf16.vlgmr.msra.gmra.mrb[0].mxu0 %vm76_vm0, %v233_v5 }
  0xe5   :  { %v226_v6 = vpop.f32.mrb[0].mxu0 }
  0xe6   :  { %v117_v8 = vpop.f32.mrb[1].mxu0  ;;  %v156_v10 = vadd.f32 %v226_v6, %v190_v7 }
  0xe7   :  { %v227_v9 = vpop.f32.mrb[2].mxu0  ;;  %v154_v13 = vadd.f32 %v190_v7, %v117_v8 }
  0xe8   :  { %v157_v11 = vadd.f32 %v227_v9, %v190_v7  ;;  %v120_v12 = vpop.f32.mrb[3].mxu0 }
  0xe9   :  { %v155_v14 = vadd.f32 %v190_v7, %v120_v12 }
  0xea   :  { %v207_v15 = vpack.c.bf16 %v157_v11, %v156_v10 }
  0xeb   :  { %v202_v16 = vpack.c.bf16 %v155_v14, %v154_v13 }
  0xec   :  { %209 = vst [vmem:[%s284_s3 + $0x8] sm:$0xff] %v207_v15  }
  0xed   :  { %203 = vst [vmem:[%s284_s3] sm:$0xff] %v202_v16  }

// kernel: resnet18_forward.32
= control target key start
LH: loop header
LB: loop body
LE: loop exit
PB: predicated region body
PF: predicated region fallthrough
CT: control target
= control target key end

     0   :  { %s622_s12 = smov 0   ;;  %s624_s13 = smov 0   ;;  %s675_s0 = inlined_call_operand.vmem [shape: bf16[9,32,128], index: 0, kind: input, shape index: {}]   ;;  %s676_s1 = inlined_call_operand.vmem [shape: bf16[9,128,128], index: 1, kind: input, shape index: {}]   ;;  %s677_s2 = inlined_call_operand.vmem [shape: f32[1,128], index: 2, kind: input, shape index: {}]   ;;  %s678_s3 = inlined_call_operand.vmem [shape: bf16[32,128], index: 3, kind: output, shape index: {}]  }
   0x1   :  { %s626_s14 = smov 0  }
   0x2 LB: > { %s22_s15 = sadd.s32 1, %s595_s13  ;;  %p469_p0 = scmp.ge.s32.totalorder %s599_s14, 1  ;;  %s599_s14 = sphi %s626_s14, %s13_s14   ;;  %s595_s13 = sphi %s624_s13, %s680_s13   ;;  %s591_s12 = sphi %s622_s12, %s679_s12  }
   0x3   : > { %p23_p1 = scmp.ge.s32.totalorder %s22_s15, 9  ;;  %p156_p2 = scmp.lt.s32.totalorder %s599_s14, 10 }
   0x5   : > { %s682_s15 = smov (%p23_p1, %s22_s15), 0  ;;  %p157_p3 = pnand %p469_p0, %p156_p2 }
   0x6   : > { %p185_p4 = scmp.lt.s32.totalorder (!%p157_p3), %s591_s12, 8  ;;  %p472_p5 = scmp.ne.s32.totalorder (!%p157_p3), %s591_s12, 0 }
   0x7   : > { %160 = sbr.rel (%p157_p3) target bundleno = 289 (0x121), region = 32 }
   0xe   : > { %s186_s16 = scalar_select %p185_p4, %s591_s12, 8 }
   0xf   : > { %204 = sbr.rel (%p472_p5) target bundleno = 22 (0x16), region = 36  ;;  %v601_v0 = vmov (!%p472_p5), 0.0  }
  0x10   : > { %s495_s17 = sshll.u32 %s186_s16, 4  ;;  %205 = vst [vmem:[#allocation2] sm:$0xff] (!%p472_p5), %v601_v0  ;;  %206 = vst [vmem:[#allocation2 + $0x8] sm:$0xff] (!%p472_p5), %v601_v0 }
  0x11   : > { %s647_s20 = scalar_lea.vmem %s675_s0, %s495_s17  ;;  %207 = vst [vmem:[#allocation2 + $0x10] sm:$0xff] (!%p472_p5), %v601_v0  ;;  %208 = vst [vmem:[#allocation2 + $0x18] sm:$0xff] (!%p472_p5), %v601_v0 }
  0x16 PF: > { %s496_s21 = sshll.u32 %s591_s12, 6  ;;  %v575_v1 = vld [vmem:[%s647_s20] sm:$0xff]   ;;  %v576_v10 = vld [vmem:[%s647_s20 + $0x8] sm:$0xff]   ;;  %p485_p6 = scmp.ne.s32.totalorder %s591_s12, 8 }
  0x17   : > { %s219_s24 = scalar_lea.vmem %s676_s1, %s496_s21  ;;  %538 = vmatprep.mubr.bf16.mxu0 %v575_v1  ;;  %v209_v12 = vld [vmem:[#allocation2] sm:$0xff]  ;;  %v210_v17 = vld [vmem:[#allocation2 + $0x8] sm:$0xff] }
  0x18   : > { %v567_v2 = vld [vmem:[%s219_s24] sm:$0xff]   ;;  %v568_v3 = vld [vmem:[%s219_s24 + $0x8] sm:$0xff]   ;;  %v569_v4 = vld [vmem:[%s219_s24 + $0x10] sm:$0xff]  }
  0x19   : > { %522 = vmatprep.subr.bf16.mxu0 %v567_v2  ;;  %v570_v5 = vld [vmem:[%s219_s24 + $0x18] sm:$0xff]   ;;  %v571_v6 = vld [vmem:[%s219_s24 + $0x20] sm:$0xff]   ;;  %v572_v7 = vld [vmem:[%s219_s24 + $0x28] sm:$0xff]  }
  0x1a   : > { %523 = vmatpush3.bf16.msra.mxu0 %v567_v2  ;;  %v573_v8 = vld [vmem:[%s219_s24 + $0x30] sm:$0xff]   ;;  %v574_v9 = vld [vmem:[%s219_s24 + $0x38] sm:$0xff]   ;;  %v486_v25 = vld [vmem:[%s677_s2] ss:$0 sm:$0xff] (!%p485_p6) }
  0x1b   : > { %524 = vmatprep.subr.bf16.mxu0 %v568_v3  ;;  %v211_v11 = vld [vmem:[#allocation2 + $0x10] sm:$0xff]  ;;  %v212_v14 = vld [vmem:[#allocation2 + $0x18] sm:$0xff] }
  0x1e   : > { %525 = vmatpush3.bf16.msra.mxu0 %v568_v3 }
  0x1f   : > { %526 = vmatprep.subr.bf16.mxu0 %v569_v4 }
  0x22   : > { %527 = vmatpush3.bf16.msra.mxu0 %v569_v4 }
  0x23   : > { %528 = vmatprep.subr.bf16.mxu0 %v570_v5 }
  0x26   : > { %529 = vmatpush3.bf16.msra.mxu0 %v570_v5 }
  0x27   : > { %530 = vmatprep.subr.bf16.mxu0 %v571_v6 }
  0x2a   : > { %531 = vmatpush3.bf16.msra.mxu0 %v571_v6 }
  0x2b   : > { %532 = vmatprep.subr.bf16.mxu0 %v572_v7 }
  0x2e   : > { %533 = vmatpush3.bf16.msra.mxu0 %v572_v7 }
  0x2f   : > { %534 = vmatprep.subr.bf16.mxu0 %v573_v8 }
  0x32   : > { %535 = vmatpush3.bf16.msra.mxu0 %v573_v8 }
  0x33   : > { %536 = vmatprep.subr.bf16.mxu0 %v574_v9 }
  0x36   : > { %537 = vmatpush3.bf16.msra.mxu0 %v574_v9 }
  0x39   : > { %539 = vmatmul.mubr.bf16.vlgmr.msra.gmra.mrb[0].mxu0 %v576_v10 }
 0x10c   : > { %v540_v13 = vpop.f32.mrb[0].mxu0  ;;  %356 = sbr.rel (%p485_p6) target bundleno = 289 (0x121), region = 40 }
 0x10d   : > { %v347_v15 = vadd.f32 %v540_v13, %v211_v11  ;;  %v330_v16 = vpop.f32.mrb[1].mxu0 }
 0x10e   : > { %v345_v18 = vadd.f32 %v330_v16, %v209_v12  ;;  %v541_v19 = vpop.f32.mrb[2].mxu0 }
 0x10f   : > { %351 = vst [vmem:[#allocation2 + $0x10] sm:$0xff] %v347_v15  ;;  %v348_v20 = vadd.f32 %v541_v19, %v212_v14  ;;  %v333_v21 = vpop.f32.mrb[3].mxu0 }
 0x110   : > { %349 = vst [vmem:[#allocation2] sm:$0xff] %v345_v18  ;;  %v346_v22 = vadd.f32 %v333_v21, %v210_v17 }
 0x111   : > { %352 = vst [vmem:[#allocation2 + $0x18] sm:$0xff] %v348_v20 }
 0x112   : > { %350 = vst [vmem:[#allocation2 + $0x8] sm:$0xff] %v346_v22 }
 0x116   : > { %v359_v28 = vld [vmem:[#allocation2 + $0x10] sm:$0xff] }
 0x117   : > { %v357_v23 = vld [vmem:[#allocation2] sm:$0xff]  ;;  %v370_v30 = vadd.f32 %v486_v25, %v359_v28 }
 0x118   : > { %v368_v26 = vadd.f32 %v486_v25, %v357_v23  ;;  %v360_v29 = vld [vmem:[#allocation2 + $0x18] sm:$0xff] }
 0x119   : > { %v358_v24 = vld [vmem:[#allocation2 + $0x8] sm:$0xff]  ;;  %v371_v31 = vadd.f32 %v486_v25, %v360_v29  ;;  %v374_v34 = vmax.f32 %v370_v30, 0.0 }
 0x11a   : > { %v369_v27 = vadd.f32 %v486_v25, %v358_v24  ;;  %v372_v32 = vmax.f32 %v368_v26, 0.0 }
 0x11b   : > { %v375_v35 = vmax.f32 %v371_v31, 0.0 }
 0x11c   : > { %v373_v33 = vmax.f32 %v369_v27, 0.0 }
 0x11d   : > { %v509_v37 = vpack.c.bf16 %v375_v35, %v374_v34 }
 0x11e   : > { %v504_v36 = vpack.c.bf16 %v373_v33, %v372_v32 }
 0x11f   : > { %511 = vst [vmem:[%s678_s3 + $0x8] sm:$0xff] %v509_v37  }
 0x120   : > { %505 = vst [vmem:[%s678_s3] sm:$0xff] %v504_v36  }
 0x121 PF: > { %s13_s14 = sadd.s32 1, %s599_s14   ;;  %s679_s12 = smov %s595_s13 }
 0x122   : > { %p10_p7 = scmp.ge.s32.totalorder %s13_s14, 11   ;;  %s680_s13 = smov %s682_s15 }
 0x124   :  { %12 = sbr.rel (!%p10_p7) target bundleno = 2 (0x2), region = 71 }

// kernel: resnet18_forward.31
= control target key start
LH: loop header
LB: loop body
LE: loop exit
PB: predicated region body
PF: predicated region fallthrough
CT: control target
= control target key end

     0   :  { %s713_s15 = smov 0   ;;  %s715_s16 = smov 0   ;;  %s772_s0 = inlined_call_operand.vmem [shape: bf16[9,32,128], index: 0, kind: input, shape index: {}]   ;;  %s773_s1 = inlined_call_operand.vmem [shape: bf16[9,128,128], index: 1, kind: input, shape index: {}]   ;;  %s774_s2 = inlined_call_operand.vmem [shape: f32[1,128], index: 2, kind: input, shape index: {}]   ;;  %s775_s3 = inlined_call_operand.vmem [shape: bf16[32,128], index: 3, kind: input, shape index: {}]   ;;  %s776_s4 = inlined_call_operand.vmem [shape: bf16[32,128], index: 4, kind: output, shape index: {}]  }
   0x1   :  { %s717_s17 = smov 0  }
   0x2 LB: > { %s23_s18 = sadd.s32 1, %s681_s16  ;;  %p546_p0 = scmp.ge.s32.totalorder %s685_s17, 1  ;;  %s685_s17 = sphi %s717_s17, %s14_s17   ;;  %s681_s16 = sphi %s715_s16, %s778_s16   ;;  %s677_s15 = sphi %s713_s15, %s777_s15  }
   0x3   : > { %p24_p1 = scmp.ge.s32.totalorder %s23_s18, 9  ;;  %p192_p2 = scmp.lt.s32.totalorder %s685_s17, 10 }
   0x5   : > { %s780_s18 = smov (%p24_p1, %s23_s18), 0  ;;  %p193_p3 = pnand %p546_p0, %p192_p2 }
   0x6   : > { %p228_p4 = scmp.lt.s32.totalorder (!%p193_p3), %s677_s15, 8  ;;  %p549_p5 = scmp.ne.s32.totalorder (!%p193_p3), %s677_s15, 0 }
   0x7   : > { %196 = sbr.rel (%p193_p3) target bundleno = 291 (0x123), region = 36 }
   0xe   : > { %s229_s19 = scalar_select %p228_p4, %s677_s15, 8 }
   0xf   : > { %253 = sbr.rel (%p549_p5) target bundleno = 22 (0x16), region = 40  ;;  %v687_v0 = vmov (!%p549_p5), 0.0  }
  0x10   : > { %s572_s20 = sshll.u32 %s229_s19, 4  ;;  %254 = vst [vmem:[#allocation2] sm:$0xff] (!%p549_p5), %v687_v0  ;;  %255 = vst [vmem:[#allocation2 + $0x8] sm:$0xff] (!%p549_p5), %v687_v0 }
  0x11   : > { %s738_s23 = scalar_lea.vmem %s772_s0, %s572_s20  ;;  %256 = vst [vmem:[#allocation2 + $0x10] sm:$0xff] (!%p549_p5), %v687_v0  ;;  %257 = vst [vmem:[#allocation2 + $0x18] sm:$0xff] (!%p549_p5), %v687_v0 }
  0x16 PF: > { %s573_s24 = sshll.u32 %s677_s15, 6  ;;  %v661_v1 = vld [vmem:[%s738_s23] sm:$0xff]   ;;  %v662_v10 = vld [vmem:[%s738_s23 + $0x8] sm:$0xff]   ;;  %p562_p6 = scmp.ne.s32.totalorder %s677_s15, 8 }
  0x17   : > { %s268_s27 = scalar_lea.vmem %s773_s1, %s573_s24  ;;  %624 = vmatprep.mubr.bf16.mxu0 %v661_v1  ;;  %v258_v12 = vld [vmem:[#allocation2] sm:$0xff]  ;;  %v259_v17 = vld [vmem:[#allocation2 + $0x8] sm:$0xff] }
  0x18   : > { %v653_v2 = vld [vmem:[%s268_s27] sm:$0xff]   ;;  %v654_v3 = vld [vmem:[%s268_s27 + $0x8] sm:$0xff]   ;;  %v655_v4 = vld [vmem:[%s268_s27 + $0x10] sm:$0xff]  }
  0x19   : > { %608 = vmatprep.subr.bf16.mxu0 %v653_v2  ;;  %v656_v5 = vld [vmem:[%s268_s27 + $0x18] sm:$0xff]   ;;  %v657_v6 = vld [vmem:[%s268_s27 + $0x20] sm:$0xff]   ;;  %v658_v7 = vld [vmem:[%s268_s27 + $0x28] sm:$0xff]  }
  0x1a   : > { %609 = vmatpush3.bf16.msra.mxu0 %v653_v2  ;;  %v659_v8 = vld [vmem:[%s268_s27 + $0x30] sm:$0xff]   ;;  %v660_v9 = vld [vmem:[%s268_s27 + $0x38] sm:$0xff]   ;;  %v563_v25 = vld [vmem:[%s774_s2] ss:$0 sm:$0xff] (!%p562_p6) }
  0x1b   : > { %610 = vmatprep.subr.bf16.mxu0 %v654_v3  ;;  %v260_v11 = vld [vmem:[#allocation2 + $0x10] sm:$0xff]  ;;  %v261_v14 = vld [vmem:[#allocation2 + $0x18] sm:$0xff]  ;;  %v579_v28 = vld [vmem:[%s775_s3] sm:$0xff] (!%p562_p6)  }
  0x1c   : > { %v580_v31 = vunpack.c.l.bf16 (!%p562_p6), %v579_v28  ;;  %v581_v32 = vunpack.c.h.bf16 (!%p562_p6), %v579_v28  ;;  %v596_v35 = vld [vmem:[%s775_s3 + $0x8] sm:$0xff] (!%p562_p6)  }
  0x1d   : > { %v584_v36 = vunpack.c.l.bf16 (!%p562_p6), %v596_v35  ;;  %v585_v37 = vunpack.c.h.bf16 (!%p562_p6), %v596_v35 }
  0x1e   : > { %611 = vmatpush3.bf16.msra.mxu0 %v654_v3 }
  0x1f   : > { %612 = vmatprep.subr.bf16.mxu0 %v655_v4 }
  0x22   : > { %613 = vmatpush3.bf16.msra.mxu0 %v655_v4 }
  0x23   : > { %614 = vmatprep.subr.bf16.mxu0 %v656_v5 }
  0x26   : > { %615 = vmatpush3.bf16.msra.mxu0 %v656_v5 }
  0x27   : > { %616 = vmatprep.subr.bf16.mxu0 %v657_v6 }
  0x2a   : > { %617 = vmatpush3.bf16.msra.mxu0 %v657_v6 }
  0x2b   : > { %618 = vmatprep.subr.bf16.mxu0 %v658_v7 }
  0x2e   : > { %619 = vmatpush3.bf16.msra.mxu0 %v658_v7 }
  0x2f   : > { %620 = vmatprep.subr.bf16.mxu0 %v659_v8 }
  0x32   : > { %621 = vmatpush3.bf16.msra.mxu0 %v659_v8 }
  0x33   : > { %622 = vmatprep.subr.bf16.mxu0 %v660_v9 }
  0x36   : > { %623 = vmatpush3.bf16.msra.mxu0 %v660_v9 }
  0x39   : > { %625 = vmatmul.mubr.bf16.vlgmr.msra.gmra.mrb[0].mxu0 %v662_v10 }
 0x10c   : > { %v626_v13 = vpop.f32.mrb[0].mxu0  ;;  %405 = sbr.rel (%p562_p6) target bundleno = 291 (0x123), region = 44 }
 0x10d   : > { %v396_v15 = vadd.f32 %v626_v13, %v260_v11  ;;  %v379_v16 = vpop.f32.mrb[1].mxu0 }
 0x10e   : > { %v394_v18 = vadd.f32 %v379_v16, %v258_v12  ;;  %v627_v19 = vpop.f32.mrb[2].mxu0 }
 0x10f   : > { %400 = vst [vmem:[#allocation2 + $0x10] sm:$0xff] %v396_v15  ;;  %v397_v20 = vadd.f32 %v627_v19, %v261_v14  ;;  %v382_v21 = vpop.f32.mrb[3].mxu0 }
 0x110   : > { %398 = vst [vmem:[#allocation2] sm:$0xff] %v394_v18  ;;  %v395_v22 = vadd.f32 %v382_v21, %v259_v17 }
 0x111   : > { %401 = vst [vmem:[#allocation2 + $0x18] sm:$0xff] %v397_v20 }
 0x112   : > { %399 = vst [vmem:[#allocation2 + $0x8] sm:$0xff] %v395_v22 }
 0x116   : > { %v408_v29 = vld [vmem:[#allocation2 + $0x10] sm:$0xff] }
 0x117   : > { %v406_v23 = vld [vmem:[#allocation2] sm:$0xff]  ;;  %v419_v33 = vadd.f32 %v563_v25, %v408_v29 }
 0x118   : > { %v417_v26 = vadd.f32 %v563_v25, %v406_v23  ;;  %v409_v30 = vld [vmem:[#allocation2 + $0x18] sm:$0xff] }
 0x119   : > { %v407_v24 = vld [vmem:[#allocation2 + $0x8] sm:$0xff]  ;;  %v420_v34 = vadd.f32 %v563_v25, %v409_v30  ;;  %v431_v40 = vadd.f32 %v584_v36, %v419_v33 }
 0x11a   : > { %v418_v27 = vadd.f32 %v563_v25, %v407_v24  ;;  %v429_v38 = vadd.f32 %v580_v31, %v417_v26 }
 0x11b   : > { %v432_v41 = vadd.f32 %v585_v37, %v420_v34  ;;  %v435_v44 = vmax.f32 %v431_v40, 0.0 }
 0x11c   : > { %v430_v39 = vadd.f32 %v581_v32, %v418_v27  ;;  %v433_v42 = vmax.f32 %v429_v38, 0.0 }
 0x11d   : > { %v436_v45 = vmax.f32 %v432_v41, 0.0 }
 0x11e   : > { %v434_v43 = vmax.f32 %v430_v39, 0.0 }
 0x11f   : > { %v594_v47 = vpack.c.bf16 %v436_v45, %v435_v44 }
 0x120   : > { %v589_v46 = vpack.c.bf16 %v434_v43, %v433_v42 }
 0x121   : > { %597 = vst [vmem:[%s776_s4 + $0x8] sm:$0xff] %v594_v47  }
 0x122   : > { %590 = vst [vmem:[%s776_s4] sm:$0xff] %v589_v46  }
 0x123 PF: > { %s14_s17 = sadd.s32 1, %s685_s17   ;;  %s777_s15 = smov %s681_s16 }
 0x124   : > { %p11_p7 = scmp.ge.s32.totalorder %s14_s17, 11   ;;  %s778_s16 = smov %s780_s18 }
 0x126   :  { %13 = sbr.rel (!%p11_p7) target bundleno = 2 (0x2), region = 78 }

// kernel: resnet18_forward.34
= control target key start
LH: loop header
LB: loop body
LE: loop exit
PB: predicated region body
PF: predicated region fallthrough
CT: control target
= control target key end

     0   :  { %s569_s12 = smov 0   ;;  %s571_s13 = smov 0   ;;  %s636_s0 = inlined_call_operand.vmem [shape: bf16[9,8,128], index: 0, kind: input, shape index: {}]   ;;  %s637_s1 = inlined_call_operand.vmem [shape: bf16[9,128,256], index: 1, kind: input, shape index: {}]   ;;  %s638_s2 = inlined_call_operand.vmem [shape: f32[1,256], index: 2, kind: input, shape index: {}]   ;;  %s639_s3 = inlined_call_operand.vmem [shape: bf16[8,256], index: 3, kind: output, shape index: {}]  }
   0x1   :  { %s573_s14 = smov 0  }
   0x2 LB: > { %s22_s15 = sadd.s32 1, %s541_s13  ;;  %p445_p0 = scmp.ge.s32.totalorder %s545_s14, 1  ;;  %s545_s14 = sphi %s573_s14, %s13_s14   ;;  %s541_s13 = sphi %s571_s13, %s641_s13   ;;  %s537_s12 = sphi %s569_s12, %s640_s12  }
   0x3   : > { %p23_p1 = scmp.ge.s32.totalorder %s22_s15, 9  ;;  %p153_p2 = scmp.lt.s32.totalorder %s545_s14, 10 }
   0x5   : > { %s643_s15 = smov (%p23_p1, %s22_s15), 0  ;;  %p154_p3 = pnand %p445_p0, %p153_p2 }
   0x6   : > { %p179_p4 = scmp.lt.s32.totalorder (!%p154_p3), %s537_s12, 8  ;;  %p447_p5 = scmp.ne.s32.totalorder (!%p154_p3), %s537_s12, 0 }
   0x7   : > { %157 = sbr.rel (%p154_p3) target bundleno = 287 (0x11f), region = 32 }
   0xe   : > { %s180_s16 = scalar_select %p179_p4, %s537_s12, 8 }
   0xf   : > { %195 = sbr.rel (%p447_p5) target bundleno = 22 (0x16), region = 36  ;;  %v547_v0 = vmov (!%p447_p5), 0.0  }
  0x10   : > { %s446_s17 = sshll.u32 %s180_s16, 2  ;;  %196 = vst [vmem:[#allocation2] sm:$0xff] (!%p447_p5), %v547_v0  ;;  %197 = vst [vmem:[#allocation2 + $0x8] sm:$0xff] (!%p447_p5), %v547_v0 }
  0x11   : > { %s594_s20 = scalar_lea.vmem %s636_s0, %s446_s17 }
  0x16 PF: > { %s471_s21 = sshll.u32 %s537_s12, 7  ;;  %v548_v1 = vmov 0   ;;  %v200_v18 = vld [vmem:[%s594_s20] sm:$0xf]  ;;  %p466_p6 = scmp.ne.s32.totalorder %s537_s12, 8 }
  0x17   : > { %s601_s24 = scalar_lea.vmem %s637_s1, %s471_s21  ;;  %332 = vmatprep.mubr.bf16.mxu0 %v548_v1  ;;  %v198_v19 = vld [vmem:[#allocation2] sm:$0xff]  ;;  %v199_v20 = vld [vmem:[#allocation2 + $0x8] sm:$0xff]  ;;  %v353_v27 = vlaneseq (!%p466_p6) }
  0x18   : > { %v499_v2 = vld [vmem:[%s601_s24 + $0x4] ss:$8 sps:$4 sm:$0xff]   ;;  %v501_v3 = vld [vmem:[%s601_s24] ss:$8 sps:$4 sm:$0xff]   ;;  %v502_v4 = vld [vmem:[%s601_s24 + $0x14] ss:$8 sps:$4 sm:$0xff]  }
  0x19   : > { %300 = vmatprep.subr.bf16.mxu0 %v499_v2  ;;  %v504_v5 = vld [vmem:[%s601_s24 + $0x10] ss:$8 sps:$4 sm:$0xff]   ;;  %v505_v6 = vld [vmem:[%s601_s24 + $0x24] ss:$8 sps:$4 sm:$0xff]   ;;  %v507_v7 = vld [vmem:[%s601_s24 + $0x20] ss:$8 sps:$4 sm:$0xff]  }
  0x1a   : > { %301 = vmatpush1.bf16.msra.mxu0 %v501_v3  ;;  %v508_v8 = vld [vmem:[%s601_s24 + $0x34] ss:$8 sps:$4 sm:$0xff]   ;;  %v510_v9 = vld [vmem:[%s601_s24 + $0x30] ss:$8 sps:$4 sm:$0xff]   ;;  %v511_v10 = vld [vmem:[%s601_s24 + $0x44] ss:$8 sps:$4 sm:$0xff]  }
  0x1b   : > { %302 = vmatprep.subr.bf16.mxu0 %v502_v4  ;;  %v513_v11 = vld [vmem:[%s601_s24 + $0x40] ss:$8 sps:$4 sm:$0xff]   ;;  %v514_v12 = vld [vmem:[%s601_s24 + $0x54] ss:$8 sps:$4 sm:$0xff]   ;;  %v516_v13 = vld [vmem:[%s601_s24 + $0x50] ss:$8 sps:$4 sm:$0xff]  }
  0x1c   : > { %v517_v14 = vld [vmem:[%s601_s24 + $0x64] ss:$8 sps:$4 sm:$0xff]   ;;  %v519_v15 = vld [vmem:[%s601_s24 + $0x60] ss:$8 sps:$4 sm:$0xff]   ;;  %v520_v16 = vld [vmem:[%s601_s24 + $0x74] ss:$8 sps:$4 sm:$0xff]  }
  0x1d   : > { %v522_v17 = vld [vmem:[%s601_s24 + $0x70] ss:$8 sps:$4 sm:$0xff]   ;;  %v354_v28 = vshrl.u32 (!%p466_p6), %v353_v27, 7  ;;  %v351_v29 = vld [vmem:[%s638_s2] sm:$0x3] (!%p466_p6) }
  0x1e   : > { %303 = vmatpush1.bf16.msra.mxu0 %v504_v5 }
  0x1f   : > { %304 = vmatprep.subr.bf16.mxu0 %v505_v6  ;;  %v355_v30 = vsub.s32 (!%p466_p6), 0, %v354_v28  ;;  %v359_v31 = vsub.s32 (!%p466_p6), 1, %v354_v28 }
  0x21   : > { %v356_v34 = vrot.slane (!%p466_p6), %v351_v29, %v355_v30  ;;  %v360_v35 = vrot.slane (!%p466_p6), %v351_v29, %v359_v31 }
  0x22   : > { %305 = vmatpush1.bf16.msra.mxu0 %v507_v7 }
  0x23   : > { %306 = vmatprep.subr.bf16.mxu0 %v508_v8 }
  0x26   : > { %307 = vmatpush1.bf16.msra.mxu0 %v510_v9 }
  0x27   : > { %308 = vmatprep.subr.bf16.mxu0 %v511_v10 }
  0x2a   : > { %309 = vmatpush1.bf16.msra.mxu0 %v513_v11 }
  0x2b   : > { %310 = vmatprep.subr.bf16.mxu0 %v514_v12 }
  0x2e   : > { %311 = vmatpush1.bf16.msra.mxu0 %v516_v13 }
  0x2f   : > { %312 = vmatprep.subr.bf16.mxu0 %v517_v14 }
  0x32   : > { %313 = vmatpush1.bf16.msra.mxu0 %v519_v15 }
  0x33   : > { %314 = vmatprep.subr.bf16.mxu0 %v520_v16 }
  0x36   : > { %315 = vmatpush1.bf16.msra.mxu0 %v522_v17 }
  0x39   : > { %333 = vmatmul.mubr.bf16.vlgmr.msra.gmra.mrb[0].mxu0 %v200_v18 }
 0x10a   : > { %348 = sbr.rel (%p466_p6) target bundleno = 287 (0x11f), region = 40 }
 0x10c   : > { %v334_v21 = vpop.f32.mrb[0].mxu0 }
 0x10d   : > { %v341_v22 = vadd.f32 %v334_v21, %v198_v19  ;;  %v336_v23 = vpop.f32.mrb[1].mxu0 }
 0x10e   : > { %v342_v24 = vadd.f32 %v336_v23, %v199_v20  ;;  %v338_v25 = vpop.f32.mrb[2].mxu0 }
 0x10f   : > { %343 = vst [vmem:[#allocation2] sm:$0xff] %v341_v22  ;;  %v339_v26 = vpop.f32.mrb[3].mxu0 }
 0x110   : > { %344 = vst [vmem:[#allocation2 + $0x8] sm:$0xff] %v342_v24 }
 0x116   : > { %v349_v32 = vld [vmem:[#allocation2] sm:$0xff] }
 0x117   : > { %v350_v33 = vld [vmem:[#allocation2 + $0x8] sm:$0xff]  ;;  %v363_v36 = vadd.f32 %v356_v34, %v349_v32 }
 0x118   : > { %v364_v37 = vadd.f32 %v360_v35, %v350_v33 }
 0x119   : > { %v365_v38 = vmax.f32 %v363_v36, 0.0 }
 0x11a   : > { %v366_v39 = vmax.f32 %v364_v37, 0.0 }
 0x11c   : > { %v472_v40 = vpack.c.bf16 %v366_v39, %v365_v38 }
 0x11e   : > { %375 = vst [vmem:[%s639_s3] sm:$0xff] %v472_v40 }
 0x11f PF: > { %s13_s14 = sadd.s32 1, %s545_s14   ;;  %s640_s12 = smov %s541_s13 }
 0x120   : > { %p10_p7 = scmp.ge.s32.totalorder %s13_s14, 11   ;;  %s641_s13 = smov %s643_s15 }
 0x122   :  { %12 = sbr.rel (!%p10_p7) target bundleno = 2 (0x2), region = 71 }

// kernel: resnet18_forward.35
= control target key start
LH: loop header
LB: loop body
LE: loop exit
PB: predicated region body
PF: predicated region fallthrough
CT: control target
= control target key end

     0   :  { %v243_v1 = vmov 0   ;;  %v175_v18 = vlaneseq  ;;  %s321_s1 = inlined_call_operand.vmem [shape: bf16[1,128,256], index: 1, kind: input, shape index: {}]   ;;  %s322_s0 = inlined_call_operand.vmem [shape: bf16[1,8,128], index: 0, kind: input, shape index: {}]   ;;  %s323_s2 = inlined_call_operand.vmem [shape: f32[1,256], index: 2, kind: input, shape index: {}]   ;;  %s324_s3 = inlined_call_operand.vmem [shape: bf16[8,256], index: 3, kind: output, shape index: {}]  }
   0x1   :  { %v219_v0 = vld [vmem:[%s321_s1 + $0x4] ss:$8 sps:$4 sm:$0xff]   ;;  %155 = vmatprep.mubr.bf16.mxu0 %v243_v1  ;;  %v221_v2 = vld [vmem:[%s321_s1] ss:$8 sps:$4 sm:$0xff]   ;;  %v222_v3 = vld [vmem:[%s321_s1 + $0x14] ss:$8 sps:$4 sm:$0xff]  }
   0x2   :  { %123 = vmatprep.subr.bf16.mxu0 %v219_v0  ;;  %v224_v4 = vld [vmem:[%s321_s1 + $0x10] ss:$8 sps:$4 sm:$0xff]   ;;  %v225_v5 = vld [vmem:[%s321_s1 + $0x24] ss:$8 sps:$4 sm:$0xff]   ;;  %v227_v6 = vld [vmem:[%s321_s1 + $0x20] ss:$8 sps:$4 sm:$0xff]  }
   0x3   :  { %124 = vmatpush1.bf16.msra.mxu0 %v221_v2  ;;  %v228_v7 = vld [vmem:[%s321_s1 + $0x34] ss:$8 sps:$4 sm:$0xff]   ;;  %v230_v8 = vld [vmem:[%s321_s1 + $0x30] ss:$8 sps:$4 sm:$0xff]   ;;  %v231_v9 = vld [vmem:[%s321_s1 + $0x44] ss:$8 sps:$4 sm:$0xff]  }
   0x4   :  { %125 = vmatprep.subr.bf16.mxu0 %v222_v3  ;;  %v233_v10 = vld [vmem:[%s321_s1 + $0x40] ss:$8 sps:$4 sm:$0xff]   ;;  %v234_v11 = vld [vmem:[%s321_s1 + $0x54] ss:$8 sps:$4 sm:$0xff]   ;;  %v236_v12 = vld [vmem:[%s321_s1 + $0x50] ss:$8 sps:$4 sm:$0xff]  }
   0x5   :  { %v237_v13 = vld [vmem:[%s321_s1 + $0x64] ss:$8 sps:$4 sm:$0xff]   ;;  %v239_v14 = vld [vmem:[%s321_s1 + $0x60] ss:$8 sps:$4 sm:$0xff]   ;;  %v240_v15 = vld [vmem:[%s321_s1 + $0x74] ss:$8 sps:$4 sm:$0xff]  }
   0x6   :  { %v242_v16 = vld [vmem:[%s321_s1 + $0x70] ss:$8 sps:$4 sm:$0xff]   ;;  %v23_v17 = vld [vmem:[%s322_s0] sm:$0xf]  ;;  %v176_v19 = vshrl.u32 %v175_v18, 7 }
   0x7   :  { %126 = vmatpush1.bf16.msra.mxu0 %v224_v4  ;;  %v173_v21 = vld [vmem:[%s323_s2] sm:$0x3] }
   0x8   :  { %127 = vmatprep.subr.bf16.mxu0 %v225_v5  ;;  %v177_v20 = vsub.s32 0, %v176_v19  ;;  %v181_v22 = vsub.s32 1, %v176_v19 }
   0xa   :  { %v178_v23 = vrot.slane %v173_v21, %v177_v20  ;;  %v182_v24 = vrot.slane %v173_v21, %v181_v22 }
   0xb   :  { %128 = vmatpush1.bf16.msra.mxu0 %v227_v6 }
   0xc   :  { %129 = vmatprep.subr.bf16.mxu0 %v228_v7 }
   0xf   :  { %130 = vmatpush1.bf16.msra.mxu0 %v230_v8 }
  0x10   :  { %131 = vmatprep.subr.bf16.mxu0 %v231_v9 }
  0x13   :  { %132 = vmatpush1.bf16.msra.mxu0 %v233_v10 }
  0x14   :  { %133 = vmatprep.subr.bf16.mxu0 %v234_v11 }
  0x17   :  { %134 = vmatpush1.bf16.msra.mxu0 %v236_v12 }
  0x18   :  { %135 = vmatprep.subr.bf16.mxu0 %v237_v13 }
  0x1b   :  { %136 = vmatpush1.bf16.msra.mxu0 %v239_v14 }
  0x1c   :  { %137 = vmatprep.subr.bf16.mxu0 %v240_v15 }
  0x1f   :  { %138 = vmatpush1.bf16.msra.mxu0 %v242_v16 }
  0x22   :  { %156 = vmatmul.mubr.bf16.vlgmr.msra.gmra.mrb[0].mxu0 %v23_v17 }
  0xf5   :  { %v157_v25 = vpop.f32.mrb[0].mxu0 }
  0xf6   :  { %v185_v26 = vadd.f32 %v178_v23, %v157_v25  ;;  %v159_v27 = vpop.f32.mrb[1].mxu0 }
  0xf7   :  { %v186_v28 = vadd.f32 %v182_v24, %v159_v27  ;;  %v161_v29 = vpop.f32.mrb[2].mxu0 }
  0xf8   :  { %v162_v30 = vpop.f32.mrb[3].mxu0 }
  0xf9   :  { %v217_v31 = vpack.c.bf16 %v186_v28, %v185_v26 }
  0xfb   :  { %195 = vst [vmem:[%s324_s3] sm:$0xff] %v217_v31 }

// kernel: resnet18_forward.36
= control target key start
LH: loop header
LB: loop body
LE: loop exit
PB: predicated region body
PF: predicated region fallthrough
CT: control target
= control target key end

     0   :  { %s800_s15 = smov 0   ;;  %s802_s16 = smov 0   ;;  %s889_s0 = inlined_call_operand.vmem [shape: bf16[9,8,256], index: 0, kind: input, shape index: {}]   ;;  %s890_s1 = inlined_call_operand.vmem [shape: bf16[9,256,256], index: 1, kind: input, shape index: {}]   ;;  %s891_s2 = inlined_call_operand.vmem [shape: f32[1,256], index: 2, kind: input, shape index: {}]   ;;  %s892_s3 = inlined_call_operand.vmem [shape: bf16[8,256], index: 3, kind: input, shape index: {}]   ;;  %s893_s4 = inlined_call_operand.vmem [shape: bf16[8,256], index: 4, kind: output, shape index: {}]  }
   0x1   :  { %s804_s17 = smov 0  }
   0x2 LB: > { %s23_s18 = sadd.s32 1, %s768_s16  ;;  %p627_p0 = scmp.ge.s32.totalorder %s772_s17, 1  ;;  %s772_s17 = sphi %s804_s17, %s14_s17   ;;  %s768_s16 = sphi %s802_s16, %s895_s16   ;;  %s764_s15 = sphi %s800_s15, %s894_s15  }
   0x3   : > { %p24_p1 = scmp.ge.s32.totalorder %s23_s18, 9  ;;  %p190_p2 = scmp.lt.s32.totalorder %s772_s17, 10 }
   0x5   : > { %s897_s18 = smov (%p24_p1, %s23_s18), 0  ;;  %p191_p3 = pnand %p627_p0, %p190_p2 }
   0x6   : > { %p225_p4 = scmp.lt.s32.totalorder (!%p191_p3), %s764_s15, 8  ;;  %p630_p5 = scmp.ne.s32.totalorder (!%p191_p3), %s764_s15, 0 }
   0x7   : > { %194 = sbr.rel (%p191_p3) target bundleno = 321 (0x141), region = 36 }
   0xe   : > { %s226_s19 = scalar_select %p225_p4, %s764_s15, 8 }
   0xf   : > { %247 = sbr.rel (%p630_p5) target bundleno = 22 (0x16), region = 40  ;;  %v774_v0 = vmov (!%p630_p5), 0.0  }
  0x10   : > { %s672_s20 = sshll.u32 %s226_s19, 3  ;;  %248 = vst [vmem:[#allocation2] sm:$0xff] (!%p630_p5), %v774_v0  ;;  %249 = vst [vmem:[#allocation2 + $0x8] sm:$0xff] (!%p630_p5), %v774_v0 }
  0x11   : > { %s233_s23 = scalar_lea.vmem %s889_s0, %s672_s20 }
  0x16 PF: > { %s673_s24 = sshll.u32 %s764_s15, 8  ;;  %v827_v1 = vld [vmem:[%s233_s23] sm:$0xff]  ;;  %p667_p6 = scmp.ne.s32.totalorder %s764_s15, 8 }
  0x17   : > { %s832_s27 = scalar_lea.vmem %s890_s1, %s673_s24  ;;  %v634_v2 = vcombine.high %v827_v1, %v827_v1  ;;  %v633_v35 = vcombine.low %v827_v1, %v827_v1  ;;  %v250_v36 = vld [vmem:[#allocation2] sm:$0xff]  ;;  %v251_v37 = vld [vmem:[#allocation2 + $0x8] sm:$0xff]  ;;  %v508_v44 = vlaneseq (!%p667_p6) }
  0x18   : > { %v700_v3 = vld [vmem:[%s832_s27 + $0x4] ss:$8 sps:$4 sm:$0xff]   ;;  %v702_v4 = vld [vmem:[%s832_s27] ss:$8 sps:$4 sm:$0xff]   ;;  %v703_v5 = vld [vmem:[%s832_s27 + $0x14] ss:$8 sps:$4 sm:$0xff]  }
  0x19   : > { %487 = vmatprep.mubr.bf16.mxu0 %v634_v2  ;;  %455 = vmatprep.subr.bf16.mxu0 %v700_v3  ;;  %v705_v6 = vld [vmem:[%s832_s27 + $0x10] ss:$8 sps:$4 sm:$0xff]   ;;  %v706_v7 = vld [vmem:[%s832_s27 + $0x24] ss:$8 sps:$4 sm:$0xff]   ;;  %v708_v8 = vld [vmem:[%s832_s27 + $0x20] ss:$8 sps:$4 sm:$0xff]  }
  0x1a   : > { %456 = vmatpush1.bf16.msra.mxu0 %v702_v4  ;;  %v709_v9 = vld [vmem:[%s832_s27 + $0x34] ss:$8 sps:$4 sm:$0xff]   ;;  %v711_v10 = vld [vmem:[%s832_s27 + $0x30] ss:$8 sps:$4 sm:$0xff]   ;;  %v712_v11 = vld [vmem:[%s832_s27 + $0x44] ss:$8 sps:$4 sm:$0xff]  }
  0x1b   : > { %457 = vmatprep.subr.bf16.mxu0 %v703_v5  ;;  %v714_v12 = vld [vmem:[%s832_s27 + $0x40] ss:$8 sps:$4 sm:$0xff]   ;;  %v715_v13 = vld [vmem:[%s832_s27 + $0x54] ss:$8 sps:$4 sm:$0xff]   ;;  %v717_v14 = vld [vmem:[%s832_s27 + $0x50] ss:$8 sps:$4 sm:$0xff]  }
  0x1c   : > { %v718_v15 = vld [vmem:[%s832_s27 + $0x64] ss:$8 sps:$4 sm:$0xff]   ;;  %v720_v16 = vld [vmem:[%s832_s27 + $0x60] ss:$8 sps:$4 sm:$0xff]   ;;  %v721_v17 = vld [vmem:[%s832_s27 + $0x74] ss:$8 sps:$4 sm:$0xff]  }
  0x1d   : > { %v723_v18 = vld [vmem:[%s832_s27 + $0x70] ss:$8 sps:$4 sm:$0xff]   ;;  %v724_v19 = vld [vmem:[%s832_s27 + $0x84] ss:$8 sps:$4 sm:$0xff]   ;;  %v726_v20 = vld [vmem:[%s832_s27 + $0x80] ss:$8 sps:$4 sm:$0xff]  }
  0x1e   : > { %458 = vmatpush1.bf16.msra.mxu0 %v705_v6  ;;  %v727_v21 = vld [vmem:[%s832_s27 + $0x94] ss:$8 sps:$4 sm:$0xff]   ;;  %v729_v22 = vld [vmem:[%s832_s27 + $0x90] ss:$8 sps:$4 sm:$0xff]   ;;  %v730_v23 = vld [vmem:[%s832_s27 + $0xa4] ss:$8 sps:$4 sm:$0xff]  }
  0x1f   : > { %459 = vmatprep.subr.bf16.mxu0 %v706_v7  ;;  %v732_v24 = vld [vmem:[%s832_s27 + $0xa0] ss:$8 sps:$4 sm:$0xff]   ;;  %v733_v25 = vld [vmem:[%s832_s27 + $0xb4] ss:$8 sps:$4 sm:$0xff]   ;;  %v735_v26 = vld [vmem:[%s832_s27 + $0xb0] ss:$8 sps:$4 sm:$0xff]  }
  0x20   : > { %v736_v27 = vld [vmem:[%s832_s27 + $0xc4] ss:$8 sps:$4 sm:$0xff]   ;;  %v738_v28 = vld [vmem:[%s832_s27 + $0xc0] ss:$8 sps:$4 sm:$0xff]   ;;  %v739_v29 = vld [vmem:[%s832_s27 + $0xd4] ss:$8 sps:$4 sm:$0xff]  }
  0x21   : > { %v741_v30 = vld [vmem:[%s832_s27 + $0xd0] ss:$8 sps:$4 sm:$0xff]   ;;  %v742_v31 = vld [vmem:[%s832_s27 + $0xe4] ss:$8 sps:$4 sm:$0xff]   ;;  %v744_v32 = vld [vmem:[%s832_s27 + $0xe0] ss:$8 sps:$4 sm:$0xff]  }
  0x22   : > { %460 = vmatpush1.bf16.msra.mxu0 %v708_v8  ;;  %v745_v33 = vld [vmem:[%s832_s27 + $0xf4] ss:$8 sps:$4 sm:$0xff]   ;;  %v747_v34 = vld [vmem:[%s832_s27 + $0xf0] ss:$8 sps:$4 sm:$0xff]   ;;  %v509_v45 = vshrl.u32 (!%p667_p6), %v508_v44, 7  ;;  %v520_v47 = vld [vmem:[%s892_s3] sm:$0xff] (!%p667_p6) }
  0x23   : > { %461 = vmatprep.subr.bf16.mxu0 %v709_v9  ;;  %v506_v46 = vld [vmem:[%s891_s2] sm:$0x3] (!%p667_p6)  ;;  %v521_v54 = vunpack.c.l.bf16 (!%p667_p6), %v520_v47  ;;  %v522_v55 = vunpack.c.h.bf16 (!%p667_p6), %v520_v47 }
  0x24   : > { %v510_v48 = vsub.s32 (!%p667_p6), 0, %v509_v45  ;;  %v514_v49 = vsub.s32 (!%p667_p6), 1, %v509_v45 }
  0x26   : > { %462 = vmatpush1.bf16.msra.mxu0 %v711_v10  ;;  %v511_v52 = vrot.slane (!%p667_p6), %v506_v46, %v510_v48  ;;  %v515_v53 = vrot.slane (!%p667_p6), %v506_v46, %v514_v49 }
  0x27   : > { %463 = vmatprep.subr.bf16.mxu0 %v712_v11 }
  0x2a   : > { %464 = vmatpush1.bf16.msra.mxu0 %v714_v12 }
  0x2b   : > { %465 = vmatprep.subr.bf16.mxu0 %v715_v13 }
  0x2e   : > { %466 = vmatpush1.bf16.msra.mxu0 %v717_v14 }
  0x2f   : > { %467 = vmatprep.subr.bf16.mxu0 %v718_v15 }
  0x32   : > { %468 = vmatpush1.bf16.msra.mxu0 %v720_v16 }
  0x33   : > { %469 = vmatprep.subr.bf16.mxu0 %v721_v17 }
  0x36   : > { %470 = vmatpush1.bf16.msra.mxu0 %v723_v18 }
  0x37   : > { %471 = vmatprep.subr.bf16.mxu0 %v724_v19 }
  0x3a   : > { %472 = vmatpush1.bf16.msra.mxu0 %v726_v20 }
  0x3b   : > { %473 = vmatprep.subr.bf16.mxu0 %v727_v21 }
  0x3e   : > { %474 = vmatpush1.bf16.msra.mxu0 %v729_v22 }
  0x3f   : > { %475 = vmatprep.subr.bf16.mxu0 %v730_v23 }
  0x42   : > { %476 = vmatpush1.bf16.msra.mxu0 %v732_v24 }
  0x43   : > { %477 = vmatprep.subr.bf16.mxu0 %v733_v25 }
  0x46   : > { %478 = vmatpush1.bf16.msra.mxu0 %v735_v26 }
  0x47   : > { %479 = vmatprep.subr.bf16.mxu0 %v736_v27 }
  0x4a   : > { %480 = vmatpush1.bf16.msra.mxu0 %v738_v28 }
  0x4b   : > { %481 = vmatprep.subr.bf16.mxu0 %v739_v29 }
  0x4e   : > { %482 = vmatpush1.bf16.msra.mxu0 %v741_v30 }
  0x4f   : > { %483 = vmatprep.subr.bf16.mxu0 %v742_v31 }
  0x52   : > { %484 = vmatpush1.bf16.msra.mxu0 %v744_v32 }
  0x53   : > { %485 = vmatprep.subr.bf16.mxu0 %v745_v33 }
  0x56   : > { %486 = vmatpush1.bf16.msra.mxu0 %v747_v34 }
  0x59   : > { %488 = vmatmul.mubr.bf16.vlgmr.msra.gmra.mrb[0].mxu0 %v633_v35 }
 0x12a   : > { %503 = sbr.rel (%p667_p6) target bundleno = 321 (0x141), region = 44 }
 0x12c   : > { %v489_v38 = vpop.f32.mrb[0].mxu0 }
 0x12d   : > { %v496_v39 = vadd.f32 %v489_v38, %v250_v36  ;;  %v491_v40 = vpop.f32.mrb[1].mxu0 }
 0x12e   : > { %v497_v41 = vadd.f32 %v491_v40, %v251_v37  ;;  %v493_v42 = vpop.f32.mrb[2].mxu0 }
 0x12f   : > { %498 = vst [vmem:[#allocation2] sm:$0xff] %v496_v39  ;;  %v494_v43 = vpop.f32.mrb[3].mxu0 }
 0x130   : > { %499 = vst [vmem:[#allocation2 + $0x8] sm:$0xff] %v497_v41 }
 0x136   : > { %v504_v50 = vld [vmem:[#allocation2] sm:$0xff] }
 0x137   : > { %v505_v51 = vld [vmem:[#allocation2 + $0x8] sm:$0xff]  ;;  %v518_v56 = vadd.f32 %v511_v52, %v504_v50 }
 0x138   : > { %v519_v57 = vadd.f32 %v515_v53, %v505_v51 }
 0x139   : > { %v523_v58 = vadd.f32 %v521_v54, %v518_v56 }
 0x13a   : > { %v524_v59 = vadd.f32 %v522_v55, %v519_v57 }
 0x13b   : > { %v525_v60 = vmax.f32 %v523_v58, 0.0 }
 0x13c   : > { %v526_v61 = vmax.f32 %v524_v59, 0.0 }
 0x13e   : > { %v674_v62 = vpack.c.bf16 %v526_v61, %v525_v60 }
 0x140   : > { %535 = vst [vmem:[%s893_s4] sm:$0xff] %v674_v62 }
 0x141 PF: > { %s14_s17 = sadd.s32 1, %s772_s17   ;;  %s894_s15 = smov %s768_s16 }
 0x142   : > { %p11_p7 = scmp.ge.s32.totalorder %s14_s17, 11   ;;  %s895_s16 = smov %s897_s18 }
 0x144   :  { %13 = sbr.rel (!%p11_p7) target bundleno = 2 (0x2), region = 78 }

// kernel: resnet18_forward.37
= control target key start
LH: loop header
LB: loop body
LE: loop exit
PB: predicated region body
PF: predicated region fallthrough
CT: control target
= control target key end

     0   :  { %s727_s12 = smov 0   ;;  %s729_s13 = smov 0   ;;  %s813_s0 = inlined_call_operand.vmem [shape: bf16[9,8,256], index: 0, kind: input, shape index: {}]   ;;  %s814_s1 = inlined_call_operand.vmem [shape: bf16[9,256,256], index: 1, kind: input, shape index: {}]   ;;  %s815_s2 = inlined_call_operand.vmem [shape: f32[1,256], index: 2, kind: input, shape index: {}]   ;;  %s816_s3 = inlined_call_operand.vmem [shape: bf16[8,256], index: 3, kind: output, shape index: {}]  }
   0x1   :  { %s731_s14 = smov 0  }
   0x2 LB: > { %s22_s15 = sadd.s32 1, %s700_s13  ;;  %p559_p0 = scmp.ge.s32.totalorder %s704_s14, 1  ;;  %s704_s14 = sphi %s731_s14, %s13_s14   ;;  %s700_s13 = sphi %s729_s13, %s818_s13   ;;  %s696_s12 = sphi %s727_s12, %s817_s12  }
   0x3   : > { %p23_p1 = scmp.ge.s32.totalorder %s22_s15, 9  ;;  %p155_p2 = scmp.lt.s32.totalorder %s704_s14, 10 }
   0x5   : > { %s820_s15 = smov (%p23_p1, %s22_s15), 0  ;;  %p156_p3 = pnand %p559_p0, %p155_p2 }
   0x6   : > { %p183_p4 = scmp.lt.s32.totalorder (!%p156_p3), %s696_s12, 8  ;;  %p562_p5 = scmp.ne.s32.totalorder (!%p156_p3), %s696_s12, 0 }
   0x7   : > { %159 = sbr.rel (%p156_p3) target bundleno = 319 (0x13f), region = 32 }
   0xe   : > { %s184_s16 = scalar_select %p183_p4, %s696_s12, 8 }
   0xf   : > { %200 = sbr.rel (%p562_p5) target bundleno = 22 (0x16), region = 36  ;;  %v706_v0 = vmov (!%p562_p5), 0.0  }
  0x10   : > { %s604_s17 = sshll.u32 %s184_s16, 3  ;;  %201 = vst [vmem:[#allocation2] sm:$0xff] (!%p562_p5), %v706_v0  ;;  %202 = vst [vmem:[#allocation2 + $0x8] sm:$0xff] (!%p562_p5), %v706_v0 }
  0x11   : > { %s191_s20 = scalar_lea.vmem %s813_s0, %s604_s17 }
  0x16 PF: > { %s605_s21 = sshll.u32 %s696_s12, 8  ;;  %v754_v1 = vld [vmem:[%s191_s20] sm:$0xff]  ;;  %p599_p6 = scmp.ne.s32.totalorder %s696_s12, 8 }
  0x17   : > { %s759_s24 = scalar_lea.vmem %s814_s1, %s605_s21  ;;  %v566_v2 = vcombine.high %v754_v1, %v754_v1  ;;  %v565_v35 = vcombine.low %v754_v1, %v754_v1  ;;  %v203_v36 = vld [vmem:[#allocation2] sm:$0xff]  ;;  %v204_v37 = vld [vmem:[#allocation2 + $0x8] sm:$0xff]  ;;  %v461_v44 = vlaneseq (!%p599_p6) }
  0x18   : > { %v632_v3 = vld [vmem:[%s759_s24 + $0x4] ss:$8 sps:$4 sm:$0xff]   ;;  %v634_v4 = vld [vmem:[%s759_s24] ss:$8 sps:$4 sm:$0xff]   ;;  %v635_v5 = vld [vmem:[%s759_s24 + $0x14] ss:$8 sps:$4 sm:$0xff]  }
  0x19   : > { %440 = vmatprep.mubr.bf16.mxu0 %v566_v2  ;;  %408 = vmatprep.subr.bf16.mxu0 %v632_v3  ;;  %v637_v6 = vld [vmem:[%s759_s24 + $0x10] ss:$8 sps:$4 sm:$0xff]   ;;  %v638_v7 = vld [vmem:[%s759_s24 + $0x24] ss:$8 sps:$4 sm:$0xff]   ;;  %v640_v8 = vld [vmem:[%s759_s24 + $0x20] ss:$8 sps:$4 sm:$0xff]  }
  0x1a   : > { %409 = vmatpush1.bf16.msra.mxu0 %v634_v4  ;;  %v641_v9 = vld [vmem:[%s759_s24 + $0x34] ss:$8 sps:$4 sm:$0xff]   ;;  %v643_v10 = vld [vmem:[%s759_s24 + $0x30] ss:$8 sps:$4 sm:$0xff]   ;;  %v644_v11 = vld [vmem:[%s759_s24 + $0x44] ss:$8 sps:$4 sm:$0xff]  }
  0x1b   : > { %410 = vmatprep.subr.bf16.mxu0 %v635_v5  ;;  %v646_v12 = vld [vmem:[%s759_s24 + $0x40] ss:$8 sps:$4 sm:$0xff]   ;;  %v647_v13 = vld [vmem:[%s759_s24 + $0x54] ss:$8 sps:$4 sm:$0xff]   ;;  %v649_v14 = vld [vmem:[%s759_s24 + $0x50] ss:$8 sps:$4 sm:$0xff]  }
  0x1c   : > { %v650_v15 = vld [vmem:[%s759_s24 + $0x64] ss:$8 sps:$4 sm:$0xff]   ;;  %v652_v16 = vld [vmem:[%s759_s24 + $0x60] ss:$8 sps:$4 sm:$0xff]   ;;  %v653_v17 = vld [vmem:[%s759_s24 + $0x74] ss:$8 sps:$4 sm:$0xff]  }
  0x1d   : > { %v655_v18 = vld [vmem:[%s759_s24 + $0x70] ss:$8 sps:$4 sm:$0xff]   ;;  %v656_v19 = vld [vmem:[%s759_s24 + $0x84] ss:$8 sps:$4 sm:$0xff]   ;;  %v658_v20 = vld [vmem:[%s759_s24 + $0x80] ss:$8 sps:$4 sm:$0xff]  }
  0x1e   : > { %411 = vmatpush1.bf16.msra.mxu0 %v637_v6  ;;  %v659_v21 = vld [vmem:[%s759_s24 + $0x94] ss:$8 sps:$4 sm:$0xff]   ;;  %v661_v22 = vld [vmem:[%s759_s24 + $0x90] ss:$8 sps:$4 sm:$0xff]   ;;  %v662_v23 = vld [vmem:[%s759_s24 + $0xa4] ss:$8 sps:$4 sm:$0xff]  }
  0x1f   : > { %412 = vmatprep.subr.bf16.mxu0 %v638_v7  ;;  %v664_v24 = vld [vmem:[%s759_s24 + $0xa0] ss:$8 sps:$4 sm:$0xff]   ;;  %v665_v25 = vld [vmem:[%s759_s24 + $0xb4] ss:$8 sps:$4 sm:$0xff]   ;;  %v667_v26 = vld [vmem:[%s759_s24 + $0xb0] ss:$8 sps:$4 sm:$0xff]  }
  0x20   : > { %v668_v27 = vld [vmem:[%s759_s24 + $0xc4] ss:$8 sps:$4 sm:$0xff]   ;;  %v670_v28 = vld [vmem:[%s759_s24 + $0xc0] ss:$8 sps:$4 sm:$0xff]   ;;  %v671_v29 = vld [vmem:[%s759_s24 + $0xd4] ss:$8 sps:$4 sm:$0xff]  }
  0x21   : > { %v673_v30 = vld [vmem:[%s759_s24 + $0xd0] ss:$8 sps:$4 sm:$0xff]   ;;  %v674_v31 = vld [vmem:[%s759_s24 + $0xe4] ss:$8 sps:$4 sm:$0xff]   ;;  %v676_v32 = vld [vmem:[%s759_s24 + $0xe0] ss:$8 sps:$4 sm:$0xff]  }
  0x22   : > { %413 = vmatpush1.bf16.msra.mxu0 %v640_v8  ;;  %v677_v33 = vld [vmem:[%s759_s24 + $0xf4] ss:$8 sps:$4 sm:$0xff]   ;;  %v679_v34 = vld [vmem:[%s759_s24 + $0xf0] ss:$8 sps:$4 sm:$0xff]   ;;  %v462_v45 = vshrl.u32 (!%p599_p6), %v461_v44, 7 }
  0x23   : > { %414 = vmatprep.subr.bf16.mxu0 %v641_v9  ;;  %v459_v46 = vld [vmem:[%s815_s2] sm:$0x3] (!%p599_p6) }
  0x24   : > { %v463_v47 = vsub.s32 (!%p599_p6), 0, %v462_v45  ;;  %v467_v48 = vsub.s32 (!%p599_p6), 1, %v462_v45 }
  0x26   : > { %415 = vmatpush1.bf16.msra.mxu0 %v643_v10  ;;  %v464_v51 = vrot.slane (!%p599_p6), %v459_v46, %v463_v47  ;;  %v468_v52 = vrot.slane (!%p599_p6), %v459_v46, %v467_v48 }
  0x27   : > { %416 = vmatprep.subr.bf16.mxu0 %v644_v11 }
  0x2a   : > { %417 = vmatpush1.bf16.msra.mxu0 %v646_v12 }
  0x2b   : > { %418 = vmatprep.subr.bf16.mxu0 %v647_v13 }
  0x2e   : > { %419 = vmatpush1.bf16.msra.mxu0 %v649_v14 }
  0x2f   : > { %420 = vmatprep.subr.bf16.mxu0 %v650_v15 }
  0x32   : > { %421 = vmatpush1.bf16.msra.mxu0 %v652_v16 }
  0x33   : > { %422 = vmatprep.subr.bf16.mxu0 %v653_v17 }
  0x36   : > { %423 = vmatpush1.bf16.msra.mxu0 %v655_v18 }
  0x37   : > { %424 = vmatprep.subr.bf16.mxu0 %v656_v19 }
  0x3a   : > { %425 = vmatpush1.bf16.msra.mxu0 %v658_v20 }
  0x3b   : > { %426 = vmatprep.subr.bf16.mxu0 %v659_v21 }
  0x3e   : > { %427 = vmatpush1.bf16.msra.mxu0 %v661_v22 }
  0x3f   : > { %428 = vmatprep.subr.bf16.mxu0 %v662_v23 }
  0x42   : > { %429 = vmatpush1.bf16.msra.mxu0 %v664_v24 }
  0x43   : > { %430 = vmatprep.subr.bf16.mxu0 %v665_v25 }
  0x46   : > { %431 = vmatpush1.bf16.msra.mxu0 %v667_v26 }
  0x47   : > { %432 = vmatprep.subr.bf16.mxu0 %v668_v27 }
  0x4a   : > { %433 = vmatpush1.bf16.msra.mxu0 %v670_v28 }
  0x4b   : > { %434 = vmatprep.subr.bf16.mxu0 %v671_v29 }
  0x4e   : > { %435 = vmatpush1.bf16.msra.mxu0 %v673_v30 }
  0x4f   : > { %436 = vmatprep.subr.bf16.mxu0 %v674_v31 }
  0x52   : > { %437 = vmatpush1.bf16.msra.mxu0 %v676_v32 }
  0x53   : > { %438 = vmatprep.subr.bf16.mxu0 %v677_v33 }
  0x56   : > { %439 = vmatpush1.bf16.msra.mxu0 %v679_v34 }
  0x59   : > { %441 = vmatmul.mubr.bf16.vlgmr.msra.gmra.mrb[0].mxu0 %v565_v35 }
 0x12a   : > { %456 = sbr.rel (%p599_p6) target bundleno = 319 (0x13f), region = 40 }
 0x12c   : > { %v442_v38 = vpop.f32.mrb[0].mxu0 }
 0x12d   : > { %v449_v39 = vadd.f32 %v442_v38, %v203_v36  ;;  %v444_v40 = vpop.f32.mrb[1].mxu0 }
 0x12e   : > { %v450_v41 = vadd.f32 %v444_v40, %v204_v37  ;;  %v446_v42 = vpop.f32.mrb[2].mxu0 }
 0x12f   : > { %451 = vst [vmem:[#allocation2] sm:$0xff] %v449_v39  ;;  %v447_v43 = vpop.f32.mrb[3].mxu0 }
 0x130   : > { %452 = vst [vmem:[#allocation2 + $0x8] sm:$0xff] %v450_v41 }
 0x136   : > { %v457_v49 = vld [vmem:[#allocation2] sm:$0xff] }
 0x137   : > { %v458_v50 = vld [vmem:[#allocation2 + $0x8] sm:$0xff]  ;;  %v471_v53 = vadd.f32 %v464_v51, %v457_v49 }
 0x138   : > { %v472_v54 = vadd.f32 %v468_v52, %v458_v50 }
 0x139   : > { %v473_v55 = vmax.f32 %v471_v53, 0.0 }
 0x13a   : > { %v474_v56 = vmax.f32 %v472_v54, 0.0 }
 0x13c   : > { %v606_v57 = vpack.c.bf16 %v474_v56, %v473_v55 }
 0x13e   : > { %483 = vst [vmem:[%s816_s3] sm:$0xff] %v606_v57 }
 0x13f PF: > { %s13_s14 = sadd.s32 1, %s704_s14   ;;  %s817_s12 = smov %s700_s13 }
 0x140   : > { %p10_p7 = scmp.ge.s32.totalorder %s13_s14, 11   ;;  %s818_s13 = smov %s820_s15 }
 0x142   :  { %12 = sbr.rel (!%p10_p7) target bundleno = 2 (0x2), region = 71 }

// kernel: resnet18_forward.39
= control target key start
LH: loop header
LB: loop body
LE: loop exit
PB: predicated region body
PF: predicated region fallthrough
CT: control target
= control target key end

     0   :  { %s1075_s12 = smov 0   ;;  %s1077_s13 = smov 0   ;;  %s1196_s0 = inlined_call_operand.vmem [shape: bf16[9,8,256], index: 0, kind: input, shape index: {}]   ;;  %s1197_s1 = inlined_call_operand.vmem [shape: bf16[9,256,512], index: 1, kind: input, shape index: {}]   ;;  %s1198_s2 = inlined_call_operand.vmem [shape: f32[1,512], index: 2, kind: input, shape index: {}]   ;;  %s1199_s3 = inlined_call_operand.vmem [shape: bf16[8,512], index: 3, kind: output, shape index: {}]  }
   0x1   :  { %s1079_s14 = smov 0  }
   0x2 LB: > { %s22_s15 = sadd.s32 1, %s1048_s13  ;;  %p825_p0 = scmp.ge.s32.totalorder %s1052_s14, 1  ;;  %s1052_s14 = sphi %s1079_s14, %s13_s14   ;;  %s1048_s13 = sphi %s1077_s13, %s1201_s13   ;;  %s1044_s12 = sphi %s1075_s12, %s1200_s12  }
   0x3   : > { %p23_p1 = scmp.ge.s32.totalorder %s22_s15, 9  ;;  %p155_p2 = scmp.lt.s32.totalorder %s1052_s14, 10 }
   0x5   : > { %s1203_s15 = smov (%p23_p1, %s22_s15), 0  ;;  %p156_p3 = pnand %p825_p0, %p155_p2 }
   0x6   : > { %p183_p4 = scmp.lt.s32.totalorder (!%p156_p3), %s1044_s12, 8  ;;  %p828_p5 = scmp.ne.s32.totalorder (!%p156_p3), %s1044_s12, 0 }
   0x7   : > { %159 = sbr.rel (%p156_p3) target bundleno = 320 (0x140), region = 32 }
   0xe   : > { %s184_s16 = scalar_select %p183_p4, %s1044_s12, 8 }
   0xf   : > { %200 = sbr.rel (%p828_p5) target bundleno = 22 (0x16), region = 36  ;;  %v1054_v0 = vmov (!%p828_p5), 0.0  }
  0x10   : > { %s903_s17 = sshll.u32 %s184_s16, 3  ;;  %201 = vst [vmem:[#allocation2] sm:$0xff] (!%p828_p5), %v1054_v0  ;;  %202 = vst [vmem:[#allocation2 + $0x8] sm:$0xff] (!%p828_p5), %v1054_v0 }
  0x11   : > { %s191_s20 = scalar_lea.vmem %s1196_s0, %s903_s17  ;;  %203 = vst [vmem:[#allocation2 + $0x10] sm:$0xff] (!%p828_p5), %v1054_v0  ;;  %204 = vst [vmem:[#allocation2 + $0x18] sm:$0xff] (!%p828_p5), %v1054_v0 }
  0x16 PF: > { %s904_s21 = sshll.u32 %s1044_s12, 9  ;;  %v1102_v1 = vld [vmem:[%s191_s20] sm:$0xff]  ;;  %p897_p6 = scmp.ne.s32.totalorder %s1044_s12, 8 }
  0x17   : > { %s1107_s24 = scalar_lea.vmem %s1197_s1, %s904_s21  ;;  %v832_v2 = vcombine.high %v1102_v1, %v1102_v1 }
  0x18   : > { %v932_v3 = vld [vmem:[%s1107_s24 + $0x4] ss:$16 sps:$4 sm:$0xff]   ;;  %v934_v4 = vld [vmem:[%s1107_s24 + $0xc] ss:$16 sps:$4 sm:$0xff]   ;;  %v936_v5 = vld [vmem:[%s1107_s24] ss:$16 sps:$4 sm:$0xff]  }
  0x19   : > { %636 = vmatprep.mubr.bf16.mxu0 %v832_v2  ;;  %677 = vmatprep.mubr.bf16.mxu1 %v832_v2  ;;  %v937_v6 = vld [vmem:[%s1107_s24 + $0x8] ss:$16 sps:$4 sm:$0xff]   ;;  %v938_v7 = vld [vmem:[%s1107_s24 + $0x24] ss:$16 sps:$4 sm:$0xff]   ;;  %v940_v8 = vld [vmem:[%s1107_s24 + $0x2c] ss:$16 sps:$4 sm:$0xff]  }
  0x1a   : > { %604 = vmatprep.subr.bf16.mxu0 %v932_v3  ;;  %645 = vmatprep.subr.bf16.mxu1 %v934_v4  ;;  %v942_v9 = vld [vmem:[%s1107_s24 + $0x20] ss:$16 sps:$4 sm:$0xff]   ;;  %v943_v10 = vld [vmem:[%s1107_s24 + $0x28] ss:$16 sps:$4 sm:$0xff]   ;;  %v944_v11 = vld [vmem:[%s1107_s24 + $0x44] ss:$16 sps:$4 sm:$0xff]   ;;  %v831_v4 = vcombine.low %v1102_v1, %v1102_v1 }
  0x1b   : > { %605 = vmatpush1.bf16.msra.mxu0 %v936_v5  ;;  %646 = vmatpush1.bf16.msra.mxu1 %v937_v6  ;;  %v946_v12 = vld [vmem:[%s1107_s24 + $0x4c] ss:$16 sps:$4 sm:$0xff]   ;;  %v948_v13 = vld [vmem:[%s1107_s24 + $0x40] ss:$16 sps:$4 sm:$0xff]   ;;  %v949_v14 = vld [vmem:[%s1107_s24 + $0x48] ss:$16 sps:$4 sm:$0xff]  }
  0x1c   : > { %606 = vmatprep.subr.bf16.mxu0 %v938_v7  ;;  %647 = vmatprep.subr.bf16.mxu1 %v940_v8  ;;  %v950_v15 = vld [vmem:[%s1107_s24 + $0x64] ss:$16 sps:$4 sm:$0xff]   ;;  %v952_v16 = vld [vmem:[%s1107_s24 + $0x6c] ss:$16 sps:$4 sm:$0xff]   ;;  %v954_v17 = vld [vmem:[%s1107_s24 + $0x60] ss:$16 sps:$4 sm:$0xff]  }
  0x1d   : > { %v955_v18 = vld [vmem:[%s1107_s24 + $0x68] ss:$16 sps:$4 sm:$0xff]   ;;  %v956_v19 = vld [vmem:[%s1107_s24 + $0x84] ss:$16 sps:$4 sm:$0xff]   ;;  %v958_v20 = vld [vmem:[%s1107_s24 + $0x8c] ss:$16 sps:$4 sm:$0xff]  }
  0x1e   : > { %v960_v21 = vld [vmem:[%s1107_s24 + $0x80] ss:$16 sps:$4 sm:$0xff]   ;;  %v961_v22 = vld [vmem:[%s1107_s24 + $0x88] ss:$16 sps:$4 sm:$0xff]   ;;  %v962_v23 = vld [vmem:[%s1107_s24 + $0xa4] ss:$16 sps:$4 sm:$0xff]  }
  0x1f   : > { %607 = vmatpush1.bf16.msra.mxu0 %v942_v9  ;;  %648 = vmatpush1.bf16.msra.mxu1 %v943_v10  ;;  %v964_v24 = vld [vmem:[%s1107_s24 + $0xac] ss:$16 sps:$4 sm:$0xff]   ;;  %v966_v25 = vld [vmem:[%s1107_s24 + $0xa0] ss:$16 sps:$4 sm:$0xff]   ;;  %v967_v26 = vld [vmem:[%s1107_s24 + $0xa8] ss:$16 sps:$4 sm:$0xff]  }
  0x20   : > { %608 = vmatprep.subr.bf16.mxu0 %v944_v11  ;;  %649 = vmatprep.subr.bf16.mxu1 %v946_v12  ;;  %v968_v27 = vld [vmem:[%s1107_s24 + $0xc4] ss:$16 sps:$4 sm:$0xff]   ;;  %v970_v28 = vld [vmem:[%s1107_s24 + $0xcc] ss:$16 sps:$4 sm:$0xff]   ;;  %v972_v29 = vld [vmem:[%s1107_s24 + $0xc0] ss:$16 sps:$4 sm:$0xff]  }
  0x21   : > { %v973_v30 = vld [vmem:[%s1107_s24 + $0xc8] ss:$16 sps:$4 sm:$0xff]   ;;  %v974_v31 = vld [vmem:[%s1107_s24 + $0xe4] ss:$16 sps:$4 sm:$0xff]   ;;  %v976_v32 = vld [vmem:[%s1107_s24 + $0xec] ss:$16 sps:$4 sm:$0xff]  }
  0x22   : > { %v978_v33 = vld [vmem:[%s1107_s24 + $0xe0] ss:$16 sps:$4 sm:$0xff]   ;;  %v979_v34 = vld [vmem:[%s1107_s24 + $0xe8] ss:$16 sps:$4 sm:$0xff]   ;;  %v980_v35 = vld [vmem:[%s1107_s24 + $0x104] ss:$16 sps:$4 sm:$0xff]  }
  0x23   : > { %609 = vmatpush1.bf16.msra.mxu0 %v948_v13  ;;  %650 = vmatpush1.bf16.msra.mxu1 %v949_v14  ;;  %v982_v36 = vld [vmem:[%s1107_s24 + $0x10c] ss:$16 sps:$4 sm:$0xff]   ;;  %v984_v37 = vld [vmem:[%s1107_s24 + $0x100] ss:$16 sps:$4 sm:$0xff]   ;;  %v985_v38 = vld [vmem:[%s1107_s24 + $0x108] ss:$16 sps:$4 sm:$0xff]  }
  0x24   : > { %610 = vmatprep.subr.bf16.mxu0 %v950_v15  ;;  %651 = vmatprep.subr.bf16.mxu1 %v952_v16  ;;  %v986_v39 = vld [vmem:[%s1107_s24 + $0x124] ss:$16 sps:$4 sm:$0xff]   ;;  %v988_v40 = vld [vmem:[%s1107_s24 + $0x12c] ss:$16 sps:$4 sm:$0xff]   ;;  %v990_v41 = vld [vmem:[%s1107_s24 + $0x120] ss:$16 sps:$4 sm:$0xff]  }
  0x25   : > { %v991_v42 = vld [vmem:[%s1107_s24 + $0x128] ss:$16 sps:$4 sm:$0xff]   ;;  %v992_v43 = vld [vmem:[%s1107_s24 + $0x144] ss:$16 sps:$4 sm:$0xff]   ;;  %v994_v44 = vld [vmem:[%s1107_s24 + $0x14c] ss:$16 sps:$4 sm:$0xff]  }
  0x26   : > { %v996_v45 = vld [vmem:[%s1107_s24 + $0x140] ss:$16 sps:$4 sm:$0xff]   ;;  %v997_v46 = vld [vmem:[%s1107_s24 + $0x148] ss:$16 sps:$4 sm:$0xff]   ;;  %v998_v47 = vld [vmem:[%s1107_s24 + $0x164] ss:$16 sps:$4 sm:$0xff]  }
  0x27   : > { %611 = vmatpush1.bf16.msra.mxu0 %v954_v17  ;;  %652 = vmatpush1.bf16.msra.mxu1 %v955_v18  ;;  %v1000_v48 = vld [vmem:[%s1107_s24 + $0x16c] ss:$16 sps:$4 sm:$0xff]   ;;  %v1002_v49 = vld [vmem:[%s1107_s24 + $0x160] ss:$16 sps:$4 sm:$0xff]   ;;  %v1003_v50 = vld [vmem:[%s1107_s24 + $0x168] ss:$16 sps:$4 sm:$0xff]  }
  0x28   : > { %612 = vmatprep.subr.bf16.mxu0 %v956_v19  ;;  %653 = vmatprep.subr.bf16.mxu1 %v958_v20  ;;  %v1004_v51 = vld [vmem:[%s1107_s24 + $0x184] ss:$16 sps:$4 sm:$0xff]   ;;  %v1006_v52 = vld [vmem:[%s1107_s24 + $0x18c] ss:$16 sps:$4 sm:$0xff]   ;;  %v1008_v53 = vld [vmem:[%s1107_s24 + $0x180] ss:$16 sps:$4 sm:$0xff]   ;;  %v704_v20 = vlaneseq (!%p897_p6) }
  0x29   : > { %v1009_v54 = vld [vmem:[%s1107_s24 + $0x188] ss:$16 sps:$4 sm:$0xff]   ;;  %v1010_v55 = vld [vmem:[%s1107_s24 + $0x1a4] ss:$16 sps:$4 sm:$0xff]   ;;  %v1012_v56 = vld [vmem:[%s1107_s24 + $0x1ac] ss:$16 sps:$4 sm:$0xff]  }
  0x2a   : > { %v1014_v57 = vld [vmem:[%s1107_s24 + $0x1a0] ss:$16 sps:$4 sm:$0xff]   ;;  %v1015_v58 = vld [vmem:[%s1107_s24 + $0x1a8] ss:$16 sps:$4 sm:$0xff]   ;;  %v1016_v59 = vld [vmem:[%s1107_s24 + $0x1c4] ss:$16 sps:$4 sm:$0xff]  }
  0x2b   : > { %613 = vmatpush1.bf16.msra.mxu0 %v960_v21  ;;  %654 = vmatpush1.bf16.msra.mxu1 %v961_v22  ;;  %v1018_v60 = vld [vmem:[%s1107_s24 + $0x1cc] ss:$16 sps:$4 sm:$0xff]   ;;  %v1020_v61 = vld [vmem:[%s1107_s24 + $0x1c0] ss:$16 sps:$4 sm:$0xff]   ;;  %v1021_v62 = vld [vmem:[%s1107_s24 + $0x1c8] ss:$16 sps:$4 sm:$0xff]  }
  0x2c   : > { %614 = vmatprep.subr.bf16.mxu0 %v962_v23  ;;  %655 = vmatprep.subr.bf16.mxu1 %v964_v24  ;;  %v1022_v63 = vld [vmem:[%s1107_s24 + $0x1e4] ss:$16 sps:$4 sm:$0xff]   ;;  %v1024_v0 = vld [vmem:[%s1107_s24 + $0x1ec] ss:$16 sps:$4 sm:$0xff]   ;;  %v1026_v2 = vld [vmem:[%s1107_s24 + $0x1e0] ss:$16 sps:$4 sm:$0xff]  }
  0x2d   : > { %v1027_v3 = vld [vmem:[%s1107_s24 + $0x1e8] ss:$16 sps:$4 sm:$0xff]   ;;  %v205_v5 = vld [vmem:[#allocation2] sm:$0xff]  ;;  %v207_v6 = vld [vmem:[#allocation2 + $0x10] sm:$0xff]  ;;  %v705_v21 = vshrl.u32 (!%p897_p6), %v704_v20, 7 }
  0x2e   : > { %v206_v7 = vld [vmem:[#allocation2 + $0x8] sm:$0xff]  ;;  %v208_v8 = vld [vmem:[#allocation2 + $0x18] sm:$0xff]  ;;  %v702_v22 = vld [vmem:[%s1198_s2] sm:$0xf] (!%p897_p6) }
  0x2f   : > { %615 = vmatpush1.bf16.msra.mxu0 %v966_v25  ;;  %656 = vmatpush1.bf16.msra.mxu1 %v967_v26  ;;  %v706_v24 = vsub.s32 (!%p897_p6), 0, %v705_v21  ;;  %v710_v25 = vsub.s32 (!%p897_p6), 1, %v705_v21  ;;  %v714_v26 = vsub.s32 (!%p897_p6), 2, %v705_v21 }
  0x30   : > { %616 = vmatprep.subr.bf16.mxu0 %v968_v27  ;;  %657 = vmatprep.subr.bf16.mxu1 %v970_v28  ;;  %v718_v27 = vsub.s32 (!%p897_p6), 3, %v705_v21 }
  0x33   : > { %617 = vmatpush1.bf16.msra.mxu0 %v972_v29  ;;  %658 = vmatpush1.bf16.msra.mxu1 %v973_v30 }
  0x34   : > { %618 = vmatprep.subr.bf16.mxu0 %v974_v31  ;;  %659 = vmatprep.subr.bf16.mxu1 %v976_v32  ;;  %v707_v31 = vrot.slane (!%p897_p6), %v702_v22, %v706_v24  ;;  %v711_v32 = vrot.slane (!%p897_p6), %v702_v22, %v710_v25 }
  0x37   : > { %619 = vmatpush1.bf16.msra.mxu0 %v978_v33  ;;  %660 = vmatpush1.bf16.msra.mxu1 %v979_v34  ;;  %v715_v33 = vrot.slane (!%p897_p6), %v702_v22, %v714_v26  ;;  %v719_v34 = vrot.slane (!%p897_p6), %v702_v22, %v718_v27 }
  0x38   : > { %620 = vmatprep.subr.bf16.mxu0 %v980_v35  ;;  %661 = vmatprep.subr.bf16.mxu1 %v982_v36 }
  0x3b   : > { %621 = vmatpush1.bf16.msra.mxu0 %v984_v37  ;;  %662 = vmatpush1.bf16.msra.mxu1 %v985_v38 }
  0x3c   : > { %622 = vmatprep.subr.bf16.mxu0 %v986_v39  ;;  %663 = vmatprep.subr.bf16.mxu1 %v988_v40 }
  0x3f   : > { %623 = vmatpush1.bf16.msra.mxu0 %v990_v41  ;;  %664 = vmatpush1.bf16.msra.mxu1 %v991_v42 }
  0x40   : > { %624 = vmatprep.subr.bf16.mxu0 %v992_v43  ;;  %665 = vmatprep.subr.bf16.mxu1 %v994_v44 }
  0x43   : > { %625 = vmatpush1.bf16.msra.mxu0 %v996_v45  ;;  %666 = vmatpush1.bf16.msra.mxu1 %v997_v46 }
  0x44   : > { %626 = vmatprep.subr.bf16.mxu0 %v998_v47  ;;  %667 = vmatprep.subr.bf16.mxu1 %v1000_v48 }
  0x47   : > { %627 = vmatpush1.bf16.msra.mxu0 %v1002_v49  ;;  %668 = vmatpush1.bf16.msra.mxu1 %v1003_v50 }
  0x48   : > { %628 = vmatprep.subr.bf16.mxu0 %v1004_v51  ;;  %669 = vmatprep.subr.bf16.mxu1 %v1006_v52 }
  0x4b   : > { %629 = vmatpush1.bf16.msra.mxu0 %v1008_v53  ;;  %670 = vmatpush1.bf16.msra.mxu1 %v1009_v54 }
  0x4c   : > { %630 = vmatprep.subr.bf16.mxu0 %v1010_v55  ;;  %671 = vmatprep.subr.bf16.mxu1 %v1012_v56 }
  0x4f   : > { %631 = vmatpush1.bf16.msra.mxu0 %v1014_v57  ;;  %672 = vmatpush1.bf16.msra.mxu1 %v1015_v58 }
  0x50   : > { %632 = vmatprep.subr.bf16.mxu0 %v1016_v59  ;;  %673 = vmatprep.subr.bf16.mxu1 %v1018_v60 }
  0x53   : > { %633 = vmatpush1.bf16.msra.mxu0 %v1020_v61  ;;  %674 = vmatpush1.bf16.msra.mxu1 %v1021_v62 }
  0x54   : > { %634 = vmatprep.subr.bf16.mxu0 %v1022_v63  ;;  %675 = vmatprep.subr.bf16.mxu1 %v1024_v0 }
  0x57   : > { %635 = vmatpush1.bf16.msra.mxu0 %v1026_v2  ;;  %676 = vmatpush1.bf16.msra.mxu1 %v1027_v3 }
  0x5a   : > { %637 = vmatmul.mubr.bf16.vlgmr.msra.gmra.mrb[0].mxu0 %v831_v4  ;;  %678 = vmatmul.mubr.bf16.vlgmr.msra.gmra.mrb[0].mxu1 %v831_v4 }
 0x12b   : > { %697 = sbr.rel (%p897_p6) target bundleno = 320 (0x140), region = 40 }
 0x12d   : > { %v638_v9 = vpop.f32.mrb[0].mxu0  ;;  %v679_v10 = vpop.f32.mrb[0].mxu1 }
 0x12e   : > { %v686_v11 = vadd.f32 %v638_v9, %v205_v5  ;;  %v688_v12 = vadd.f32 %v679_v10, %v207_v6  ;;  %v640_v13 = vpop.f32.mrb[1].mxu0  ;;  %v681_v14 = vpop.f32.mrb[1].mxu1 }
 0x12f   : > { %v687_v15 = vadd.f32 %v640_v13, %v206_v7  ;;  %v689_v16 = vadd.f32 %v681_v14, %v208_v8  ;;  %v642_v17 = vpop.f32.mrb[2].mxu0  ;;  %v683_v18 = vpop.f32.mrb[2].mxu1 }
 0x130   : > { %690 = vst [vmem:[#allocation2] sm:$0xff] %v686_v11  ;;  %692 = vst [vmem:[#allocation2 + $0x10] sm:$0xff] %v688_v12  ;;  %v643_v1 = vpop.f32.mrb[3].mxu0  ;;  %v684_v19 = vpop.f32.mrb[3].mxu1 }
 0x131   : > { %691 = vst [vmem:[#allocation2 + $0x8] sm:$0xff] %v687_v15  ;;  %693 = vst [vmem:[#allocation2 + $0x18] sm:$0xff] %v689_v16 }
 0x137   : > { %v698_v23 = vld [vmem:[#allocation2] sm:$0xff]  ;;  %v700_v29 = vld [vmem:[#allocation2 + $0x10] sm:$0xff] }
 0x138   : > { %v699_v28 = vld [vmem:[#allocation2 + $0x8] sm:$0xff]  ;;  %v701_v30 = vld [vmem:[#allocation2 + $0x18] sm:$0xff]  ;;  %v724_v35 = vadd.f32 %v707_v31, %v698_v23  ;;  %v726_v37 = vadd.f32 %v715_v33, %v700_v29 }
 0x139   : > { %v725_v36 = vadd.f32 %v711_v32, %v699_v28  ;;  %v727_v38 = vadd.f32 %v719_v34, %v701_v30 }
 0x13a   : > { %v728_v39 = vmax.f32 %v724_v35, 0.0  ;;  %v730_v41 = vmax.f32 %v726_v37, 0.0 }
 0x13b   : > { %v729_v40 = vmax.f32 %v725_v36, 0.0  ;;  %v731_v42 = vmax.f32 %v727_v38, 0.0 }
 0x13d   : > { %v905_v43 = vpack.c.bf16 %v729_v40, %v728_v39  ;;  %v906_v44 = vpack.c.bf16 %v731_v42, %v730_v41 }
 0x13f   : > { %748 = vst [vmem:[%s1199_s3] sm:$0xff] %v905_v43  ;;  %749 = vst [vmem:[%s1199_s3 + $0x8] sm:$0xff] %v906_v44 }
 0x140 PF: > { %s13_s14 = sadd.s32 1, %s1052_s14   ;;  %s1200_s12 = smov %s1048_s13 }
 0x141   : > { %p10_p7 = scmp.ge.s32.totalorder %s13_s14, 11   ;;  %s1201_s13 = smov %s1203_s15 }
 0x143   :  { %12 = sbr.rel (!%p10_p7) target bundleno = 2 (0x2), region = 71 }

// kernel: resnet18_forward.40
= control target key start
LH: loop header
LB: loop body
LE: loop exit
PB: predicated region body
PF: predicated region fallthrough
CT: control target
= control target key end

     0   :  { %s958_s1 = inlined_call_operand.vmem [shape: bf16[1,256,512], index: 1, kind: input, shape index: {}]   ;;  %s959_s0 = inlined_call_operand.vmem [shape: bf16[1,8,256], index: 0, kind: input, shape index: {}]   ;;  %s960_s2 = inlined_call_operand.vmem [shape: f32[1,512], index: 2, kind: input, shape index: {}]   ;;  %s961_s3 = inlined_call_operand.vmem [shape: bf16[8,512], index: 3, kind: output, shape index: {}]  }
   0x1   :  { %v636_v0 = vld [vmem:[%s958_s1 + $0x4] ss:$16 sps:$4 sm:$0xff]   ;;  %v638_v1 = vld [vmem:[%s958_s1 + $0xc] ss:$16 sps:$4 sm:$0xff]   ;;  %v640_v2 = vld [vmem:[%s958_s1] ss:$16 sps:$4 sm:$0xff]  }
   0x2   :  { %421 = vmatprep.subr.bf16.mxu0 %v636_v0  ;;  %v641_v3 = vld [vmem:[%s958_s1 + $0x8] ss:$16 sps:$4 sm:$0xff]   ;;  %462 = vmatprep.subr.bf16.mxu1 %v638_v1  ;;  %v642_v4 = vld [vmem:[%s958_s1 + $0x24] ss:$16 sps:$4 sm:$0xff]   ;;  %v644_v5 = vld [vmem:[%s958_s1 + $0x2c] ss:$16 sps:$4 sm:$0xff]  }
   0x3   :  { %422 = vmatpush1.bf16.msra.mxu0 %v640_v2  ;;  %463 = vmatpush1.bf16.msra.mxu1 %v641_v3  ;;  %v646_v6 = vld [vmem:[%s958_s1 + $0x20] ss:$16 sps:$4 sm:$0xff]   ;;  %v647_v7 = vld [vmem:[%s958_s1 + $0x28] ss:$16 sps:$4 sm:$0xff]   ;;  %v648_v8 = vld [vmem:[%s958_s1 + $0x44] ss:$16 sps:$4 sm:$0xff]   ;;  %v520_v3 = vlaneseq }
   0x4   :  { %423 = vmatprep.subr.bf16.mxu0 %v642_v4  ;;  %464 = vmatprep.subr.bf16.mxu1 %v644_v5  ;;  %v650_v9 = vld [vmem:[%s958_s1 + $0x4c] ss:$16 sps:$4 sm:$0xff]   ;;  %v652_v10 = vld [vmem:[%s958_s1 + $0x40] ss:$16 sps:$4 sm:$0xff]   ;;  %v653_v11 = vld [vmem:[%s958_s1 + $0x48] ss:$16 sps:$4 sm:$0xff]  }
   0x5   :  { %v654_v12 = vld [vmem:[%s958_s1 + $0x64] ss:$16 sps:$4 sm:$0xff]   ;;  %v656_v13 = vld [vmem:[%s958_s1 + $0x6c] ss:$16 sps:$4 sm:$0xff]   ;;  %v658_v14 = vld [vmem:[%s958_s1 + $0x60] ss:$16 sps:$4 sm:$0xff]  }
   0x6   :  { %v659_v15 = vld [vmem:[%s958_s1 + $0x68] ss:$16 sps:$4 sm:$0xff]   ;;  %v660_v16 = vld [vmem:[%s958_s1 + $0x84] ss:$16 sps:$4 sm:$0xff]   ;;  %v662_v17 = vld [vmem:[%s958_s1 + $0x8c] ss:$16 sps:$4 sm:$0xff]  }
   0x7   :  { %424 = vmatpush1.bf16.msra.mxu0 %v646_v6  ;;  %465 = vmatpush1.bf16.msra.mxu1 %v647_v7  ;;  %v664_v18 = vld [vmem:[%s958_s1 + $0x80] ss:$16 sps:$4 sm:$0xff]   ;;  %v665_v19 = vld [vmem:[%s958_s1 + $0x88] ss:$16 sps:$4 sm:$0xff]   ;;  %v666_v20 = vld [vmem:[%s958_s1 + $0xa4] ss:$16 sps:$4 sm:$0xff]  }
   0x8   :  { %425 = vmatprep.subr.bf16.mxu0 %v648_v8  ;;  %466 = vmatprep.subr.bf16.mxu1 %v650_v9  ;;  %v668_v21 = vld [vmem:[%s958_s1 + $0xac] ss:$16 sps:$4 sm:$0xff]   ;;  %v670_v22 = vld [vmem:[%s958_s1 + $0xa0] ss:$16 sps:$4 sm:$0xff]   ;;  %v671_v23 = vld [vmem:[%s958_s1 + $0xa8] ss:$16 sps:$4 sm:$0xff]  }
   0x9   :  { %v672_v24 = vld [vmem:[%s958_s1 + $0xc4] ss:$16 sps:$4 sm:$0xff]   ;;  %v674_v25 = vld [vmem:[%s958_s1 + $0xcc] ss:$16 sps:$4 sm:$0xff]   ;;  %v676_v26 = vld [vmem:[%s958_s1 + $0xc0] ss:$16 sps:$4 sm:$0xff]  }
   0xa   :  { %v677_v27 = vld [vmem:[%s958_s1 + $0xc8] ss:$16 sps:$4 sm:$0xff]   ;;  %v678_v28 = vld [vmem:[%s958_s1 + $0xe4] ss:$16 sps:$4 sm:$0xff]   ;;  %v680_v29 = vld [vmem:[%s958_s1 + $0xec] ss:$16 sps:$4 sm:$0xff]  }
   0xb   :  { %426 = vmatpush1.bf16.msra.mxu0 %v652_v10  ;;  %467 = vmatpush1.bf16.msra.mxu1 %v653_v11  ;;  %v682_v30 = vld [vmem:[%s958_s1 + $0xe0] ss:$16 sps:$4 sm:$0xff]   ;;  %v683_v31 = vld [vmem:[%s958_s1 + $0xe8] ss:$16 sps:$4 sm:$0xff]   ;;  %v684_v32 = vld [vmem:[%s958_s1 + $0x104] ss:$16 sps:$4 sm:$0xff]  }
   0xc   :  { %427 = vmatprep.subr.bf16.mxu0 %v654_v12  ;;  %468 = vmatprep.subr.bf16.mxu1 %v656_v13  ;;  %v686_v33 = vld [vmem:[%s958_s1 + $0x10c] ss:$16 sps:$4 sm:$0xff]   ;;  %v688_v34 = vld [vmem:[%s958_s1 + $0x100] ss:$16 sps:$4 sm:$0xff]   ;;  %v689_v35 = vld [vmem:[%s958_s1 + $0x108] ss:$16 sps:$4 sm:$0xff]  }
   0xd   :  { %v690_v36 = vld [vmem:[%s958_s1 + $0x124] ss:$16 sps:$4 sm:$0xff]   ;;  %v692_v37 = vld [vmem:[%s958_s1 + $0x12c] ss:$16 sps:$4 sm:$0xff]   ;;  %v694_v38 = vld [vmem:[%s958_s1 + $0x120] ss:$16 sps:$4 sm:$0xff]  }
   0xe   :  { %v695_v39 = vld [vmem:[%s958_s1 + $0x128] ss:$16 sps:$4 sm:$0xff]   ;;  %v696_v40 = vld [vmem:[%s958_s1 + $0x144] ss:$16 sps:$4 sm:$0xff]   ;;  %v698_v41 = vld [vmem:[%s958_s1 + $0x14c] ss:$16 sps:$4 sm:$0xff]  }
   0xf   :  { %428 = vmatpush1.bf16.msra.mxu0 %v658_v14  ;;  %469 = vmatpush1.bf16.msra.mxu1 %v659_v15  ;;  %v700_v42 = vld [vmem:[%s958_s1 + $0x140] ss:$16 sps:$4 sm:$0xff]   ;;  %v701_v43 = vld [vmem:[%s958_s1 + $0x148] ss:$16 sps:$4 sm:$0xff]   ;;  %v702_v44 = vld [vmem:[%s958_s1 + $0x164] ss:$16 sps:$4 sm:$0xff]  }
  0x10   :  { %429 = vmatprep.subr.bf16.mxu0 %v660_v16  ;;  %470 = vmatprep.subr.bf16.mxu1 %v662_v17  ;;  %v704_v45 = vld [vmem:[%s958_s1 + $0x16c] ss:$16 sps:$4 sm:$0xff]   ;;  %v26_v46 = vld [vmem:[%s959_s0] sm:$0xff]  ;;  %v707_v49 = vld [vmem:[%s958_s1 + $0x168] ss:$16 sps:$4 sm:$0xff]   ;;  %v521_v4 = vshrl.u32 %v520_v3, 7 }
  0x11   :  { %v567_v47 = vcombine.high %v26_v46, %v26_v46  ;;  %v706_v48 = vld [vmem:[%s958_s1 + $0x160] ss:$16 sps:$4 sm:$0xff]   ;;  %v708_v50 = vld [vmem:[%s958_s1 + $0x184] ss:$16 sps:$4 sm:$0xff]   ;;  %v710_v51 = vld [vmem:[%s958_s1 + $0x18c] ss:$16 sps:$4 sm:$0xff]   ;;  %v566_v2 = vcombine.low %v26_v46, %v26_v46 }
  0x12   :  { %v712_v52 = vld [vmem:[%s958_s1 + $0x180] ss:$16 sps:$4 sm:$0xff]   ;;  %v713_v53 = vld [vmem:[%s958_s1 + $0x188] ss:$16 sps:$4 sm:$0xff]   ;;  %v714_v54 = vld [vmem:[%s958_s1 + $0x1a4] ss:$16 sps:$4 sm:$0xff]  }
  0x13   :  { %430 = vmatpush1.bf16.msra.mxu0 %v664_v18  ;;  %471 = vmatpush1.bf16.msra.mxu1 %v665_v19  ;;  %v716_v55 = vld [vmem:[%s958_s1 + $0x1ac] ss:$16 sps:$4 sm:$0xff]   ;;  %v718_v56 = vld [vmem:[%s958_s1 + $0x1a0] ss:$16 sps:$4 sm:$0xff]   ;;  %v719_v57 = vld [vmem:[%s958_s1 + $0x1a8] ss:$16 sps:$4 sm:$0xff]  }
  0x14   :  { %431 = vmatprep.subr.bf16.mxu0 %v666_v20  ;;  %472 = vmatprep.subr.bf16.mxu1 %v668_v21  ;;  %v720_v58 = vld [vmem:[%s958_s1 + $0x1c4] ss:$16 sps:$4 sm:$0xff]   ;;  %v722_v59 = vld [vmem:[%s958_s1 + $0x1cc] ss:$16 sps:$4 sm:$0xff]   ;;  %v724_v60 = vld [vmem:[%s958_s1 + $0x1c0] ss:$16 sps:$4 sm:$0xff]  }
  0x15   :  { %453 = vmatprep.mubr.bf16.mxu0 %v567_v47  ;;  %494 = vmatprep.mubr.bf16.mxu1 %v567_v47  ;;  %v725_v61 = vld [vmem:[%s958_s1 + $0x1c8] ss:$16 sps:$4 sm:$0xff]   ;;  %v726_v62 = vld [vmem:[%s958_s1 + $0x1e4] ss:$16 sps:$4 sm:$0xff]   ;;  %v728_v63 = vld [vmem:[%s958_s1 + $0x1ec] ss:$16 sps:$4 sm:$0xff]  }
  0x16   :  { %v730_v0 = vld [vmem:[%s958_s1 + $0x1e0] ss:$16 sps:$4 sm:$0xff]   ;;  %v731_v1 = vld [vmem:[%s958_s1 + $0x1e8] ss:$16 sps:$4 sm:$0xff]   ;;  %v522_v5 = vsub.s32 0, %v521_v4  ;;  %v530_v6 = vsub.s32 2, %v521_v4 }
  0x17   :  { %432 = vmatpush1.bf16.msra.mxu0 %v670_v22  ;;  %473 = vmatpush1.bf16.msra.mxu1 %v671_v23  ;;  %v518_v7 = vld [vmem:[%s960_s2] sm:$0xf]  ;;  %v526_v8 = vsub.s32 1, %v521_v4  ;;  %v534_v9 = vsub.s32 3, %v521_v4 }
  0x18   :  { %433 = vmatprep.subr.bf16.mxu0 %v672_v24  ;;  %474 = vmatprep.subr.bf16.mxu1 %v674_v25  ;;  %v523_v10 = vrot.slane %v518_v7, %v522_v5  ;;  %v531_v11 = vrot.slane %v518_v7, %v530_v6 }
  0x19   :  { %v527_v12 = vrot.slane %v518_v7, %v526_v8  ;;  %v535_v13 = vrot.slane %v518_v7, %v534_v9 }
  0x1b   :  { %434 = vmatpush1.bf16.msra.mxu0 %v676_v26  ;;  %475 = vmatpush1.bf16.msra.mxu1 %v677_v27 }
  0x1c   :  { %435 = vmatprep.subr.bf16.mxu0 %v678_v28  ;;  %476 = vmatprep.subr.bf16.mxu1 %v680_v29 }
  0x1f   :  { %436 = vmatpush1.bf16.msra.mxu0 %v682_v30  ;;  %477 = vmatpush1.bf16.msra.mxu1 %v683_v31 }
  0x20   :  { %437 = vmatprep.subr.bf16.mxu0 %v684_v32  ;;  %478 = vmatprep.subr.bf16.mxu1 %v686_v33 }
  0x23   :  { %438 = vmatpush1.bf16.msra.mxu0 %v688_v34  ;;  %479 = vmatpush1.bf16.msra.mxu1 %v689_v35 }
  0x24   :  { %439 = vmatprep.subr.bf16.mxu0 %v690_v36  ;;  %480 = vmatprep.subr.bf16.mxu1 %v692_v37 }
  0x27   :  { %440 = vmatpush1.bf16.msra.mxu0 %v694_v38  ;;  %481 = vmatpush1.bf16.msra.mxu1 %v695_v39 }
  0x28   :  { %441 = vmatprep.subr.bf16.mxu0 %v696_v40  ;;  %482 = vmatprep.subr.bf16.mxu1 %v698_v41 }
  0x2b   :  { %442 = vmatpush1.bf16.msra.mxu0 %v700_v42  ;;  %483 = vmatpush1.bf16.msra.mxu1 %v701_v43 }
  0x2c   :  { %443 = vmatprep.subr.bf16.mxu0 %v702_v44  ;;  %484 = vmatprep.subr.bf16.mxu1 %v704_v45 }
  0x2f   :  { %444 = vmatpush1.bf16.msra.mxu0 %v706_v48  ;;  %485 = vmatpush1.bf16.msra.mxu1 %v707_v49 }
  0x30   :  { %445 = vmatprep.subr.bf16.mxu0 %v708_v50  ;;  %486 = vmatprep.subr.bf16.mxu1 %v710_v51 }
  0x33   :  { %446 = vmatpush1.bf16.msra.mxu0 %v712_v52  ;;  %487 = vmatpush1.bf16.msra.mxu1 %v713_v53 }
  0x34   :  { %447 = vmatprep.subr.bf16.mxu0 %v714_v54  ;;  %488 = vmatprep.subr.bf16.mxu1 %v716_v55 }
  0x37   :  { %448 = vmatpush1.bf16.msra.mxu0 %v718_v56  ;;  %489 = vmatpush1.bf16.msra.mxu1 %v719_v57 }
  0x38   :  { %449 = vmatprep.subr.bf16.mxu0 %v720_v58  ;;  %490 = vmatprep.subr.bf16.mxu1 %v722_v59 }
  0x3b   :  { %450 = vmatpush1.bf16.msra.mxu0 %v724_v60  ;;  %491 = vmatpush1.bf16.msra.mxu1 %v725_v61 }
  0x3c   :  { %451 = vmatprep.subr.bf16.mxu0 %v726_v62  ;;  %492 = vmatprep.subr.bf16.mxu1 %v728_v63 }
  0x3f   :  { %452 = vmatpush1.bf16.msra.mxu0 %v730_v0  ;;  %493 = vmatpush1.bf16.msra.mxu1 %v731_v1 }
  0x42   :  { %454 = vmatmul.mubr.bf16.vlgmr.msra.gmra.mrb[0].mxu0 %v566_v2  ;;  %495 = vmatmul.mubr.bf16.vlgmr.msra.gmra.mrb[0].mxu1 %v566_v2 }
 0x115   :  { %v455_v14 = vpop.f32.mrb[0].mxu0  ;;  %v496_v15 = vpop.f32.mrb[0].mxu1 }
 0x116   :  { %v540_v16 = vadd.f32 %v523_v10, %v455_v14  ;;  %v542_v17 = vadd.f32 %v531_v11, %v496_v15  ;;  %v457_v18 = vpop.f32.mrb[1].mxu0  ;;  %v498_v19 = vpop.f32.mrb[1].mxu1 }
 0x117   :  { %v541_v20 = vadd.f32 %v527_v12, %v457_v18  ;;  %v543_v21 = vadd.f32 %v535_v13, %v498_v19  ;;  %v459_v22 = vpop.f32.mrb[2].mxu0  ;;  %v500_v23 = vpop.f32.mrb[2].mxu1 }
 0x118   :  { %v460_v24 = vpop.f32.mrb[3].mxu0  ;;  %v501_v25 = vpop.f32.mrb[3].mxu1 }
 0x119   :  { %v634_v26 = vpack.c.bf16 %v541_v20, %v540_v16  ;;  %v635_v27 = vpack.c.bf16 %v543_v21, %v542_v17 }
 0x11b   :  { %560 = vst [vmem:[%s961_s3] sm:$0xff] %v634_v26  ;;  %561 = vst [vmem:[%s961_s3 + $0x8] sm:$0xff] %v635_v27 }

// kernel: resnet18_forward.41
= control target key start
LH: loop header
LB: loop body
LE: loop exit
PB: predicated region body
PF: predicated region fallthrough
CT: control target
= control target key end

     0   :  { %s1791_s15 = smov 0   ;;  %s1793_s16 = smov 0   ;;  %s2004_s0 = inlined_call_operand.vmem [shape: bf16[9,8,512], index: 0, kind: input, shape index: {}]   ;;  %s2005_s1 = inlined_call_operand.vmem [shape: bf16[9,512,512], index: 1, kind: input, shape index: {}]   ;;  %s2006_s2 = inlined_call_operand.vmem [shape: f32[1,512], index: 2, kind: input, shape index: {}]   ;;  %s2007_s3 = inlined_call_operand.vmem [shape: bf16[8,512], index: 3, kind: input, shape index: {}]   ;;  %s2008_s4 = inlined_call_operand.vmem [shape: bf16[8,512], index: 4, kind: output, shape index: {}]  }
   0x1   :  { %s1795_s17 = smov 0  }
   0x2 LB: > { %s23_s18 = sadd.s32 1, %s1759_s16  ;;  %p1372_p0 = scmp.ge.s32.totalorder %s1763_s17, 1  ;;  %s1763_s17 = sphi %s1795_s17, %s14_s17   ;;  %s1759_s16 = sphi %s1793_s16, %s2010_s16   ;;  %s1755_s15 = sphi %s1791_s15, %s2009_s15  }
   0x3   : > { %p24_p1 = scmp.ge.s32.totalorder %s23_s18, 9  ;;  %p190_p2 = scmp.lt.s32.totalorder %s1763_s17, 10 }
   0x5   : > { %s2012_s18 = smov (%p24_p1, %s23_s18), 0  ;;  %p191_p3 = pnand %p1372_p0, %p190_p2 }
   0x6   : > { %p225_p4 = scmp.lt.s32.totalorder (!%p191_p3), %s1755_s15, 8  ;;  %p1375_p5 = scmp.ne.s32.totalorder (!%p191_p3), %s1755_s15, 0 }
   0x7   : > { %194 = sbr.rel (%p191_p3) target bundleno = 388 (0x184), region = 36 }
   0xe   : > { %s226_s19 = scalar_select %p225_p4, %s1755_s15, 8 }
   0xf   : > { %247 = sbr.rel (%p1375_p5) target bundleno = 22 (0x16), region = 40  ;;  %v1765_v0 = vmov (!%p1375_p5), 0.0  }
  0x10   : > { %s1516_s20 = sshll.u32 %s226_s19, 4  ;;  %248 = vst [vmem:[#allocation2] sm:$0xff] (!%p1375_p5), %v1765_v0  ;;  %249 = vst [vmem:[#allocation2 + $0x8] sm:$0xff] (!%p1375_p5), %v1765_v0 }
  0x11   : > { %s233_s23 = scalar_lea.vmem %s2004_s0, %s1516_s20  ;;  %250 = vst [vmem:[#allocation2 + $0x10] sm:$0xff] (!%p1375_p5), %v1765_v0  ;;  %251 = vst [vmem:[#allocation2 + $0x18] sm:$0xff] (!%p1375_p5), %v1765_v0 }
  0x16 PF: > { %s1517_s24 = sshll.u32 %s1755_s15, 10  ;;  %v1818_v1 = vld [vmem:[%s233_s23] sm:$0xff]  ;;  %v1820_v2 = vld [vmem:[%s233_s23 + $0x8] sm:$0xff]  ;;  %p1510_p6 = scmp.ne.s32.totalorder %s1755_s15, 8 }
  0x17   : > { %s1825_s27 = scalar_lea.vmem %s2005_s1, %s1517_s24  ;;  %v1829_v3 = vcombine.high %v1818_v1, %v1818_v1  ;;  %v1833_v4 = vcombine.high %v1820_v2, %v1820_v2 }
  0x18   : > { %v1545_v5 = vld [vmem:[%s1825_s27 + $0x4] ss:$16 sps:$4 sm:$0xff]   ;;  %v1549_v7 = vld [vmem:[%s1825_s27] ss:$16 sps:$4 sm:$0xff]  }
  0x19   : > { %v1547_v6 = vld [vmem:[%s1825_s27 + $0x204] ss:$16 sps:$4 sm:$0xff]   ;;  %1075 = vmatprep.mubr.bf16.mxu0 %v1829_v3  ;;  %1116 = vmatprep.mubr.bf16.mxu1 %v1833_v4  ;;  %v1550_v8 = vld [vmem:[%s1825_s27 + $0x200] ss:$16 sps:$4 sm:$0xff]  }
  0x1a   : > { %1043 = vmatprep.subr.bf16.mxu0 %v1545_v5  ;;  %1084 = vmatprep.subr.bf16.mxu1 %v1547_v6  ;;  %v1551_v9 = vld [vmem:[%s1825_s27 + $0x24] ss:$16 sps:$4 sm:$0xff]   ;;  %v1555_v11 = vld [vmem:[%s1825_s27 + $0x20] ss:$16 sps:$4 sm:$0xff]  }
  0x1b   : > { %1044 = vmatpush1.bf16.msra.mxu0 %v1549_v7  ;;  %1085 = vmatpush1.bf16.msra.mxu1 %v1550_v8  ;;  %v1553_v10 = vld [vmem:[%s1825_s27 + $0x224] ss:$16 sps:$4 sm:$0xff]   ;;  %v1556_v12 = vld [vmem:[%s1825_s27 + $0x220] ss:$16 sps:$4 sm:$0xff]  }
  0x1c   : > { %1045 = vmatprep.subr.bf16.mxu0 %v1551_v9  ;;  %1086 = vmatprep.subr.bf16.mxu1 %v1553_v10  ;;  %v1557_v13 = vld [vmem:[%s1825_s27 + $0x44] ss:$16 sps:$4 sm:$0xff]   ;;  %v1561_v15 = vld [vmem:[%s1825_s27 + $0x40] ss:$16 sps:$4 sm:$0xff]   ;;  %v1647_v9 = vld [vmem:[%s1825_s27 + $0xc] ss:$16 sps:$4 sm:$0xff]  }
  0x1d   : > { %v1559_v14 = vld [vmem:[%s1825_s27 + $0x244] ss:$16 sps:$4 sm:$0xff]   ;;  %v1562_v16 = vld [vmem:[%s1825_s27 + $0x240] ss:$16 sps:$4 sm:$0xff]   ;;  %v1650_v10 = vld [vmem:[%s1825_s27 + $0x20c] ss:$16 sps:$4 sm:$0xff]  }
  0x1e   : > { %v1563_v17 = vld [vmem:[%s1825_s27 + $0x64] ss:$16 sps:$4 sm:$0xff]   ;;  %v1567_v19 = vld [vmem:[%s1825_s27 + $0x60] ss:$16 sps:$4 sm:$0xff]  }
  0x1f   : > { %1046 = vmatpush1.bf16.msra.mxu0 %v1555_v11  ;;  %1087 = vmatpush1.bf16.msra.mxu1 %v1556_v12  ;;  %v1565_v18 = vld [vmem:[%s1825_s27 + $0x264] ss:$16 sps:$4 sm:$0xff]   ;;  %v1568_v20 = vld [vmem:[%s1825_s27 + $0x260] ss:$16 sps:$4 sm:$0xff]   ;;  %v1905_v11 = vcombine.low %v1818_v1, %v1818_v1  ;;  %v1909_v12 = vcombine.low %v1820_v2, %v1820_v2  ;;  %v1651_v1 = vld [vmem:[%s1825_s27 + $0x28] ss:$16 sps:$4 sm:$0xff]  }
  0x20   : > { %1047 = vmatprep.subr.bf16.mxu0 %v1557_v13  ;;  %1088 = vmatprep.subr.bf16.mxu1 %v1559_v14  ;;  %v1569_v21 = vld [vmem:[%s1825_s27 + $0x84] ss:$16 sps:$4 sm:$0xff]   ;;  %v1573_v23 = vld [vmem:[%s1825_s27 + $0x80] ss:$16 sps:$4 sm:$0xff]   ;;  %v1645_v13 = vld [vmem:[%s1825_s27 + $0x8] ss:$16 sps:$4 sm:$0xff]  }
  0x21   : > { %v1571_v22 = vld [vmem:[%s1825_s27 + $0x284] ss:$16 sps:$4 sm:$0xff]   ;;  %v1574_v24 = vld [vmem:[%s1825_s27 + $0x280] ss:$16 sps:$4 sm:$0xff]   ;;  %v1648_v14 = vld [vmem:[%s1825_s27 + $0x208] ss:$16 sps:$4 sm:$0xff]  }
  0x22   : > { %v1575_v25 = vld [vmem:[%s1825_s27 + $0xa4] ss:$16 sps:$4 sm:$0xff]   ;;  %v1579_v27 = vld [vmem:[%s1825_s27 + $0xa0] ss:$16 sps:$4 sm:$0xff]   ;;  %v1659_v2 = vld [vmem:[%s1825_s27 + $0x4c] ss:$16 sps:$4 sm:$0xff]  }
  0x23   : > { %1048 = vmatpush1.bf16.msra.mxu0 %v1561_v15  ;;  %1089 = vmatpush1.bf16.msra.mxu1 %v1562_v16  ;;  %v1577_v26 = vld [vmem:[%s1825_s27 + $0x2a4] ss:$16 sps:$4 sm:$0xff]   ;;  %v1580_v28 = vld [vmem:[%s1825_s27 + $0x2a0] ss:$16 sps:$4 sm:$0xff]   ;;  %v1653_v15 = vld [vmem:[%s1825_s27 + $0x2c] ss:$16 sps:$4 sm:$0xff]  }
  0x24   : > { %1049 = vmatprep.subr.bf16.mxu0 %v1563_v17  ;;  %1090 = vmatprep.subr.bf16.mxu1 %v1565_v18  ;;  %v1581_v29 = vld [vmem:[%s1825_s27 + $0xc4] ss:$16 sps:$4 sm:$0xff]   ;;  %v1585_v31 = vld [vmem:[%s1825_s27 + $0xc0] ss:$16 sps:$4 sm:$0xff]   ;;  %v1656_v16 = vld [vmem:[%s1825_s27 + $0x22c] ss:$16 sps:$4 sm:$0xff]  }
  0x25   : > { %v1583_v30 = vld [vmem:[%s1825_s27 + $0x2c4] ss:$16 sps:$4 sm:$0xff]   ;;  %v1586_v32 = vld [vmem:[%s1825_s27 + $0x2c0] ss:$16 sps:$4 sm:$0xff]   ;;  %v1654_v17 = vld [vmem:[%s1825_s27 + $0x228] ss:$16 sps:$4 sm:$0xff]  }
  0x26   : > { %v1587_v33 = vld [vmem:[%s1825_s27 + $0xe4] ss:$16 sps:$4 sm:$0xff]   ;;  %v1591_v35 = vld [vmem:[%s1825_s27 + $0xe0] ss:$16 sps:$4 sm:$0xff]   ;;  %v1662_v18 = vld [vmem:[%s1825_s27 + $0x24c] ss:$16 sps:$4 sm:$0xff]  }
  0x27   : > { %1050 = vmatpush1.bf16.msra.mxu0 %v1567_v19  ;;  %1091 = vmatpush1.bf16.msra.mxu1 %v1568_v20  ;;  %v1589_v34 = vld [vmem:[%s1825_s27 + $0x2e4] ss:$16 sps:$4 sm:$0xff]   ;;  %v1592_v36 = vld [vmem:[%s1825_s27 + $0x2e0] ss:$16 sps:$4 sm:$0xff]   ;;  %v1657_v19 = vld [vmem:[%s1825_s27 + $0x48] ss:$16 sps:$4 sm:$0xff]  }
  0x28   : > { %1051 = vmatprep.subr.bf16.mxu0 %v1569_v21  ;;  %1092 = vmatprep.subr.bf16.mxu1 %v1571_v22  ;;  %v1593_v37 = vld [vmem:[%s1825_s27 + $0x104] ss:$16 sps:$4 sm:$0xff]   ;;  %v1597_v39 = vld [vmem:[%s1825_s27 + $0x100] ss:$16 sps:$4 sm:$0xff]   ;;  %v1660_v20 = vld [vmem:[%s1825_s27 + $0x248] ss:$16 sps:$4 sm:$0xff]  }
  0x29   : > { %v1595_v38 = vld [vmem:[%s1825_s27 + $0x304] ss:$16 sps:$4 sm:$0xff]   ;;  %v1598_v40 = vld [vmem:[%s1825_s27 + $0x300] ss:$16 sps:$4 sm:$0xff]   ;;  %v1665_v21 = vld [vmem:[%s1825_s27 + $0x6c] ss:$16 sps:$4 sm:$0xff]  }
  0x2a   : > { %v1599_v41 = vld [vmem:[%s1825_s27 + $0x124] ss:$16 sps:$4 sm:$0xff]   ;;  %v1603_v43 = vld [vmem:[%s1825_s27 + $0x120] ss:$16 sps:$4 sm:$0xff]   ;;  %v1668_v22 = vld [vmem:[%s1825_s27 + $0x26c] ss:$16 sps:$4 sm:$0xff]  }
  0x2b   : > { %1052 = vmatpush1.bf16.msra.mxu0 %v1573_v23  ;;  %1093 = vmatpush1.bf16.msra.mxu1 %v1574_v24  ;;  %v1601_v42 = vld [vmem:[%s1825_s27 + $0x324] ss:$16 sps:$4 sm:$0xff]   ;;  %v1604_v44 = vld [vmem:[%s1825_s27 + $0x320] ss:$16 sps:$4 sm:$0xff]   ;;  %v1663_v23 = vld [vmem:[%s1825_s27 + $0x68] ss:$16 sps:$4 sm:$0xff]  }
  0x2c   : > { %1053 = vmatprep.subr.bf16.mxu0 %v1575_v25  ;;  %1094 = vmatprep.subr.bf16.mxu1 %v1577_v26  ;;  %v1605_v45 = vld [vmem:[%s1825_s27 + $0x144] ss:$16 sps:$4 sm:$0xff]   ;;  %v1609_v47 = vld [vmem:[%s1825_s27 + $0x140] ss:$16 sps:$4 sm:$0xff]   ;;  %v1666_v24 = vld [vmem:[%s1825_s27 + $0x268] ss:$16 sps:$4 sm:$0xff]  }
  0x2d   : > { %v1607_v46 = vld [vmem:[%s1825_s27 + $0x344] ss:$16 sps:$4 sm:$0xff]   ;;  %v1610_v48 = vld [vmem:[%s1825_s27 + $0x340] ss:$16 sps:$4 sm:$0xff]   ;;  %v1669_v25 = vld [vmem:[%s1825_s27 + $0x88] ss:$16 sps:$4 sm:$0xff]  }
  0x2e   : > { %v1611_v49 = vld [vmem:[%s1825_s27 + $0x164] ss:$16 sps:$4 sm:$0xff]   ;;  %v1615_v51 = vld [vmem:[%s1825_s27 + $0x160] ss:$16 sps:$4 sm:$0xff]   ;;  %v1672_v26 = vld [vmem:[%s1825_s27 + $0x288] ss:$16 sps:$4 sm:$0xff]  }
  0x2f   : > { %1054 = vmatpush1.bf16.msra.mxu0 %v1579_v27  ;;  %1095 = vmatpush1.bf16.msra.mxu1 %v1580_v28  ;;  %v1613_v50 = vld [vmem:[%s1825_s27 + $0x364] ss:$16 sps:$4 sm:$0xff]   ;;  %v1616_v52 = vld [vmem:[%s1825_s27 + $0x360] ss:$16 sps:$4 sm:$0xff]   ;;  %v1677_v27 = vld [vmem:[%s1825_s27 + $0xac] ss:$16 sps:$4 sm:$0xff]  }
  0x30   : > { %1055 = vmatprep.subr.bf16.mxu0 %v1581_v29  ;;  %1096 = vmatprep.subr.bf16.mxu1 %v1583_v30  ;;  %v1617_v53 = vld [vmem:[%s1825_s27 + $0x184] ss:$16 sps:$4 sm:$0xff]   ;;  %v1621_v55 = vld [vmem:[%s1825_s27 + $0x180] ss:$16 sps:$4 sm:$0xff]   ;;  %v1680_v28 = vld [vmem:[%s1825_s27 + $0x2ac] ss:$16 sps:$4 sm:$0xff]  }
  0x31   : > { %v1619_v54 = vld [vmem:[%s1825_s27 + $0x384] ss:$16 sps:$4 sm:$0xff]   ;;  %v1622_v56 = vld [vmem:[%s1825_s27 + $0x380] ss:$16 sps:$4 sm:$0xff]   ;;  %v1675_v29 = vld [vmem:[%s1825_s27 + $0xa8] ss:$16 sps:$4 sm:$0xff]  }
  0x32   : > { %v1623_v57 = vld [vmem:[%s1825_s27 + $0x1a4] ss:$16 sps:$4 sm:$0xff]   ;;  %v1627_v59 = vld [vmem:[%s1825_s27 + $0x1a0] ss:$16 sps:$4 sm:$0xff]   ;;  %v1678_v30 = vld [vmem:[%s1825_s27 + $0x2a8] ss:$16 sps:$4 sm:$0xff]  }
  0x33   : > { %1056 = vmatpush1.bf16.msra.mxu0 %v1585_v31  ;;  %1097 = vmatpush1.bf16.msra.mxu1 %v1586_v32  ;;  %v1625_v58 = vld [vmem:[%s1825_s27 + $0x3a4] ss:$16 sps:$4 sm:$0xff]   ;;  %v1628_v60 = vld [vmem:[%s1825_s27 + $0x3a0] ss:$16 sps:$4 sm:$0xff]   ;;  %v1683_v31 = vld [vmem:[%s1825_s27 + $0xcc] ss:$16 sps:$4 sm:$0xff]  }
  0x34   : > { %1057 = vmatprep.subr.bf16.mxu0 %v1587_v33  ;;  %1098 = vmatprep.subr.bf16.mxu1 %v1589_v34  ;;  %v1629_v61 = vld [vmem:[%s1825_s27 + $0x1c4] ss:$16 sps:$4 sm:$0xff]   ;;  %v1633_v63 = vld [vmem:[%s1825_s27 + $0x1c0] ss:$16 sps:$4 sm:$0xff]   ;;  %v1686_v32 = vld [vmem:[%s1825_s27 + $0x2cc] ss:$16 sps:$4 sm:$0xff]  }
  0x35   : > { %v1631_v62 = vld [vmem:[%s1825_s27 + $0x3c4] ss:$16 sps:$4 sm:$0xff]   ;;  %v1634_v0 = vld [vmem:[%s1825_s27 + $0x3c0] ss:$16 sps:$4 sm:$0xff]   ;;  %v1681_v33 = vld [vmem:[%s1825_s27 + $0xc8] ss:$16 sps:$4 sm:$0xff]  }
  0x36   : > { %v1635_v5 = vld [vmem:[%s1825_s27 + $0x1e4] ss:$16 sps:$4 sm:$0xff]   ;;  %v1639_v7 = vld [vmem:[%s1825_s27 + $0x1e0] ss:$16 sps:$4 sm:$0xff]   ;;  %v1684_v34 = vld [vmem:[%s1825_s27 + $0x2c8] ss:$16 sps:$4 sm:$0xff]  }
  0x37   : > { %1058 = vmatpush1.bf16.msra.mxu0 %v1591_v35  ;;  %1099 = vmatpush1.bf16.msra.mxu1 %v1592_v36  ;;  %v1637_v6 = vld [vmem:[%s1825_s27 + $0x3e4] ss:$16 sps:$4 sm:$0xff]   ;;  %v1640_v8 = vld [vmem:[%s1825_s27 + $0x3e0] ss:$16 sps:$4 sm:$0xff]   ;;  %v1689_v35 = vld [vmem:[%s1825_s27 + $0xec] ss:$16 sps:$4 sm:$0xff]  }
  0x38   : > { %1059 = vmatprep.subr.bf16.mxu0 %v1593_v37  ;;  %1100 = vmatprep.subr.bf16.mxu1 %v1595_v38  ;;  %v1692_v36 = vld [vmem:[%s1825_s27 + $0x2ec] ss:$16 sps:$4 sm:$0xff]   ;;  %v1687_v37 = vld [vmem:[%s1825_s27 + $0xe8] ss:$16 sps:$4 sm:$0xff]  }
  0x39   : > { %v1690_v38 = vld [vmem:[%s1825_s27 + $0x2e8] ss:$16 sps:$4 sm:$0xff]  }
  0x3b   : > { %1060 = vmatpush1.bf16.msra.mxu0 %v1597_v39  ;;  %1101 = vmatpush1.bf16.msra.mxu1 %v1598_v40  ;;  %v1695_v39 = vld [vmem:[%s1825_s27 + $0x10c] ss:$16 sps:$4 sm:$0xff]  }
  0x3c   : > { %1061 = vmatprep.subr.bf16.mxu0 %v1599_v41  ;;  %1102 = vmatprep.subr.bf16.mxu1 %v1601_v42  ;;  %v1698_v40 = vld [vmem:[%s1825_s27 + $0x30c] ss:$16 sps:$4 sm:$0xff]   ;;  %v1693_v41 = vld [vmem:[%s1825_s27 + $0x108] ss:$16 sps:$4 sm:$0xff]  }
  0x3d   : > { %v1696_v42 = vld [vmem:[%s1825_s27 + $0x308] ss:$16 sps:$4 sm:$0xff]  }
  0x3f   : > { %1062 = vmatpush1.bf16.msra.mxu0 %v1603_v43  ;;  %1103 = vmatpush1.bf16.msra.mxu1 %v1604_v44  ;;  %v1701_v43 = vld [vmem:[%s1825_s27 + $0x12c] ss:$16 sps:$4 sm:$0xff]  }
  0x40   : > { %1063 = vmatprep.subr.bf16.mxu0 %v1605_v45  ;;  %1104 = vmatprep.subr.bf16.mxu1 %v1607_v46  ;;  %v1704_v44 = vld [vmem:[%s1825_s27 + $0x32c] ss:$16 sps:$4 sm:$0xff]   ;;  %v1699_v45 = vld [vmem:[%s1825_s27 + $0x128] ss:$16 sps:$4 sm:$0xff]  }
  0x41   : > { %v1702_v46 = vld [vmem:[%s1825_s27 + $0x328] ss:$16 sps:$4 sm:$0xff]  }
  0x43   : > { %1064 = vmatpush1.bf16.msra.mxu0 %v1609_v47  ;;  %1105 = vmatpush1.bf16.msra.mxu1 %v1610_v48  ;;  %v1707_v47 = vld [vmem:[%s1825_s27 + $0x14c] ss:$16 sps:$4 sm:$0xff]  }
  0x44   : > { %1065 = vmatprep.subr.bf16.mxu0 %v1611_v49  ;;  %1106 = vmatprep.subr.bf16.mxu1 %v1613_v50  ;;  %v1710_v48 = vld [vmem:[%s1825_s27 + $0x34c] ss:$16 sps:$4 sm:$0xff]   ;;  %v1705_v49 = vld [vmem:[%s1825_s27 + $0x148] ss:$16 sps:$4 sm:$0xff]  }
  0x45   : > { %v1708_v50 = vld [vmem:[%s1825_s27 + $0x348] ss:$16 sps:$4 sm:$0xff]  }
  0x47   : > { %1066 = vmatpush1.bf16.msra.mxu0 %v1615_v51  ;;  %1107 = vmatpush1.bf16.msra.mxu1 %v1616_v52  ;;  %v1713_v51 = vld [vmem:[%s1825_s27 + $0x16c] ss:$16 sps:$4 sm:$0xff]  }
  0x48   : > { %1067 = vmatprep.subr.bf16.mxu0 %v1617_v53  ;;  %1108 = vmatprep.subr.bf16.mxu1 %v1619_v54  ;;  %v1716_v52 = vld [vmem:[%s1825_s27 + $0x36c] ss:$16 sps:$4 sm:$0xff]   ;;  %v1711_v53 = vld [vmem:[%s1825_s27 + $0x168] ss:$16 sps:$4 sm:$0xff]  }
  0x49   : > { %v1714_v54 = vld [vmem:[%s1825_s27 + $0x368] ss:$16 sps:$4 sm:$0xff]  }
  0x4b   : > { %1068 = vmatpush1.bf16.msra.mxu0 %v1621_v55  ;;  %1109 = vmatpush1.bf16.msra.mxu1 %v1622_v56  ;;  %v1719_v55 = vld [vmem:[%s1825_s27 + $0x18c] ss:$16 sps:$4 sm:$0xff]  }
  0x4c   : > { %1069 = vmatprep.subr.bf16.mxu0 %v1623_v57  ;;  %1110 = vmatprep.subr.bf16.mxu1 %v1625_v58  ;;  %v1722_v56 = vld [vmem:[%s1825_s27 + $0x38c] ss:$16 sps:$4 sm:$0xff]   ;;  %v1717_v57 = vld [vmem:[%s1825_s27 + $0x188] ss:$16 sps:$4 sm:$0xff]  }
  0x4d   : > { %v1720_v58 = vld [vmem:[%s1825_s27 + $0x388] ss:$16 sps:$4 sm:$0xff]  }
  0x4f   : > { %1070 = vmatpush1.bf16.msra.mxu0 %v1627_v59  ;;  %1111 = vmatpush1.bf16.msra.mxu1 %v1628_v60  ;;  %v1725_v59 = vld [vmem:[%s1825_s27 + $0x1ac] ss:$16 sps:$4 sm:$0xff]  }
  0x50   : > { %1071 = vmatprep.subr.bf16.mxu0 %v1629_v61  ;;  %1112 = vmatprep.subr.bf16.mxu1 %v1631_v62  ;;  %v1728_v60 = vld [vmem:[%s1825_s27 + $0x3ac] ss:$16 sps:$4 sm:$0xff]   ;;  %v1723_v61 = vld [vmem:[%s1825_s27 + $0x1a8] ss:$16 sps:$4 sm:$0xff]  }
  0x51   : > { %v1726_v62 = vld [vmem:[%s1825_s27 + $0x3a8] ss:$16 sps:$4 sm:$0xff]  }
  0x53   : > { %1072 = vmatpush1.bf16.msra.mxu0 %v1633_v63  ;;  %1113 = vmatpush1.bf16.msra.mxu1 %v1634_v0  ;;  %v1731_v63 = vld [vmem:[%s1825_s27 + $0x1cc] ss:$16 sps:$4 sm:$0xff]  }
  0x54   : > { %1073 = vmatprep.subr.bf16.mxu0 %v1635_v5  ;;  %1114 = vmatprep.subr.bf16.mxu1 %v1637_v6  ;;  %v1734_v0 = vld [vmem:[%s1825_s27 + $0x3cc] ss:$16 sps:$4 sm:$0xff]   ;;  %v1729_v5 = vld [vmem:[%s1825_s27 + $0x1c8] ss:$16 sps:$4 sm:$0xff]  }
  0x55   : > { %v1732_v6 = vld [vmem:[%s1825_s27 + $0x3c8] ss:$16 sps:$4 sm:$0xff]  }
  0x57   : > { %1074 = vmatpush1.bf16.msra.mxu0 %v1639_v7  ;;  %1115 = vmatpush1.bf16.msra.mxu1 %v1640_v8  ;;  %v1737_v7 = vld [vmem:[%s1825_s27 + $0x1ec] ss:$16 sps:$4 sm:$0xff]  }
  0x58   : > { %1125 = vmatprep.subr.bf16.mxu0 %v1647_v9  ;;  %1166 = vmatprep.subr.bf16.mxu1 %v1650_v10  ;;  %v1740_v8 = vld [vmem:[%s1825_s27 + $0x3ec] ss:$16 sps:$4 sm:$0xff]   ;;  %v1735_v9 = vld [vmem:[%s1825_s27 + $0x1e8] ss:$16 sps:$4 sm:$0xff]  }
  0x59   : > { %v1738_v10 = vld [vmem:[%s1825_s27 + $0x3e8] ss:$16 sps:$4 sm:$0xff]  }
  0x5a   : > { %1076 = vmatmul.mubr.bf16.vlgmr.msra.gmra.mrb[0].mxu0 %v1905_v11  ;;  %1117 = vmatmul.mubr.bf16.vlgmr.msra.gmra.mrb[0].mxu1 %v1909_v12 }
  0x5b   : > { %1126 = vmatpush1.bf16.msra.mxu0 %v1645_v13  ;;  %1167 = vmatpush1.bf16.msra.mxu1 %v1648_v14  ;;  %v252_v14 = vld [vmem:[#allocation2] sm:$0xff] }
  0x5c   : > { %1127 = vmatprep.subr.bf16.mxu0 %v1653_v15  ;;  %1168 = vmatprep.subr.bf16.mxu1 %v1656_v16 }
  0x5d   : > { %1157 = vmatprep.mubr.bf16.mxu0 %v1829_v3  ;;  %1198 = vmatprep.mubr.bf16.mxu1 %v1833_v4  ;;  %v1671_v3 = vld [vmem:[%s1825_s27 + $0x8c] ss:$16 sps:$4 sm:$0xff]  }
  0x5e   : > { %v1674_v4 = vld [vmem:[%s1825_s27 + $0x28c] ss:$16 sps:$4 sm:$0xff]  }
  0x5f   : > { %1128 = vmatpush1.bf16.msra.mxu0 %v1651_v1  ;;  %1169 = vmatpush1.bf16.msra.mxu1 %v1654_v17  ;;  %v253_v17 = vld [vmem:[#allocation2 + $0x8] sm:$0xff] }
  0x60   : > { %1129 = vmatprep.subr.bf16.mxu0 %v1659_v2  ;;  %1170 = vmatprep.subr.bf16.mxu1 %v1662_v18 }
  0x63   : > { %1130 = vmatpush1.bf16.msra.mxu0 %v1657_v19  ;;  %1171 = vmatpush1.bf16.msra.mxu1 %v1660_v20 }
  0x64   : > { %1131 = vmatprep.subr.bf16.mxu0 %v1665_v21  ;;  %1172 = vmatprep.subr.bf16.mxu1 %v1668_v22 }
  0x67   : > { %1132 = vmatpush1.bf16.msra.mxu0 %v1663_v23  ;;  %1173 = vmatpush1.bf16.msra.mxu1 %v1666_v24 }
  0x68   : > { %1133 = vmatprep.subr.bf16.mxu0 %v1671_v3  ;;  %1174 = vmatprep.subr.bf16.mxu1 %v1674_v4 }
  0x6b   : > { %1134 = vmatpush1.bf16.msra.mxu0 %v1669_v25  ;;  %1175 = vmatpush1.bf16.msra.mxu1 %v1672_v26  ;;  %v255_v26 = vld [vmem:[#allocation2 + $0x18] sm:$0xff] }
  0x6c   : > { %1135 = vmatprep.subr.bf16.mxu0 %v1677_v27  ;;  %1176 = vmatprep.subr.bf16.mxu1 %v1680_v28 }
  0x6f   : > { %1136 = vmatpush1.bf16.msra.mxu0 %v1675_v29  ;;  %1177 = vmatpush1.bf16.msra.mxu1 %v1678_v30 }
  0x70   : > { %1137 = vmatprep.subr.bf16.mxu0 %v1683_v31  ;;  %1178 = vmatprep.subr.bf16.mxu1 %v1686_v32 }
  0x73   : > { %1138 = vmatpush1.bf16.msra.mxu0 %v1681_v33  ;;  %1179 = vmatpush1.bf16.msra.mxu1 %v1684_v34 }
  0x74   : > { %1139 = vmatprep.subr.bf16.mxu0 %v1689_v35  ;;  %1180 = vmatprep.subr.bf16.mxu1 %v1692_v36  ;;  %v1225_v35 = vlaneseq (!%p1510_p6) }
  0x76   : > { %v1226_v36 = vshrl.u32 (!%p1510_p6), %v1225_v35, 7 }
  0x77   : > { %1140 = vmatpush1.bf16.msra.mxu0 %v1687_v37  ;;  %1181 = vmatpush1.bf16.msra.mxu1 %v1690_v38  ;;  %v1249_v37 = vld [vmem:[%s2007_s3] sm:$0xff] (!%p1510_p6)  ;;  %v1250_v38 = vld [vmem:[%s2007_s3 + $0x8] sm:$0xff] (!%p1510_p6) }
  0x78   : > { %1141 = vmatprep.subr.bf16.mxu0 %v1695_v39  ;;  %1182 = vmatprep.subr.bf16.mxu1 %v1698_v40  ;;  %v1223_v39 = vld [vmem:[%s2006_s2] sm:$0xf] (!%p1510_p6) }
  0x7b   : > { %1142 = vmatpush1.bf16.msra.mxu0 %v1693_v41  ;;  %1183 = vmatpush1.bf16.msra.mxu1 %v1696_v42  ;;  %v1227_v41 = vsub.s32 (!%p1510_p6), 0, %v1226_v36  ;;  %v1231_v42 = vsub.s32 (!%p1510_p6), 1, %v1226_v36 }
  0x7c   : > { %1143 = vmatprep.subr.bf16.mxu0 %v1701_v43  ;;  %1184 = vmatprep.subr.bf16.mxu1 %v1704_v44  ;;  %v1235_v43 = vsub.s32 (!%p1510_p6), 2, %v1226_v36  ;;  %v1239_v44 = vsub.s32 (!%p1510_p6), 3, %v1226_v36 }
  0x7f   : > { %1144 = vmatpush1.bf16.msra.mxu0 %v1699_v45  ;;  %1185 = vmatpush1.bf16.msra.mxu1 %v1702_v46  ;;  %v1251_v46 = vunpack.c.l.bf16 (!%p1510_p6), %v1249_v37 }
  0x80   : > { %1145 = vmatprep.subr.bf16.mxu0 %v1707_v47  ;;  %1186 = vmatprep.subr.bf16.mxu1 %v1710_v48  ;;  %v1252_v47 = vunpack.c.h.bf16 (!%p1510_p6), %v1249_v37 }
  0x83   : > { %1146 = vmatpush1.bf16.msra.mxu0 %v1705_v49  ;;  %1187 = vmatpush1.bf16.msra.mxu1 %v1708_v50  ;;  %v1253_v50 = vunpack.c.l.bf16 (!%p1510_p6), %v1250_v38 }
  0x84   : > { %1147 = vmatprep.subr.bf16.mxu0 %v1713_v51  ;;  %1188 = vmatprep.subr.bf16.mxu1 %v1716_v52  ;;  %v1254_v51 = vunpack.c.h.bf16 (!%p1510_p6), %v1250_v38  ;;  %v1228_v52 = vrot.slane (!%p1510_p6), %v1223_v39, %v1227_v41 }
  0x87   : > { %1148 = vmatpush1.bf16.msra.mxu0 %v1711_v53  ;;  %1189 = vmatpush1.bf16.msra.mxu1 %v1714_v54  ;;  %v1232_v53 = vrot.slane (!%p1510_p6), %v1223_v39, %v1231_v42  ;;  %v1236_v54 = vrot.slane (!%p1510_p6), %v1223_v39, %v1235_v43 }
  0x88   : > { %1149 = vmatprep.subr.bf16.mxu0 %v1719_v55  ;;  %1190 = vmatprep.subr.bf16.mxu1 %v1722_v56  ;;  %v1240_v55 = vrot.slane (!%p1510_p6), %v1223_v39, %v1239_v44 }
  0x8b   : > { %1150 = vmatpush1.bf16.msra.mxu0 %v1717_v57  ;;  %1191 = vmatpush1.bf16.msra.mxu1 %v1720_v58 }
  0x8c   : > { %1151 = vmatprep.subr.bf16.mxu0 %v1725_v59  ;;  %1192 = vmatprep.subr.bf16.mxu1 %v1728_v60 }
  0x8f   : > { %1152 = vmatpush1.bf16.msra.mxu0 %v1723_v61  ;;  %1193 = vmatpush1.bf16.msra.mxu1 %v1726_v62 }
  0x90   : > { %1153 = vmatprep.subr.bf16.mxu0 %v1731_v63  ;;  %1194 = vmatprep.subr.bf16.mxu1 %v1734_v0 }
  0x93   : > { %1154 = vmatpush1.bf16.msra.mxu0 %v1729_v5  ;;  %1195 = vmatpush1.bf16.msra.mxu1 %v1732_v6 }
  0x94   : > { %1155 = vmatprep.subr.bf16.mxu0 %v1737_v7  ;;  %1196 = vmatprep.subr.bf16.mxu1 %v1740_v8 }
  0x97   : > { %1156 = vmatpush1.bf16.msra.mxu0 %v1735_v9  ;;  %1197 = vmatpush1.bf16.msra.mxu1 %v1738_v10 }
  0x9a   : > { %1158 = vmatmul.mubr.bf16.vlgmr.msra.gmra.mrb[4].mxu0 %v1905_v11  ;;  %1199 = vmatmul.mubr.bf16.vlgmr.msra.gmra.mrb[4].mxu1 %v1909_v12  ;;  %v254_v11 = vld [vmem:[#allocation2 + $0x10] sm:$0xff] }
 0x12d   : > { %v1077_v13 = vpop.f32.mrb[0].mxu0  ;;  %v1118_v15 = vpop.f32.mrb[0].mxu1 }
 0x12e   : > { %v1119_v16 = vadd.f32 %v1118_v15, %v1077_v13  ;;  %v1079_v1 = vpop.f32.mrb[1].mxu0  ;;  %v1120_v2 = vpop.f32.mrb[1].mxu1 }
 0x12f   : > { %v1121_v18 = vadd.f32 %v1120_v2, %v1079_v1  ;;  %v1081_v19 = vpop.f32.mrb[2].mxu0  ;;  %v1122_v20 = vpop.f32.mrb[2].mxu1 }
 0x130   : > { %v1207_v21 = vadd.f32 %v1119_v16, %v252_v14  ;;  %v1082_v22 = vpop.f32.mrb[3].mxu0  ;;  %v1123_v23 = vpop.f32.mrb[3].mxu1 }
 0x131   : > { %v1208_v24 = vadd.f32 %v1121_v18, %v253_v17 }
 0x132   : > { %1211 = vst [vmem:[#allocation2] sm:$0xff] %v1207_v21 }
 0x133   : > { %1212 = vst [vmem:[#allocation2 + $0x8] sm:$0xff] %v1208_v24 }
 0x139   : > { %v1219_v40 = vld [vmem:[#allocation2] sm:$0xff] (!%p1510_p6) }
 0x13a   : > { %v1220_v45 = vld [vmem:[#allocation2 + $0x8] sm:$0xff] (!%p1510_p6)  ;;  %v1245_v56 = vadd.f32 (!%p1510_p6), %v1228_v52, %v1219_v40 }
 0x13b   : > { %v1246_v57 = vadd.f32 (!%p1510_p6), %v1232_v53, %v1220_v45 }
 0x13c   : > { %v1255_v60 = vadd.f32 (!%p1510_p6), %v1251_v46, %v1245_v56 }
 0x13d   : > { %v1256_v61 = vadd.f32 (!%p1510_p6), %v1252_v47, %v1246_v57 }
 0x13e   : > { %v1259_v0 = vmax.f32 (!%p1510_p6), %v1255_v60, 0.0 }
 0x13f   : > { %v1260_v5 = vmax.f32 (!%p1510_p6), %v1256_v61, 0.0 }
 0x141   : > { %v1518_v8 = vpack.c.bf16 (!%p1510_p6), %v1260_v5, %v1259_v0 }
 0x143   : > { %1279 = vst [vmem:[%s2008_s4] sm:$0xff] (!%p1510_p6), %v1518_v8 }
 0x16d   : > { %v1159_v3 = vpop.f32.mrb[4].mxu0  ;;  %v1200_v4 = vpop.f32.mrb[4].mxu1  ;;  %1218 = sbr.rel (%p1510_p6) target bundleno = 388 (0x184), region = 44 }
 0x16e   : > { %v1201_v12 = vadd.f32 %v1200_v4, %v1159_v3  ;;  %v1161_v25 = vpop.f32.mrb[5].mxu0  ;;  %v1202_v27 = vpop.f32.mrb[5].mxu1 }
 0x16f   : > { %v1203_v28 = vadd.f32 %v1202_v27, %v1161_v25  ;;  %v1163_v29 = vpop.f32.mrb[6].mxu0  ;;  %v1204_v30 = vpop.f32.mrb[6].mxu1 }
 0x170   : > { %v1209_v31 = vadd.f32 %v1201_v12, %v254_v11  ;;  %v1164_v32 = vpop.f32.mrb[7].mxu0  ;;  %v1205_v33 = vpop.f32.mrb[7].mxu1 }
 0x171   : > { %v1210_v34 = vadd.f32 %v1203_v28, %v255_v26 }
 0x172   : > { %1213 = vst [vmem:[#allocation2 + $0x10] sm:$0xff] %v1209_v31 }
 0x173   : > { %1214 = vst [vmem:[#allocation2 + $0x18] sm:$0xff] %v1210_v34 }
 0x179   : > { %v1221_v48 = vld [vmem:[#allocation2 + $0x10] sm:$0xff] }
 0x17a   : > { %v1222_v49 = vld [vmem:[#allocation2 + $0x18] sm:$0xff]  ;;  %v1247_v58 = vadd.f32 %v1236_v54, %v1221_v48 }
 0x17b   : > { %v1248_v59 = vadd.f32 %v1240_v55, %v1222_v49 }
 0x17c   : > { %v1257_v62 = vadd.f32 %v1253_v50, %v1247_v58 }
 0x17d   : > { %v1258_v63 = vadd.f32 %v1254_v51, %v1248_v59 }
 0x17e   : > { %v1261_v6 = vmax.f32 %v1257_v62, 0.0 }
 0x17f   : > { %v1262_v7 = vmax.f32 %v1258_v63, 0.0 }
 0x181   : > { %v1519_v9 = vpack.c.bf16 %v1262_v7, %v1261_v6 }
 0x183   : > { %1280 = vst [vmem:[%s2008_s4 + $0x8] sm:$0xff] %v1519_v9 }
 0x184 PF: > { %s14_s17 = sadd.s32 1, %s1763_s17   ;;  %s2009_s15 = smov %s1759_s16 }
 0x185   : > { %p11_p7 = scmp.ge.s32.totalorder %s14_s17, 11   ;;  %s2010_s16 = smov %s2012_s18 }
 0x187   :  { %13 = sbr.rel (!%p11_p7) target bundleno = 2 (0x2), region = 78 }

// kernel: resnet18_forward.42
= control target key start
LH: loop header
LB: loop body
LE: loop exit
PB: predicated region body
PF: predicated region fallthrough
CT: control target
= control target key end

     0   :  { %s1713_s12 = smov 0   ;;  %s1715_s13 = smov 0   ;;  %s1920_s0 = inlined_call_operand.vmem [shape: bf16[9,8,512], index: 0, kind: input, shape index: {}]   ;;  %s1921_s1 = inlined_call_operand.vmem [shape: bf16[9,512,512], index: 1, kind: input, shape index: {}]   ;;  %s1922_s2 = inlined_call_operand.vmem [shape: f32[1,512], index: 2, kind: input, shape index: {}]   ;;  %s1923_s3 = inlined_call_operand.vmem [shape: bf16[8,512], index: 3, kind: output, shape index: {}]  }
   0x1   :  { %s1717_s14 = smov 0  }
   0x2 LB: > { %s22_s15 = sadd.s32 1, %s1686_s13  ;;  %p1299_p0 = scmp.ge.s32.totalorder %s1690_s14, 1  ;;  %s1690_s14 = sphi %s1717_s14, %s13_s14   ;;  %s1686_s13 = sphi %s1715_s13, %s1925_s13   ;;  %s1682_s12 = sphi %s1713_s12, %s1924_s12  }
   0x3   : > { %p23_p1 = scmp.ge.s32.totalorder %s22_s15, 9  ;;  %p155_p2 = scmp.lt.s32.totalorder %s1690_s14, 10 }
   0x5   : > { %s1927_s15 = smov (%p23_p1, %s22_s15), 0  ;;  %p156_p3 = pnand %p1299_p0, %p155_p2 }
   0x6   : > { %p183_p4 = scmp.lt.s32.totalorder (!%p156_p3), %s1682_s12, 8  ;;  %p1302_p5 = scmp.ne.s32.totalorder (!%p156_p3), %s1682_s12, 0 }
   0x7   : > { %159 = sbr.rel (%p156_p3) target bundleno = 386 (0x182), region = 32 }
   0xe   : > { %s184_s16 = scalar_select %p183_p4, %s1682_s12, 8 }
   0xf   : > { %200 = sbr.rel (%p1302_p5) target bundleno = 22 (0x16), region = 36  ;;  %v1692_v0 = vmov (!%p1302_p5), 0.0  }
  0x10   : > { %s1443_s17 = sshll.u32 %s184_s16, 4  ;;  %201 = vst [vmem:[#allocation2] sm:$0xff] (!%p1302_p5), %v1692_v0  ;;  %202 = vst [vmem:[#allocation2 + $0x8] sm:$0xff] (!%p1302_p5), %v1692_v0 }
  0x11   : > { %s191_s20 = scalar_lea.vmem %s1920_s0, %s1443_s17  ;;  %203 = vst [vmem:[#allocation2 + $0x10] sm:$0xff] (!%p1302_p5), %v1692_v0  ;;  %204 = vst [vmem:[#allocation2 + $0x18] sm:$0xff] (!%p1302_p5), %v1692_v0 }
  0x16 PF: > { %s1444_s21 = sshll.u32 %s1682_s12, 10  ;;  %v1740_v1 = vld [vmem:[%s191_s20] sm:$0xff]  ;;  %v1742_v2 = vld [vmem:[%s191_s20 + $0x8] sm:$0xff]  ;;  %p1437_p6 = scmp.ne.s32.totalorder %s1682_s12, 8 }
  0x17   : > { %s1747_s24 = scalar_lea.vmem %s1921_s1, %s1444_s21  ;;  %v1751_v3 = vcombine.high %v1740_v1, %v1740_v1  ;;  %v1755_v4 = vcombine.high %v1742_v2, %v1742_v2 }
  0x18   : > { %v1472_v5 = vld [vmem:[%s1747_s24 + $0x4] ss:$16 sps:$4 sm:$0xff]   ;;  %v1476_v7 = vld [vmem:[%s1747_s24] ss:$16 sps:$4 sm:$0xff]  }
  0x19   : > { %v1474_v6 = vld [vmem:[%s1747_s24 + $0x204] ss:$16 sps:$4 sm:$0xff]   ;;  %1028 = vmatprep.mubr.bf16.mxu0 %v1751_v3  ;;  %1069 = vmatprep.mubr.bf16.mxu1 %v1755_v4  ;;  %v1477_v8 = vld [vmem:[%s1747_s24 + $0x200] ss:$16 sps:$4 sm:$0xff]  }
  0x1a   : > { %996 = vmatprep.subr.bf16.mxu0 %v1472_v5  ;;  %1037 = vmatprep.subr.bf16.mxu1 %v1474_v6  ;;  %v1478_v9 = vld [vmem:[%s1747_s24 + $0x24] ss:$16 sps:$4 sm:$0xff]   ;;  %v1482_v11 = vld [vmem:[%s1747_s24 + $0x20] ss:$16 sps:$4 sm:$0xff]  }
  0x1b   : > { %997 = vmatpush1.bf16.msra.mxu0 %v1476_v7  ;;  %1038 = vmatpush1.bf16.msra.mxu1 %v1477_v8  ;;  %v1480_v10 = vld [vmem:[%s1747_s24 + $0x224] ss:$16 sps:$4 sm:$0xff]   ;;  %v1483_v12 = vld [vmem:[%s1747_s24 + $0x220] ss:$16 sps:$4 sm:$0xff]  }
  0x1c   : > { %998 = vmatprep.subr.bf16.mxu0 %v1478_v9  ;;  %1039 = vmatprep.subr.bf16.mxu1 %v1480_v10  ;;  %v1484_v13 = vld [vmem:[%s1747_s24 + $0x44] ss:$16 sps:$4 sm:$0xff]   ;;  %v1488_v15 = vld [vmem:[%s1747_s24 + $0x40] ss:$16 sps:$4 sm:$0xff]   ;;  %v1574_v9 = vld [vmem:[%s1747_s24 + $0xc] ss:$16 sps:$4 sm:$0xff]  }
  0x1d   : > { %v1486_v14 = vld [vmem:[%s1747_s24 + $0x244] ss:$16 sps:$4 sm:$0xff]   ;;  %v1489_v16 = vld [vmem:[%s1747_s24 + $0x240] ss:$16 sps:$4 sm:$0xff]   ;;  %v1577_v10 = vld [vmem:[%s1747_s24 + $0x20c] ss:$16 sps:$4 sm:$0xff]  }
  0x1e   : > { %v1490_v17 = vld [vmem:[%s1747_s24 + $0x64] ss:$16 sps:$4 sm:$0xff]   ;;  %v1494_v19 = vld [vmem:[%s1747_s24 + $0x60] ss:$16 sps:$4 sm:$0xff]  }
  0x1f   : > { %999 = vmatpush1.bf16.msra.mxu0 %v1482_v11  ;;  %1040 = vmatpush1.bf16.msra.mxu1 %v1483_v12  ;;  %v1492_v18 = vld [vmem:[%s1747_s24 + $0x264] ss:$16 sps:$4 sm:$0xff]   ;;  %v1495_v20 = vld [vmem:[%s1747_s24 + $0x260] ss:$16 sps:$4 sm:$0xff]   ;;  %v1827_v11 = vcombine.low %v1740_v1, %v1740_v1  ;;  %v1831_v12 = vcombine.low %v1742_v2, %v1742_v2  ;;  %v1578_v1 = vld [vmem:[%s1747_s24 + $0x28] ss:$16 sps:$4 sm:$0xff]  }
  0x20   : > { %1000 = vmatprep.subr.bf16.mxu0 %v1484_v13  ;;  %1041 = vmatprep.subr.bf16.mxu1 %v1486_v14  ;;  %v1496_v21 = vld [vmem:[%s1747_s24 + $0x84] ss:$16 sps:$4 sm:$0xff]   ;;  %v1500_v23 = vld [vmem:[%s1747_s24 + $0x80] ss:$16 sps:$4 sm:$0xff]   ;;  %v1572_v13 = vld [vmem:[%s1747_s24 + $0x8] ss:$16 sps:$4 sm:$0xff]  }
  0x21   : > { %v1498_v22 = vld [vmem:[%s1747_s24 + $0x284] ss:$16 sps:$4 sm:$0xff]   ;;  %v1501_v24 = vld [vmem:[%s1747_s24 + $0x280] ss:$16 sps:$4 sm:$0xff]   ;;  %v1575_v14 = vld [vmem:[%s1747_s24 + $0x208] ss:$16 sps:$4 sm:$0xff]  }
  0x22   : > { %v1502_v25 = vld [vmem:[%s1747_s24 + $0xa4] ss:$16 sps:$4 sm:$0xff]   ;;  %v1506_v27 = vld [vmem:[%s1747_s24 + $0xa0] ss:$16 sps:$4 sm:$0xff]   ;;  %v1586_v2 = vld [vmem:[%s1747_s24 + $0x4c] ss:$16 sps:$4 sm:$0xff]  }
  0x23   : > { %1001 = vmatpush1.bf16.msra.mxu0 %v1488_v15  ;;  %1042 = vmatpush1.bf16.msra.mxu1 %v1489_v16  ;;  %v1504_v26 = vld [vmem:[%s1747_s24 + $0x2a4] ss:$16 sps:$4 sm:$0xff]   ;;  %v1507_v28 = vld [vmem:[%s1747_s24 + $0x2a0] ss:$16 sps:$4 sm:$0xff]   ;;  %v1580_v15 = vld [vmem:[%s1747_s24 + $0x2c] ss:$16 sps:$4 sm:$0xff]  }
  0x24   : > { %1002 = vmatprep.subr.bf16.mxu0 %v1490_v17  ;;  %1043 = vmatprep.subr.bf16.mxu1 %v1492_v18  ;;  %v1508_v29 = vld [vmem:[%s1747_s24 + $0xc4] ss:$16 sps:$4 sm:$0xff]   ;;  %v1512_v31 = vld [vmem:[%s1747_s24 + $0xc0] ss:$16 sps:$4 sm:$0xff]   ;;  %v1583_v16 = vld [vmem:[%s1747_s24 + $0x22c] ss:$16 sps:$4 sm:$0xff]  }
  0x25   : > { %v1510_v30 = vld [vmem:[%s1747_s24 + $0x2c4] ss:$16 sps:$4 sm:$0xff]   ;;  %v1513_v32 = vld [vmem:[%s1747_s24 + $0x2c0] ss:$16 sps:$4 sm:$0xff]   ;;  %v1581_v17 = vld [vmem:[%s1747_s24 + $0x228] ss:$16 sps:$4 sm:$0xff]  }
  0x26   : > { %v1514_v33 = vld [vmem:[%s1747_s24 + $0xe4] ss:$16 sps:$4 sm:$0xff]   ;;  %v1518_v35 = vld [vmem:[%s1747_s24 + $0xe0] ss:$16 sps:$4 sm:$0xff]   ;;  %v1589_v18 = vld [vmem:[%s1747_s24 + $0x24c] ss:$16 sps:$4 sm:$0xff]  }
  0x27   : > { %1003 = vmatpush1.bf16.msra.mxu0 %v1494_v19  ;;  %1044 = vmatpush1.bf16.msra.mxu1 %v1495_v20  ;;  %v1516_v34 = vld [vmem:[%s1747_s24 + $0x2e4] ss:$16 sps:$4 sm:$0xff]   ;;  %v1519_v36 = vld [vmem:[%s1747_s24 + $0x2e0] ss:$16 sps:$4 sm:$0xff]   ;;  %v1584_v19 = vld [vmem:[%s1747_s24 + $0x48] ss:$16 sps:$4 sm:$0xff]  }
  0x28   : > { %1004 = vmatprep.subr.bf16.mxu0 %v1496_v21  ;;  %1045 = vmatprep.subr.bf16.mxu1 %v1498_v22  ;;  %v1520_v37 = vld [vmem:[%s1747_s24 + $0x104] ss:$16 sps:$4 sm:$0xff]   ;;  %v1524_v39 = vld [vmem:[%s1747_s24 + $0x100] ss:$16 sps:$4 sm:$0xff]   ;;  %v1587_v20 = vld [vmem:[%s1747_s24 + $0x248] ss:$16 sps:$4 sm:$0xff]  }
  0x29   : > { %v1522_v38 = vld [vmem:[%s1747_s24 + $0x304] ss:$16 sps:$4 sm:$0xff]   ;;  %v1525_v40 = vld [vmem:[%s1747_s24 + $0x300] ss:$16 sps:$4 sm:$0xff]   ;;  %v1592_v21 = vld [vmem:[%s1747_s24 + $0x6c] ss:$16 sps:$4 sm:$0xff]  }
  0x2a   : > { %v1526_v41 = vld [vmem:[%s1747_s24 + $0x124] ss:$16 sps:$4 sm:$0xff]   ;;  %v1530_v43 = vld [vmem:[%s1747_s24 + $0x120] ss:$16 sps:$4 sm:$0xff]   ;;  %v1595_v22 = vld [vmem:[%s1747_s24 + $0x26c] ss:$16 sps:$4 sm:$0xff]  }
  0x2b   : > { %1005 = vmatpush1.bf16.msra.mxu0 %v1500_v23  ;;  %1046 = vmatpush1.bf16.msra.mxu1 %v1501_v24  ;;  %v1528_v42 = vld [vmem:[%s1747_s24 + $0x324] ss:$16 sps:$4 sm:$0xff]   ;;  %v1531_v44 = vld [vmem:[%s1747_s24 + $0x320] ss:$16 sps:$4 sm:$0xff]   ;;  %v1590_v23 = vld [vmem:[%s1747_s24 + $0x68] ss:$16 sps:$4 sm:$0xff]  }
  0x2c   : > { %1006 = vmatprep.subr.bf16.mxu0 %v1502_v25  ;;  %1047 = vmatprep.subr.bf16.mxu1 %v1504_v26  ;;  %v1532_v45 = vld [vmem:[%s1747_s24 + $0x144] ss:$16 sps:$4 sm:$0xff]   ;;  %v1536_v47 = vld [vmem:[%s1747_s24 + $0x140] ss:$16 sps:$4 sm:$0xff]   ;;  %v1593_v24 = vld [vmem:[%s1747_s24 + $0x268] ss:$16 sps:$4 sm:$0xff]  }
  0x2d   : > { %v1534_v46 = vld [vmem:[%s1747_s24 + $0x344] ss:$16 sps:$4 sm:$0xff]   ;;  %v1537_v48 = vld [vmem:[%s1747_s24 + $0x340] ss:$16 sps:$4 sm:$0xff]   ;;  %v1596_v25 = vld [vmem:[%s1747_s24 + $0x88] ss:$16 sps:$4 sm:$0xff]  }
  0x2e   : > { %v1538_v49 = vld [vmem:[%s1747_s24 + $0x164] ss:$16 sps:$4 sm:$0xff]   ;;  %v1542_v51 = vld [vmem:[%s1747_s24 + $0x160] ss:$16 sps:$4 sm:$0xff]   ;;  %v1599_v26 = vld [vmem:[%s1747_s24 + $0x288] ss:$16 sps:$4 sm:$0xff]  }
  0x2f   : > { %1007 = vmatpush1.bf16.msra.mxu0 %v1506_v27  ;;  %1048 = vmatpush1.bf16.msra.mxu1 %v1507_v28  ;;  %v1540_v50 = vld [vmem:[%s1747_s24 + $0x364] ss:$16 sps:$4 sm:$0xff]   ;;  %v1543_v52 = vld [vmem:[%s1747_s24 + $0x360] ss:$16 sps:$4 sm:$0xff]   ;;  %v1604_v27 = vld [vmem:[%s1747_s24 + $0xac] ss:$16 sps:$4 sm:$0xff]  }
  0x30   : > { %1008 = vmatprep.subr.bf16.mxu0 %v1508_v29  ;;  %1049 = vmatprep.subr.bf16.mxu1 %v1510_v30  ;;  %v1544_v53 = vld [vmem:[%s1747_s24 + $0x184] ss:$16 sps:$4 sm:$0xff]   ;;  %v1548_v55 = vld [vmem:[%s1747_s24 + $0x180] ss:$16 sps:$4 sm:$0xff]   ;;  %v1607_v28 = vld [vmem:[%s1747_s24 + $0x2ac] ss:$16 sps:$4 sm:$0xff]  }
  0x31   : > { %v1546_v54 = vld [vmem:[%s1747_s24 + $0x384] ss:$16 sps:$4 sm:$0xff]   ;;  %v1549_v56 = vld [vmem:[%s1747_s24 + $0x380] ss:$16 sps:$4 sm:$0xff]   ;;  %v1602_v29 = vld [vmem:[%s1747_s24 + $0xa8] ss:$16 sps:$4 sm:$0xff]  }
  0x32   : > { %v1550_v57 = vld [vmem:[%s1747_s24 + $0x1a4] ss:$16 sps:$4 sm:$0xff]   ;;  %v1554_v59 = vld [vmem:[%s1747_s24 + $0x1a0] ss:$16 sps:$4 sm:$0xff]   ;;  %v1605_v30 = vld [vmem:[%s1747_s24 + $0x2a8] ss:$16 sps:$4 sm:$0xff]  }
  0x33   : > { %1009 = vmatpush1.bf16.msra.mxu0 %v1512_v31  ;;  %1050 = vmatpush1.bf16.msra.mxu1 %v1513_v32  ;;  %v1552_v58 = vld [vmem:[%s1747_s24 + $0x3a4] ss:$16 sps:$4 sm:$0xff]   ;;  %v1555_v60 = vld [vmem:[%s1747_s24 + $0x3a0] ss:$16 sps:$4 sm:$0xff]   ;;  %v1610_v31 = vld [vmem:[%s1747_s24 + $0xcc] ss:$16 sps:$4 sm:$0xff]  }
  0x34   : > { %1010 = vmatprep.subr.bf16.mxu0 %v1514_v33  ;;  %1051 = vmatprep.subr.bf16.mxu1 %v1516_v34  ;;  %v1556_v61 = vld [vmem:[%s1747_s24 + $0x1c4] ss:$16 sps:$4 sm:$0xff]   ;;  %v1560_v63 = vld [vmem:[%s1747_s24 + $0x1c0] ss:$16 sps:$4 sm:$0xff]   ;;  %v1613_v32 = vld [vmem:[%s1747_s24 + $0x2cc] ss:$16 sps:$4 sm:$0xff]  }
  0x35   : > { %v1558_v62 = vld [vmem:[%s1747_s24 + $0x3c4] ss:$16 sps:$4 sm:$0xff]   ;;  %v1561_v0 = vld [vmem:[%s1747_s24 + $0x3c0] ss:$16 sps:$4 sm:$0xff]   ;;  %v1608_v33 = vld [vmem:[%s1747_s24 + $0xc8] ss:$16 sps:$4 sm:$0xff]  }
  0x36   : > { %v1562_v5 = vld [vmem:[%s1747_s24 + $0x1e4] ss:$16 sps:$4 sm:$0xff]   ;;  %v1566_v7 = vld [vmem:[%s1747_s24 + $0x1e0] ss:$16 sps:$4 sm:$0xff]   ;;  %v1611_v34 = vld [vmem:[%s1747_s24 + $0x2c8] ss:$16 sps:$4 sm:$0xff]  }
  0x37   : > { %1011 = vmatpush1.bf16.msra.mxu0 %v1518_v35  ;;  %1052 = vmatpush1.bf16.msra.mxu1 %v1519_v36  ;;  %v1564_v6 = vld [vmem:[%s1747_s24 + $0x3e4] ss:$16 sps:$4 sm:$0xff]   ;;  %v1567_v8 = vld [vmem:[%s1747_s24 + $0x3e0] ss:$16 sps:$4 sm:$0xff]   ;;  %v1616_v35 = vld [vmem:[%s1747_s24 + $0xec] ss:$16 sps:$4 sm:$0xff]  }
  0x38   : > { %1012 = vmatprep.subr.bf16.mxu0 %v1520_v37  ;;  %1053 = vmatprep.subr.bf16.mxu1 %v1522_v38  ;;  %v1619_v36 = vld [vmem:[%s1747_s24 + $0x2ec] ss:$16 sps:$4 sm:$0xff]   ;;  %v1614_v37 = vld [vmem:[%s1747_s24 + $0xe8] ss:$16 sps:$4 sm:$0xff]  }
  0x39   : > { %v1617_v38 = vld [vmem:[%s1747_s24 + $0x2e8] ss:$16 sps:$4 sm:$0xff]  }
  0x3b   : > { %1013 = vmatpush1.bf16.msra.mxu0 %v1524_v39  ;;  %1054 = vmatpush1.bf16.msra.mxu1 %v1525_v40  ;;  %v1622_v39 = vld [vmem:[%s1747_s24 + $0x10c] ss:$16 sps:$4 sm:$0xff]  }
  0x3c   : > { %1014 = vmatprep.subr.bf16.mxu0 %v1526_v41  ;;  %1055 = vmatprep.subr.bf16.mxu1 %v1528_v42  ;;  %v1625_v40 = vld [vmem:[%s1747_s24 + $0x30c] ss:$16 sps:$4 sm:$0xff]   ;;  %v1620_v41 = vld [vmem:[%s1747_s24 + $0x108] ss:$16 sps:$4 sm:$0xff]  }
  0x3d   : > { %v1623_v42 = vld [vmem:[%s1747_s24 + $0x308] ss:$16 sps:$4 sm:$0xff]  }
  0x3f   : > { %1015 = vmatpush1.bf16.msra.mxu0 %v1530_v43  ;;  %1056 = vmatpush1.bf16.msra.mxu1 %v1531_v44  ;;  %v1628_v43 = vld [vmem:[%s1747_s24 + $0x12c] ss:$16 sps:$4 sm:$0xff]  }
  0x40   : > { %1016 = vmatprep.subr.bf16.mxu0 %v1532_v45  ;;  %1057 = vmatprep.subr.bf16.mxu1 %v1534_v46  ;;  %v1631_v44 = vld [vmem:[%s1747_s24 + $0x32c] ss:$16 sps:$4 sm:$0xff]   ;;  %v1626_v45 = vld [vmem:[%s1747_s24 + $0x128] ss:$16 sps:$4 sm:$0xff]  }
  0x41   : > { %v1629_v46 = vld [vmem:[%s1747_s24 + $0x328] ss:$16 sps:$4 sm:$0xff]  }
  0x43   : > { %1017 = vmatpush1.bf16.msra.mxu0 %v1536_v47  ;;  %1058 = vmatpush1.bf16.msra.mxu1 %v1537_v48  ;;  %v1634_v47 = vld [vmem:[%s1747_s24 + $0x14c] ss:$16 sps:$4 sm:$0xff]  }
  0x44   : > { %1018 = vmatprep.subr.bf16.mxu0 %v1538_v49  ;;  %1059 = vmatprep.subr.bf16.mxu1 %v1540_v50  ;;  %v1637_v48 = vld [vmem:[%s1747_s24 + $0x34c] ss:$16 sps:$4 sm:$0xff]   ;;  %v1632_v49 = vld [vmem:[%s1747_s24 + $0x148] ss:$16 sps:$4 sm:$0xff]  }
  0x45   : > { %v1635_v50 = vld [vmem:[%s1747_s24 + $0x348] ss:$16 sps:$4 sm:$0xff]  }
  0x47   : > { %1019 = vmatpush1.bf16.msra.mxu0 %v1542_v51  ;;  %1060 = vmatpush1.bf16.msra.mxu1 %v1543_v52  ;;  %v1640_v51 = vld [vmem:[%s1747_s24 + $0x16c] ss:$16 sps:$4 sm:$0xff]  }
  0x48   : > { %1020 = vmatprep.subr.bf16.mxu0 %v1544_v53  ;;  %1061 = vmatprep.subr.bf16.mxu1 %v1546_v54  ;;  %v1643_v52 = vld [vmem:[%s1747_s24 + $0x36c] ss:$16 sps:$4 sm:$0xff]   ;;  %v1638_v53 = vld [vmem:[%s1747_s24 + $0x168] ss:$16 sps:$4 sm:$0xff]  }
  0x49   : > { %v1641_v54 = vld [vmem:[%s1747_s24 + $0x368] ss:$16 sps:$4 sm:$0xff]  }
  0x4b   : > { %1021 = vmatpush1.bf16.msra.mxu0 %v1548_v55  ;;  %1062 = vmatpush1.bf16.msra.mxu1 %v1549_v56  ;;  %v1646_v55 = vld [vmem:[%s1747_s24 + $0x18c] ss:$16 sps:$4 sm:$0xff]  }
  0x4c   : > { %1022 = vmatprep.subr.bf16.mxu0 %v1550_v57  ;;  %1063 = vmatprep.subr.bf16.mxu1 %v1552_v58  ;;  %v1649_v56 = vld [vmem:[%s1747_s24 + $0x38c] ss:$16 sps:$4 sm:$0xff]   ;;  %v1644_v57 = vld [vmem:[%s1747_s24 + $0x188] ss:$16 sps:$4 sm:$0xff]  }
  0x4d   : > { %v1647_v58 = vld [vmem:[%s1747_s24 + $0x388] ss:$16 sps:$4 sm:$0xff]  }
  0x4f   : > { %1023 = vmatpush1.bf16.msra.mxu0 %v1554_v59  ;;  %1064 = vmatpush1.bf16.msra.mxu1 %v1555_v60  ;;  %v1652_v59 = vld [vmem:[%s1747_s24 + $0x1ac] ss:$16 sps:$4 sm:$0xff]  }
  0x50   : > { %1024 = vmatprep.subr.bf16.mxu0 %v1556_v61  ;;  %1065 = vmatprep.subr.bf16.mxu1 %v1558_v62  ;;  %v1655_v60 = vld [vmem:[%s1747_s24 + $0x3ac] ss:$16 sps:$4 sm:$0xff]   ;;  %v1650_v61 = vld [vmem:[%s1747_s24 + $0x1a8] ss:$16 sps:$4 sm:$0xff]  }
  0x51   : > { %v1653_v62 = vld [vmem:[%s1747_s24 + $0x3a8] ss:$16 sps:$4 sm:$0xff]  }
  0x53   : > { %1025 = vmatpush1.bf16.msra.mxu0 %v1560_v63  ;;  %1066 = vmatpush1.bf16.msra.mxu1 %v1561_v0  ;;  %v1658_v63 = vld [vmem:[%s1747_s24 + $0x1cc] ss:$16 sps:$4 sm:$0xff]  }
  0x54   : > { %1026 = vmatprep.subr.bf16.mxu0 %v1562_v5  ;;  %1067 = vmatprep.subr.bf16.mxu1 %v1564_v6  ;;  %v1661_v0 = vld [vmem:[%s1747_s24 + $0x3cc] ss:$16 sps:$4 sm:$0xff]   ;;  %v1656_v5 = vld [vmem:[%s1747_s24 + $0x1c8] ss:$16 sps:$4 sm:$0xff]  }
  0x55   : > { %v1659_v6 = vld [vmem:[%s1747_s24 + $0x3c8] ss:$16 sps:$4 sm:$0xff]  }
  0x57   : > { %1027 = vmatpush1.bf16.msra.mxu0 %v1566_v7  ;;  %1068 = vmatpush1.bf16.msra.mxu1 %v1567_v8  ;;  %v1664_v7 = vld [vmem:[%s1747_s24 + $0x1ec] ss:$16 sps:$4 sm:$0xff]  }
  0x58   : > { %1078 = vmatprep.subr.bf16.mxu0 %v1574_v9  ;;  %1119 = vmatprep.subr.bf16.mxu1 %v1577_v10  ;;  %v1667_v8 = vld [vmem:[%s1747_s24 + $0x3ec] ss:$16 sps:$4 sm:$0xff]   ;;  %v1662_v9 = vld [vmem:[%s1747_s24 + $0x1e8] ss:$16 sps:$4 sm:$0xff]  }
  0x59   : > { %v1665_v10 = vld [vmem:[%s1747_s24 + $0x3e8] ss:$16 sps:$4 sm:$0xff]  }
  0x5a   : > { %1029 = vmatmul.mubr.bf16.vlgmr.msra.gmra.mrb[0].mxu0 %v1827_v11  ;;  %1070 = vmatmul.mubr.bf16.vlgmr.msra.gmra.mrb[0].mxu1 %v1831_v12 }
  0x5b   : > { %1079 = vmatpush1.bf16.msra.mxu0 %v1572_v13  ;;  %1120 = vmatpush1.bf16.msra.mxu1 %v1575_v14  ;;  %v205_v14 = vld [vmem:[#allocation2] sm:$0xff] }
  0x5c   : > { %1080 = vmatprep.subr.bf16.mxu0 %v1580_v15  ;;  %1121 = vmatprep.subr.bf16.mxu1 %v1583_v16 }
  0x5d   : > { %1110 = vmatprep.mubr.bf16.mxu0 %v1751_v3  ;;  %1151 = vmatprep.mubr.bf16.mxu1 %v1755_v4  ;;  %v1598_v3 = vld [vmem:[%s1747_s24 + $0x8c] ss:$16 sps:$4 sm:$0xff]  }
  0x5e   : > { %v1601_v4 = vld [vmem:[%s1747_s24 + $0x28c] ss:$16 sps:$4 sm:$0xff]  }
  0x5f   : > { %1081 = vmatpush1.bf16.msra.mxu0 %v1578_v1  ;;  %1122 = vmatpush1.bf16.msra.mxu1 %v1581_v17  ;;  %v206_v17 = vld [vmem:[#allocation2 + $0x8] sm:$0xff] }
  0x60   : > { %1082 = vmatprep.subr.bf16.mxu0 %v1586_v2  ;;  %1123 = vmatprep.subr.bf16.mxu1 %v1589_v18 }
  0x63   : > { %1083 = vmatpush1.bf16.msra.mxu0 %v1584_v19  ;;  %1124 = vmatpush1.bf16.msra.mxu1 %v1587_v20 }
  0x64   : > { %1084 = vmatprep.subr.bf16.mxu0 %v1592_v21  ;;  %1125 = vmatprep.subr.bf16.mxu1 %v1595_v22 }
  0x67   : > { %1085 = vmatpush1.bf16.msra.mxu0 %v1590_v23  ;;  %1126 = vmatpush1.bf16.msra.mxu1 %v1593_v24 }
  0x68   : > { %1086 = vmatprep.subr.bf16.mxu0 %v1598_v3  ;;  %1127 = vmatprep.subr.bf16.mxu1 %v1601_v4 }
  0x6b   : > { %1087 = vmatpush1.bf16.msra.mxu0 %v1596_v25  ;;  %1128 = vmatpush1.bf16.msra.mxu1 %v1599_v26  ;;  %v208_v26 = vld [vmem:[#allocation2 + $0x18] sm:$0xff] }
  0x6c   : > { %1088 = vmatprep.subr.bf16.mxu0 %v1604_v27  ;;  %1129 = vmatprep.subr.bf16.mxu1 %v1607_v28 }
  0x6f   : > { %1089 = vmatpush1.bf16.msra.mxu0 %v1602_v29  ;;  %1130 = vmatpush1.bf16.msra.mxu1 %v1605_v30 }
  0x70   : > { %1090 = vmatprep.subr.bf16.mxu0 %v1610_v31  ;;  %1131 = vmatprep.subr.bf16.mxu1 %v1613_v32 }
  0x73   : > { %1091 = vmatpush1.bf16.msra.mxu0 %v1608_v33  ;;  %1132 = vmatpush1.bf16.msra.mxu1 %v1611_v34 }
  0x74   : > { %1092 = vmatprep.subr.bf16.mxu0 %v1616_v35  ;;  %1133 = vmatprep.subr.bf16.mxu1 %v1619_v36  ;;  %v1178_v35 = vlaneseq (!%p1437_p6) }
  0x76   : > { %v1179_v36 = vshrl.u32 (!%p1437_p6), %v1178_v35, 7 }
  0x77   : > { %1093 = vmatpush1.bf16.msra.mxu0 %v1614_v37  ;;  %1134 = vmatpush1.bf16.msra.mxu1 %v1617_v38  ;;  %v1176_v37 = vld [vmem:[%s1922_s2] sm:$0xf] (!%p1437_p6) }
  0x78   : > { %1094 = vmatprep.subr.bf16.mxu0 %v1622_v39  ;;  %1135 = vmatprep.subr.bf16.mxu1 %v1625_v40  ;;  %v1180_v39 = vsub.s32 (!%p1437_p6), 0, %v1179_v36  ;;  %v1184_v40 = vsub.s32 (!%p1437_p6), 1, %v1179_v36 }
  0x7b   : > { %1095 = vmatpush1.bf16.msra.mxu0 %v1620_v41  ;;  %1136 = vmatpush1.bf16.msra.mxu1 %v1623_v42  ;;  %v1188_v41 = vsub.s32 (!%p1437_p6), 2, %v1179_v36  ;;  %v1192_v42 = vsub.s32 (!%p1437_p6), 3, %v1179_v36 }
  0x7c   : > { %1096 = vmatprep.subr.bf16.mxu0 %v1628_v43  ;;  %1137 = vmatprep.subr.bf16.mxu1 %v1631_v44 }
  0x7f   : > { %1097 = vmatpush1.bf16.msra.mxu0 %v1626_v45  ;;  %1138 = vmatpush1.bf16.msra.mxu1 %v1629_v46  ;;  %v1181_v46 = vrot.slane (!%p1437_p6), %v1176_v37, %v1180_v39 }
  0x80   : > { %1098 = vmatprep.subr.bf16.mxu0 %v1634_v47  ;;  %1139 = vmatprep.subr.bf16.mxu1 %v1637_v48  ;;  %v1185_v47 = vrot.slane (!%p1437_p6), %v1176_v37, %v1184_v40  ;;  %v1189_v48 = vrot.slane (!%p1437_p6), %v1176_v37, %v1188_v41 }
  0x83   : > { %1099 = vmatpush1.bf16.msra.mxu0 %v1632_v49  ;;  %1140 = vmatpush1.bf16.msra.mxu1 %v1635_v50  ;;  %v1193_v49 = vrot.slane (!%p1437_p6), %v1176_v37, %v1192_v42 }
  0x84   : > { %1100 = vmatprep.subr.bf16.mxu0 %v1640_v51  ;;  %1141 = vmatprep.subr.bf16.mxu1 %v1643_v52 }
  0x87   : > { %1101 = vmatpush1.bf16.msra.mxu0 %v1638_v53  ;;  %1142 = vmatpush1.bf16.msra.mxu1 %v1641_v54 }
  0x88   : > { %1102 = vmatprep.subr.bf16.mxu0 %v1646_v55  ;;  %1143 = vmatprep.subr.bf16.mxu1 %v1649_v56 }
  0x8b   : > { %1103 = vmatpush1.bf16.msra.mxu0 %v1644_v57  ;;  %1144 = vmatpush1.bf16.msra.mxu1 %v1647_v58 }
  0x8c   : > { %1104 = vmatprep.subr.bf16.mxu0 %v1652_v59  ;;  %1145 = vmatprep.subr.bf16.mxu1 %v1655_v60 }
  0x8f   : > { %1105 = vmatpush1.bf16.msra.mxu0 %v1650_v61  ;;  %1146 = vmatpush1.bf16.msra.mxu1 %v1653_v62 }
  0x90   : > { %1106 = vmatprep.subr.bf16.mxu0 %v1658_v63  ;;  %1147 = vmatprep.subr.bf16.mxu1 %v1661_v0 }
  0x93   : > { %1107 = vmatpush1.bf16.msra.mxu0 %v1656_v5  ;;  %1148 = vmatpush1.bf16.msra.mxu1 %v1659_v6 }
  0x94   : > { %1108 = vmatprep.subr.bf16.mxu0 %v1664_v7  ;;  %1149 = vmatprep.subr.bf16.mxu1 %v1667_v8 }
  0x97   : > { %1109 = vmatpush1.bf16.msra.mxu0 %v1662_v9  ;;  %1150 = vmatpush1.bf16.msra.mxu1 %v1665_v10 }
  0x9a   : > { %1111 = vmatmul.mubr.bf16.vlgmr.msra.gmra.mrb[4].mxu0 %v1827_v11  ;;  %1152 = vmatmul.mubr.bf16.vlgmr.msra.gmra.mrb[4].mxu1 %v1831_v12  ;;  %v207_v11 = vld [vmem:[#allocation2 + $0x10] sm:$0xff] }
 0x12d   : > { %v1030_v13 = vpop.f32.mrb[0].mxu0  ;;  %v1071_v15 = vpop.f32.mrb[0].mxu1 }
 0x12e   : > { %v1072_v16 = vadd.f32 %v1071_v15, %v1030_v13  ;;  %v1032_v1 = vpop.f32.mrb[1].mxu0  ;;  %v1073_v2 = vpop.f32.mrb[1].mxu1 }
 0x12f   : > { %v1074_v18 = vadd.f32 %v1073_v2, %v1032_v1  ;;  %v1034_v19 = vpop.f32.mrb[2].mxu0  ;;  %v1075_v20 = vpop.f32.mrb[2].mxu1 }
 0x130   : > { %v1160_v21 = vadd.f32 %v1072_v16, %v205_v14  ;;  %v1035_v22 = vpop.f32.mrb[3].mxu0  ;;  %v1076_v23 = vpop.f32.mrb[3].mxu1 }
 0x131   : > { %v1161_v24 = vadd.f32 %v1074_v18, %v206_v17 }
 0x132   : > { %1164 = vst [vmem:[#allocation2] sm:$0xff] %v1160_v21 }
 0x133   : > { %1165 = vst [vmem:[#allocation2 + $0x8] sm:$0xff] %v1161_v24 }
 0x139   : > { %v1172_v38 = vld [vmem:[#allocation2] sm:$0xff] (!%p1437_p6) }
 0x13a   : > { %v1173_v43 = vld [vmem:[#allocation2 + $0x8] sm:$0xff] (!%p1437_p6)  ;;  %v1198_v50 = vadd.f32 (!%p1437_p6), %v1181_v46, %v1172_v38 }
 0x13b   : > { %v1199_v51 = vadd.f32 (!%p1437_p6), %v1185_v47, %v1173_v43 }
 0x13c   : > { %v1202_v54 = vmax.f32 (!%p1437_p6), %v1198_v50, 0.0 }
 0x13d   : > { %v1203_v55 = vmax.f32 (!%p1437_p6), %v1199_v51, 0.0 }
 0x13f   : > { %v1445_v58 = vpack.c.bf16 (!%p1437_p6), %v1203_v55, %v1202_v54 }
 0x141   : > { %1222 = vst [vmem:[%s1923_s3] sm:$0xff] (!%p1437_p6), %v1445_v58 }
 0x16d   : > { %v1112_v3 = vpop.f32.mrb[4].mxu0  ;;  %v1153_v4 = vpop.f32.mrb[4].mxu1  ;;  %1171 = sbr.rel (%p1437_p6) target bundleno = 386 (0x182), region = 40 }
 0x16e   : > { %v1154_v12 = vadd.f32 %v1153_v4, %v1112_v3  ;;  %v1114_v25 = vpop.f32.mrb[5].mxu0  ;;  %v1155_v27 = vpop.f32.mrb[5].mxu1 }
 0x16f   : > { %v1156_v28 = vadd.f32 %v1155_v27, %v1114_v25  ;;  %v1116_v29 = vpop.f32.mrb[6].mxu0  ;;  %v1157_v30 = vpop.f32.mrb[6].mxu1 }
 0x170   : > { %v1162_v31 = vadd.f32 %v1154_v12, %v207_v11  ;;  %v1117_v32 = vpop.f32.mrb[7].mxu0  ;;  %v1158_v33 = vpop.f32.mrb[7].mxu1 }
 0x171   : > { %v1163_v34 = vadd.f32 %v1156_v28, %v208_v26 }
 0x172   : > { %1166 = vst [vmem:[#allocation2 + $0x10] sm:$0xff] %v1162_v31 }
 0x173   : > { %1167 = vst [vmem:[#allocation2 + $0x18] sm:$0xff] %v1163_v34 }
 0x179   : > { %v1174_v44 = vld [vmem:[#allocation2 + $0x10] sm:$0xff] }
 0x17a   : > { %v1175_v45 = vld [vmem:[#allocation2 + $0x18] sm:$0xff]  ;;  %v1200_v52 = vadd.f32 %v1189_v48, %v1174_v44 }
 0x17b   : > { %v1201_v53 = vadd.f32 %v1193_v49, %v1175_v45 }
 0x17c   : > { %v1204_v56 = vmax.f32 %v1200_v52, 0.0 }
 0x17d   : > { %v1205_v57 = vmax.f32 %v1201_v53, 0.0 }
 0x17f   : > { %v1446_v59 = vpack.c.bf16 %v1205_v57, %v1204_v56 }
 0x181   : > { %1223 = vst [vmem:[%s1923_s3 + $0x8] sm:$0xff] %v1446_v59 }
 0x182 PF: > { %s13_s14 = sadd.s32 1, %s1690_s14   ;;  %s1924_s12 = smov %s1686_s13 }
 0x183   : > { %p10_p7 = scmp.ge.s32.totalorder %s13_s14, 11   ;;  %s1925_s13 = smov %s1927_s15 }
 0x185   :  { %12 = sbr.rel (!%p10_p7) target bundleno = 2 (0x2), region = 71 }

// kernel: resnet18_forward.44
= control target key start
LH: loop header
LB: loop body
LE: loop exit
PB: predicated region body
PF: predicated region fallthrough
CT: control target
= control target key end

     0   :  { %v40_v0 = vlaneseq  ;;  %vm168_vm0 = vcmask 1041409   ;;  %vm170_vm1 = vcmask 1042434   ;;  %vm172_vm2 = vcmask 1043459   ;;  %s344_s0 = inlined_call_operand.vmem [shape: bf16[8,1,512], index: 0, kind: input, shape index: {}]   ;;  %s345_s1 = inlined_call_operand.vmem [shape: f32[8,512], index: 1, kind: output, shape index: {}]  }
   0x1   :  { %v216_v1 = vld [vmem:[%s344_s0] sm:$0xff]   ;;  %v231_v2 = vld [vmem:[%s344_s0 + $0x8] sm:$0xff]   ;;  %v232_v3 = vld [vmem:[%s344_s0 + $0x10] sm:$0xff]   ;;  %vm174_vm3 = vcmask 1044484   ;;  %vm176_vm4 = vcmask 1045509   ;;  %vm178_vm5 = vcmask 1046534  }
   0x2   :  { %v233_v4 = vld [vmem:[%s344_s0 + $0x18] sm:$0xff]   ;;  %v256_v5 = vunpack.c.l.bf16 %v216_v1  ;;  %v258_v6 = vunpack.c.h.bf16 %v216_v1  ;;  %v260_v7 = vunpack.c.l.bf16 %v231_v2  ;;  %v262_v8 = vunpack.c.h.bf16 %v231_v2 }
   0x3   :  { %v41_v9 = vshrl.u32 %v40_v0, 7  ;;  %v264_v10 = vunpack.c.l.bf16 %v232_v3  ;;  %v266_v11 = vunpack.c.h.bf16 %v232_v3  ;;  %v268_v12 = vunpack.c.l.bf16 %v233_v4 }
   0x4   :  { %v270_v15 = vunpack.c.h.bf16 %v233_v4  ;;  %vm180_vm6 = vcmask 1047559  }
   0x5   :  { %v42_v13 = vsub.s32 0, %v41_v9  ;;  %v46_v14 = vsub.s32 2, %v41_v9  ;;  %v50_v16 = vsub.s32 4, %v41_v9  ;;  %v54_v24 = vsub.s32 6, %v41_v9 }
   0x7   :  { %v43_v17 = vrot.slane %v256_v5, %v42_v13  ;;  %v59_v18 = vrot.slane %v258_v6, %v42_v13  ;;  %v75_v19 = vrot.slane %v260_v7, %v42_v13  ;;  %v91_v20 = vrot.slane %v262_v8, %v42_v13 }
   0x8   :  { %v107_v21 = vrot.slane %v264_v10, %v42_v13  ;;  %v123_v22 = vrot.slane %v266_v11, %v42_v13  ;;  %v139_v23 = vrot.slane %v268_v12, %v42_v13  ;;  %v47_v26 = vrot.slane %v256_v5, %v46_v14 }
   0x9   :  { %v169_v25 = vsel %vm168_vm0, %v59_v18, %v43_v17  ;;  %v63_v27 = vrot.slane %v258_v6, %v46_v14  ;;  %v79_v28 = vrot.slane %v260_v7, %v46_v14  ;;  %v155_v29 = vrot.slane %v270_v15, %v42_v13 }
   0xa   :  { %v171_v30 = vsel %vm170_vm1, %v75_v19, %v169_v25  ;;  %v95_v31 = vrot.slane %v262_v8, %v46_v14  ;;  %v111_v32 = vrot.slane %v264_v10, %v46_v14  ;;  %v127_v34 = vrot.slane %v266_v11, %v46_v14 }
   0xb   :  { %v173_v33 = vsel %vm172_vm2, %v91_v20, %v171_v30  ;;  %v143_v35 = vrot.slane %v268_v12, %v46_v14  ;;  %v182_v36 = vsel %vm168_vm0, %v63_v27, %v47_v26  ;;  %v51_v39 = vrot.slane %v256_v5, %v50_v16 }
   0xc   :  { %v175_v37 = vsel %vm174_vm3, %v107_v21, %v173_v33  ;;  %v183_v38 = vsel %vm170_vm1, %v79_v28, %v182_v36  ;;  %v67_v40 = vrot.slane %v258_v6, %v50_v16  ;;  %v159_v42 = vrot.slane %v270_v15, %v46_v14 }
   0xd   :  { %v177_v41 = vsel %vm176_vm4, %v123_v22, %v175_v37  ;;  %v184_v43 = vsel %vm172_vm2, %v95_v31, %v183_v38  ;;  %v83_v44 = vrot.slane %v260_v7, %v50_v16  ;;  %v99_v47 = vrot.slane %v262_v8, %v50_v16 }
   0xe   :  { %v179_v45 = vsel %vm178_vm5, %v139_v23, %v177_v41  ;;  %v185_v46 = vsel %vm174_vm3, %v111_v32, %v184_v43  ;;  %v115_v48 = vrot.slane %v264_v10, %v50_v16  ;;  %v131_v51 = vrot.slane %v266_v11, %v50_v16 }
   0xf   :  { %v181_v49 = vsel %vm180_vm6, %v155_v29, %v179_v45  ;;  %v186_v50 = vsel %vm176_vm4, %v127_v34, %v185_v46  ;;  %v147_v52 = vrot.slane %v268_v12, %v50_v16  ;;  %v189_v54 = vsel %vm168_vm0, %v67_v40, %v51_v39 }
  0x10   :  { %207 = vst [vmem:[%s345_s1] sm:$0xff] %v181_v49  ;;  %v187_v53 = vsel %vm178_vm5, %v143_v35, %v186_v50  ;;  %v55_v55 = vrot.slane %v256_v5, %v54_v24  ;;  %v71_v56 = vrot.slane %v258_v6, %v54_v24  ;;  %v190_v58 = vsel %vm170_vm1, %v83_v44, %v189_v54 }
  0x11   :  { %v188_v57 = vsel %vm180_vm6, %v159_v42, %v187_v53  ;;  %v87_v59 = vrot.slane %v260_v7, %v54_v24  ;;  %v103_v60 = vrot.slane %v262_v8, %v54_v24  ;;  %v163_v61 = vrot.slane %v270_v15, %v50_v16 }
  0x12   :  { %208 = vst [vmem:[%s345_s1 + $0x8] sm:$0xff] %v188_v57  ;;  %v191_v62 = vsel %vm172_vm2, %v99_v47, %v190_v58  ;;  %v119_v63 = vrot.slane %v264_v10, %v54_v24  ;;  %v135_v1 = vrot.slane %v266_v11, %v54_v24  ;;  %v196_v2 = vsel %vm168_vm0, %v71_v56, %v55_v55 }
  0x13   :  { %v192_v0 = vsel %vm174_vm3, %v115_v48, %v191_v62  ;;  %v151_v4 = vrot.slane %v268_v12, %v54_v24  ;;  %v197_v5 = vsel %vm170_vm1, %v87_v59, %v196_v2  ;;  %v167_v7 = vrot.slane %v270_v15, %v54_v24 }
  0x14   :  { %v193_v3 = vsel %vm176_vm4, %v131_v51, %v192_v0  ;;  %v198_v8 = vsel %vm172_vm2, %v103_v60, %v197_v5 }
  0x15   :  { %v194_v6 = vsel %vm178_vm5, %v147_v52, %v193_v3  ;;  %v199_v10 = vsel %vm174_vm3, %v119_v63, %v198_v8 }
  0x16   :  { %v195_v9 = vsel %vm180_vm6, %v163_v61, %v194_v6  ;;  %v200_v11 = vsel %vm176_vm4, %v135_v1, %v199_v10 }
  0x17   :  { %209 = vst [vmem:[%s345_s1 + $0x10] sm:$0xff] %v195_v9  ;;  %v201_v12 = vsel %vm178_vm5, %v151_v4, %v200_v11 }
  0x18   :  { %v202_v13 = vsel %vm180_vm6, %v167_v7, %v201_v12 }
  0x19   :  { %210 = vst [vmem:[%s345_s1 + $0x18] sm:$0xff] %v202_v13 }

// kernel: resnet18_forward.45
= control target key start
LH: loop header
LB: loop body
LE: loop exit
PB: predicated region body
PF: predicated region fallthrough
CT: control target
= control target key end

     0   :  { %s640_s1 = inlined_call_operand.vmem [shape: bf16[1,512,128], index: 1, kind: input, shape index: {}]   ;;  %s641_s0 = inlined_call_operand.vmem [shape: bf16[1,8,512], index: 0, kind: input, shape index: {}]   ;;  %s642_s2 = inlined_call_operand.vmem [shape: f32[1,128], index: 2, kind: input, shape index: {}]   ;;  %s643_s3 = inlined_call_operand.vmem [shape: f32[8,128], index: 3, kind: output, shape index: {}]  }
   0x1   :  { %v476_v0 = vld [vmem:[%s640_s1 + $0x40] sm:$0xff]   ;;  %v480_v4 = vld [vmem:[%s640_s1 + $0x48] sm:$0xff]   ;;  %v484_v8 = vld [vmem:[%s640_s1 + $0x50] sm:$0xff]  }
   0x2   :  { %v477_v1 = vld [vmem:[%s640_s1 + $0xc0] sm:$0xff]   ;;  %432 = vmatprep.subr.bf16.mxu0 %v476_v0  ;;  %v481_v5 = vld [vmem:[%s640_s1 + $0xc8] sm:$0xff]   ;;  %v485_v9 = vld [vmem:[%s640_s1 + $0xd0] sm:$0xff]  }
   0x3   :  { %v478_v2 = vld [vmem:[%s640_s1] sm:$0xff]   ;;  %454 = vmatprep.subr.bf16.mxu1 %v477_v1  ;;  %v482_v6 = vld [vmem:[%s640_s1 + $0x8] sm:$0xff]   ;;  %v486_v10 = vld [vmem:[%s640_s1 + $0x10] sm:$0xff]  }
   0x4   :  { %v479_v3 = vld [vmem:[%s640_s1 + $0x80] sm:$0xff]   ;;  %433 = vmatpush3.bf16.msra.mxu0 %v478_v2  ;;  %v483_v7 = vld [vmem:[%s640_s1 + $0x88] sm:$0xff]   ;;  %v487_v11 = vld [vmem:[%s640_s1 + $0x90] sm:$0xff]  }
   0x5   :  { %455 = vmatpush3.bf16.msra.mxu1 %v479_v3  ;;  %434 = vmatprep.subr.bf16.mxu0 %v480_v4  ;;  %v488_v12 = vld [vmem:[%s640_s1 + $0x58] sm:$0xff]   ;;  %v492_v16 = vld [vmem:[%s640_s1 + $0x60] sm:$0xff]   ;;  %v496_v20 = vld [vmem:[%s640_s1 + $0x68] sm:$0xff]  }
   0x6   :  { %456 = vmatprep.subr.bf16.mxu1 %v481_v5  ;;  %v489_v13 = vld [vmem:[%s640_s1 + $0xd8] sm:$0xff]   ;;  %v493_v17 = vld [vmem:[%s640_s1 + $0xe0] sm:$0xff]   ;;  %v497_v21 = vld [vmem:[%s640_s1 + $0xe8] sm:$0xff]  }
   0x7   :  { %v490_v14 = vld [vmem:[%s640_s1 + $0x18] sm:$0xff]   ;;  %v494_v18 = vld [vmem:[%s640_s1 + $0x20] sm:$0xff]   ;;  %v498_v22 = vld [vmem:[%s640_s1 + $0x28] sm:$0xff]  }
   0x8   :  { %435 = vmatpush3.bf16.msra.mxu0 %v482_v6  ;;  %v491_v15 = vld [vmem:[%s640_s1 + $0x98] sm:$0xff]   ;;  %v495_v19 = vld [vmem:[%s640_s1 + $0xa0] sm:$0xff]   ;;  %v499_v23 = vld [vmem:[%s640_s1 + $0xa8] sm:$0xff]  }
   0x9   :  { %457 = vmatpush3.bf16.msra.mxu1 %v483_v7  ;;  %436 = vmatprep.subr.bf16.mxu0 %v484_v8  ;;  %v500_v24 = vld [vmem:[%s640_s1 + $0x70] sm:$0xff]   ;;  %v504_v28 = vld [vmem:[%s640_s1 + $0x78] sm:$0xff]   ;;  %v21_v32 = vld [vmem:[%s641_s0] sm:$0xff] }
   0xa   :  { %458 = vmatprep.subr.bf16.mxu1 %v485_v9  ;;  %v501_v25 = vld [vmem:[%s640_s1 + $0xf0] sm:$0xff]   ;;  %v505_v29 = vld [vmem:[%s640_s1 + $0xf8] sm:$0xff]   ;;  %v22_v33 = vld [vmem:[%s641_s0 + $0x8] sm:$0xff]  ;;  %v395_v34 = vcombine.low %v21_v32, %v21_v32  ;;  %v396_v35 = vcombine.high %v21_v32, %v21_v32 }
   0xb   :  { %v502_v26 = vld [vmem:[%s640_s1 + $0x30] sm:$0xff]   ;;  %v506_v30 = vld [vmem:[%s640_s1 + $0x38] sm:$0xff]   ;;  %v397_v36 = vcombine.low %v22_v33, %v22_v33  ;;  %v398_v37 = vcombine.high %v22_v33, %v22_v33  ;;  %v431_v46 = vld [vmem:[%s642_s2] ss:$0 sm:$0xff] }
   0xc   :  { %437 = vmatpush3.bf16.msra.mxu0 %v486_v10  ;;  %v503_v27 = vld [vmem:[%s640_s1 + $0xb0] sm:$0xff]   ;;  %v507_v31 = vld [vmem:[%s640_s1 + $0xb8] sm:$0xff]   ;;  %328 = vmatprep.mubr.bf16.mxu0 %v396_v35 }
   0xd   :  { %459 = vmatpush3.bf16.msra.mxu1 %v487_v11  ;;  %438 = vmatprep.subr.bf16.mxu0 %v488_v12 }
   0xe   :  { %460 = vmatprep.subr.bf16.mxu1 %v489_v13  ;;  %368 = vmatprep.mubr.bf16.mxu1 %v398_v37 }
  0x10   :  { %439 = vmatpush3.bf16.msra.mxu0 %v490_v14 }
  0x11   :  { %461 = vmatpush3.bf16.msra.mxu1 %v491_v15  ;;  %440 = vmatprep.subr.bf16.mxu0 %v492_v16 }
  0x12   :  { %462 = vmatprep.subr.bf16.mxu1 %v493_v17 }
  0x14   :  { %441 = vmatpush3.bf16.msra.mxu0 %v494_v18 }
  0x15   :  { %463 = vmatpush3.bf16.msra.mxu1 %v495_v19  ;;  %442 = vmatprep.subr.bf16.mxu0 %v496_v20 }
  0x16   :  { %464 = vmatprep.subr.bf16.mxu1 %v497_v21 }
  0x18   :  { %443 = vmatpush3.bf16.msra.mxu0 %v498_v22 }
  0x19   :  { %465 = vmatpush3.bf16.msra.mxu1 %v499_v23  ;;  %444 = vmatprep.subr.bf16.mxu0 %v500_v24 }
  0x1a   :  { %466 = vmatprep.subr.bf16.mxu1 %v501_v25 }
  0x1c   :  { %445 = vmatpush3.bf16.msra.mxu0 %v502_v26 }
  0x1d   :  { %467 = vmatpush3.bf16.msra.mxu1 %v503_v27  ;;  %446 = vmatprep.subr.bf16.mxu0 %v504_v28 }
  0x1e   :  { %468 = vmatprep.subr.bf16.mxu1 %v505_v29 }
  0x20   :  { %447 = vmatpush3.bf16.msra.mxu0 %v506_v30 }
  0x21   :  { %469 = vmatpush3.bf16.msra.mxu1 %v507_v31 }
  0x23   :  { %329 = vmatmul.mubr.bf16.vlgmr.msra.gmra.mrb[0].mxu0 %v395_v34 }
  0x24   :  { %369 = vmatmul.mubr.bf16.vlgmr.msra.gmra.mrb[0].mxu1 %v397_v36 }
  0xf6   :  { %v448_v38 = vpop.f32.mrb[0].mxu0 }
  0xf7   :  { %v470_v39 = vpop.f32.mrb[0].mxu1  ;;  %v449_v40 = vpop.f32.mrb[1].mxu0 }
  0xf8   :  { %v471_v41 = vpop.f32.mrb[1].mxu1  ;;  %v450_v42 = vadd.f32 %v449_v40, %v448_v38  ;;  %v451_v44 = vpop.f32.mrb[2].mxu0 }
  0xf9   :  { %v472_v43 = vadd.f32 %v471_v41, %v470_v39  ;;  %v473_v45 = vpop.f32.mrb[2].mxu1  ;;  %v452_v47 = vpop.f32.mrb[3].mxu0 }
  0xfa   :  { %v474_v48 = vpop.f32.mrb[3].mxu1 }
  0xfb   :  { %v371_v49 = vadd.f32 %v472_v43, %v450_v42 }
  0xfd   :  { %v389_v50 = vadd.f32 %v431_v46, %v371_v49 }
  0xff   :  { %390 = vst [vmem:[%s643_s3] sm:$0xff] %v389_v50 }

</bundles_post_ra>
